<compile_context>
chip_gen: v6e
topology: v6e:2x2x1
jax: 0.10.0
libtpu: 0.0.40
codegen_flags: <defaults>
</compile_context>

<pallas_src>
import functools

import jax
import jax.numpy as jnp
from jax import lax
from jax.experimental import pallas as pl
from jax.experimental.pallas import tpu as pltpu

# ----------------------------- model dims -----------------------------------
N_BATCH = 256     # batch size
D_EMB = 32        # embedding dim of x
N_DIGITS = 8      # number of code digits
N_ARY = 16        # arity of each digit
TAU = 0.5         # discretizer temperature
MASKED_VALUE = 0  # code value masked before decoding (must be 0)


# ------------------------------- kernel --------------------------------------
def _mae_kernel(x_ref, w_enc_ref, b_enc_ref, s_ref, w_dec_ref, b_dec_ref,
                latent_ref, prob_ref, xdash_ref, *, inv_tau):
    """Forward pass for one batch tile of TILE_N rows.

    x_ref     : (TN, D)   input embeddings
    w_enc_ref : (D, GA)   encoder weight            (VMEM-resident)
    b_enc_ref : (1, GA)   encoder bias
    s_ref     : (GA, GA)  block-diagonal ones (same-digit indicator)
    w_dec_ref : (GA, D)   decoder weight with mask folded in
    b_dec_ref : (1, D)    decoder bias
    latent_ref: (TN, GA)  discretized latent code (flattened)
    prob_ref  : (TN, GA)  encoder code probabilities (flattened)
    xdash_ref : (TN, D)   length-normalized reconstruction
    """
    x = x_ref[...]                                             # (TN, D)

    # ---- encoder: one full-width linear --------------------------------------
    logits = jnp.dot(x, w_enc_ref[...],
                     preferred_element_type=jnp.float32) + b_enc_ref[...]  # (TN, GA)

    # Softmax is shift-invariant per row, so one 128-lane row max serves every
    # 16-lane digit group and keeps all heavy work full-width / lane-dense.
    row_max = jnp.max(logits, axis=-1, keepdims=True)          # (TN, 1)
    shifted = logits - row_max

    # One full-width EUP exp pass; discretizer numerator is specialized for
    # integer 1/tau (tau=0.5 -> e_q = e_p^2, a single VPU multiply).
    e_p = jnp.exp(shifted)                                     # (TN, GA)
    inv_tau_int = int(round(inv_tau))
    if abs(inv_tau - inv_tau_int) < 1e-12 and 1 <= inv_tau_int <= 4:
        e_q = e_p
        for _ in range(inv_tau_int - 1):                       # static unroll
            e_q = e_q * e_p
    else:
        e_q = jnp.exp(shifted * inv_tau)                       # fallback

    # Per-digit denominators, already splatted to full lane width, via one
    # block-diagonal ones matmul each.  MXU is otherwise idle here; HIGHEST
    # precision keeps the 16-term sums at f32 accuracy.
    den_p = jnp.dot(e_p, s_ref[...], preferred_element_type=jnp.float32,
                    precision=lax.Precision.HIGHEST)           # (TN, GA)
    den_q = jnp.dot(e_q, s_ref[...], preferred_element_type=jnp.float32,
                    precision=lax.Precision.HIGHEST)           # (TN, GA)

    def _recip(d):
        # EUP approximate reciprocal + 2 Newton-Raphson steps (VPU) -> ~f32.
        r = pl.reciprocal(d, approx=True)
        r = r * (2.0 - d * r)
        r = r * (2.0 - d * r)
        return r

    p = e_p * _recip(den_p)                                    # code_prob
    q = e_q * _recip(den_q)                                    # latent_code

    # Single lane-dense 128-wide stores per output.
    prob_ref[...] = p
    latent_ref[...] = q

    # ---- decoder: mask already folded into the weight, one K=GA matmul -------
    x_dash = jnp.dot(q, w_dec_ref[...],
                     preferred_element_type=jnp.float32) + b_dec_ref[...]   # (TN, D)

    # ---- output length normalization ------------------------------------------
    x_norm = jnp.sqrt(jnp.sum(x * x, axis=-1, keepdims=True))
    xd_norm = jnp.sqrt(jnp.sum(x_dash * x_dash, axis=-1, keepdims=True))
    # compact (TN, 1) reciprocal; exact divide is cheap here and keeps the
    # 1e-4 output tolerance comfortably.
    scale = x_norm * pl.reciprocal(xd_norm + 1e-7, approx=False)
    xdash_ref[...] = x_dash * scale


# --------------------------- tile selection -----------------------------------
def _choose_tile_n(n):
    """Generation-aware batch tile: one big tile on single-TC chips (v5e/v6e),
    >=2 parallel tiles on dual-TC chips (v7x, megacore v4/v5p)."""
    kind = ""
    try:
        devs = jax.devices()
        if devs:
            kind = (getattr(devs[0], "device_kind", "") or "").lower()
    except Exception:
        pass
    dual_tc = any(tag in kind for tag in ("v7", "7x", "v4", "v5p"))
    min_tiles = 2 if dual_tc else 1
    max_rows = 1024                      # keep double-buffered tiles small
    n_tiles = max(min_tiles, -(-n // max_rows))
    while n_tiles <= n:
        if n % n_tiles == 0:
            tile = n // n_tiles
            if tile % 8 == 0 or n_tiles == 1:   # (8,128) sublane rule
                return tile
        n_tiles += 1
    return n                              # fallback: single full-batch tile


# ------------------------------ wrapper ---------------------------------------
def masked_autoencoder_forward(x, w_enc, b_enc, mask, w_dec, b_dec,
                               *, n_digits=N_DIGITS, n_ary=N_ARY, tau=TAU,
                               tile_n=None):
    n, d = x.shape
    ga = n_digits * n_ary
    if tile_n is None:
        tile_n = _choose_tile_n(n)
    assert n % tile_n == 0, "batch must be a multiple of the batch tile"

    # fold the 0/1 mask into the decoder weight (bit-exact) -> no mask input
    mask_flat = mask.reshape(ga, 1).astype(jnp.float32)
    w_dec_masked = (w_dec * mask_flat).astype(w_dec.dtype)

    # block-diagonal ones: S[i, j] = 1 iff lanes i and j belong to same digit
    lane = jnp.arange(ga)
    s_blockdiag = (lane[:, None] // n_ary == lane[None, :] // n_ary
                   ).astype(jnp.float32)                        # (GA, GA)

    kernel = functools.partial(_mae_kernel, inv_tau=1.0 / tau)

    grid = (n // tile_n,)
    batch_spec = lambda cols: pl.BlockSpec((tile_n, cols), lambda i: (i, 0))
    const_spec = lambda shape: pl.BlockSpec(shape, lambda i: (0, 0))

    latent_flat, prob_flat, x_dash = pl.pallas_call(
        kernel,
        out_shape=(
            jax.ShapeDtypeStruct((n, ga), jnp.float32),   # latent_code (flat)
            jax.ShapeDtypeStruct((n, ga), jnp.float32),   # code_prob   (flat)
            jax.ShapeDtypeStruct((n, d), jnp.float32),    # x_dash
        ),
        grid=grid,
        in_specs=[
            batch_spec(d),          # x            (tiled along batch)
            const_spec((d, ga)),    # w_enc        (VMEM-resident)
            const_spec((1, ga)),    # b_enc
            const_spec((ga, ga)),   # block-diagonal ones
            const_spec((ga, d)),    # w_dec (mask folded in)
            const_spec((1, d)),     # b_dec
        ],
        out_specs=(
            batch_spec(ga),         # latent (flat)
            batch_spec(ga),         # prob   (flat)
            batch_spec(d),          # x_dash
        ),
        compiler_params=pltpu.CompilerParams(
            dimension_semantics=("parallel",)),
    )(x, w_enc, b_enc, s_blockdiag, w_dec_masked, b_dec)

    # glue: present the (N, n_digits, n_ary) view expected by the PyTorch API
    latent_code = latent_flat.reshape(n, n_digits, n_ary)
    code_prob = prob_flat.reshape(n, n_digits, n_ary)
    return latent_code, code_prob, x_dash


# --------------------------- pure-JAX reference -------------------------------
def _reference(x, w_enc, b_enc, mask, w_dec, b_dec):
    n, d = x.shape
    logits = (x @ w_enc + b_enc).reshape(n, N_DIGITS, N_ARY)
    code_prob = jax.nn.softmax(logits, axis=-1)
    latent = jax.nn.softmax(jnp.log(code_prob + 1e-12) / TAU, axis=-1)
    masked = latent * mask.reshape(1, N_DIGITS, N_ARY)
    x_dash = masked.reshape(n, N_DIGITS * N_ARY) @ w_dec + b_dec
    x_norm = jnp.linalg.norm(x, axis=-1, keepdims=True)
    xd_norm = jnp.linalg.norm(x_dash, axis=-1, keepdims=True)
    x_dash = x_dash * (x_norm / (xd_norm + 1e-7))
    return latent, code_prob, x_dash


# ---------------------------------- main --------------------------------------
if __name__ == "__main__":
    key = jax.random.PRNGKey(0)
    k_x, k_we, k_be, k_wd, k_bd = jax.random.split(key, 5)

    GA = N_DIGITS * N_ARY

    x = jax.random.normal(k_x, (N_BATCH, D_EMB), jnp.float32)
    w_enc = jax.random.normal(k_we, (D_EMB, GA), jnp.float32) * (1.0 / jnp.sqrt(D_EMB))
    b_enc = jax.random.normal(k_be, (1, GA), jnp.float32) * 0.01
    w_dec = jax.random.normal(k_wd, (GA, D_EMB), jnp.float32) * (1.0 / jnp.sqrt(GA))
    b_dec = jax.random.normal(k_bd, (1, D_EMB), jnp.float32) * 0.01

    # mask tensor: ones with the masked code value (0) zeroed out
    mask = jnp.ones((N_DIGITS, N_ARY), jnp.float32).at[:, MASKED_VALUE].set(0.0)

    latent, prob, x_dash = masked_autoencoder_forward(
        x, w_enc, b_enc, mask, w_dec, b_dec)
    jax.block_until_ready((latent, prob, x_dash))

    # correctness check against the pure-JAX reference
    latent_r, prob_r, x_dash_r = _reference(x, w_enc, b_enc, mask, w_dec, b_dec)
    assert latent.shape == (N_BATCH, N_DIGITS, N_ARY)
    assert prob.shape == (N_BATCH, N_DIGITS, N_ARY)
    assert x_dash.shape == (N_BATCH, D_EMB)
    assert jnp.allclose(prob, prob_r, atol=1e-5)
    assert jnp.allclose(latent, latent_r, atol=1e-5)
    assert jnp.allclose(x_dash, x_dash_r, atol=1e-4)

    print("KERNEL_OK")
</pallas_src>

<mosaic_0001>
module attributes {stable_mosaic.version = 11 : i64} {
  func.func @_mae_kernel(%arg0: i32, %arg1: memref<256x32xf32, #tpu.memory_space<vmem>>, %arg2: memref<32x128xf32, #tpu.memory_space<vmem>>, %arg3: memref<1x128xf32, #tpu.memory_space<vmem>>, %arg4: memref<128x128xf32, #tpu.memory_space<vmem>>, %arg5: memref<128x32xf32, #tpu.memory_space<vmem>>, %arg6: memref<1x32xf32, #tpu.memory_space<vmem>>, %arg7: memref<256x128xf32, #tpu.memory_space<vmem>>, %arg8: memref<256x128xf32, #tpu.memory_space<vmem>>, %arg9: memref<256x32xf32, #tpu.memory_space<vmem>>) attributes {dimension_semantics = [#tpu.dimension_semantics<parallel>], iteration_bounds = array<i64: 1>, scalar_prefetch = 0 : i64, scratch_operands = 0 : i64, tpu.core_type = #tpu.core_type<tc>, window_params = [{transform_indices = @transform_0, window_bounds = array<i64: 256, 32>}, {pipeline_mode = #tpu.pipeline_mode<synchronous>, transform_indices = @transform_1, window_bounds = array<i64: 32, 128>}, {pipeline_mode = #tpu.pipeline_mode<synchronous>, transform_indices = @transform_2, window_bounds = array<i64: 1, 128>}, {pipeline_mode = #tpu.pipeline_mode<synchronous>, transform_indices = @transform_3, window_bounds = array<i64: 128, 128>}, {pipeline_mode = #tpu.pipeline_mode<synchronous>, transform_indices = @transform_4, window_bounds = array<i64: 128, 32>}, {pipeline_mode = #tpu.pipeline_mode<synchronous>, transform_indices = @transform_5, window_bounds = array<i64: 1, 32>}, {transform_indices = @transform_6, window_bounds = array<i64: 256, 128>}, {transform_indices = @transform_7, window_bounds = array<i64: 256, 128>}, {transform_indices = @transform_8, window_bounds = array<i64: 256, 32>}]} {
    %c0 = arith.constant 0 : index
    %c0_0 = arith.constant 0 : index
    %0 = vector.load %arg1[%c0, %c0_0] : memref<256x32xf32, #tpu.memory_space<vmem>>, vector<256x32xf32>
    %c0_1 = arith.constant 0 : index
    %c0_2 = arith.constant 0 : index
    %1 = vector.load %arg2[%c0_1, %c0_2] : memref<32x128xf32, #tpu.memory_space<vmem>>, vector<32x128xf32>
    %cst = arith.constant dense<0.000000e+00> : vector<256x128xf32>
    %2 = tpu.matmul %0, %1, %cst {dimension_numbers = #tpu.dot_dimension_numbers<[1], [0], [0], [1], [0, 0, 1, 1], [], []>} : vector<256x32xf32>, vector<32x128xf32>, vector<256x128xf32> -> vector<256x128xf32>
    %c0_3 = arith.constant 0 : index
    %c0_4 = arith.constant 0 : index
    %3 = vector.load %arg3[%c0_3, %c0_4] : memref<1x128xf32, #tpu.memory_space<vmem>>, vector<1x128xf32>
    %4 = vector.broadcast %3 : vector<1x128xf32> to vector<256x128xf32>
    %5 = arith.addf %2, %4 : vector<256x128xf32>
    %cst_5 = arith.constant dense<0xFF800000> : vector<256xf32>
    %6 = vector.multi_reduction <maximumf>, %5, %cst_5 [1] : vector<256x128xf32> to vector<256xf32>
    %7 = vector.shape_cast %6 : vector<256xf32> to vector<256x1xf32>
    %8 = vector.broadcast %7 : vector<256x1xf32> to vector<256x128xf32>
    %9 = arith.subf %5, %8 : vector<256x128xf32>
    %10 = math.exp %9 : vector<256x128xf32>
    %11 = arith.mulf %10, %10 : vector<256x128xf32>
    %c0_6 = arith.constant 0 : index
    %c0_7 = arith.constant 0 : index
    %12 = vector.load %arg4[%c0_6, %c0_7] : memref<128x128xf32, #tpu.memory_space<vmem>>, vector<128x128xf32>
    %cst_8 = arith.constant dense<0.000000e+00> : vector<256x128xf32>
    %13 = tpu.matmul %10, %12, %cst_8 {dimension_numbers = #tpu.dot_dimension_numbers<[1], [0], [0], [1], [0, 0, 1, 1], [], []>, precision = #tpu.contract_precision<fp32>} : vector<256x128xf32>, vector<128x128xf32>, vector<256x128xf32> -> vector<256x128xf32>
    %c0_9 = arith.constant 0 : index
    %c0_10 = arith.constant 0 : index
    %14 = vector.load %arg4[%c0_9, %c0_10] : memref<128x128xf32, #tpu.memory_space<vmem>>, vector<128x128xf32>
    %cst_11 = arith.constant dense<0.000000e+00> : vector<256x128xf32>
    %15 = tpu.matmul %11, %14, %cst_11 {dimension_numbers = #tpu.dot_dimension_numbers<[1], [0], [0], [1], [0, 0, 1, 1], [], []>, precision = #tpu.contract_precision<fp32>} : vector<256x128xf32>, vector<128x128xf32>, vector<256x128xf32> -> vector<256x128xf32>
    %16 = tpu.reciprocal %13 {approx = true} : vector<256x128xf32> -> vector<256x128xf32>
    %17 = arith.mulf %13, %16 : vector<256x128xf32>
    %cst_12 = arith.constant 2.000000e+00 : f32
    %18 = vector.broadcast %cst_12 : f32 to vector<256x128xf32>
    %19 = arith.subf %18, %17 : vector<256x128xf32>
    %20 = arith.mulf %16, %19 : vector<256x128xf32>
    %21 = arith.mulf %13, %20 : vector<256x128xf32>
    %cst_13 = arith.constant 2.000000e+00 : f32
    %22 = vector.broadcast %cst_13 : f32 to vector<256x128xf32>
    %23 = arith.subf %22, %21 : vector<256x128xf32>
    %24 = arith.mulf %20, %23 : vector<256x128xf32>
    %25 = arith.mulf %10, %24 : vector<256x128xf32>
    %26 = tpu.reciprocal %15 {approx = true} : vector<256x128xf32> -> vector<256x128xf32>
    %27 = arith.mulf %15, %26 : vector<256x128xf32>
    %cst_14 = arith.constant 2.000000e+00 : f32
    %28 = vector.broadcast %cst_14 : f32 to vector<256x128xf32>
    %29 = arith.subf %28, %27 : vector<256x128xf32>
    %30 = arith.mulf %26, %29 : vector<256x128xf32>
    %31 = arith.mulf %15, %30 : vector<256x128xf32>
    %cst_15 = arith.constant 2.000000e+00 : f32
    %32 = vector.broadcast %cst_15 : f32 to vector<256x128xf32>
    %33 = arith.subf %32, %31 : vector<256x128xf32>
    %34 = arith.mulf %30, %33 : vector<256x128xf32>
    %35 = arith.mulf %11, %34 : vector<256x128xf32>
    %c0_16 = arith.constant 0 : index
    %c0_17 = arith.constant 0 : index
    %36 = vector.load %arg8[%c0_16, %c0_17] : memref<256x128xf32, #tpu.memory_space<vmem>>, vector<256x128xf32>
    tpu.vector_store %arg8[%c0_16, %c0_17], %25 {strides = array<i32>} : memref<256x128xf32, #tpu.memory_space<vmem>>, vector<256x128xf32>,
    %c0_18 = arith.constant 0 : index
    %c0_19 = arith.constant 0 : index
    %37 = vector.load %arg7[%c0_18, %c0_19] : memref<256x128xf32, #tpu.memory_space<vmem>>, vector<256x128xf32>
    tpu.vector_store %arg7[%c0_18, %c0_19], %35 {strides = array<i32>} : memref<256x128xf32, #tpu.memory_space<vmem>>, vector<256x128xf32>,
    %c0_20 = arith.constant 0 : index
    %c0_21 = arith.constant 0 : index
    %38 = vector.load %arg5[%c0_20, %c0_21] : memref<128x32xf32, #tpu.memory_space<vmem>>, vector<128x32xf32>
    %cst_22 = arith.constant dense<0.000000e+00> : vector<256x32xf32>
    %39 = tpu.matmul %35, %38, %cst_22 {dimension_numbers = #tpu.dot_dimension_numbers<[1], [0], [0], [1], [0, 0, 1, 1], [], []>} : vector<256x128xf32>, vector<128x32xf32>, vector<256x32xf32> -> vector<256x32xf32>
    %c0_23 = arith.constant 0 : index
    %c0_24 = arith.constant 0 : index
    %40 = vector.load %arg6[%c0_23, %c0_24] : memref<1x32xf32, #tpu.memory_space<vmem>>, vector<1x32xf32>
    %41 = vector.broadcast %40 : vector<1x32xf32> to vector<256x32xf32>
    %42 = arith.addf %39, %41 : vector<256x32xf32>
    %43 = arith.mulf %0, %0 : vector<256x32xf32>
    %cst_25 = arith.constant dense<0.000000e+00> : vector<256xf32>
    %44 = vector.multi_reduction <add>, %43, %cst_25 [1] : vector<256x32xf32> to vector<256xf32>
    %45 = vector.shape_cast %44 : vector<256xf32> to vector<256x1xf32>
    %46 = math.sqrt %45 : vector<256x1xf32>
    %47 = arith.mulf %42, %42 : vector<256x32xf32>
    %cst_26 = arith.constant dense<0.000000e+00> : vector<256xf32>
    %48 = vector.multi_reduction <add>, %47, %cst_26 [1] : vector<256x32xf32> to vector<256xf32>
    %49 = vector.shape_cast %48 : vector<256xf32> to vector<256x1xf32>
    %50 = math.sqrt %49 : vector<256x1xf32>
    %cst_27 = arith.constant 1.000000e-07 : f32
    %51 = vector.broadcast %cst_27 : f32 to vector<256x1xf32>
    %52 = arith.addf %50, %51 : vector<256x1xf32>
    %53 = tpu.reciprocal %52 : vector<256x1xf32> -> vector<256x1xf32>
    %54 = arith.mulf %46, %53 : vector<256x1xf32>
    %55 = vector.broadcast %54 : vector<256x1xf32> to vector<256x32xf32>
    %56 = arith.mulf %42, %55 : vector<256x32xf32>
    %c0_28 = arith.constant 0 : index
    %c0_29 = arith.constant 0 : index
    %57 = vector.load %arg9[%c0_28, %c0_29] : memref<256x32xf32, #tpu.memory_space<vmem>>, vector<256x32xf32>
    tpu.vector_store %arg9[%c0_28, %c0_29], %56 {strides = array<i32>} : memref<256x32xf32, #tpu.memory_space<vmem>>, vector<256x32xf32>,
    return
  }
  func.func @transform_0(%arg0: i32) -> (i32, i32) {
    %c0_i32 = arith.constant 0 : i32
    %c0_i32_0 = arith.constant 0 : i32
    return %arg0, %c0_i32 : i32, i32
  }
  func.func @transform_1(%arg0: i32) -> (i32, i32) {
    %c0_i32 = arith.constant 0 : i32
    %c0_i32_0 = arith.constant 0 : i32
    %c0_i32_1 = arith.constant 0 : i32
    return %c0_i32, %c0_i32_0 : i32, i32
  }
  func.func @transform_2(%arg0: i32) -> (i32, i32) {
    %c0_i32 = arith.constant 0 : i32
    %c0_i32_0 = arith.constant 0 : i32
    %c0_i32_1 = arith.constant 0 : i32
    return %c0_i32, %c0_i32_0 : i32, i32
  }
  func.func @transform_3(%arg0: i32) -> (i32, i32) {
    %c0_i32 = arith.constant 0 : i32
    %c0_i32_0 = arith.constant 0 : i32
    %c0_i32_1 = arith.constant 0 : i32
    return %c0_i32, %c0_i32_0 : i32, i32
  }
  func.func @transform_4(%arg0: i32) -> (i32, i32) {
    %c0_i32 = arith.constant 0 : i32
    %c0_i32_0 = arith.constant 0 : i32
    %c0_i32_1 = arith.constant 0 : i32
    return %c0_i32, %c0_i32_0 : i32, i32
  }
  func.func @transform_5(%arg0: i32) -> (i32, i32) {
    %c0_i32 = arith.constant 0 : i32
    %c0_i32_0 = arith.constant 0 : i32
    %c0_i32_1 = arith.constant 0 : i32
    return %c0_i32, %c0_i32_0 : i32, i32
  }
  func.func @transform_6(%arg0: i32) -> (i32, i32) {
    %c0_i32 = arith.constant 0 : i32
    %c0_i32_0 = arith.constant 0 : i32
    return %arg0, %c0_i32 : i32, i32
  }
  func.func @transform_7(%arg0: i32) -> (i32, i32) {
    %c0_i32 = arith.constant 0 : i32
    %c0_i32_0 = arith.constant 0 : i32
    return %arg0, %c0_i32 : i32, i32
  }
  func.func @transform_8(%arg0: i32) -> (i32, i32) {
    %c0_i32 = arith.constant 0 : i32
    %c0_i32_0 = arith.constant 0 : i32
    return %arg0, %c0_i32 : i32, i32
  }
}

</mosaic_0001>

<bundles_post_ra>
// kernel: tpu_custom_call.1
= control target key start
LH: loop header
LB: loop body
LE: loop exit
PB: predicated region body
PF: predicated region fallthrough
CT: control target
= control target key end

     0   :  { %14 = vsyncpa [#allocation3], 0  ;;  %vm13779_vm0 = vcmask 261120   ;;  %s13360_s0 = inlined_call_operand.vmem [shape: f32[256,32], index: 0, kind: input, shape index: {}]   ;;  %s13361_s1 = inlined_call_operand.vmem [shape: f32[32,128], index: 1, kind: input, shape index: {}]   ;;  %s13362_s2 = inlined_call_operand.vmem [shape: f32[1,128], index: 2, kind: input, shape index: {}]   ;;  %s13363_s3 = inlined_call_operand.vmem [shape: f32[128,128], index: 3, kind: input, shape index: {}]   ;;  %s13364_s4 = inlined_call_operand.vmem [shape: f32[128,32], index: 4, kind: input, shape index: {}]   ;;  %s13365_s5 = inlined_call_operand.vmem [shape: f32[1,32], index: 5, kind: input, shape index: {}]   ;;  %s13366_s6 = inlined_call_operand.hbm [shape: f32[256,128], index: 6, kind: output, shape index: {0}]   ;;  %s13367_s7 = inlined_call_operand.hbm [shape: f32[256,128], index: 7, kind: output, shape index: {1}]   ;;  %s13368_s8 = inlined_call_operand.vmem [shape: f32[256,32], index: 8, kind: output, shape index: {2}]  }
   0x1   :  { %v63_v0 = vld [vmem:[%s13361_s1 + $0x18] sm:$0xff]  ;;  %v62_v1 = vld [vmem:[%s13361_s1 + $0x10] sm:$0xff]  ;;  %v28_v2 = vld [vmem:[%s13360_s0] sm:$0xff] }
   0x2   :  { %6967 = vmatprep.subr.mxu0 %v63_v0  ;;  %v61_v3 = vld [vmem:[%s13361_s1 + $0x8] sm:$0xff]  ;;  %6975 = vmatprep.mubr.msk.f32.mxu0 %vm13779_vm0, %v28_v2  ;;  %v60_v4 = vld [vmem:[%s13361_s1] sm:$0xff]  ;;  %v30_v6 = vld [vmem:[%s13360_s0 + $0x10] sm:$0xff] }
   0x3   :  { %6968 = vmatpush3.msra.mxu0 %v63_v0  ;;  %v29_v5 = vld [vmem:[%s13360_s0 + $0x8] sm:$0xff]  ;;  %v31_v7 = vld [vmem:[%s13360_s0 + $0x18] sm:$0xff]  ;;  %v32_v8 = vld [vmem:[%s13360_s0 + $0x20] sm:$0xff] }
   0x4   :  { %6969 = vmatprep.subr.mxu0 %v62_v1 }
   0x5   :  { %6970 = vmatpush3.msra.mxu0 %v62_v1 }
   0x6   :  { %6971 = vmatprep.subr.mxu0 %v61_v3 }
   0x7   :  { %6972 = vmatpush3.msra.mxu0 %v61_v3 }
   0x8   :  { %6973 = vmatprep.subr.mxu0 %v60_v4 }
   0x9   :  { %6974 = vmatpush3.msra.mxu0 %v60_v4 }
   0xa   :  { %6976 = vmatmul.mubr.msk.f32.vlgmr.msra.gmra.mxu0 %vm13779_vm0, %v29_v5 }
   0xb   :  { %6978 = vmatprep.mubr.msk.f32.mxu0 %vm13779_vm0, %v30_v6 }
   0xc   :  { %15 = vsyncpa [#allocation5], 0  ;;  %v33_v9 = vld [vmem:[%s13360_s0 + $0x28] sm:$0xff]  ;;  %v34_v10 = vld [vmem:[%s13360_s0 + $0x30] sm:$0xff] }
   0xd   :  { %v35_v11 = vld [vmem:[%s13360_s0 + $0x38] sm:$0xff]  ;;  %v36_v12 = vld [vmem:[%s13360_s0 + $0x40] sm:$0xff]  ;;  %v37_v13 = vld [vmem:[%s13360_s0 + $0x48] sm:$0xff] }
   0xe   :  { %6979 = vmatmul.mubr.msk.f32.gmra.mxu0 %vm13779_vm0, %v31_v7  ;;  %v38_v14 = vld [vmem:[%s13360_s0 + $0x50] sm:$0xff]  ;;  %v39_v15 = vld [vmem:[%s13360_s0 + $0x58] sm:$0xff]  ;;  %v40_v16 = vld [vmem:[%s13360_s0 + $0x60] sm:$0xff] }
   0xf   :  { %6981 = vmatprep.mubr.msk.f32.mxu0 %vm13779_vm0, %v32_v8  ;;  %v41_v17 = vld [vmem:[%s13360_s0 + $0x68] sm:$0xff]  ;;  %v42_v18 = vld [vmem:[%s13360_s0 + $0x70] sm:$0xff]  ;;  %v43_v19 = vld [vmem:[%s13360_s0 + $0x78] sm:$0xff] }
  0x10   :  { %v44_v20 = vld [vmem:[%s13360_s0 + $0x80] sm:$0xff]  ;;  %v45_v21 = vld [vmem:[%s13360_s0 + $0x88] sm:$0xff]  ;;  %v46_v22 = vld [vmem:[%s13360_s0 + $0x90] sm:$0xff] }
  0x11   :  { %v47_v23 = vld [vmem:[%s13360_s0 + $0x98] sm:$0xff]  ;;  %v48_v24 = vld [vmem:[%s13360_s0 + $0xa0] sm:$0xff]  ;;  %v49_v25 = vld [vmem:[%s13360_s0 + $0xa8] sm:$0xff] }
  0x12   :  { %6982 = vmatmul.mubr.msk.f32.gmra.mxu0 %vm13779_vm0, %v33_v9  ;;  %v50_v26 = vld [vmem:[%s13360_s0 + $0xb0] sm:$0xff]  ;;  %v51_v27 = vld [vmem:[%s13360_s0 + $0xb8] sm:$0xff]  ;;  %v52_v28 = vld [vmem:[%s13360_s0 + $0xc0] sm:$0xff] }
  0x13   :  { %6984 = vmatprep.mubr.msk.f32.mxu0 %vm13779_vm0, %v34_v10  ;;  %v53_v29 = vld [vmem:[%s13360_s0 + $0xc8] sm:$0xff]  ;;  %v54_v30 = vld [vmem:[%s13360_s0 + $0xd0] sm:$0xff]  ;;  %v55_v31 = vld [vmem:[%s13360_s0 + $0xd8] sm:$0xff] }
  0x14   :  { %v56_v32 = vld [vmem:[%s13360_s0 + $0xe0] sm:$0xff]  ;;  %v57_v33 = vld [vmem:[%s13360_s0 + $0xe8] sm:$0xff]  ;;  %v58_v34 = vld [vmem:[%s13360_s0 + $0xf0] sm:$0xff] }
  0x15   :  { %v59_v35 = vld [vmem:[%s13360_s0 + $0xf8] sm:$0xff]  ;;  %v599_v37 = vld [vmem:[%s13363_s3 + $0x70] sm:$0xff]  ;;  %v598_v38 = vld [vmem:[%s13363_s3 + $0x68] sm:$0xff] }
  0x16   :  { %6985 = vmatmul.mubr.msk.f32.gmra.mxu0 %vm13779_vm0, %v35_v11  ;;  %v600_v36 = vld [vmem:[%s13363_s3 + $0x78] sm:$0xff]  ;;  %v8759_v40 = vand.u32 4294901760, %v599_v37  ;;  %v8761_v41 = vand.u32 4294901760, %v598_v38  ;;  %v597_v42 = vld [vmem:[%s13363_s3 + $0x60] sm:$0xff]  ;;  %v595_v44 = vld [vmem:[%s13363_s3 + $0x50] sm:$0xff] }
  0x17   :  { %6987 = vmatprep.mubr.msk.f32.mxu0 %vm13779_vm0, %v36_v12  ;;  %v8757_v39 = vand.u32 4294901760, %v600_v36  ;;  %v596_v43 = vld [vmem:[%s13363_s3 + $0x58] sm:$0xff]  ;;  %v8772_v45 = vand.u32 4294901760, %v597_v42  ;;  %v8776_v47 = vand.u32 4294901760, %v595_v44  ;;  %v594_v48 = vld [vmem:[%s13363_s3 + $0x48] sm:$0xff]  ;;  %v593_v49 = vld [vmem:[%s13363_s3 + $0x40] sm:$0xff] }
  0x18   :  { %v8774_v46 = vand.u32 4294901760, %v596_v43  ;;  %v8788_v51 = vsub.f32 %v599_v37, %v8759_v40  ;;  %v8791_v52 = vsub.f32 %v598_v38, %v8761_v41  ;;  %v8793_v53 = vand.u32 4294901760, %v594_v48 }
  0x19   :  { %v8785_v50 = vsub.f32 %v600_v36, %v8757_v39  ;;  %7023 = vmatprep.subr.mxu1 %v8757_v39  ;;  %v8797_v54 = vsub.f32 %v597_v42, %v8772_v45  ;;  %v8803_v56 = vsub.f32 %v595_v44, %v8776_v47  ;;  %v8815_v60 = vand.u32 4294901760, %v593_v49  ;;  %v591_v42 = vld [vmem:[%s13363_s3 + $0x30] sm:$0xff] }
  0x1a   :  { %6988 = vmatmul.mubr.msk.f32.gmra.mxu0 %vm13779_vm0, %v37_v13  ;;  %13790 = vst [vmem:[#allocation9_spill] sm:$0xff] %v8788_v51  ;;  %13791 = vst [vmem:[#allocation10_spill] sm:$0xff] %v8791_v52  ;;  %v8800_v55 = vsub.f32 %v596_v43, %v8774_v46  ;;  %7024 = vmatpush3.msra.mxu1 %v8757_v39  ;;  %v8810_v58 = vand.u32 4294901760, %v8788_v51  ;;  %v8813_v59 = vand.u32 4294901760, %v8791_v52  ;;  %v8943_v44 = vand.u32 4294901760, %v591_v42 }
  0x1b   :  { %6990 = vmatprep.mubr.msk.f32.mxu0 %vm13779_vm0, %v38_v14  ;;  %13789 = vst [vmem:[#allocation8_spill] sm:$0xff] %v8785_v50  ;;  %13792 = vst [vmem:[#allocation11_spill] sm:$0xff] %v8797_v54  ;;  %v8807_v57 = vand.u32 4294901760, %v8785_v50  ;;  %7025 = vmatprep.subr.mxu1 %v8759_v40  ;;  %v8819_v61 = vand.u32 4294901760, %v8797_v54  ;;  %v8822_v62 = vsub.f32 %v594_v48, %v8793_v53  ;;  %v8836_v3 = vand.u32 4294901760, %v8803_v56 }
  0x1c   :  { %13793 = vst [vmem:[#allocation12_spill] sm:$0xff] %v8800_v55  ;;  %13794 = vst [vmem:[#allocation13_spill] sm:$0xff] %v8803_v56  ;;  %7026 = vmatpush3.msra.mxu1 %v8759_v40  ;;  %v1013_v0 = vsub.f32 %v8788_v51, %v8810_v58  ;;  %v1020_v1 = vsub.f32 %v8791_v52, %v8813_v59  ;;  %v8832_v2 = vand.u32 4294901760, %v8800_v55 }
  0x1d   :  { %13795 = vst [vmem:[#allocation14_spill] sm:$0xff] %v8807_v57  ;;  %13796 = vst [vmem:[#allocation15_spill] sm:$0xff] %v8810_v58  ;;  %v1006_v63 = vsub.f32 %v8785_v50, %v8807_v57  ;;  %7027 = vmatprep.subr.mxu1 %v8761_v41  ;;  %v1027_v6 = vsub.f32 %v8797_v54, %v8819_v61  ;;  %v8846_v7 = vsub.f32 %v593_v49, %v8815_v60  ;;  %v590_v49 = vld [vmem:[%s13363_s3 + $0x28] sm:$0xff] }
  0x1e   :  { %6991 = vmatmul.mubr.msk.f32.gmra.mxu0 %vm13779_vm0, %v39_v15  ;;  %13797 = vst [vmem:[#allocation16_spill] sm:$0xff] %v8813_v59  ;;  %13798 = vst [vmem:[#allocation17_spill] sm:$0xff] %v8819_v61  ;;  %7028 = vmatpush3.msra.mxu1 %v8761_v41  ;;  %v8841_v5 = vand.u32 4294901760, %v1013_v0  ;;  %v8851_v8 = vand.u32 4294901760, %v1020_v1  ;;  %v1034_v9 = vsub.f32 %v8800_v55, %v8832_v2  ;;  %v8856_v10 = vand.u32 4294901760, %v8822_v62 }
  0x1f   :  { %6993 = vmatprep.mubr.msk.f32.mxu0 %vm13779_vm0, %v40_v16  ;;  %13799 = vst [vmem:[#allocation18_spill] sm:$0xff] %v8822_v62  ;;  %13800 = vst [vmem:[#allocation19_spill] sm:$0xff] %v8832_v2  ;;  %v8839_v4 = vand.u32 4294901760, %v1006_v63  ;;  %7029 = vmatprep.subr.mxu1 %v8772_v45  ;;  %v8862_v11 = vand.u32 4294901760, %v1027_v6  ;;  %v1041_v12 = vsub.f32 %v8803_v56, %v8836_v3  ;;  %v8867_v13 = vand.u32 4294901760, %v8846_v7 }
  0x20   :  { %13801 = vst [vmem:[#allocation20_spill] sm:$0xff] %v8836_v3  ;;  %13803 = vst [vmem:[#allocation22_spill] sm:$0xff] %v8841_v5  ;;  %7030 = vmatpush3.msra.mxu1 %v8772_v45  ;;  %v8873_v14 = vand.u32 4294901760, %v1034_v9  ;;  %v1048_v15 = vsub.f32 %v8822_v62, %v8856_v10  ;;  %v8955_v0 = vsub.f32 %v591_v42, %v8943_v44  ;;  %v8957_v1 = vand.u32 4294901760, %v590_v49 }
  0x21   :  { %13802 = vst [vmem:[#allocation21_spill] sm:$0xff] %v8839_v4  ;;  %13804 = vst [vmem:[#allocation23_spill] sm:$0xff] %v8846_v7  ;;  %7103 = vmatprep.subr.mxu0 %v8839_v4  ;;  %7031 = vmatprep.subr.mxu1 %v8774_v46  ;;  %v8881_v16 = vand.u32 4294901760, %v1041_v12 }
  0x22   :  { %6994 = vmatmul.mubr.msk.f32.gmra.mxu0 %vm13779_vm0, %v41_v17  ;;  %13805 = vst [vmem:[#allocation24_spill] sm:$0xff] %v8851_v8  ;;  %13806 = vst [vmem:[#allocation25_spill] sm:$0xff] %v8856_v10  ;;  %7032 = vmatpush3.msra.mxu1 %v8774_v46  ;;  %v1055_v17 = vsub.f32 %v8846_v7, %v8867_v13 }
  0x23   :  { %6996 = vmatprep.mubr.msk.f32.mxu0 %vm13779_vm0, %v42_v18  ;;  %7104 = vmatpush3.msra.mxu0 %v8839_v4  ;;  %13807 = vst [vmem:[#allocation26_spill] sm:$0xff] %v8862_v11  ;;  %13808 = vst [vmem:[#allocation27_spill] sm:$0xff] %v8867_v13  ;;  %v8889_v18 = vand.u32 4294901760, %v1048_v15  ;;  %v589_v15 = vld [vmem:[%s13363_s3 + $0x20] sm:$0xff] }
  0x24   :  { %7105 = vmatprep.subr.mxu0 %v8841_v5  ;;  %7033 = vmatprep.subr.mxu1 %v8776_v47  ;;  %13809 = vst [vmem:[#allocation28_spill] sm:$0xff] %v8873_v14  ;;  %13810 = vst [vmem:[#allocation29_spill] sm:$0xff] %v8881_v16 }
  0x25   :  { %7106 = vmatpush3.msra.mxu0 %v8841_v5  ;;  %7034 = vmatpush3.msra.mxu1 %v8776_v47  ;;  %13811 = vst [vmem:[#allocation30_spill] sm:$0xff] %v8889_v18  ;;  %13816 = vst [vmem:[#allocation35_spill] sm:$0xff] %v8955_v0 }
  0x26   :  { %6997 = vmatmul.mubr.msk.f32.gmra.mxu0 %vm13779_vm0, %v43_v19  ;;  %7107 = vmatprep.subr.mxu0 %v8851_v8  ;;  %v8893_v19 = vand.u32 4294901760, %v1055_v17 }
  0x27   :  { %6999 = vmatprep.mubr.msk.f32.mxu0 %vm13779_vm0, %v44_v20  ;;  %7035 = vmatprep.subr.mxu1 %v8793_v53 }
  0x28   :  { %7108 = vmatpush3.msra.mxu0 %v8851_v8  ;;  %7036 = vmatpush3.msra.mxu1 %v8793_v53  ;;  %13812 = vst [vmem:[#allocation31_spill] sm:$0xff] %v8893_v19 }
  0x29   :  { %7109 = vmatprep.subr.mxu0 %v8862_v11  ;;  %7037 = vmatprep.subr.mxu1 %v8815_v60 }
  0x2a   :  { %7000 = vmatmul.mubr.msk.f32.gmra.mxu0 %vm13779_vm0, %v45_v21  ;;  %7038 = vmatpush3.msra.mxu1 %v8815_v60  ;;  %v8903_v21 = vld [vmem:[%s13362_s2] ss:$0 sm:$0xff] }
  0x2b   :  { %7002 = vmatprep.mubr.msk.f32.mxu0 %vm13779_vm0, %v46_v22  ;;  %7110 = vmatpush3.msra.mxu0 %v8862_v11 }
  0x2c   :  { %7111 = vmatprep.subr.mxu0 %v8873_v14 }
  0x2d   :  { %7112 = vmatpush3.msra.mxu0 %v8873_v14 }
  0x2e   :  { %7003 = vmatmul.mubr.msk.f32.gmra.mxu0 %vm13779_vm0, %v47_v23  ;;  %7113 = vmatprep.subr.mxu0 %v8881_v16 }
  0x2f   :  { %7005 = vmatprep.mubr.msk.f32.mxu0 %vm13779_vm0, %v48_v24  ;;  %7114 = vmatpush3.msra.mxu0 %v8881_v16 }
  0x30   :  { %7115 = vmatprep.subr.mxu0 %v8889_v18 }
  0x31   :  { %7116 = vmatpush3.msra.mxu0 %v8889_v18 }
  0x32   :  { %7006 = vmatmul.mubr.msk.f32.gmra.mxu0 %vm13779_vm0, %v49_v25  ;;  %7117 = vmatprep.subr.mxu0 %v8893_v19 }
  0x33   :  { %7008 = vmatprep.mubr.msk.f32.mxu0 %vm13779_vm0, %v50_v26  ;;  %7118 = vmatpush3.msra.mxu0 %v8893_v19 }
  0x36   :  { %7009 = vmatmul.mubr.msk.f32.gmra.mxu0 %vm13779_vm0, %v51_v27 }
  0x37   :  { %7011 = vmatprep.mubr.msk.f32.mxu0 %vm13779_vm0, %v52_v28 }
  0x3a   :  { %7012 = vmatmul.mubr.msk.f32.gmra.mxu0 %vm13779_vm0, %v53_v29 }
  0x3b   :  { %7014 = vmatprep.mubr.msk.f32.mxu0 %vm13779_vm0, %v54_v30 }
  0x3e   :  { %7015 = vmatmul.mubr.msk.f32.gmra.mxu0 %vm13779_vm0, %v55_v31 }
  0x3f   :  { %7017 = vmatprep.mubr.msk.f32.mxu0 %vm13779_vm0, %v56_v32 }
  0x42   :  { %7018 = vmatmul.mubr.msk.f32.gmra.mxu0 %vm13779_vm0, %v57_v33  ;;  %v592_v33 = vld [vmem:[%s13363_s3 + $0x38] sm:$0xff] }
  0x43   :  { %7020 = vmatprep.mubr.msk.f32.mxu0 %vm13779_vm0, %v58_v34  ;;  %v8928_v34 = vand.u32 4294901760, %v592_v33 }
  0x45   :  { %13813 = vst [vmem:[#allocation32_spill] sm:$0xff] %v8928_v34  ;;  %v8937_v38 = vsub.f32 %v592_v33, %v8928_v34  ;;  %7039 = vmatprep.subr.mxu1 %v8928_v34 }
  0x46   :  { %7021 = vmatmul.mubr.msk.f32.gmra.mxu0 %vm13779_vm0, %v59_v35  ;;  %7040 = vmatpush3.msra.mxu1 %v8928_v34 }
  0x47   :  { %13814 = vst [vmem:[#allocation33_spill] sm:$0xff] %v8937_v38  ;;  %v8949_v48 = vand.u32 4294901760, %v8937_v38  ;;  %7041 = vmatprep.subr.mxu1 %v8943_v44 }
  0x48   :  { %7042 = vmatpush3.msra.mxu1 %v8943_v44 }
  0x49   :  { %13815 = vst [vmem:[#allocation34_spill] sm:$0xff] %v8949_v48  ;;  %v1062_v12 = vsub.f32 %v8937_v38, %v8949_v48  ;;  %7043 = vmatprep.subr.mxu1 %v8957_v1 }
  0x4a   :  { %7044 = vmatpush3.msra.mxu1 %v8957_v1 }
  0xca   :  { %v6977_v20 = vpop.f32.mrf.mxu0 }
  0xcb   :  { %v8910_v26 = vadd.f32 %v6977_v20, %v8903_v21  ;;  %v8973_v20 = vand.u32 4294901760, %v8955_v0 }
  0xcc   :  { %v234_v22 = vpop.f32.mrf.mxu0 }
  0xcd   :  { %v8906_v23 = vadd.f32 %v8903_v21, %v234_v22  ;;  %13817 = vst [vmem:[#allocation36_spill] sm:$0xff] %v8973_v20  ;;  %v8976_v22 = vsub.f32 %v590_v49, %v8957_v1 }
  0xce   :  { %v6980_v24 = vpop.f32.mrf.mxu0 }
  0xcf   :  { %393 = vmax.xlane.f32.xlu0 %v8906_v23  ;;  %v8918_v30 = vadd.f32 %v6980_v24, %v8903_v21  ;;  %13818 = vst [vmem:[#allocation37_spill] sm:$0xff] %v8976_v22  ;;  %v8978_v24 = vand.u32 4294901760, %v589_v15  ;;  %v8991_v33 = vand.u32 4294901760, %v8976_v22 }
  0xd0   :  { %v244_v25 = vpop.f32.mrf.mxu0 }
  0xd1   :  { %v8913_v27 = vadd.f32 %v8903_v21, %v244_v25  ;;  %13819 = vst [vmem:[#allocation38_spill] sm:$0xff] %v8978_v24  ;;  %v8983_v25 = vand.u32 4294901760, %v1062_v12  ;;  %13821 = vst [vmem:[#allocation40_spill] sm:$0xff] %v8991_v33  ;;  %v587_v12 = vld [vmem:[%s13363_s3 + $0x10] sm:$0xff]  ;;  %7045 = vmatprep.subr.mxu1 %v8978_v24 }
  0xd2   :  { %v6983_v28 = vpop.f32.mrf.mxu0  ;;  %7046 = vmatpush3.msra.mxu1 %v8978_v24  ;;  %v9024_v16 = vand.u32 4294901760, %v587_v12 }
  0xd3   :  { %397 = vmax.xlane.f32.xlu1 %v8913_v27  ;;  %395 = vmax.xlane.f32.xlu0 %v8910_v26  ;;  %v8931_v36 = vadd.f32 %v6983_v28, %v8903_v21  ;;  %13820 = vst [vmem:[#allocation39_spill] sm:$0xff] %v8983_v25  ;;  %v588_v28 = vld [vmem:[%s13363_s3 + $0x18] sm:$0xff] }
  0xd4   :  { %v254_v29 = vpop.f32.mrf.mxu0  ;;  %v8996_v42 = vand.u32 4294901760, %v588_v28  ;;  %7119 = vmatprep.subr.mxu0 %v8983_v25  ;;  %13827 = vst [vmem:[#allocation46_spill] sm:$0xff] %v9024_v16 }
  0xd5   :  { %v8921_v31 = vadd.f32 %v8903_v21, %v254_v29  ;;  %7120 = vmatpush3.msra.mxu0 %v8983_v25 }
  0xd6   :  { %v6986_v32 = vpop.f32.mrf.mxu0  ;;  %13823 = vst [vmem:[#allocation42_spill] sm:$0xff] %v8996_v42  ;;  %7047 = vmatprep.subr.mxu1 %v8996_v42 }
  0xd7   :  { %399 = vmax.xlane.f32.xlu1 %v8918_v30  ;;  %401 = vmax.xlane.f32.xlu0 %v8921_v31  ;;  %v8961_v6 = vadd.f32 %v6986_v32, %v8903_v21  ;;  %v1069_v32 = vsub.f32 %v8955_v0, %v8973_v20 }
  0xd8   :  { %v264_v35 = vpop.f32.mrf.mxu0  ;;  %7048 = vmatpush3.msra.mxu1 %v8996_v42 }
  0xd9   :  { %v8934_v37 = vadd.f32 %v8903_v21, %v264_v35  ;;  %v8994_v35 = vsub.f32 %v589_v15, %v8978_v24  ;;  %v9011_v19 = vand.u32 4294901760, %v1069_v32  ;;  %v586_v32 = vld [vmem:[%s13363_s3 + $0x8] sm:$0xff]  ;;  %7049 = vmatprep.subr.mxu1 %v9024_v16 }
  0xda   :  { %v6989_v43 = vpop.f32.mrf.mxu0  ;;  %v9037_v8 = vand.u32 4294901760, %v586_v32  ;;  %7050 = vmatpush3.msra.mxu1 %v9024_v16 }
  0xdb   :  { %403 = vmax.xlane.f32.xlu1 %v8931_v36  ;;  %405 = vmax.xlane.f32.xlu0 %v8934_v37  ;;  %13822 = vst [vmem:[#allocation41_spill] sm:$0xff] %v8994_v35  ;;  %v9000_v49 = vadd.f32 %v6989_v43, %v8903_v21  ;;  %13824 = vst [vmem:[#allocation43_spill] sm:$0xff] %v9011_v19  ;;  %v1076_v43 = vsub.f32 %v8976_v22, %v8991_v33  ;;  %v9016_v18 = vand.u32 4294901760, %v8994_v35 }
  0xdc   :  { %v274_v63 = vpop.f32.mrf.mxu0  ;;  %7121 = vmatprep.subr.mxu0 %v9011_v19  ;;  %13830 = vst [vmem:[#allocation49_spill] sm:$0xff] %v9037_v8  ;;  %7051 = vmatprep.subr.mxu1 %v9037_v8 }
  0xdd   :  { %v8964_v9 = vadd.f32 %v8903_v21, %v274_v63  ;;  %13825 = vst [vmem:[#allocation44_spill] sm:$0xff] %v9016_v18  ;;  %v9030_v14 = vand.u32 4294901760, %v1076_v43  ;;  %7122 = vmatpush3.msra.mxu0 %v9011_v19  ;;  %v9048_v43 = vsub.f32 %v587_v12, %v9024_v16  ;;  %7052 = vmatpush3.msra.mxu1 %v9037_v8 }
  0xde   :  { %v6992_v17 = vpop.f32.mrf.mxu0 }
  0xdf   :  { %407 = vmax.xlane.f32.xlu1 %v8961_v6  ;;  %409 = vmax.xlane.f32.xlu0 %v8964_v9  ;;  %13828 = vst [vmem:[#allocation47_spill] sm:$0xff] %v9030_v14  ;;  %v9041_v5 = vadd.f32 %v6992_v17, %v8903_v21  ;;  %13831 = vst [vmem:[#allocation50_spill] sm:$0xff] %v9048_v43  ;;  %v9068_v12 = vand.u32 4294901760, %v9048_v43 }
  0xe0   :  { %v284_v29 = vpop.f32.mrf.mxu0  ;;  %7123 = vmatprep.subr.mxu0 %v9030_v14 }
  0xe1   :  { %v9003_v63 = vadd.f32 %v8903_v21, %v284_v29  ;;  %v9019_v29 = vsub.f32 %v588_v28, %v8996_v42  ;;  %v1083_v28 = vsub.f32 %v8994_v35, %v9016_v18  ;;  %v585_v18 = vld [vmem:[%s13363_s3] sm:$0xff]  ;;  %13835 = vst [vmem:[#allocation54_spill] sm:$0xff] %v9068_v12  ;;  %7124 = vmatpush3.msra.mxu0 %v9030_v14 }
  0xe2   :  { %v6995_v15 = vpop.f32.mrf.mxu0  ;;  %v9062_v19 = vand.u32 4294901760, %v585_v18 }
  0xe3   :  { %13826 = vst [vmem:[#allocation45_spill] sm:$0xff] %v9019_v29  ;;  %411 = vmax.xlane.f32.xlu1 %v9000_v49  ;;  %413 = vmax.xlane.f32.xlu0 %v9003_v63  ;;  %v9035_v11 = vand.u32 4294901760, %v9019_v29  ;;  %v9055_v20 = vand.u32 4294901760, %v1083_v28  ;;  %v9081_v13 = vadd.f32 %v6995_v15, %v8903_v21 }
  0xe4   :  { %v294_v25 = vpop.f32.mrf.mxu0  ;;  %13834 = vst [vmem:[#allocation53_spill] sm:$0xff] %v9062_v19  ;;  %7053 = vmatprep.subr.mxu1 %v9062_v19 }
  0xe5   :  { %13829 = vst [vmem:[#allocation48_spill] sm:$0xff] %v9035_v11  ;;  %v9044_v4 = vadd.f32 %v8903_v21, %v294_v25  ;;  %13832 = vst [vmem:[#allocation51_spill] sm:$0xff] %v9055_v20  ;;  %v1090_v17 = vsub.f32 %v9019_v29, %v9035_v11  ;;  %v9060_v25 = vsub.f32 %v586_v32, %v9037_v8  ;;  %7125 = vmatprep.subr.mxu0 %v9055_v20 }
  0xe6   :  { %v6998_v33 = vpop.f32.mrf.mxu0  ;;  %v9077_v32 = vsub.f32 %v585_v18, %v9062_v19  ;;  %7126 = vmatpush3.msra.mxu0 %v9055_v20  ;;  %7054 = vmatpush3.msra.mxu1 %v9062_v19 }
  0xe7   :  { %13833 = vst [vmem:[#allocation52_spill] sm:$0xff] %v9060_v25  ;;  %415 = vmax.xlane.f32.xlu1 %v9041_v5  ;;  %417 = vmax.xlane.f32.xlu0 %v9044_v4  ;;  %v9071_v28 = vand.u32 4294901760, %v1090_v17  ;;  %v9074_v11 = vand.u32 4294901760, %v9060_v25  ;;  %v1097_v17 = vsub.f32 %v9048_v43, %v9068_v12 }
  0xe8   :  { %v304_v48 = vpop.f32.mrf.mxu0  ;;  %13838 = vst [vmem:[#allocation57_spill] sm:$0xff] %v9077_v32  ;;  %v9094_v3 = vand.u32 4294901760, %v9077_v32  ;;  %7183 = vmatprep.subr.mxu1 %v8785_v50 }
  0xe9   :  { %13836 = vst [vmem:[#allocation55_spill] sm:$0xff] %v9071_v28  ;;  %13837 = vst [vmem:[#allocation56_spill] sm:$0xff] %v9074_v11  ;;  %v9084_v10 = vadd.f32 %v8903_v21, %v304_v48  ;;  %v1104_v18 = vsub.f32 %v9060_v25, %v9074_v11  ;;  %v9099_v48 = vand.u32 4294901760, %v1097_v17  ;;  %7127 = vmatprep.subr.mxu0 %v9071_v28 }
  0xea   :  { %v7001_v14 = vpop.f32.mrf.mxu0  ;;  %13839 = vst [vmem:[#allocation58_spill] sm:$0xff] %v9094_v3  ;;  %v1111_v20 = vsub.f32 %v9077_v32, %v9094_v3  ;;  %v9106_v11 = vadd.f32 %v6998_v33, %v8903_v21  ;;  %7128 = vmatpush3.msra.mxu0 %v9071_v28 }
  0xeb   :  { %419 = vmax.xlane.f32.xlu1 %v9081_v13  ;;  %421 = vmax.xlane.f32.xlu0 %v9084_v10  ;;  %13840 = vst [vmem:[#allocation59_spill] sm:$0xff] %v9099_v48  ;;  %v9112_v2 = vand.u32 4294901760, %v1104_v18  ;;  %v9123_v28 = vadd.f32 %v7001_v14, %v8903_v21 }
  0xec   :  { %v314_v15 = vpop.f32.mrf.mxu0  ;;  %7129 = vmatprep.subr.mxu0 %v9099_v48 }
  0xed   :  { %v9109_v12 = vadd.f32 %v8903_v21, %v314_v15  ;;  %13841 = vst [vmem:[#allocation60_spill] sm:$0xff] %v9112_v2  ;;  %7130 = vmatpush3.msra.mxu0 %v9099_v48  ;;  %v9120_v15 = vand.u32 4294901760, %v1111_v20 }
  0xee   :  { %v7004_v17 = vpop.f32.mrf.mxu0  ;;  %7131 = vmatprep.subr.mxu0 %v9112_v2 }
  0xef   :  { %423 = vmax.xlane.f32.xlu1 %v9106_v11  ;;  %425 = vmax.xlane.f32.xlu0 %v9109_v12  ;;  %13842 = vst [vmem:[#allocation61_spill] sm:$0xff] %v9120_v15  ;;  %v9134_v20 = vadd.f32 %v7004_v17, %v8903_v21 }
  0xf0   :  { %v324_v33 = vpop.f32.mrf.mxu0  ;;  %7132 = vmatpush3.msra.mxu0 %v9112_v2 }
  0xf1   :  { %v9126_v18 = vadd.f32 %v8903_v21, %v324_v33  ;;  %7133 = vmatprep.subr.mxu0 %v9120_v15 }
  0xf2   :  { %v7007_v3 = vpop.f32.mrf.mxu0  ;;  %7134 = vmatpush3.msra.mxu0 %v9120_v15 }
  0xf3   :  { %427 = vmax.xlane.f32.xlu1 %v9123_v28  ;;  %429 = vmax.xlane.f32.xlu0 %v9126_v18  ;;  %v9144_v48 = vadd.f32 %v7007_v3, %v8903_v21 }
  0xf4   :  { %v334_v61 = vpop.f32.mrf.mxu0  ;;  %7263 = vmatprep.subr.mxu0 %v8757_v39 }
  0xf5   :  { %v9137_v14 = vadd.f32 %v8903_v21, %v334_v61 }
  0xf6   :  { %v7010_v33 = vpop.f32.mrf.mxu0 }
  0xf7   :  { %431 = vmax.xlane.f32.xlu1 %v9134_v20  ;;  %433 = vmax.xlane.f32.xlu0 %v9137_v14  ;;  %v9152_v15 = vadd.f32 %v7010_v33, %v8903_v21 }
  0xf8   :  { %v344_v2 = vpop.f32.mrf.mxu0 }
  0xf9   :  { %v9147_v59 = vadd.f32 %v8903_v21, %v344_v2 }
  0xfa   :  { %v7013_v17 = vpop.f32.mrf.mxu0 }
  0xfb   :  { %435 = vmax.xlane.f32.xlu1 %v9144_v48  ;;  %437 = vmax.xlane.f32.xlu0 %v9147_v59  ;;  %v9160_v2 = vadd.f32 %v7013_v17, %v8903_v21 }
  0xfc   :  { %v354_v61 = vpop.f32.mrf.mxu0 }
  0xfd   :  { %v9155_v58 = vadd.f32 %v8903_v21, %v354_v61 }
  0xfe   :  { %v7016_v57 = vpop.f32.mrf.mxu0 }
  0xff   :  { %439 = vmax.xlane.f32.xlu1 %v9152_v15  ;;  %441 = vmax.xlane.f32.xlu0 %v9155_v58  ;;  %v9168_v61 = vadd.f32 %v7016_v57, %v8903_v21 }
 0x100   :  { %v364_v3 = vpop.f32.mrf.mxu0 }
 0x101   :  { %v9163_v32 = vadd.f32 %v8903_v21, %v364_v3 }
 0x102   :  { %v7019_v25 = vpop.f32.mrf.mxu0 }
 0x103   :  { %443 = vmax.xlane.f32.xlu1 %v9160_v2  ;;  %445 = vmax.xlane.f32.xlu0 %v9163_v32  ;;  %v9176_v3 = vadd.f32 %v7019_v25, %v8903_v21 }
 0x104   :  { %v374_v33 = vpop.f32.mrf.mxu0 }
 0x105   :  { %v9171_v43 = vadd.f32 %v8903_v21, %v374_v33 }
 0x106   :  { %v7022_v19 = vpop.f32.mrf.mxu0 }
 0x107   :  { %447 = vmax.xlane.f32.xlu1 %v9168_v61  ;;  %449 = vmax.xlane.f32.xlu0 %v9171_v43  ;;  %v9184_v57 = vadd.f32 %v7022_v19, %v8903_v21 }
 0x108   :  { %v384_v17 = vpop.f32.mrf.mxu0 }
 0x109   :  { %v9179_v29 = vadd.f32 %v8903_v21, %v384_v17  ;;  %13843 = vst [vmem:[#allocation62_spill] sm:$0xff] %v9184_v57 }
 0x10b   :  { %451 = vmax.xlane.f32.xlu1 %v9176_v3  ;;  %453 = vmax.xlane.f32.xlu0 %v9179_v29 }
 0x10f   :  { %455 = vmax.xlane.f32.xlu1 %v9184_v57 }
 0x158   :  { %v394_v33 = vpop.xlane.xlu0 %393 }
 0x159   :  { %v457_v8 = vsub.f32 %v8906_v23, %v394_v33 }
 0x15b   :  { %v489_v35 = vmul.f32 1.442695, %v457_v8 }
 0x15c   :  { %v398_v16 = vpop.xlane.xlu1 %397  ;;  %v396_v22 = vpop.xlane.xlu0 %395 }
 0x15d   :  { %8099 = vpow2.f32 %v489_v35  ;;  %v459_v25 = vsub.f32 %v8913_v27, %v398_v16  ;;  %v458_v17 = vsub.f32 %v8910_v26, %v396_v22 }
 0x15f   :  { %v493_v42 = vmul.f32 1.442695, %v459_v25  ;;  %v491_v0 = vmul.f32 1.442695, %v458_v17 }
 0x160   :  { %v400_v24 = vpop.xlane.xlu1 %399  ;;  %v402_v38 = vpop.xlane.xlu0 %401 }
 0x161   :  { %8101 = vpow2.f32 %v493_v42  ;;  %v460_v19 = vsub.f32 %v8918_v30, %v400_v24  ;;  %v461_v21 = vsub.f32 %v8921_v31, %v402_v38 }
 0x162   :  { %8103 = vpow2.f32 %v491_v0 }
 0x163   :  { %v495_v57 = vmul.f32 1.442695, %v460_v19  ;;  %v497_v23 = vmul.f32 1.442695, %v461_v21 }
 0x164   :  { %v404_v8 = vpop.xlane.xlu1 %403  ;;  %v406_v33 = vpop.xlane.xlu0 %405 }
 0x165   :  { %8105 = vpow2.f32 %v495_v57  ;;  %v462_v35 = vsub.f32 %v8931_v36, %v404_v8  ;;  %v463_v16 = vsub.f32 %v8934_v37, %v406_v33 }
 0x166   :  { %8107 = vpow2.f32 %v497_v23 }
 0x167   :  { %v499_v26 = vmul.f32 1.442695, %v462_v35  ;;  %v501_v27 = vmul.f32 1.442695, %v463_v16 }
 0x168   :  { %v408_v22 = vpop.xlane.xlu1 %407  ;;  %v410_v25 = vpop.xlane.xlu0 %409 }
 0x169   :  { %8109 = vpow2.f32 %v499_v26  ;;  %v464_v30 = vsub.f32 %v8961_v6, %v408_v22  ;;  %v465_v31 = vsub.f32 %v8964_v9, %v410_v25 }
 0x16a   :  { %v9196_v38 = vpop.eup %8099  ;;  %8111 = vpow2.f32 %v501_v27 }
 0x16b   :  { %13844 = vst [vmem:[#allocation63_spill] sm:$0xff] %v9196_v38  ;;  %v503_v0 = vmul.f32 1.442695, %v464_v30  ;;  %v505_v24 = vmul.f32 1.442695, %v465_v31  ;;  %v9199_v42 = vand.u32 4294901760, %v9196_v38 }
 0x16c   :  { %v412_v36 = vpop.xlane.xlu1 %411  ;;  %v414_v37 = vpop.xlane.xlu0 %413 }
 0x16d   :  { %8113 = vpow2.f32 %v503_v0  ;;  %v466_v57 = vsub.f32 %v9000_v49, %v412_v36  ;;  %v467_v17 = vsub.f32 %v9003_v63, %v414_v37  ;;  %7135 = vmatprep.mubr.f32.mxu0 %v9199_v42  ;;  %v9206_v6 = vsub.f32 %v9196_v38, %v9199_v42 }
 0x16e   :  { %v9208_v9 = vpop.eup %8101  ;;  %8115 = vpow2.f32 %v505_v24 }
 0x16f   :  { %13845 = vst [vmem:[#allocation64_spill] sm:$0xff] %v9208_v9  ;;  %v9210_v19 = vpop.eup %8103  ;;  %v507_v21 = vmul.f32 1.442695, %v466_v57  ;;  %v509_v23 = vmul.f32 1.442695, %v467_v17  ;;  %v9213_v8 = vand.u32 4294901760, %v9208_v9 }
 0x170   :  { %13846 = vst [vmem:[#allocation65_spill] sm:$0xff] %v9210_v19  ;;  %v13462_v49 = vand.u32 4294901760, %v9206_v6  ;;  %v416_v33 = vpop.xlane.xlu1 %415  ;;  %v418_v63 = vpop.xlane.xlu0 %417  ;;  %v9217_v35 = vand.u32 4294901760, %v9210_v19 }
 0x171   :  { %8117 = vpow2.f32 %v507_v21  ;;  %v468_v16 = vsub.f32 %v9041_v5, %v416_v33  ;;  %v469_v26 = vsub.f32 %v9044_v4, %v418_v63  ;;  %v9233_v30 = vsub.f32 %v9208_v9, %v9213_v8 }
 0x172   :  { %v685_v27 = vsub.f32 %v9206_v6, %v13462_v49  ;;  %v9224_v22 = vpop.eup %8105  ;;  %8119 = vpow2.f32 %v509_v23  ;;  %7136 = vmatmul.mubr.f32.vlgmr.msra.gmra.mxu0 %v9217_v35  ;;  %v9229_v25 = vsub.f32 %v9210_v19, %v9217_v35 }
 0x173   :  { %13847 = vst [vmem:[#allocation66_spill] sm:$0xff] %v9224_v22  ;;  %v9235_v5 = vpop.eup %8107  ;;  %v511_v4 = vmul.f32 1.442695, %v468_v16  ;;  %v513_v31 = vmul.f32 1.442695, %v469_v26  ;;  %7138 = vmatprep.mubr.f32.mxu0 %v9213_v8  ;;  %v9239_v24 = vand.u32 4294901760, %v9224_v22  ;;  %7264 = vmatpush3.msra.mxu0 %v8757_v39 }
 0x174   :  { %13848 = vst [vmem:[#allocation67_spill] sm:$0xff] %v9235_v5  ;;  %v686_v0 = vand.u32 4294901760, %v685_v27  ;;  %v420_v36 = vpop.xlane.xlu1 %419  ;;  %v422_v37 = vpop.xlane.xlu0 %421  ;;  %v9243_v57 = vand.u32 4294901760, %v9235_v5  ;;  %v13461_v17 = vand.u32 4294901760, %v9229_v25  ;;  %v13460_v21 = vand.u32 4294901760, %v9233_v30  ;;  %7265 = vmatprep.subr.mxu0 %v8759_v40 }
 0x175   :  { %8121 = vpow2.f32 %v511_v4  ;;  %v470_v23 = vsub.f32 %v9081_v13, %v420_v36  ;;  %v471_v33 = vsub.f32 %v9084_v10, %v422_v37  ;;  %v9252_v63 = vsub.f32 %v9224_v22, %v9239_v24  ;;  %7266 = vmatpush3.msra.mxu0 %v8759_v40 }
 0x176   :  { %7055 = vmatprep.mubr.f32.mxu1 %v686_v0  ;;  %v9255_v16 = vpop.eup %8109  ;;  %8123 = vpow2.f32 %v513_v31  ;;  %7139 = vmatmul.mubr.f32.gmra.mxu0 %v9239_v24  ;;  %v695_v26 = vsub.f32 %v9229_v25, %v13461_v17  ;;  %v705_v10 = vsub.f32 %v9233_v30, %v13460_v21  ;;  %v9266_v13 = vsub.f32 %v9235_v5, %v9243_v57 }
 0x177   :  { %13849 = vst [vmem:[#allocation68_spill] sm:$0xff] %v9255_v16  ;;  %7267 = vmatprep.subr.mxu0 %v8761_v41  ;;  %v9269_v27 = vpop.eup %8111  ;;  %v515_v4 = vmul.f32 1.442695, %v470_v23  ;;  %v517_v31 = vmul.f32 1.442695, %v471_v33  ;;  %7141 = vmatprep.mubr.f32.mxu0 %v9243_v57  ;;  %v9273_v0 = vand.u32 4294901760, %v9255_v16 }
 0x178   :  { %13850 = vst [vmem:[#allocation69_spill] sm:$0xff] %v9269_v27  ;;  %v13470_v36 = vand.u32 4294901760, %v9252_v63  ;;  %7268 = vmatpush3.msra.mxu0 %v8761_v41  ;;  %v424_v37 = vpop.xlane.xlu1 %423  ;;  %v426_v21 = vpop.xlane.xlu0 %425  ;;  %v696_v17 = vand.u32 4294901760, %v695_v26  ;;  %v706_v49 = vand.u32 4294901760, %v705_v10  ;;  %v9278_v5 = vand.u32 4294901760, %v9269_v27 }
 0x179   :  { %13851 = vst [vmem:[#allocation70_spill] sm:$0xff] %v9273_v0  ;;  %v13469_v22 = vand.u32 4294901760, %v9266_v13  ;;  %7269 = vmatprep.subr.mxu0 %v8772_v45  ;;  %8125 = vpow2.f32 %v515_v4  ;;  %v472_v23 = vsub.f32 %v9106_v11, %v424_v37  ;;  %v473_v33 = vsub.f32 %v9109_v12, %v426_v21 }
 0x17a   :  { %13852 = vst [vmem:[#allocation71_spill] sm:$0xff] %v9278_v5  ;;  %v715_v9 = vsub.f32 %v9252_v63, %v13470_v36  ;;  %7270 = vmatpush3.msra.mxu0 %v8772_v45  ;;  %v9288_v26 = vpop.eup %8113  ;;  %8127 = vpow2.f32 %v517_v31  ;;  %7056 = vmatmul.mubr.f32.vlgmr.msra.gmra.mxu1 %v696_v17  ;;  %v9296_v11 = vsub.f32 %v9255_v16, %v9273_v0 }
 0x17b   :  { %13853 = vst [vmem:[#allocation72_spill] sm:$0xff] %v9288_v26  ;;  %7142 = vmatmul.mubr.f32.gmra.mxu0 %v9273_v0  ;;  %v725_v10 = vsub.f32 %v9266_v13, %v13469_v22  ;;  %v9300_v12 = vsub.f32 %v9269_v27, %v9278_v5  ;;  %v9302_v21 = vpop.eup %8115  ;;  %v519_v4 = vmul.f32 1.442695, %v472_v23  ;;  %v521_v37 = vmul.f32 1.442695, %v473_v33  ;;  %7184 = vmatpush3.msra.mxu1 %v8785_v50 }
 0x17c   :  { %13854 = vst [vmem:[#allocation73_spill] sm:$0xff] %v9302_v21  ;;  %7058 = vmatprep.mubr.f32.mxu1 %v706_v49  ;;  %v716_v17 = vand.u32 4294901760, %v715_v9  ;;  %v9306_v31 = vand.u32 4294901760, %v9288_v26  ;;  %7144 = vmatprep.mubr.f32.mxu0 %v9278_v5  ;;  %v428_v22 = vpop.xlane.xlu1 %427  ;;  %v430_v36 = vpop.xlane.xlu0 %429  ;;  %v9311_v27 = vand.u32 4294901760, %v9302_v21  ;;  %v13479_v23 = vand.u32 4294901760, %v9296_v11 }
 0x17d   :  { %7185 = vmatprep.subr.mxu1 %v8788_v51  ;;  %v726_v16 = vand.u32 4294901760, %v725_v10  ;;  %v13480_v33 = vand.u32 4294901760, %v9300_v12  ;;  %8129 = vpow2.f32 %v519_v4  ;;  %v474_v9 = vsub.f32 %v9123_v28, %v428_v22  ;;  %7271 = vmatprep.subr.mxu0 %v8774_v46 }
 0x17e   :  { %13855 = vst [vmem:[#allocation74_spill] sm:$0xff] %v9306_v31  ;;  %13856 = vst [vmem:[#allocation75_spill] sm:$0xff] %v9311_v27  ;;  %v475_v49 = vsub.f32 %v9126_v18, %v430_v36  ;;  %7186 = vmatpush3.msra.mxu1 %v8788_v51  ;;  %v9320_v50 = vsub.f32 %v9288_v26, %v9306_v31  ;;  %v9323_v10 = vpop.eup %8117  ;;  %8131 = vpow2.f32 %v521_v37  ;;  %7272 = vmatpush3.msra.mxu0 %v8774_v46 }
 0x17f   :  { %13857 = vst [vmem:[#allocation76_spill] sm:$0xff] %v9323_v10  ;;  %7059 = vmatmul.mubr.f32.gmra.mxu1 %v716_v17  ;;  %7145 = vmatmul.mubr.f32.gmra.mxu0 %v9306_v31  ;;  %v735_v28 = vsub.f32 %v9296_v11, %v13479_v23  ;;  %v745_v18 = vsub.f32 %v9300_v12, %v13480_v33  ;;  %v9336_v36 = vpop.eup %8119  ;;  %v523_v4 = vmul.f32 1.442695, %v474_v9  ;;  %v9340_v37 = vand.u32 4294901760, %v9323_v10 }
 0x180   :  { %v9334_v22 = vsub.f32 %v9302_v21, %v9311_v27  ;;  %13858 = vst [vmem:[#allocation77_spill] sm:$0xff] %v9336_v36  ;;  %v525_v51 = vmul.f32 1.442695, %v475_v49  ;;  %7061 = vmatprep.mubr.f32.mxu1 %v726_v16  ;;  %7147 = vmatprep.mubr.f32.mxu0 %v9311_v27  ;;  %v13490_v17 = vand.u32 4294901760, %v9320_v50  ;;  %v432_v23 = vpop.xlane.xlu1 %431  ;;  %v434_v33 = vpop.xlane.xlu0 %433  ;;  %v9345_v21 = vand.u32 4294901760, %v9336_v36 }
 0x181   :  { %13859 = vst [vmem:[#allocation78_spill] sm:$0xff] %v9340_v37  ;;  %7187 = vmatprep.subr.mxu1 %v8791_v52  ;;  %v736_v26 = vand.u32 4294901760, %v735_v28  ;;  %v746_v19 = vand.u32 4294901760, %v745_v18  ;;  %8133 = vpow2.f32 %v523_v4  ;;  %v476_v16 = vsub.f32 %v9134_v20, %v432_v23  ;;  %7273 = vmatprep.subr.mxu0 %v8776_v47 }
 0x182   :  { %13860 = vst [vmem:[#allocation79_spill] sm:$0xff] %v9345_v21  ;;  %v13489_v9 = vand.u32 4294901760, %v9334_v22  ;;  %v477_v49 = vsub.f32 %v9137_v14, %v434_v33  ;;  %7188 = vmatpush3.msra.mxu1 %v8791_v52  ;;  %v755_v38 = vsub.f32 %v9320_v50, %v13490_v17  ;;  %v9356_v28 = vpop.eup %8121  ;;  %8135 = vpow2.f32 %v525_v51  ;;  %7274 = vmatpush3.msra.mxu0 %v8776_v47 }
 0x183   :  { %13861 = vst [vmem:[#allocation80_spill] sm:$0xff] %v9356_v28  ;;  %7062 = vmatmul.mubr.f32.gmra.mxu1 %v736_v26  ;;  %7148 = vmatmul.mubr.f32.gmra.mxu0 %v9340_v37  ;;  %v9364_v14 = vsub.f32 %v9323_v10, %v9340_v37  ;;  %v9368_v23 = vsub.f32 %v9336_v36, %v9345_v21  ;;  %v9370_v33 = vpop.eup %8123  ;;  %v527_v18 = vmul.f32 1.442695, %v476_v16  ;;  %v9374_v26 = vand.u32 4294901760, %v9356_v28 }
 0x184   :  { %v765_v20 = vsub.f32 %v9334_v22, %v13489_v9  ;;  %13862 = vst [vmem:[#allocation81_spill] sm:$0xff] %v9370_v33  ;;  %v529_v4 = vmul.f32 1.442695, %v477_v49  ;;  %7064 = vmatprep.mubr.f32.mxu1 %v746_v19  ;;  %7150 = vmatprep.mubr.f32.mxu0 %v9345_v21  ;;  %v756_v51 = vand.u32 4294901760, %v755_v38  ;;  %v436_v9 = vpop.xlane.xlu1 %435  ;;  %v438_v17 = vpop.xlane.xlu0 %437  ;;  %v9378_v10 = vand.u32 4294901760, %v9370_v33 }
 0x185   :  { %13863 = vst [vmem:[#allocation82_spill] sm:$0xff] %v9374_v26  ;;  %7189 = vmatprep.subr.mxu1 %v8797_v54  ;;  %v13499_v36 = vand.u32 4294901760, %v9364_v14  ;;  %v13500_v16 = vand.u32 4294901760, %v9368_v23  ;;  %8137 = vpow2.f32 %v527_v18  ;;  %v478_v38 = vsub.f32 %v9144_v48, %v436_v9  ;;  %7275 = vmatprep.subr.mxu0 %v8793_v53 }
 0x186   :  { %v766_v52 = vand.u32 4294901760, %v765_v20  ;;  %13864 = vst [vmem:[#allocation83_spill] sm:$0xff] %v9378_v10  ;;  %v479_v19 = vsub.f32 %v9147_v59, %v438_v17  ;;  %7190 = vmatpush3.msra.mxu1 %v8797_v54  ;;  %v9388_v49 = vsub.f32 %v9356_v28, %v9374_v26  ;;  %v9391_v20 = vpop.eup %8125  ;;  %8139 = vpow2.f32 %v529_v4  ;;  %7276 = vmatpush3.msra.mxu0 %v8793_v53 }
 0x187   :  { %13865 = vst [vmem:[#allocation84_spill] sm:$0xff] %v9391_v20  ;;  %7065 = vmatmul.mubr.f32.gmra.mxu1 %v756_v51  ;;  %7151 = vmatmul.mubr.f32.gmra.mxu0 %v9374_v26  ;;  %v775_v48 = vsub.f32 %v9364_v14, %v13499_v36  ;;  %v785_v59 = vsub.f32 %v9368_v23, %v13500_v16  ;;  %v9404_v9 = vpop.eup %8127  ;;  %v531_v18 = vmul.f32 1.442695, %v478_v38  ;;  %v9408_v4 = vand.u32 4294901760, %v9391_v20 }
 0x188   :  { %v9402_v17 = vsub.f32 %v9370_v33, %v9378_v10  ;;  %13866 = vst [vmem:[#allocation85_spill] sm:$0xff] %v9404_v9  ;;  %v533_v54 = vmul.f32 1.442695, %v479_v19  ;;  %7067 = vmatprep.mubr.f32.mxu1 %v766_v52  ;;  %7153 = vmatprep.mubr.f32.mxu0 %v9378_v10  ;;  %v13510_v51 = vand.u32 4294901760, %v9388_v49  ;;  %v440_v36 = vpop.xlane.xlu1 %439  ;;  %v442_v16 = vpop.xlane.xlu0 %441  ;;  %v9413_v33 = vand.u32 4294901760, %v9404_v9 }
 0x189   :  { %13867 = vst [vmem:[#allocation86_spill] sm:$0xff] %v9408_v4  ;;  %7191 = vmatprep.subr.mxu1 %v8800_v55  ;;  %v776_v28 = vand.u32 4294901760, %v775_v48  ;;  %v786_v26 = vand.u32 4294901760, %v785_v59  ;;  %8141 = vpow2.f32 %v531_v18  ;;  %v480_v52 = vsub.f32 %v9152_v15, %v440_v36  ;;  %7277 = vmatprep.subr.mxu0 %v8815_v60 }
 0x18a   :  { %13868 = vst [vmem:[#allocation87_spill] sm:$0xff] %v9413_v33  ;;  %v13509_v38 = vand.u32 4294901760, %v9402_v17  ;;  %v481_v19 = vsub.f32 %v9155_v58, %v442_v16  ;;  %7192 = vmatpush3.msra.mxu1 %v8800_v55  ;;  %v795_v10 = vsub.f32 %v9388_v49, %v13510_v51  ;;  %v9424_v48 = vpop.eup %8129  ;;  %8143 = vpow2.f32 %v533_v54  ;;  %7278 = vmatpush3.msra.mxu0 %v8815_v60 }
 0x18b   :  { %13869 = vst [vmem:[#allocation88_spill] sm:$0xff] %v9424_v48  ;;  %7068 = vmatmul.mubr.f32.gmra.mxu1 %v776_v28  ;;  %7154 = vmatmul.mubr.f32.gmra.mxu0 %v9408_v4  ;;  %v9432_v58 = vsub.f32 %v9391_v20, %v9408_v4  ;;  %v9436_v36 = vsub.f32 %v9404_v9, %v9413_v33  ;;  %v9438_v16 = vpop.eup %8131  ;;  %v535_v59 = vmul.f32 1.442695, %v480_v52  ;;  %v9442_v28 = vand.u32 4294901760, %v9424_v48 }
 0x18c   :  { %v805_v15 = vsub.f32 %v9402_v17, %v13509_v38  ;;  %13870 = vst [vmem:[#allocation89_spill] sm:$0xff] %v9438_v16  ;;  %v537_v18 = vmul.f32 1.442695, %v481_v19  ;;  %7070 = vmatprep.mubr.f32.mxu1 %v786_v26  ;;  %7156 = vmatprep.mubr.f32.mxu0 %v9413_v33  ;;  %v796_v54 = vand.u32 4294901760, %v795_v10  ;;  %v444_v38 = vpop.xlane.xlu1 %443  ;;  %v446_v51 = vpop.xlane.xlu0 %445  ;;  %v9446_v20 = vand.u32 4294901760, %v9438_v16 }
 0x18d   :  { %13871 = vst [vmem:[#allocation90_spill] sm:$0xff] %v9442_v28  ;;  %7193 = vmatprep.subr.mxu1 %v8803_v56  ;;  %v13519_v9 = vand.u32 4294901760, %v9432_v58  ;;  %v13520_v52 = vand.u32 4294901760, %v9436_v36  ;;  %8145 = vpow2.f32 %v535_v59  ;;  %v482_v10 = vsub.f32 %v9160_v2, %v444_v38  ;;  %7279 = vmatprep.subr.mxu0 %v8928_v34 }
 0x18e   :  { %v806_v55 = vand.u32 4294901760, %v805_v15  ;;  %13872 = vst [vmem:[#allocation91_spill] sm:$0xff] %v9446_v20  ;;  %v483_v26 = vsub.f32 %v9163_v32, %v446_v51  ;;  %7194 = vmatpush3.msra.mxu1 %v8803_v56  ;;  %v9456_v19 = vsub.f32 %v9424_v48, %v9442_v28  ;;  %v9459_v15 = vpop.eup %8133  ;;  %8147 = vpow2.f32 %v537_v18  ;;  %7280 = vmatpush3.msra.mxu0 %v8928_v34 }
 0x18f   :  { %13873 = vst [vmem:[#allocation92_spill] sm:$0xff] %v9459_v15  ;;  %7071 = vmatmul.mubr.f32.gmra.mxu1 %v796_v54  ;;  %7157 = vmatmul.mubr.f32.gmra.mxu0 %v9442_v28  ;;  %v815_v2 = vsub.f32 %v9432_v58, %v13519_v9  ;;  %v825_v32 = vsub.f32 %v9436_v36, %v13520_v52  ;;  %v9472_v38 = vpop.eup %8135  ;;  %v539_v59 = vmul.f32 1.442695, %v482_v10  ;;  %v9476_v18 = vand.u32 4294901760, %v9459_v15 }
 0x190   :  { %v9470_v51 = vsub.f32 %v9438_v16, %v9446_v20  ;;  %13874 = vst [vmem:[#allocation93_spill] sm:$0xff] %v9472_v38  ;;  %v541_v56 = vmul.f32 1.442695, %v483_v26  ;;  %7073 = vmatprep.mubr.f32.mxu1 %v806_v55  ;;  %7159 = vmatprep.mubr.f32.mxu0 %v9446_v20  ;;  %v13530_v54 = vand.u32 4294901760, %v9456_v19  ;;  %v448_v9 = vpop.xlane.xlu1 %447  ;;  %v450_v52 = vpop.xlane.xlu0 %449  ;;  %v9481_v16 = vand.u32 4294901760, %v9472_v38 }
 0x191   :  { %13875 = vst [vmem:[#allocation94_spill] sm:$0xff] %v9476_v18  ;;  %7195 = vmatprep.subr.mxu1 %v8822_v62  ;;  %v816_v48 = vand.u32 4294901760, %v815_v2  ;;  %v826_v28 = vand.u32 4294901760, %v825_v32  ;;  %8149 = vpow2.f32 %v539_v59  ;;  %v484_v55 = vsub.f32 %v9168_v61, %v448_v9  ;;  %7281 = vmatprep.subr.mxu0 %v8943_v44 }
 0x192   :  { %13876 = vst [vmem:[#allocation95_spill] sm:$0xff] %v9481_v16  ;;  %v13529_v10 = vand.u32 4294901760, %v9470_v51  ;;  %v485_v26 = vsub.f32 %v9171_v43, %v450_v52  ;;  %7196 = vmatpush3.msra.mxu1 %v8822_v62  ;;  %v835_v20 = vsub.f32 %v9456_v19, %v13530_v54  ;;  %v9492_v2 = vpop.eup %8137  ;;  %8151 = vpow2.f32 %v541_v56  ;;  %7282 = vmatpush3.msra.mxu0 %v8943_v44 }
 0x193   :  { %13877 = vst [vmem:[#allocation96_spill] sm:$0xff] %v9492_v2  ;;  %7074 = vmatmul.mubr.f32.gmra.mxu1 %v816_v48  ;;  %7160 = vmatmul.mubr.f32.gmra.mxu0 %v9476_v18  ;;  %v9500_v43 = vsub.f32 %v9459_v15, %v9476_v18  ;;  %v9504_v9 = vsub.f32 %v9472_v38, %v9481_v16  ;;  %v9506_v52 = vpop.eup %8139  ;;  %v543_v32 = vmul.f32 1.442695, %v484_v55  ;;  %v9510_v48 = vand.u32 4294901760, %v9492_v2 }
 0x194   :  { %v845_v61 = vsub.f32 %v9470_v51, %v13529_v10  ;;  %13878 = vst [vmem:[#allocation97_spill] sm:$0xff] %v9506_v52  ;;  %v545_v59 = vmul.f32 1.442695, %v485_v26  ;;  %7076 = vmatprep.mubr.f32.mxu1 %v826_v28  ;;  %7162 = vmatprep.mubr.f32.mxu0 %v9481_v16  ;;  %v836_v56 = vand.u32 4294901760, %v835_v20  ;;  %v452_v10 = vpop.xlane.xlu1 %451  ;;  %v454_v54 = vpop.xlane.xlu0 %453  ;;  %v9514_v15 = vand.u32 4294901760, %v9506_v52 }
 0x195   :  { %13879 = vst [vmem:[#allocation98_spill] sm:$0xff] %v9510_v48  ;;  %7197 = vmatprep.subr.mxu1 %v8846_v7  ;;  %v13539_v38 = vand.u32 4294901760, %v9500_v43  ;;  %v13542_v55 = vand.u32 4294901760, %v9504_v9  ;;  %8153 = vpow2.f32 %v543_v32  ;;  %v486_v20 = vsub.f32 %v9176_v3, %v452_v10  ;;  %7283 = vmatprep.subr.mxu0 %v8957_v1 }
 0x196   :  { %v846_v62 = vand.u32 4294901760, %v845_v61  ;;  %13880 = vst [vmem:[#allocation99_spill] sm:$0xff] %v9514_v15  ;;  %v487_v28 = vsub.f32 %v9179_v29, %v454_v54  ;;  %7198 = vmatpush3.msra.mxu1 %v8846_v7  ;;  %v9524_v26 = vsub.f32 %v9492_v2, %v9510_v48  ;;  %v9527_v61 = vpop.eup %8141  ;;  %8155 = vpow2.f32 %v545_v59  ;;  %v13884_v2 = vld [vmem:[#allocation33_spill] sm:$0xff]  ;;  %7284 = vmatpush3.msra.mxu0 %v8957_v1 }
 0x197   :  { %13881 = vst [vmem:[#allocation100_spill] sm:$0xff] %v9527_v61  ;;  %7077 = vmatmul.mubr.f32.gmra.mxu1 %v836_v56  ;;  %7163 = vmatmul.mubr.f32.gmra.mxu0 %v9510_v48  ;;  %v855_v3 = vsub.f32 %v9500_v43, %v13539_v38  ;;  %v865_v29 = vsub.f32 %v9504_v9, %v13542_v55  ;;  %v9540_v10 = vpop.eup %8143  ;;  %v547_v32 = vmul.f32 1.442695, %v486_v20  ;;  %v9544_v59 = vand.u32 4294901760, %v9527_v61 }
 0x198   :  { %v9538_v54 = vsub.f32 %v9506_v52, %v9514_v15  ;;  %13882 = vst [vmem:[#allocation101_spill] sm:$0xff] %v9540_v10  ;;  %v549_v7 = vmul.f32 1.442695, %v487_v28  ;;  %7079 = vmatprep.mubr.f32.mxu1 %v846_v62  ;;  %7165 = vmatprep.mubr.f32.mxu0 %v9514_v15  ;;  %v13551_v56 = vand.u32 4294901760, %v9524_v26  ;;  %v456_v38 = vpop.xlane.xlu1 %455  ;;  %v9549_v52 = vand.u32 4294901760, %v9540_v10  ;;  %v13886_v62 = vld [vmem:[#allocation62_spill] sm:$0xff] }
 0x199   :  { %13883 = vst [vmem:[#allocation102_spill] sm:$0xff] %v9544_v59  ;;  %7199 = vmatprep.subr.mxu1 %v13884_v2  ;;  %v856_v55 = vand.u32 4294901760, %v855_v3  ;;  %v866_v48 = vand.u32 4294901760, %v865_v29  ;;  %8157 = vpow2.f32 %v547_v32  ;;  %v488_v20 = vsub.f32 %v13886_v62, %v456_v38  ;;  %v13887_v29 = vld [vmem:[#allocation38_spill] sm:$0xff] }
 0x19a   :  { %13885 = vst [vmem:[#allocation103_spill] sm:$0xff] %v9549_v52  ;;  %v13557_v16 = vand.u32 4294901760, %v9538_v54  ;;  %7200 = vmatpush3.msra.mxu1 %v13884_v2  ;;  %v875_v28 = vsub.f32 %v9524_v26, %v13551_v56  ;;  %v9560_v3 = vsub.f32 %v9527_v61, %v9544_v59  ;;  %7285 = vmatprep.subr.mxu0 %v13887_v29  ;;  %v9563_v15 = vpop.eup %8145  ;;  %8159 = vpow2.f32 %v549_v7  ;;  %v13891_v61 = vld [vmem:[#allocation35_spill] sm:$0xff] }
 0x19b   :  { %13888 = vst [vmem:[#allocation62_spill] sm:$0xff] %v9563_v15  ;;  %7080 = vmatmul.mubr.f32.gmra.mxu1 %v856_v55  ;;  %7166 = vmatmul.mubr.f32.gmra.mxu0 %v9544_v59  ;;  %v9571_v32 = vsub.f32 %v9540_v10, %v9549_v52  ;;  %v9573_v62 = vpop.eup %8147  ;;  %v551_v56 = vmul.f32 1.442695, %v488_v20  ;;  %v9577_v7 = vand.u32 4294901760, %v9563_v15 }
 0x19c   :  { %v885_v38 = vsub.f32 %v9538_v54, %v13557_v16  ;;  %13889 = vst [vmem:[#allocation38_spill] sm:$0xff] %v9573_v62  ;;  %7082 = vmatprep.mubr.f32.mxu1 %v866_v48  ;;  %7168 = vmatprep.mubr.f32.mxu0 %v9549_v52  ;;  %v876_v2 = vand.u32 4294901760, %v875_v28  ;;  %v13561_v55 = vand.u32 4294901760, %v9560_v3  ;;  %v9582_v16 = vand.u32 4294901760, %v9573_v62  ;;  %v13893_v28 = vld [vmem:[#allocation42_spill] sm:$0xff] }
 0x19d   :  { %13890 = vst [vmem:[#allocation104_spill] sm:$0xff] %v9577_v7  ;;  %7201 = vmatprep.subr.mxu1 %v13891_v61  ;;  %v13570_v10 = vand.u32 4294901760, %v9571_v32  ;;  %7286 = vmatpush3.msra.mxu0 %v13887_v29  ;;  %8161 = vpow2.f32 %v551_v56  ;;  %v9592_v20 = vsub.f32 %v9563_v15, %v9577_v7 }
 0x19e   :  { %v886_v59 = vand.u32 4294901760, %v885_v38  ;;  %13892 = vst [vmem:[#allocation105_spill] sm:$0xff] %v9582_v16  ;;  %7202 = vmatpush3.msra.mxu1 %v13891_v61  ;;  %v895_v48 = vsub.f32 %v9560_v3, %v13561_v55  ;;  %7287 = vmatprep.subr.mxu0 %v13893_v28  ;;  %v9595_v38 = vpop.eup %8149  ;;  %v9603_v61 = vsub.f32 %v9573_v62, %v9582_v16 }
 0x19f   :  { %13894 = vst [vmem:[#allocation42_spill] sm:$0xff] %v9595_v38  ;;  %7083 = vmatmul.mubr.f32.gmra.mxu1 %v876_v2  ;;  %7169 = vmatmul.mubr.f32.gmra.mxu0 %v9577_v7  ;;  %v905_v56 = vsub.f32 %v9571_v32, %v13570_v10  ;;  %v9605_v55 = vpop.eup %8151  ;;  %v9609_v52 = vand.u32 4294901760, %v9595_v38  ;;  %v13578_v2 = vand.u32 4294901760, %v9592_v20  ;;  %v13897_v7 = vld [vmem:[#allocation37_spill] sm:$0xff] }
 0x1a0   :  { %13895 = vst [vmem:[#allocation106_spill] sm:$0xff] %v9605_v55  ;;  %7085 = vmatprep.mubr.f32.mxu1 %v886_v59  ;;  %7171 = vmatprep.mubr.f32.mxu0 %v9582_v16  ;;  %v896_v15 = vand.u32 4294901760, %v895_v48  ;;  %v9614_v10 = vand.u32 4294901760, %v9605_v55  ;;  %v13587_v62 = vand.u32 4294901760, %v9603_v61  ;;  %v13899_v16 = vld [vmem:[#allocation46_spill] sm:$0xff] }
 0x1a1   :  { %13896 = vst [vmem:[#allocation107_spill] sm:$0xff] %v9609_v52  ;;  %7203 = vmatprep.subr.mxu1 %v13897_v7  ;;  %v906_v18 = vand.u32 4294901760, %v905_v56  ;;  %7288 = vmatpush3.msra.mxu0 %v13893_v28  ;;  %v915_v59 = vsub.f32 %v9592_v20, %v13578_v2  ;;  %v9624_v48 = vsub.f32 %v9595_v38, %v9609_v52 }
 0x1a2   :  { %13898 = vst [vmem:[#allocation108_spill] sm:$0xff] %v9614_v10  ;;  %7204 = vmatpush3.msra.mxu1 %v13897_v7  ;;  %7289 = vmatprep.subr.mxu0 %v13899_v16  ;;  %v9627_v56 = vpop.eup %8153  ;;  %v925_v33 = vsub.f32 %v9603_v61, %v13587_v62  ;;  %v9635_v7 = vsub.f32 %v9605_v55, %v9614_v10 }
 0x1a3   :  { %13900 = vst [vmem:[#allocation46_spill] sm:$0xff] %v9627_v56  ;;  %7086 = vmatmul.mubr.f32.gmra.mxu1 %v896_v15  ;;  %7172 = vmatmul.mubr.f32.gmra.mxu0 %v9609_v52  ;;  %v9637_v2 = vpop.eup %8155  ;;  %v916_v38 = vand.u32 4294901760, %v915_v59  ;;  %v9641_v4 = vand.u32 4294901760, %v9627_v56  ;;  %v13595_v15 = vand.u32 4294901760, %v9624_v48  ;;  %v13903_v52 = vld [vmem:[#allocation41_spill] sm:$0xff] }
 0x1a4   :  { %13901 = vst [vmem:[#allocation109_spill] sm:$0xff] %v9637_v2  ;;  %7088 = vmatprep.mubr.f32.mxu1 %v906_v18  ;;  %7174 = vmatprep.mubr.f32.mxu0 %v9614_v10  ;;  %v926_v21 = vand.u32 4294901760, %v925_v33  ;;  %v9646_v62 = vand.u32 4294901760, %v9637_v2  ;;  %v13604_v55 = vand.u32 4294901760, %v9635_v7  ;;  %v13905_v10 = vld [vmem:[#allocation49_spill] sm:$0xff] }
 0x1a5   :  { %13902 = vst [vmem:[#allocation110_spill] sm:$0xff] %v9641_v4  ;;  %7205 = vmatprep.subr.mxu1 %v13903_v52  ;;  %7290 = vmatpush3.msra.mxu0 %v13899_v16  ;;  %v935_v18 = vsub.f32 %v9624_v48, %v13595_v15  ;;  %v9656_v59 = vsub.f32 %v9627_v56, %v9641_v4 }
 0x1a6   :  { %13904 = vst [vmem:[#allocation111_spill] sm:$0xff] %v9646_v62  ;;  %7206 = vmatpush3.msra.mxu1 %v13903_v52  ;;  %7291 = vmatprep.subr.mxu0 %v13905_v10  ;;  %v9659_v33 = vpop.eup %8157  ;;  %v945_v37 = vsub.f32 %v9635_v7, %v13604_v55  ;;  %v9667_v52 = vsub.f32 %v9637_v2, %v9646_v62 }
 0x1a7   :  { %13906 = vst [vmem:[#allocation49_spill] sm:$0xff] %v9659_v33  ;;  %7089 = vmatmul.mubr.f32.gmra.mxu1 %v916_v38  ;;  %7175 = vmatmul.mubr.f32.gmra.mxu0 %v9641_v4  ;;  %v9669_v15 = vpop.eup %8159  ;;  %v936_v56 = vand.u32 4294901760, %v935_v18  ;;  %v9673_v27 = vand.u32 4294901760, %v9659_v33  ;;  %v13612_v38 = vand.u32 4294901760, %v9656_v59  ;;  %v13909_v4 = vld [vmem:[#allocation45_spill] sm:$0xff] }
 0x1a8   :  { %13907 = vst [vmem:[#allocation112_spill] sm:$0xff] %v9669_v15  ;;  %7091 = vmatprep.mubr.f32.mxu1 %v926_v21  ;;  %7177 = vmatprep.mubr.f32.mxu0 %v9646_v62  ;;  %v946_v31 = vand.u32 4294901760, %v945_v37  ;;  %v9678_v55 = vand.u32 4294901760, %v9669_v15  ;;  %v13619_v2 = vand.u32 4294901760, %v9667_v52  ;;  %v13911_v18 = vld [vmem:[#allocation53_spill] sm:$0xff] }
 0x1a9   :  { %13908 = vst [vmem:[#allocation113_spill] sm:$0xff] %v9673_v27  ;;  %7207 = vmatprep.subr.mxu1 %v13909_v4  ;;  %7292 = vmatpush3.msra.mxu0 %v13905_v10  ;;  %v955_v21 = vsub.f32 %v9656_v59, %v13612_v38  ;;  %v9689_v62 = vsub.f32 %v9659_v33, %v9673_v27 }
 0x1aa   :  { %13910 = vst [vmem:[#allocation114_spill] sm:$0xff] %v9678_v55  ;;  %7208 = vmatpush3.msra.mxu1 %v13909_v4  ;;  %7293 = vmatprep.subr.mxu0 %v13911_v18  ;;  %v9691_v37 = vpop.eup %8161  ;;  %v965_v5 = vsub.f32 %v9667_v52, %v13619_v2  ;;  %v9699_v4 = vsub.f32 %v9669_v15, %v9678_v55 }
 0x1ab   :  { %13912 = vst [vmem:[#allocation53_spill] sm:$0xff] %v9691_v37  ;;  %7092 = vmatmul.mubr.f32.gmra.mxu1 %v936_v56  ;;  %7178 = vmatmul.mubr.f32.gmra.mxu0 %v9673_v27  ;;  %v956_v38 = vand.u32 4294901760, %v955_v21  ;;  %v9703_v33 = vand.u32 4294901760, %v9691_v37  ;;  %v13623_v0 = vand.u32 4294901760, %v9689_v62  ;;  %v13914_v56 = vld [vmem:[#allocation50_spill] sm:$0xff] }
 0x1ac   :  { %7094 = vmatprep.mubr.f32.mxu1 %v946_v31  ;;  %7180 = vmatprep.mubr.f32.mxu0 %v9678_v55  ;;  %v966_v27 = vand.u32 4294901760, %v965_v5  ;;  %v984_v2 = vand.u32 4294901760, %v9699_v4  ;;  %v13916_v55 = vld [vmem:[#allocation52_spill] sm:$0xff] }
 0x1ad   :  { %13913 = vst [vmem:[#allocation115_spill] sm:$0xff] %v9703_v33  ;;  %7209 = vmatprep.subr.mxu1 %v13914_v56  ;;  %7294 = vmatpush3.msra.mxu0 %v13911_v18  ;;  %v975_v31 = vsub.f32 %v9689_v62, %v13623_v0  ;;  %v9715_v21 = vsub.f32 %v9691_v37, %v9703_v33 }
 0x1ae   :  { %7210 = vmatpush3.msra.mxu1 %v13914_v56  ;;  %7423 = vmatprep.subr.mxu0 %v8757_v39  ;;  %v985_v5 = vsub.f32 %v9699_v4, %v984_v2  ;;  %v13915_v56 = vand.u32 4294901760, %v9206_v6 }
 0x1af   :  { %7095 = vmatmul.mubr.f32.gmra.mxu1 %v956_v38  ;;  %7181 = vmatmul.mubr.f32.gmra.mxu0 %v9703_v33  ;;  %v976_v15 = vand.u32 4294901760, %v975_v31  ;;  %v994_v0 = vand.u32 4294901760, %v9715_v21  ;;  %v13917_v33 = vand.u32 4294901760, %v9229_v25  ;;  %v13919_v31 = vld [vmem:[#allocation57_spill] sm:$0xff] }
 0x1b0   :  { %7097 = vmatprep.mubr.f32.mxu1 %v966_v27  ;;  %7295 = vmatprep.mubr.f32.mxu0 %v13915_v56  ;;  %v986_v37 = vand.u32 4294901760, %v985_v5  ;;  %v13918_v27 = vand.u32 4294901760, %v9233_v30  ;;  %v13920_v5 = vand.u32 4294901760, %v9252_v63 }
 0x1b1   :  { %7211 = vmatprep.subr.mxu1 %v13916_v55  ;;  %v995_v38 = vsub.f32 %v9715_v21, %v994_v0 }
 0x1b2   :  { %7212 = vmatpush3.msra.mxu1 %v13916_v55 }
 0x1b3   :  { %7098 = vmatmul.mubr.f32.gmra.mxu1 %v976_v15  ;;  %7296 = vmatmul.mubr.f32.vlgmr.msra.gmra.mxu0 %v13917_v33  ;;  %v996_v56 = vand.u32 4294901760, %v995_v38  ;;  %v13921_v15 = vand.u32 4294901760, %v9266_v13  ;;  %v13922_v33 = vld [vmem:[#allocation14_spill] sm:$0xff]  ;;  %v13925_v38 = vld [vmem:[#allocation15_spill] sm:$0xff] }
 0x1b4   :  { %7100 = vmatprep.mubr.f32.mxu1 %v986_v37  ;;  %7298 = vmatprep.mubr.f32.mxu0 %v13918_v27  ;;  %v13923_v37 = vand.u32 4294901760, %v9296_v11  ;;  %v13927_v27 = vand.u32 4294901760, %v9334_v22 }
 0x1b5   :  { %7213 = vmatprep.subr.mxu1 %v13919_v31  ;;  %7424 = vmatpush3.msra.mxu0 %v8757_v39 }
 0x1b6   :  { %7214 = vmatpush3.msra.mxu1 %v13919_v31  ;;  %7425 = vmatprep.subr.mxu0 %v8759_v40 }
 0x1b7   :  { %7101 = vmatmul.mubr.f32.gmra.mxu1 %v996_v56  ;;  %7299 = vmatmul.mubr.f32.gmra.mxu0 %v13920_v5  ;;  %v13931_v56 = vld [vmem:[#allocation17_spill] sm:$0xff]  ;;  %v13934_v5 = vld [vmem:[#allocation19_spill] sm:$0xff] }
 0x1b8   :  { %7215 = vmatprep.mubr.f32.mxu1 %v9206_v6  ;;  %7301 = vmatprep.mubr.f32.mxu0 %v13921_v15  ;;  %v13924_v6 = vand.u32 4294901760, %v9300_v12  ;;  %v13937_v15 = vld [vmem:[#allocation20_spill] sm:$0xff] }
 0x1b9   :  { %7343 = vmatprep.subr.mxu1 %v13922_v33  ;;  %7426 = vmatpush3.msra.mxu0 %v8759_v40 }
 0x1ba   :  { %7427 = vmatprep.subr.mxu0 %v8761_v41 }
 0x1bb   :  { %7216 = vmatmul.mubr.f32.vlgmr.msra.gmra.mxu1 %v9229_v25  ;;  %7302 = vmatmul.mubr.f32.gmra.mxu0 %v13923_v37  ;;  %v13926_v25 = vand.u32 4294901760, %v9320_v50  ;;  %v13940_v37 = vld [vmem:[#allocation25_spill] sm:$0xff] }
 0x1bc   :  { %7344 = vmatpush3.msra.mxu1 %v13922_v33  ;;  %7218 = vmatprep.mubr.f32.mxu1 %v9233_v30  ;;  %v13928_v30 = vld [vmem:[#allocation16_spill] sm:$0xff] }
 0x1bd   :  { %7304 = vmatprep.mubr.f32.mxu0 %v13924_v6  ;;  %7345 = vmatprep.subr.mxu1 %v13925_v38  ;;  %v13943_v6 = vld [vmem:[#allocation27_spill] sm:$0xff] }
 0x1be   :  { %7346 = vmatpush3.msra.mxu1 %v13925_v38  ;;  %7428 = vmatpush3.msra.mxu0 %v8761_v41 }
 0x1bf   :  { %7219 = vmatmul.mubr.f32.gmra.mxu1 %v9252_v63  ;;  %7305 = vmatmul.mubr.f32.gmra.mxu0 %v13926_v25  ;;  %v13929_v63 = vand.u32 4294901760, %v9364_v14  ;;  %v13946_v25 = vld [vmem:[#allocation34_spill] sm:$0xff] }
 0x1c0   :  { %7221 = vmatprep.mubr.f32.mxu1 %v9266_v13  ;;  %7307 = vmatprep.mubr.f32.mxu0 %v13927_v27  ;;  %v13930_v13 = vand.u32 4294901760, %v9368_v23  ;;  %v13949_v27 = vld [vmem:[#allocation36_spill] sm:$0xff] }
 0x1c1   :  { %7347 = vmatprep.subr.mxu1 %v13928_v30  ;;  %7429 = vmatprep.subr.mxu0 %v8772_v45 }
 0x1c2   :  { %7348 = vmatpush3.msra.mxu1 %v13928_v30  ;;  %7430 = vmatpush3.msra.mxu0 %v8772_v45 }
 0x1c3   :  { %7222 = vmatmul.mubr.f32.gmra.mxu1 %v9296_v11  ;;  %7308 = vmatmul.mubr.f32.gmra.mxu0 %v13929_v63  ;;  %v13932_v11 = vand.u32 4294901760, %v9388_v49  ;;  %v13952_v63 = vld [vmem:[#allocation40_spill] sm:$0xff] }
 0x1c4   :  { %7224 = vmatprep.mubr.f32.mxu1 %v9300_v12  ;;  %7310 = vmatprep.mubr.f32.mxu0 %v13930_v13  ;;  %v13933_v12 = vand.u32 4294901760, %v9402_v17  ;;  %v13955_v13 = vld [vmem:[#allocation44_spill] sm:$0xff] }
 0x1c5   :  { %7349 = vmatprep.subr.mxu1 %v13931_v56  ;;  %7431 = vmatprep.subr.mxu0 %v8774_v46 }
 0x1c6   :  { %7350 = vmatpush3.msra.mxu1 %v13931_v56  ;;  %7432 = vmatpush3.msra.mxu0 %v8774_v46 }
 0x1c7   :  { %7225 = vmatmul.mubr.f32.gmra.mxu1 %v9320_v50  ;;  %7311 = vmatmul.mubr.f32.gmra.mxu0 %v13932_v11  ;;  %v13935_v50 = vand.u32 4294901760, %v9432_v58  ;;  %v13958_v11 = vld [vmem:[#allocation48_spill] sm:$0xff] }
 0x1c8   :  { %7227 = vmatprep.mubr.f32.mxu1 %v9334_v22  ;;  %7313 = vmatprep.mubr.f32.mxu0 %v13933_v12  ;;  %v13936_v22 = vand.u32 4294901760, %v9436_v36  ;;  %v13975_v12 = vld [vmem:[#allocation83_spill] sm:$0xff] }
 0x1c9   :  { %7351 = vmatprep.subr.mxu1 %v13934_v5  ;;  %7433 = vmatprep.subr.mxu0 %v8776_v47 }
 0x1ca   :  { %7352 = vmatpush3.msra.mxu1 %v13934_v5  ;;  %7434 = vmatpush3.msra.mxu0 %v8776_v47  ;;  %v14079_v5 = vld [vmem:[#allocation11_spill] sm:$0xff] }
 0x1cb   :  { %7228 = vmatmul.mubr.f32.gmra.mxu1 %v9364_v14  ;;  %7314 = vmatmul.mubr.f32.gmra.mxu0 %v13935_v50  ;;  %v13938_v14 = vand.u32 4294901760, %v9456_v19  ;;  %v13976_v50 = vld [vmem:[#allocation29_spill] sm:$0xff] }
 0x1cc   :  { %7230 = vmatprep.mubr.f32.mxu1 %v9368_v23  ;;  %7316 = vmatprep.mubr.f32.mxu0 %v13936_v22  ;;  %v13939_v23 = vand.u32 4294901760, %v9470_v51  ;;  %v13977_v22 = vld [vmem:[#allocation86_spill] sm:$0xff] }
 0x1cd   :  { %7353 = vmatprep.subr.mxu1 %v13937_v15  ;;  %7435 = vmatprep.subr.mxu0 %v8793_v53 }
 0x1ce   :  { %7354 = vmatpush3.msra.mxu1 %v13937_v15  ;;  %7436 = vmatpush3.msra.mxu0 %v8793_v53 }
 0x1cf   :  { %7231 = vmatmul.mubr.f32.gmra.mxu1 %v9388_v49  ;;  %7317 = vmatmul.mubr.f32.gmra.mxu0 %v13938_v14  ;;  %v13941_v49 = vand.u32 4294901760, %v9500_v43  ;;  %v13978_v14 = vld [vmem:[#allocation87_spill] sm:$0xff] }
 0x1d0   :  { %7233 = vmatprep.mubr.f32.mxu1 %v9402_v17  ;;  %7319 = vmatprep.mubr.f32.mxu0 %v13939_v23  ;;  %v13942_v17 = vand.u32 4294901760, %v9504_v9  ;;  %v13979_v23 = vld [vmem:[#allocation30_spill] sm:$0xff] }
 0x1d1   :  { %7355 = vmatprep.subr.mxu1 %v13940_v37  ;;  %7437 = vmatprep.subr.mxu0 %v8815_v60 }
 0x1d2   :  { %7356 = vmatpush3.msra.mxu1 %v13940_v37  ;;  %7438 = vmatpush3.msra.mxu0 %v8815_v60 }
 0x1d3   :  { %7234 = vmatmul.mubr.f32.gmra.mxu1 %v9432_v58  ;;  %7320 = vmatmul.mubr.f32.gmra.mxu0 %v13941_v49  ;;  %v13944_v58 = vand.u32 4294901760, %v9524_v26  ;;  %v13980_v49 = vld [vmem:[#allocation90_spill] sm:$0xff] }
 0x1d4   :  { %7236 = vmatprep.mubr.f32.mxu1 %v9436_v36  ;;  %7322 = vmatprep.mubr.f32.mxu0 %v13942_v17  ;;  %v13945_v36 = vand.u32 4294901760, %v9538_v54  ;;  %v13981_v17 = vld [vmem:[#allocation91_spill] sm:$0xff] }
 0x1d5   :  { %7357 = vmatprep.subr.mxu1 %v13943_v6  ;;  %7439 = vmatprep.subr.mxu0 %v8928_v34 }
 0x1d6   :  { %7358 = vmatpush3.msra.mxu1 %v13943_v6  ;;  %7440 = vmatpush3.msra.mxu0 %v8928_v34 }
 0x1d7   :  { %7237 = vmatmul.mubr.f32.gmra.mxu1 %v9456_v19  ;;  %7323 = vmatmul.mubr.f32.gmra.mxu0 %v13944_v58  ;;  %v13947_v19 = vand.u32 4294901760, %v9560_v3  ;;  %v13982_v58 = vld [vmem:[#allocation31_spill] sm:$0xff] }
 0x1d8   :  { %7239 = vmatprep.mubr.f32.mxu1 %v9470_v51  ;;  %7325 = vmatprep.mubr.f32.mxu0 %v13945_v36  ;;  %v13948_v51 = vand.u32 4294901760, %v9571_v32  ;;  %v13983_v36 = vld [vmem:[#allocation94_spill] sm:$0xff] }
 0x1d9   :  { %7359 = vmatprep.subr.mxu1 %v13946_v25  ;;  %7441 = vmatprep.subr.mxu0 %v8943_v44 }
 0x1da   :  { %7360 = vmatpush3.msra.mxu1 %v13946_v25  ;;  %7442 = vmatpush3.msra.mxu0 %v8943_v44 }
 0x1db   :  { %7240 = vmatmul.mubr.f32.gmra.mxu1 %v9500_v43  ;;  %7326 = vmatmul.mubr.f32.gmra.mxu0 %v13947_v19  ;;  %v13950_v43 = vand.u32 4294901760, %v9592_v20  ;;  %v13984_v19 = vld [vmem:[#allocation95_spill] sm:$0xff] }
 0x1dc   :  { %7242 = vmatprep.mubr.f32.mxu1 %v9504_v9  ;;  %7328 = vmatprep.mubr.f32.mxu0 %v13948_v51  ;;  %v13951_v9 = vand.u32 4294901760, %v9603_v61  ;;  %v13985_v51 = vld [vmem:[#allocation39_spill] sm:$0xff] }
 0x1dd   :  { %7361 = vmatprep.subr.mxu1 %v13949_v27  ;;  %7443 = vmatprep.subr.mxu0 %v8957_v1 }
 0x1de   :  { %7362 = vmatpush3.msra.mxu1 %v13949_v27  ;;  %7444 = vmatpush3.msra.mxu0 %v8957_v1 }
 0x1df   :  { %7243 = vmatmul.mubr.f32.gmra.mxu1 %v9524_v26  ;;  %7329 = vmatmul.mubr.f32.gmra.mxu0 %v13950_v43  ;;  %v13953_v26 = vand.u32 4294901760, %v9624_v48  ;;  %v13986_v43 = vld [vmem:[#allocation98_spill] sm:$0xff] }
 0x1e0   :  { %7245 = vmatprep.mubr.f32.mxu1 %v9538_v54  ;;  %7331 = vmatprep.mubr.f32.mxu0 %v13951_v9  ;;  %v13954_v54 = vand.u32 4294901760, %v9635_v7  ;;  %v13987_v9 = vld [vmem:[#allocation99_spill] sm:$0xff] }
 0x1e1   :  { %7363 = vmatprep.subr.mxu1 %v13952_v63  ;;  %7445 = vmatprep.subr.mxu0 %v13887_v29 }
 0x1e2   :  { %7364 = vmatpush3.msra.mxu1 %v13952_v63  ;;  %7446 = vmatpush3.msra.mxu0 %v13887_v29 }
 0x1e3   :  { %7246 = vmatmul.mubr.f32.gmra.mxu1 %v9560_v3  ;;  %7332 = vmatmul.mubr.f32.gmra.mxu0 %v13953_v26  ;;  %v13956_v3 = vand.u32 4294901760, %v9656_v59  ;;  %v13988_v26 = vld [vmem:[#allocation43_spill] sm:$0xff] }
 0x1e4   :  { %7248 = vmatprep.mubr.f32.mxu1 %v9571_v32  ;;  %7334 = vmatprep.mubr.f32.mxu0 %v13954_v54  ;;  %v13957_v32 = vand.u32 4294901760, %v9667_v52  ;;  %v13989_v54 = vld [vmem:[#allocation102_spill] sm:$0xff] }
 0x1e5   :  { %7365 = vmatprep.subr.mxu1 %v13955_v13  ;;  %7447 = vmatprep.subr.mxu0 %v13893_v28 }
 0x1e6   :  { %7366 = vmatpush3.msra.mxu1 %v13955_v13  ;;  %7448 = vmatpush3.msra.mxu0 %v13893_v28 }
 0x1e7   :  { %7249 = vmatmul.mubr.f32.gmra.mxu1 %v9592_v20  ;;  %7335 = vmatmul.mubr.f32.gmra.mxu0 %v13956_v3  ;;  %v13959_v20 = vand.u32 4294901760, %v9689_v62  ;;  %v13990_v3 = vld [vmem:[#allocation103_spill] sm:$0xff] }
 0x1e8   :  { %7251 = vmatprep.mubr.f32.mxu1 %v9603_v61  ;;  %7337 = vmatprep.mubr.f32.mxu0 %v13957_v32  ;;  %v13960_v61 = vld [vmem:[#allocation54_spill] sm:$0xff]  ;;  %v13991_v32 = vld [vmem:[#allocation47_spill] sm:$0xff] }
 0x1e9   :  { %7367 = vmatprep.subr.mxu1 %v13958_v11  ;;  %7449 = vmatprep.subr.mxu0 %v13899_v16 }
 0x1ea   :  { %7368 = vmatpush3.msra.mxu1 %v13958_v11  ;;  %7450 = vmatpush3.msra.mxu0 %v13899_v16 }
 0x1eb   :  { %7252 = vmatmul.mubr.f32.gmra.mxu1 %v9624_v48  ;;  %7338 = vmatmul.mubr.f32.gmra.mxu0 %v13959_v20  ;;  %v13968_v48 = vld [vmem:[#allocation74_spill] sm:$0xff]  ;;  %v13992_v20 = vld [vmem:[#allocation104_spill] sm:$0xff] }
 0x1ec   :  { %7254 = vmatprep.mubr.f32.mxu1 %v9635_v7  ;;  %7340 = vmatprep.mubr.f32.mxu0 %v984_v2  ;;  %v13961_v7 = vld [vmem:[#allocation56_spill] sm:$0xff]  ;;  %v13966_v2 = vld [vmem:[#allocation71_spill] sm:$0xff] }
 0x1ed   :  { %7369 = vmatprep.subr.mxu1 %v13960_v61  ;;  %7451 = vmatprep.subr.mxu0 %v13905_v10 }
 0x1ee   :  { %7370 = vmatpush3.msra.mxu1 %v13960_v61  ;;  %7452 = vmatpush3.msra.mxu0 %v13905_v10 }
 0x1ef   :  { %7255 = vmatmul.mubr.f32.gmra.mxu1 %v9656_v59  ;;  %7341 = vmatmul.mubr.f32.gmra.mxu0 %v994_v0  ;;  %v13962_v0 = vld [vmem:[#allocation58_spill] sm:$0xff] }
 0x1f0   :  { %7257 = vmatprep.mubr.f32.mxu1 %v9667_v52  ;;  %7455 = vmatprep.mubr.f32.mxu0 %v9199_v42  ;;  %v13963_v52 = vld [vmem:[#allocation21_spill] sm:$0xff]  ;;  %v13971_v59 = vld [vmem:[#allocation78_spill] sm:$0xff] }
 0x1f1   :  { %7453 = vmatprep.subr.mxu0 %v13911_v18  ;;  %7371 = vmatprep.subr.mxu1 %v13961_v7 }
 0x1f2   :  { %7454 = vmatpush3.msra.mxu0 %v13911_v18  ;;  %7372 = vmatpush3.msra.mxu1 %v13961_v7 }
 0x1f3   :  { %7258 = vmatmul.mubr.f32.gmra.mxu1 %v9689_v62  ;;  %7456 = vmatmul.mubr.f32.vlgmr.msra.gmra.mxu0 %v9217_v35  ;;  %v13965_v62 = vld [vmem:[#allocation70_spill] sm:$0xff] }
 0x1f4   :  { %7260 = vmatprep.mubr.f32.mxu1 %v9699_v4  ;;  %7458 = vmatprep.mubr.f32.mxu0 %v9213_v8  ;;  %v13964_v4 = vld [vmem:[#allocation22_spill] sm:$0xff] }
 0x1f5   :  { %7373 = vmatprep.subr.mxu1 %v13962_v0  ;;  %7583 = vmatprep.subr.mxu0 %v13963_v52 }
 0x1f6   :  { %7374 = vmatpush3.msra.mxu1 %v13962_v0  ;;  %7584 = vmatpush3.msra.mxu0 %v13963_v52  ;;  %v13993_v52 = vld [vmem:[#allocation105_spill] sm:$0xff] }
 0x1f7   :  { %7261 = vmatmul.mubr.f32.gmra.mxu1 %v9715_v21  ;;  %7459 = vmatmul.mubr.f32.gmra.mxu0 %v9239_v24  ;;  %v13974_v21 = vld [vmem:[#allocation82_spill] sm:$0xff] }
 0x1f8   :  { %7375 = vmatprep.mubr.f32.mxu1 %v9199_v42  ;;  %7461 = vmatprep.mubr.f32.mxu0 %v9243_v57  ;;  %v13967_v42 = vld [vmem:[#allocation24_spill] sm:$0xff] }
 0x1f9   :  { %7503 = vmatprep.subr.mxu1 %v8757_v39  ;;  %7585 = vmatprep.subr.mxu0 %v13964_v4 }
 0x1fa   :  { %7586 = vmatpush3.msra.mxu0 %v13964_v4  ;;  %v13994_v4 = vld [vmem:[#allocation51_spill] sm:$0xff] }
 0x1fb   :  { %7376 = vmatmul.mubr.f32.vlgmr.msra.gmra.mxu1 %v9217_v35  ;;  %7462 = vmatmul.mubr.f32.gmra.mxu0 %v13965_v62  ;;  %v13969_v35 = vld [vmem:[#allocation75_spill] sm:$0xff] }
 0x1fc   :  { %7504 = vmatpush3.msra.mxu1 %v8757_v39  ;;  %7378 = vmatprep.mubr.f32.mxu1 %v9213_v8  ;;  %v13970_v8 = vld [vmem:[#allocation26_spill] sm:$0xff] }
 0x1fd   :  { %7464 = vmatprep.mubr.f32.mxu0 %v13966_v2  ;;  %7505 = vmatprep.subr.mxu1 %v8759_v40 }
 0x1fe   :  { %7506 = vmatpush3.msra.mxu1 %v8759_v40  ;;  %7587 = vmatprep.subr.mxu0 %v13967_v42 }
 0x1ff   :  { %7379 = vmatmul.mubr.f32.gmra.mxu1 %v9239_v24  ;;  %7465 = vmatmul.mubr.f32.gmra.mxu0 %v13968_v48  ;;  %v13972_v24 = vld [vmem:[#allocation79_spill] sm:$0xff] }
 0x200   :  { %7381 = vmatprep.mubr.f32.mxu1 %v9243_v57  ;;  %7467 = vmatprep.mubr.f32.mxu0 %v13969_v35  ;;  %v13973_v57 = vld [vmem:[#allocation28_spill] sm:$0xff] }
 0x201   :  { %7507 = vmatprep.subr.mxu1 %v8761_v41  ;;  %7588 = vmatpush3.msra.mxu0 %v13967_v42  ;;  %v13997_v42 = vld [vmem:[#allocation107_spill] sm:$0xff] }
 0x202   :  { %7508 = vmatpush3.msra.mxu1 %v8761_v41  ;;  %7589 = vmatprep.subr.mxu0 %v13970_v8 }
 0x203   :  { %7382 = vmatmul.mubr.f32.gmra.mxu1 %v13965_v62  ;;  %7468 = vmatmul.mubr.f32.gmra.mxu0 %v13971_v59  ;;  %v13995_v62 = vld [vmem:[#allocation63_spill] sm:$0xff] }
 0x204   :  { %7384 = vmatprep.mubr.f32.mxu1 %v13966_v2  ;;  %7470 = vmatprep.mubr.f32.mxu0 %v13972_v24  ;;  %v9982_v2 = vmul.f32 %v13995_v62, %v13995_v62 }
 0x205   :  { %7509 = vmatprep.subr.mxu1 %v8772_v45  ;;  %7590 = vmatpush3.msra.mxu0 %v13970_v8 }
 0x206   :  { %7510 = vmatpush3.msra.mxu1 %v8772_v45  ;;  %7591 = vmatprep.subr.mxu0 %v13973_v57  ;;  %13996 = vst [vmem:[#allocation52_spill] sm:$0xff] %v9982_v2 }
 0x207   :  { %7385 = vmatmul.mubr.f32.gmra.mxu1 %v13968_v48  ;;  %7471 = vmatmul.mubr.f32.gmra.mxu0 %v13974_v21  ;;  %v13998_v48 = vld [vmem:[#allocation108_spill] sm:$0xff] }
 0x208   :  { %7387 = vmatprep.mubr.f32.mxu1 %v13969_v35  ;;  %7473 = vmatprep.mubr.f32.mxu0 %v13975_v12  ;;  %v13999_v35 = vld [vmem:[#allocation65_spill] sm:$0xff] }
 0x209   :  { %7511 = vmatprep.subr.mxu1 %v8774_v46  ;;  %7592 = vmatpush3.msra.mxu0 %v13973_v57  ;;  %v9992_v8 = vmul.f32 %v13999_v35, %v13999_v35  ;;  %v14003_v57 = vld [vmem:[#allocation64_spill] sm:$0xff] }
 0x20a   :  { %7512 = vmatpush3.msra.mxu1 %v8774_v46  ;;  %7593 = vmatprep.subr.mxu0 %v13976_v50 }
 0x20b   :  { %7388 = vmatmul.mubr.f32.gmra.mxu1 %v13971_v59  ;;  %7474 = vmatmul.mubr.f32.gmra.mxu0 %v13977_v22  ;;  %14000 = vst [vmem:[#allocation57_spill] sm:$0xff] %v9992_v8  ;;  %v14001_v59 = vld [vmem:[#allocation55_spill] sm:$0xff] }
 0x20c   :  { %7390 = vmatprep.mubr.f32.mxu1 %v13972_v24  ;;  %7476 = vmatprep.mubr.f32.mxu0 %v13978_v14  ;;  %v9997_v24 = vand.u32 4294901760, %v9982_v2 }
 0x20d   :  { %7513 = vmatprep.subr.mxu1 %v8776_v47  ;;  %7594 = vmatpush3.msra.mxu0 %v13976_v50  ;;  %v14006_v50 = vld [vmem:[#allocation111_spill] sm:$0xff] }
 0x20e   :  { %7514 = vmatpush3.msra.mxu1 %v8776_v47  ;;  %7595 = vmatprep.subr.mxu0 %v13979_v23  ;;  %14002 = vst [vmem:[#allocation14_spill] sm:$0xff] %v9997_v24 }
 0x20f   :  { %7391 = vmatmul.mubr.f32.gmra.mxu1 %v13974_v21  ;;  %7477 = vmatmul.mubr.f32.gmra.mxu0 %v13980_v49  ;;  %v10001_v21 = vmul.f32 %v14003_v57, %v14003_v57 }
 0x210   :  { %7393 = vmatprep.mubr.f32.mxu1 %v13975_v12  ;;  %7479 = vmatprep.mubr.f32.mxu0 %v13981_v17  ;;  %v14005_v12 = vld [vmem:[#allocation110_spill] sm:$0xff] }
 0x211   :  { %7515 = vmatprep.subr.mxu1 %v8793_v53  ;;  %7596 = vmatpush3.msra.mxu0 %v13979_v23  ;;  %14004 = vst [vmem:[#allocation15_spill] sm:$0xff] %v10001_v21 }
 0x212   :  { %7516 = vmatpush3.msra.mxu1 %v8793_v53  ;;  %7597 = vmatprep.subr.mxu0 %v13982_v58 }
 0x213   :  { %7394 = vmatmul.mubr.f32.gmra.mxu1 %v13977_v22  ;;  %7480 = vmatmul.mubr.f32.gmra.mxu0 %v13983_v36  ;;  %v10010_v22 = vand.u32 4294901760, %v9992_v8 }
 0x214   :  { %7396 = vmatprep.mubr.f32.mxu1 %v13978_v14  ;;  %7482 = vmatprep.mubr.f32.mxu0 %v13984_v19  ;;  %v14008_v14 = vld [vmem:[#allocation66_spill] sm:$0xff] }
 0x215   :  { %7517 = vmatprep.subr.mxu1 %v8815_v60  ;;  %7598 = vmatpush3.msra.mxu0 %v13982_v58  ;;  %14007 = vst [vmem:[#allocation16_spill] sm:$0xff] %v10010_v22  ;;  %v10014_v23 = vmul.f32 %v14008_v14, %v14008_v14  ;;  %v10023_v58 = vsub.f32 %v9982_v2, %v9997_v24  ;;  %v14025_v2 = vld [vmem:[#allocation72_spill] sm:$0xff] }
 0x216   :  { %7518 = vmatpush3.msra.mxu1 %v8815_v60  ;;  %7599 = vmatprep.subr.mxu0 %v13985_v51 }
 0x217   :  { %7397 = vmatmul.mubr.f32.gmra.mxu1 %v13980_v49  ;;  %7483 = vmatmul.mubr.f32.gmra.mxu0 %v13986_v43  ;;  %14009 = vst [vmem:[#allocation21_spill] sm:$0xff] %v10014_v23  ;;  %v14010_v49 = vld [vmem:[#allocation59_spill] sm:$0xff] }
 0x218   :  { %7399 = vmatprep.mubr.f32.mxu1 %v13981_v17  ;;  %7485 = vmatprep.mubr.f32.mxu0 %v13987_v9  ;;  %v10019_v17 = vand.u32 4294901760, %v10001_v21 }
 0x219   :  { %7519 = vmatprep.subr.mxu1 %v8928_v34  ;;  %7600 = vmatpush3.msra.mxu0 %v13985_v51  ;;  %v14014_v51 = vld [vmem:[#allocation113_spill] sm:$0xff] }
 0x21a   :  { %7520 = vmatpush3.msra.mxu1 %v8928_v34  ;;  %7601 = vmatprep.subr.mxu0 %v13988_v26  ;;  %14011 = vst [vmem:[#allocation22_spill] sm:$0xff] %v10019_v17 }
 0x21b   :  { %7400 = vmatmul.mubr.f32.gmra.mxu1 %v13983_v36  ;;  %7486 = vmatmul.mubr.f32.gmra.mxu0 %v13989_v54  ;;  %v14012_v36 = vld [vmem:[#allocation67_spill] sm:$0xff] }
 0x21c   :  { %7402 = vmatprep.mubr.f32.mxu1 %v13984_v19  ;;  %7488 = vmatprep.mubr.f32.mxu0 %v13990_v3  ;;  %v10027_v19 = vmul.f32 %v14012_v36, %v14012_v36  ;;  %v14029_v36 = vld [vmem:[#allocation73_spill] sm:$0xff] }
 0x21d   :  { %7521 = vmatprep.subr.mxu1 %v8943_v44  ;;  %7602 = vmatpush3.msra.mxu0 %v13988_v26  ;;  %v14017_v26 = vld [vmem:[#allocation114_spill] sm:$0xff] }
 0x21e   :  { %7522 = vmatpush3.msra.mxu1 %v8943_v44  ;;  %7603 = vmatprep.subr.mxu0 %v13991_v32  ;;  %14013 = vst [vmem:[#allocation70_spill] sm:$0xff] %v10027_v19 }
 0x21f   :  { %7403 = vmatmul.mubr.f32.gmra.mxu1 %v13986_v43  ;;  %7489 = vmatmul.mubr.f32.gmra.mxu0 %v13992_v20  ;;  %v14015_v43 = vld [vmem:[#allocation68_spill] sm:$0xff] }
 0x220   :  { %7405 = vmatprep.mubr.f32.mxu1 %v13987_v9  ;;  %7491 = vmatprep.mubr.f32.mxu0 %v13993_v52  ;;  %v10033_v9 = vmul.f32 %v14015_v43, %v14015_v43 }
 0x221   :  { %7523 = vmatprep.subr.mxu1 %v8957_v1  ;;  %7604 = vmatpush3.msra.mxu0 %v13991_v32  ;;  %v14019_v32 = vld [vmem:[#allocation69_spill] sm:$0xff] }
 0x222   :  { %7524 = vmatpush3.msra.mxu1 %v8957_v1  ;;  %7605 = vmatprep.subr.mxu0 %v13994_v4  ;;  %14016 = vst [vmem:[#allocation71_spill] sm:$0xff] %v10033_v9 }
 0x223   :  { %7406 = vmatmul.mubr.f32.gmra.mxu1 %v13989_v54  ;;  %7492 = vmatmul.mubr.f32.gmra.mxu0 %v13997_v42  ;;  %v10040_v54 = vand.u32 4294901760, %v10014_v23 }
 0x224   :  { %7408 = vmatprep.mubr.f32.mxu1 %v13990_v3  ;;  %7494 = vmatprep.mubr.f32.mxu0 %v13998_v48  ;;  %v10044_v3 = vsub.f32 %v9992_v8, %v10010_v22  ;;  %v10067_v8 = vmul.f32 %v14025_v2, %v14025_v2  ;;  %v10083_v2 = vmul.f32 %v14029_v36, %v14029_v36 }
 0x225   :  { %7525 = vmatprep.subr.mxu1 %v13887_v29  ;;  %7606 = vmatpush3.msra.mxu0 %v13994_v4  ;;  %14018 = vst [vmem:[#allocation24_spill] sm:$0xff] %v10040_v54  ;;  %v14027_v4 = vld [vmem:[#allocation61_spill] sm:$0xff] }
 0x226   :  { %7526 = vmatpush3.msra.mxu1 %v13887_v29  ;;  %7607 = vmatprep.subr.mxu0 %v14001_v59  ;;  %14026 = vst [vmem:[#allocation78_spill] sm:$0xff] %v10067_v8  ;;  %14030 = vst [vmem:[#allocation28_spill] sm:$0xff] %v10083_v2  ;;  %v10098_v36 = vand.u32 4294901760, %v10067_v8 }
 0x227   :  { %7409 = vmatmul.mubr.f32.gmra.mxu1 %v13992_v20  ;;  %7495 = vmatmul.mubr.f32.gmra.mxu0 %v14005_v12  ;;  %v10048_v20 = vmul.f32 %v14019_v32, %v14019_v32  ;;  %v10079_v32 = vsub.f32 %v10014_v23, %v10040_v54 }
 0x228   :  { %7411 = vmatprep.mubr.f32.mxu1 %v13993_v52  ;;  %7497 = vmatprep.mubr.f32.mxu0 %v14006_v50  ;;  %v14021_v52 = vld [vmem:[#allocation60_spill] sm:$0xff]  ;;  %14032 = vst [vmem:[#allocation82_spill] sm:$0xff] %v10098_v36 }
 0x229   :  { %7527 = vmatprep.subr.mxu1 %v13893_v28  ;;  %7608 = vmatpush3.msra.mxu0 %v14001_v59  ;;  %14020 = vst [vmem:[#allocation74_spill] sm:$0xff] %v10048_v20  ;;  %v14023_v59 = vld [vmem:[#allocation115_spill] sm:$0xff] }
 0x22a   :  { %7528 = vmatpush3.msra.mxu1 %v13893_v28  ;;  %7609 = vmatprep.subr.mxu0 %v14010_v49 }
 0x22b   :  { %7412 = vmatmul.mubr.f32.gmra.mxu1 %v13997_v42  ;;  %7498 = vmatmul.mubr.f32.gmra.mxu0 %v14014_v51  ;;  %v10054_v42 = vand.u32 4294901760, %v10027_v19 }
 0x22c   :  { %7414 = vmatprep.mubr.f32.mxu1 %v13998_v48  ;;  %7500 = vmatprep.mubr.f32.mxu0 %v14017_v26  ;;  %v10058_v48 = vsub.f32 %v10001_v21, %v10019_v17 }
 0x22d   :  { %7529 = vmatprep.subr.mxu1 %v13899_v16  ;;  %7610 = vmatpush3.msra.mxu0 %v14010_v49  ;;  %14022 = vst [vmem:[#allocation75_spill] sm:$0xff] %v10054_v42  ;;  %v10063_v49 = vand.u32 4294901760, %v10033_v9  ;;  %v10093_v43 = vsub.f32 %v10027_v19, %v10054_v42  ;;  %v14035_v19 = vld [vmem:[#allocation77_spill] sm:$0xff] }
 0x22e   :  { %7530 = vmatpush3.msra.mxu1 %v13899_v16  ;;  %7611 = vmatprep.subr.mxu0 %v14021_v52  ;;  %v14039_v35 = vand.u32 4294901760, %v10058_v48 }
 0x22f   :  { %7415 = vmatmul.mubr.f32.gmra.mxu1 %v14005_v12  ;;  %7501 = vmatmul.mubr.f32.gmra.mxu0 %v14023_v59  ;;  %14024 = vst [vmem:[#allocation26_spill] sm:$0xff] %v10063_v49  ;;  %v10075_v12 = vand.u32 4294901760, %v10048_v20 }
 0x230   :  { %7417 = vmatprep.mubr.f32.mxu1 %v14006_v50  ;;  %7612 = vmatpush3.msra.mxu0 %v14021_v52  ;;  %v14031_v50 = vand.u32 4294901760, %v10023_v58  ;;  %v2679_v0 = vsub.f32 %v10058_v48, %v14039_v35 }
 0x231   :  { %7615 = vmatprep.mubr.f32.mxu0 %v9997_v24  ;;  %7613 = vmatprep.subr.mxu0 %v14027_v4  ;;  %14028 = vst [vmem:[#allocation79_spill] sm:$0xff] %v10075_v12 }
 0x232   :  { %7531 = vmatprep.subr.mxu1 %v13905_v10  ;;  %7614 = vmatpush3.msra.mxu0 %v14027_v4  ;;  %v2659_v52 = vsub.f32 %v10023_v58, %v14031_v50  ;;  %v7137_v23 = vpop.f32.mrf.mxu0  ;;  %v10102_v4 = vsub.f32 %v10033_v9, %v10063_v49  ;;  %v14033_v50 = vld [vmem:[#allocation76_spill] sm:$0xff]  ;;  %v14037_v9 = vand.u32 4294901760, %v10044_v3  ;;  %v2680_v24 = vand.u32 4294901760, %v2679_v0 }
 0x233   :  { %7418 = vmatmul.mubr.f32.gmra.mxu1 %v14014_v51  ;;  %7616 = vmatmul.mubr.f32.vlgmr.msra.gmra.mxu0 %v10010_v22  ;;  %v10108_v21 = vmul.f32 %v14033_v50, %v14033_v50  ;;  %v10112_v51 = vmul.f32 %v14035_v19, %v14035_v19  ;;  %v10125_v50 = vsub.f32 %v10048_v20, %v10075_v12  ;;  %v14044_v22 = vld [vmem:[#allocation8_spill] sm:$0xff] }
 0x234   :  { %7532 = vmatpush3.msra.mxu1 %v13905_v10  ;;  %7420 = vmatprep.mubr.f32.mxu1 %v14017_v26  ;;  %v1149_v57 = vpop.f32.mrf.mxu0  ;;  %v2669_v14 = vsub.f32 %v10044_v3, %v14037_v9  ;;  %v10121_v26 = vand.u32 4294901760, %v10083_v2  ;;  %v2660_v19 = vand.u32 4294901760, %v2659_v52  ;;  %v10138_v20 = vsub.f32 %v10067_v8, %v10098_v36  ;;  %v14042_v9 = vld [vmem:[#allocation80_spill] sm:$0xff] }
 0x235   :  { %14034 = vst [vmem:[#allocation83_spill] sm:$0xff] %v10108_v21  ;;  %14036 = vst [vmem:[#allocation29_spill] sm:$0xff] %v10112_v51  ;;  %7618 = vmatprep.mubr.f32.mxu0 %v10019_v17  ;;  %7533 = vmatprep.subr.mxu1 %v13911_v18  ;;  %v10142_v35 = vand.u32 4294901760, %v10108_v21  ;;  %v10145_v52 = vand.u32 4294901760, %v10112_v51 }
 0x236   :  { %14038 = vst [vmem:[#allocation86_spill] sm:$0xff] %v10121_v26  ;;  %7534 = vmatpush3.msra.mxu1 %v13911_v18  ;;  %7743 = vmatprep.subr.mxu0 %v8757_v39  ;;  %v7140_v17 = vpop.f32.mrf.mxu0  ;;  %v2670_v62 = vand.u32 4294901760, %v2669_v14  ;;  %v10159_v7 = vsub.f32 %v10083_v2, %v10121_v26  ;;  %v14047_v14 = vld [vmem:[#allocation81_spill] sm:$0xff] }
 0x237   :  { %7421 = vmatmul.mubr.f32.gmra.mxu1 %v14023_v59  ;;  %7619 = vmatmul.mubr.f32.gmra.mxu0 %v10040_v54  ;;  %14040 = vst [vmem:[#allocation87_spill] sm:$0xff] %v10142_v35  ;;  %14041 = vst [vmem:[#allocation30_spill] sm:$0xff] %v10145_v52  ;;  %v10149_v59 = vmul.f32 %v14042_v9, %v14042_v9  ;;  %v14046_v9 = vand.u32 4294901760, %v10093_v43  ;;  %v10167_v11 = vmul.f32 %v14047_v14, %v14047_v14 }
 0x238   :  { %7535 = vmatprep.mubr.f32.mxu1 %v2660_v19  ;;  %7621 = vmatprep.mubr.f32.mxu0 %v10054_v42  ;;  %v1161_v54 = vpop.f32.mrf.mxu0  ;;  %v14045_v19 = vand.u32 4294901760, %v10079_v32  ;;  %v10182_v14 = vsub.f32 %v10108_v21, %v10142_v35 }
 0x239   :  { %14043 = vst [vmem:[#allocation90_spill] sm:$0xff] %v10149_v59  ;;  %7663 = vmatprep.subr.mxu1 %v14044_v22  ;;  %7744 = vmatpush3.msra.mxu0 %v8757_v39  ;;  %v2699_v61 = vsub.f32 %v10093_v43, %v14046_v9  ;;  %14048 = vst [vmem:[#allocation91_spill] sm:$0xff] %v10167_v11  ;;  %v10178_v9 = vand.u32 4294901760, %v10149_v59 }
 0x23a   :  { %v2689_v8 = vsub.f32 %v10079_v32, %v14045_v19  ;;  %7745 = vmatprep.subr.mxu0 %v8759_v40  ;;  %v7057_v13 = vpop.f32.mrf.mxu1  ;;  %v14049_v19 = vand.u32 4294901760, %v10102_v4 }
 0x23b   :  { %v7143_v63 = vpop.f32.mrf.mxu0  ;;  %7536 = vmatmul.mubr.f32.vlgmr.msra.gmra.mxu1 %v2670_v62  ;;  %7622 = vmatmul.mubr.f32.gmra.mxu0 %v10063_v49  ;;  %v10174_v2 = vadd.f32 %v7137_v23, %v7057_v13  ;;  %14051 = vst [vmem:[#allocation94_spill] sm:$0xff] %v10178_v9  ;;  %v10186_v62 = vsub.f32 %v10112_v51, %v10145_v52  ;;  %v14053_v13 = vld [vmem:[#allocation9_spill] sm:$0xff]  ;;  %v2700_v51 = vand.u32 4294901760, %v2699_v61 }
 0x23c   :  { %v2709_v42 = vsub.f32 %v10102_v4, %v14049_v19  ;;  %7664 = vmatpush3.msra.mxu1 %v14044_v22  ;;  %7538 = vmatprep.mubr.f32.mxu1 %v2680_v24  ;;  %v688_v19 = vpop.f32.mrf.mxu1  ;;  %v2690_v23 = vand.u32 4294901760, %v2689_v8  ;;  %v14054_v24 = vand.u32 4294901760, %v10125_v50  ;;  %v14059_v8 = vld [vmem:[#allocation85_spill] sm:$0xff] }
 0x23d   :  { %14050 = vst [vmem:[#allocation31_spill] sm:$0xff] %v10174_v2  ;;  %14052 = vst [vmem:[#allocation95_spill] sm:$0xff] %v10186_v62  ;;  %7624 = vmatprep.mubr.f32.mxu0 %v10075_v12  ;;  %v1173_v0 = vpop.f32.mrf.mxu0  ;;  %7665 = vmatprep.subr.mxu1 %v14053_v13  ;;  %v14055_v2 = vld [vmem:[#allocation84_spill] sm:$0xff]  ;;  %v10198_v27 = vadd.f32 %v1149_v57, %v688_v19  ;;  %v10203_v12 = vand.u32 4294901760, %v10167_v11  ;;  %v10207_v25 = vmul.f32 %v14059_v8, %v14059_v8 }
 0x23e   :  { %v2719_v22 = vsub.f32 %v10125_v50, %v14054_v24  ;;  %v10196_v21 = vmul.f32 %v14055_v2, %v14055_v2  ;;  %7666 = vmatpush3.msra.mxu1 %v14053_v13  ;;  %7746 = vmatpush3.msra.mxu0 %v8759_v40  ;;  %v2710_v2 = vand.u32 4294901760, %v2709_v42  ;;  %v14061_v57 = vand.u32 4294901760, %v10138_v20  ;;  %v14064_v42 = vld [vmem:[#allocation10_spill] sm:$0xff] }
 0x23f   :  { %14057 = vst [vmem:[#allocation98_spill] sm:$0xff] %v10198_v27  ;;  %14058 = vst [vmem:[#allocation99_spill] sm:$0xff] %v10203_v12  ;;  %v7060_v24 = vpop.f32.mrf.mxu1  ;;  %v7146_v49 = vpop.f32.mrf.mxu0  ;;  %7539 = vmatmul.mubr.f32.gmra.mxu1 %v2690_v23  ;;  %7625 = vmatmul.mubr.f32.gmra.mxu0 %v10098_v36  ;;  %v10220_v27 = vsub.f32 %v10149_v59, %v10178_v9  ;;  %v10243_v59 = vsub.f32 %v10167_v11, %v10203_v12  ;;  %v14077_v11 = vand.u32 4294901760, %v10182_v14 }
 0x240   :  { %14056 = vst [vmem:[#allocation39_spill] sm:$0xff] %v10196_v21  ;;  %14060 = vst [vmem:[#allocation43_spill] sm:$0xff] %v10207_v25  ;;  %v2729_v19 = vsub.f32 %v10138_v20, %v14061_v57  ;;  %v10213_v61 = vadd.f32 %v7140_v17, %v7060_v24  ;;  %7541 = vmatprep.mubr.f32.mxu1 %v2700_v51  ;;  %7627 = vmatprep.mubr.f32.mxu0 %v10121_v26  ;;  %v2720_v6 = vand.u32 4294901760, %v2719_v22  ;;  %v14067_v57 = vld [vmem:[#allocation88_spill] sm:$0xff] }
 0x241   :  { %14063 = vst [vmem:[#allocation103_spill] sm:$0xff] %v10220_v27  ;;  %v708_v23 = vpop.f32.mrf.mxu1  ;;  %v1185_v36 = vpop.f32.mrf.mxu0  ;;  %7667 = vmatprep.subr.mxu1 %v14064_v42  ;;  %7747 = vmatprep.subr.mxu0 %v8761_v41  ;;  %v14065_v17 = vand.u32 4294901760, %v10159_v7  ;;  %v10228_v24 = vand.u32 4294901760, %v10196_v21  ;;  %v10232_v8 = vmul.f32 %v14067_v57, %v14067_v57  ;;  %v10239_v22 = vand.u32 4294901760, %v10207_v25  ;;  %14071 = vst [vmem:[#allocation107_spill] sm:$0xff] %v10243_v59 }
 0x242   :  { %14062 = vst [vmem:[#allocation102_spill] sm:$0xff] %v10213_v61  ;;  %v10234_v13 = vadd.f32 %v1161_v54, %v708_v23  ;;  %7668 = vmatpush3.msra.mxu1 %v14064_v42  ;;  %7748 = vmatpush3.msra.mxu0 %v8761_v41  ;;  %v2730_v54 = vand.u32 4294901760, %v2729_v19  ;;  %v14074_v23 = vld [vmem:[#allocation92_spill] sm:$0xff]  ;;  %v14078_v37 = vand.u32 4294901760, %v10186_v62 }
 0x243   :  { %v2739_v51 = vsub.f32 %v10159_v7, %v14065_v17  ;;  %14066 = vst [vmem:[#allocation47_spill] sm:$0xff] %v10228_v24  ;;  %14068 = vst [vmem:[#allocation104_spill] sm:$0xff] %v10232_v8  ;;  %v14072_v17 = vld [vmem:[#allocation89_spill] sm:$0xff]  ;;  %v7063_v61 = vpop.f32.mrf.mxu1  ;;  %v7149_v57 = vpop.f32.mrf.mxu0  ;;  %7542 = vmatmul.mubr.f32.gmra.mxu1 %v2710_v2  ;;  %7628 = vmatmul.mubr.f32.gmra.mxu0 %v10142_v35  ;;  %v10252_v42 = vmul.f32 %v14074_v23, %v14074_v23 }
 0x244   :  { %14069 = vst [vmem:[#allocation105_spill] sm:$0xff] %v10234_v13  ;;  %14070 = vst [vmem:[#allocation51_spill] sm:$0xff] %v10239_v22  ;;  %v10247_v26 = vmul.f32 %v14072_v17, %v14072_v17  ;;  %v10254_v13 = vadd.f32 %v7143_v63, %v7063_v61  ;;  %7544 = vmatprep.mubr.f32.mxu1 %v2720_v6  ;;  %7630 = vmatprep.mubr.f32.mxu0 %v10145_v52  ;;  %v10267_v6 = vand.u32 4294901760, %v10232_v8 }
 0x245   :  { %14075 = vst [vmem:[#allocation55_spill] sm:$0xff] %v10252_v42  ;;  %v2749_v17 = vsub.f32 %v10182_v14, %v14077_v11  ;;  %v2759_v2 = vsub.f32 %v10186_v62, %v14078_v37  ;;  %v728_v19 = vpop.f32.mrf.mxu1  ;;  %v1197_v15 = vpop.f32.mrf.mxu0  ;;  %7669 = vmatprep.subr.mxu1 %v14079_v5  ;;  %v2740_v23 = vand.u32 4294901760, %v2739_v51  ;;  %7749 = vmatprep.subr.mxu0 %v8772_v45  ;;  %v14082_v11 = vld [vmem:[#allocation93_spill] sm:$0xff]  ;;  %v14092_v62 = vld [vmem:[#allocation12_spill] sm:$0xff] }
 0x246   :  { %14073 = vst [vmem:[#allocation108_spill] sm:$0xff] %v10247_v26  ;;  %14076 = vst [vmem:[#allocation110_spill] sm:$0xff] %v10254_v13  ;;  %v10271_v63 = vsub.f32 %v10196_v21, %v10228_v24  ;;  %v10275_v61 = vmul.f32 %v14082_v11, %v14082_v11  ;;  %v10277_v37 = vadd.f32 %v1173_v0, %v728_v19  ;;  %7670 = vmatpush3.msra.mxu1 %v14079_v5  ;;  %v14088_v5 = vld [vmem:[#allocation96_spill] sm:$0xff] }
 0x247   :  { %14080 = vst [vmem:[#allocation111_spill] sm:$0xff] %v10267_v6  ;;  %7750 = vmatpush3.msra.mxu0 %v8772_v45  ;;  %v10283_v35 = vand.u32 4294901760, %v10247_v26  ;;  %v10287_v52 = vsub.f32 %v10207_v25, %v10239_v22  ;;  %v7066_v21 = vpop.f32.mrf.mxu1  ;;  %v7152_v13 = vpop.f32.mrf.mxu0  ;;  %7545 = vmatmul.mubr.f32.gmra.mxu1 %v2730_v54  ;;  %v10291_v0 = vand.u32 4294901760, %v10252_v42  ;;  %v10295_v19 = vmul.f32 %v14088_v5, %v14088_v5 }
 0x248   :  { %14081 = vst [vmem:[#allocation59_spill] sm:$0xff] %v10271_v63  ;;  %14083 = vst [vmem:[#allocation113_spill] sm:$0xff] %v10275_v61  ;;  %7631 = vmatmul.mubr.f32.gmra.mxu0 %v10178_v9  ;;  %v10297_v51 = vadd.f32 %v7146_v49, %v7066_v21  ;;  %7547 = vmatprep.mubr.f32.mxu1 %v2740_v23  ;;  %v2750_v11 = vand.u32 4294901760, %v2749_v17  ;;  %v2760_v25 = vand.u32 4294901760, %v2759_v2  ;;  %v10307_v21 = vand.u32 4294901760, %v10275_v61  ;;  %v14095_v17 = vld [vmem:[#allocation97_spill] sm:$0xff] }
 0x249   :  { %14084 = vst [vmem:[#allocation114_spill] sm:$0xff] %v10277_v37  ;;  %14085 = vst [vmem:[#allocation60_spill] sm:$0xff] %v10283_v35  ;;  %7633 = vmatprep.mubr.f32.mxu0 %v10203_v12  ;;  %v14091_v37 = vand.u32 4294901760, %v10220_v27  ;;  %v748_v56 = vpop.f32.mrf.mxu1  ;;  %v1209_v9 = vpop.f32.mrf.mxu0  ;;  %7671 = vmatprep.subr.mxu1 %v14092_v62  ;;  %v10311_v49 = vsub.f32 %v10232_v8, %v10267_v6  ;;  %v10315_v23 = vmul.f32 %v14095_v17, %v14095_v17  ;;  %v14102_v12 = vld [vmem:[#allocation100_spill] sm:$0xff] }
 0x24a   :  { %14086 = vst [vmem:[#allocation115_spill] sm:$0xff] %v10287_v52  ;;  %14087 = vst [vmem:[#allocation61_spill] sm:$0xff] %v10291_v0  ;;  %7751 = vmatprep.subr.mxu0 %v8774_v46  ;;  %v10317_v2 = vadd.f32 %v1185_v36, %v748_v56  ;;  %7672 = vmatpush3.msra.mxu1 %v14092_v62  ;;  %v10327_v8 = vsub.f32 %v10247_v26, %v10283_v35  ;;  %v10331_v56 = vand.u32 4294901760, %v10295_v19 }
 0x24b   :  { %14089 = vst [vmem:[#allocation8_spill] sm:$0xff] %v10295_v19  ;;  %14090 = vst [vmem:[#allocation9_spill] sm:$0xff] %v10297_v51  ;;  %v2769_v54 = vsub.f32 %v10220_v27, %v14091_v37  ;;  %7752 = vmatpush3.msra.mxu0 %v8774_v46  ;;  %v14098_v37 = vand.u32 4294901760, %v10243_v59  ;;  %v7069_v51 = vpop.f32.mrf.mxu1  ;;  %v7155_v27 = vpop.f32.mrf.mxu0  ;;  %7548 = vmatmul.mubr.f32.gmra.mxu1 %v2750_v11  ;;  %v10335_v36 = vsub.f32 %v10252_v42, %v10291_v0  ;;  %v14104_v11 = vld [vmem:[#allocation101_spill] sm:$0xff] }
 0x24c   :  { %14093 = vst [vmem:[#allocation10_spill] sm:$0xff] %v10307_v21  ;;  %14094 = vst [vmem:[#allocation11_spill] sm:$0xff] %v10311_v49  ;;  %7634 = vmatmul.mubr.f32.gmra.mxu0 %v10228_v24  ;;  %v10337_v62 = vadd.f32 %v7149_v57, %v7069_v51  ;;  %7550 = vmatprep.mubr.f32.mxu1 %v2760_v25  ;;  %v10342_v26 = vmul.f32 %v14102_v12, %v14102_v12  ;;  %v14107_v57 = vand.u32 4294901760, %v10271_v63 }
 0x24d   :  { %14096 = vst [vmem:[#allocation12_spill] sm:$0xff] %v10315_v23  ;;  %14097 = vst [vmem:[#allocation116_spill] sm:$0xff] %v10317_v2  ;;  %v2779_v5 = vsub.f32 %v10243_v59, %v14098_v37  ;;  %7636 = vmatprep.mubr.f32.mxu0 %v10239_v22  ;;  %v2770_v37 = vand.u32 4294901760, %v2769_v54  ;;  %v10346_v17 = vmul.f32 %v14104_v11, %v14104_v11  ;;  %v768_v24 = vpop.f32.mrf.mxu1  ;;  %v1221_v2 = vpop.f32.mrf.mxu0  ;;  %v14106_v59 = vld [vmem:[#allocation13_spill] sm:$0xff]  ;;  %7753 = vmatprep.subr.mxu0 %v8776_v47 }
 0x24e   :  { %14099 = vst [vmem:[#allocation117_spill] sm:$0xff] %v10331_v56  ;;  %14100 = vst [vmem:[#allocation118_spill] sm:$0xff] %v10335_v36  ;;  %7673 = vmatprep.subr.mxu1 %v14106_v59  ;;  %v2789_v25 = vsub.f32 %v10271_v63, %v14107_v57  ;;  %v10355_v54 = vand.u32 4294901760, %v10315_v23  ;;  %v10359_v42 = vsub.f32 %v10275_v61, %v10307_v21  ;;  %7754 = vmatpush3.msra.mxu0 %v8776_v47 }
 0x24f   :  { %14101 = vst [vmem:[#allocation119_spill] sm:$0xff] %v10337_v62  ;;  %14103 = vst [vmem:[#allocation120_spill] sm:$0xff] %v10342_v26  ;;  %v10361_v11 = vadd.f32 %v1197_v15, %v768_v24  ;;  %7674 = vmatpush3.msra.mxu1 %v14106_v59  ;;  %v2780_v12 = vand.u32 4294901760, %v2779_v5  ;;  %v14111_v22 = vand.u32 4294901760, %v10287_v52  ;;  %v7072_v62 = vpop.f32.mrf.mxu1  ;;  %v7158_v63 = vpop.f32.mrf.mxu0  ;;  %v10373_v15 = vsub.f32 %v10295_v19, %v10331_v56  ;;  %v14116_v5 = vld [vmem:[#allocation62_spill] sm:$0xff] }
 0x250   :  { %14105 = vst [vmem:[#allocation121_spill] sm:$0xff] %v10346_v17  ;;  %14108 = vst [vmem:[#allocation13_spill] sm:$0xff] %v10355_v54  ;;  %7551 = vmatmul.mubr.f32.gmra.mxu1 %v2770_v37  ;;  %7637 = vmatmul.mubr.f32.gmra.mxu0 %v10267_v6  ;;  %v10375_v59 = vadd.f32 %v7152_v13, %v7072_v62  ;;  %v10379_v24 = vand.u32 4294901760, %v10342_v26  ;;  %v10386_v37 = vmul.f32 %v14116_v5, %v14116_v5  ;;  %v14118_v6 = vld [vmem:[#allocation18_spill] sm:$0xff] }
 0x251   :  { %14109 = vst [vmem:[#allocation122_spill] sm:$0xff] %v10359_v42  ;;  %14110 = vst [vmem:[#allocation123_spill] sm:$0xff] %v10361_v11  ;;  %v2799_v57 = vsub.f32 %v10287_v52, %v14111_v22  ;;  %7553 = vmatprep.mubr.f32.mxu1 %v2780_v12  ;;  %7639 = vmatprep.mubr.f32.mxu0 %v10283_v35  ;;  %v10382_v22 = vand.u32 4294901760, %v10346_v17  ;;  %v788_v61 = vpop.f32.mrf.mxu1  ;;  %v1233_v51 = vpop.f32.mrf.mxu0  ;;  %v2790_v19 = vand.u32 4294901760, %v2789_v25  ;;  %v14119_v12 = vand.u32 4294901760, %v10311_v49  ;;  %v14123_v52 = vld [vmem:[#allocation38_spill] sm:$0xff] }
 0x252   :  { %14112 = vst [vmem:[#allocation124_spill] sm:$0xff] %v10373_v15  ;;  %14113 = vst [vmem:[#allocation125_spill] sm:$0xff] %v10375_v59  ;;  %7675 = vmatprep.subr.mxu1 %v14118_v6  ;;  %7755 = vmatprep.subr.mxu0 %v8793_v53  ;;  %v10396_v35 = vsub.f32 %v10315_v23, %v10355_v54  ;;  %v10398_v59 = vadd.f32 %v1209_v9, %v788_v61  ;;  %v14122_v25 = vand.u32 4294901760, %v10327_v8 }
 0x253   :  { %14114 = vst [vmem:[#allocation126_spill] sm:$0xff] %v10379_v24  ;;  %14115 = vst [vmem:[#allocation127_spill] sm:$0xff] %v10382_v22  ;;  %v2809_v13 = vsub.f32 %v10311_v49, %v14119_v12  ;;  %7676 = vmatpush3.msra.mxu1 %v14118_v6  ;;  %v2800_v5 = vand.u32 4294901760, %v2799_v57  ;;  %7756 = vmatpush3.msra.mxu0 %v8793_v53  ;;  %v10407_v12 = vmul.f32 %v14123_v52, %v14123_v52  ;;  %v7075_v62 = vpop.f32.mrf.mxu1  ;;  %v7161_v49 = vpop.f32.mrf.mxu0 }
 0x254   :  { %14117 = vst [vmem:[#allocation128_spill] sm:$0xff] %v10386_v37  ;;  %14120 = vst [vmem:[#allocation18_spill] sm:$0xff] %v10396_v35  ;;  %v2819_v11 = vsub.f32 %v10327_v8, %v14122_v25  ;;  %7554 = vmatmul.mubr.f32.gmra.mxu1 %v2790_v19  ;;  %7640 = vmatmul.mubr.f32.gmra.mxu0 %v10291_v0  ;;  %v14125_v9 = vand.u32 4294901760, %v10335_v36  ;;  %v10414_v57 = vadd.f32 %v7155_v27, %v7075_v62  ;;  %v14130_v0 = vld [vmem:[#allocation23_spill] sm:$0xff] }
 0x255   :  { %14121 = vst [vmem:[#allocation129_spill] sm:$0xff] %v10398_v59  ;;  %14124 = vst [vmem:[#allocation130_spill] sm:$0xff] %v10407_v12  ;;  %7556 = vmatprep.mubr.f32.mxu1 %v2800_v5  ;;  %7642 = vmatprep.mubr.f32.mxu0 %v10307_v21  ;;  %v10418_v25 = vand.u32 4294901760, %v10386_v37  ;;  %v10422_v23 = vsub.f32 %v10342_v26, %v10379_v24  ;;  %v10426_v19 = vsub.f32 %v10346_v17, %v10382_v22  ;;  %v808_v52 = vpop.f32.mrf.mxu1  ;;  %v14132_v21 = vld [vmem:[#allocation42_spill] sm:$0xff] }
 0x256   :  { %v2829_v6 = vsub.f32 %v10335_v36, %v14125_v9  ;;  %14126 = vst [vmem:[#allocation131_spill] sm:$0xff] %v10414_v57  ;;  %v1245_v9 = vpop.f32.mrf.mxu0  ;;  %7677 = vmatprep.subr.mxu1 %v14130_v0  ;;  %v2810_v27 = vand.u32 4294901760, %v2809_v13  ;;  %7757 = vmatprep.subr.mxu0 %v8815_v60  ;;  %v14131_v5 = vand.u32 4294901760, %v10359_v42  ;;  %v10436_v26 = vmul.f32 %v14132_v21, %v14132_v21  ;;  %v14136_v59 = vld [vmem:[#allocation106_spill] sm:$0xff] }
 0x257   :  { %14127 = vst [vmem:[#allocation132_spill] sm:$0xff] %v10418_v25  ;;  %14128 = vst [vmem:[#allocation133_spill] sm:$0xff] %v10422_v23  ;;  %v10438_v57 = vadd.f32 %v1221_v2, %v808_v52  ;;  %7678 = vmatpush3.msra.mxu1 %v14130_v0  ;;  %v2820_v17 = vand.u32 4294901760, %v2819_v11  ;;  %7758 = vmatpush3.msra.mxu0 %v8815_v60  ;;  %v10443_v13 = vand.u32 4294901760, %v10407_v12  ;;  %v14138_v52 = vand.u32 4294901760, %v10373_v15 }
 0x258   :  { %14129 = vst [vmem:[#allocation134_spill] sm:$0xff] %v10426_v19  ;;  %v2839_v62 = vsub.f32 %v10359_v42, %v14131_v5  ;;  %14133 = vst [vmem:[#allocation23_spill] sm:$0xff] %v10436_v26  ;;  %v10447_v36 = vmul.f32 %v14136_v59, %v14136_v59  ;;  %v7078_v5 = vpop.f32.mrf.mxu1  ;;  %v7164_v61 = vpop.f32.mrf.mxu0  ;;  %7557 = vmatmul.mubr.f32.gmra.mxu1 %v2810_v27  ;;  %7643 = vmatmul.mubr.f32.gmra.mxu0 %v10331_v56  ;;  %v2830_v21 = vand.u32 4294901760, %v2829_v6  ;;  %v14141_v6 = vld [vmem:[#allocation33_spill] sm:$0xff] }
 0x259   :  { %14134 = vst [vmem:[#allocation135_spill] sm:$0xff] %v10438_v57  ;;  %14135 = vst [vmem:[#allocation136_spill] sm:$0xff] %v10443_v13  ;;  %v2849_v0 = vsub.f32 %v10373_v15, %v14138_v52  ;;  %v10453_v2 = vadd.f32 %v7158_v63, %v7078_v5  ;;  %7559 = vmatprep.mubr.f32.mxu1 %v2820_v17  ;;  %7645 = vmatprep.mubr.f32.mxu0 %v10355_v54  ;;  %v14142_v63 = vand.u32 4294901760, %v10396_v35  ;;  %v14144_v52 = vld [vmem:[#allocation46_spill] sm:$0xff] }
 0x25a   :  { %14137 = vst [vmem:[#allocation137_spill] sm:$0xff] %v10447_v36  ;;  %v10460_v57 = vsub.f32 %v10386_v37, %v10418_v25  ;;  %v828_v27 = vpop.f32.mrf.mxu1  ;;  %v1257_v56 = vpop.f32.mrf.mxu0  ;;  %7679 = vmatprep.subr.mxu1 %v14141_v6  ;;  %v2840_v42 = vand.u32 4294901760, %v2839_v62  ;;  %7759 = vmatprep.subr.mxu0 %v8928_v34  ;;  %v10468_v5 = vand.u32 4294901760, %v10436_v26  ;;  %v10472_v59 = vmul.f32 %v14144_v52, %v14144_v52 }
 0x25b   :  { %14139 = vst [vmem:[#allocation138_spill] sm:$0xff] %v10453_v2  ;;  %v2859_v17 = vsub.f32 %v10396_v35, %v14142_v63  ;;  %v10474_v11 = vadd.f32 %v1233_v51, %v828_v27  ;;  %7680 = vmatpush3.msra.mxu1 %v14141_v6  ;;  %7760 = vmatpush3.msra.mxu0 %v8928_v34  ;;  %v10479_v62 = vand.u32 4294901760, %v10447_v36  ;;  %v14148_v63 = vld [vmem:[#allocation109_spill] sm:$0xff]  ;;  %v2850_v51 = vand.u32 4294901760, %v2849_v0  ;;  %v14152_v34 = vld [vmem:[#allocation35_spill] sm:$0xff] }
 0x25c   :  { %14140 = vst [vmem:[#allocation139_spill] sm:$0xff] %v10460_v57  ;;  %14143 = vst [vmem:[#allocation33_spill] sm:$0xff] %v10468_v5  ;;  %v10483_v37 = vsub.f32 %v10407_v12, %v10443_v13  ;;  %v10487_v54 = vmul.f32 %v14148_v63, %v14148_v63  ;;  %v7081_v35 = vpop.f32.mrf.mxu1  ;;  %v7167_v52 = vpop.f32.mrf.mxu0  ;;  %7560 = vmatmul.mubr.f32.gmra.mxu1 %v2830_v21  ;;  %7646 = vmatmul.mubr.f32.gmra.mxu0 %v10379_v24  ;;  %v14150_v6 = vand.u32 4294901760, %v10422_v23 }
 0x25d   :  { %14145 = vst [vmem:[#allocation140_spill] sm:$0xff] %v10472_v59  ;;  %14146 = vst [vmem:[#allocation141_spill] sm:$0xff] %v10474_v11  ;;  %v10490_v27 = vadd.f32 %v7161_v49, %v7081_v35  ;;  %7562 = vmatprep.mubr.f32.mxu1 %v2840_v42  ;;  %7648 = vmatprep.mubr.f32.mxu0 %v10382_v22  ;;  %v14151_v11 = vand.u32 4294901760, %v10426_v19  ;;  %v2860_v0 = vand.u32 4294901760, %v2859_v17  ;;  %v10503_v35 = vand.u32 4294901760, %v10472_v59  ;;  %v14155_v49 = vld [vmem:[#allocation49_spill] sm:$0xff] }
 0x25e   :  { %14147 = vst [vmem:[#allocation142_spill] sm:$0xff] %v10479_v62  ;;  %14149 = vst [vmem:[#allocation143_spill] sm:$0xff] %v10487_v54  ;;  %v2869_v12 = vsub.f32 %v10422_v23, %v14150_v6  ;;  %v848_v2 = vpop.f32.mrf.mxu1  ;;  %v1269_v21 = vpop.f32.mrf.mxu0  ;;  %7681 = vmatprep.subr.mxu1 %v14152_v34  ;;  %7761 = vmatprep.subr.mxu0 %v8943_v44  ;;  %v10507_v42 = vsub.f32 %v10436_v26, %v10468_v5  ;;  %v10519_v15 = vand.u32 4294901760, %v10487_v54 }
 0x25f   :  { %v2879_v63 = vsub.f32 %v10426_v19, %v14151_v11  ;;  %14153 = vst [vmem:[#allocation35_spill] sm:$0xff] %v10503_v35  ;;  %v10511_v6 = vmul.f32 %v14155_v49, %v14155_v49  ;;  %v10513_v11 = vadd.f32 %v1245_v9, %v848_v2  ;;  %7682 = vmatpush3.msra.mxu1 %v14152_v34  ;;  %v14159_v9 = vld [vmem:[#allocation112_spill] sm:$0xff] }
 0x260   :  { %14154 = vst [vmem:[#allocation144_spill] sm:$0xff] %v10507_v42  ;;  %7762 = vmatpush3.msra.mxu0 %v8943_v44  ;;  %14158 = vst [vmem:[#allocation147_spill] sm:$0xff] %v10519_v15  ;;  %v10523_v22 = vsub.f32 %v10447_v36, %v10479_v62  ;;  %v7084_v26 = vpop.f32.mrf.mxu1  ;;  %v7170_v24 = vpop.f32.mrf.mxu0  ;;  %7563 = vmatmul.mubr.f32.gmra.mxu1 %v2850_v51  ;;  %v10528_v2 = vmul.f32 %v14159_v9, %v14159_v9  ;;  %v2870_v17 = vand.u32 4294901760, %v2869_v12  ;;  %v14162_v51 = vld [vmem:[#allocation37_spill] sm:$0xff] }
 0x261   :  { %14156 = vst [vmem:[#allocation145_spill] sm:$0xff] %v10511_v6  ;;  %14157 = vst [vmem:[#allocation146_spill] sm:$0xff] %v10513_v11  ;;  %7649 = vmatmul.mubr.f32.gmra.mxu0 %v10418_v25  ;;  %v10530_v34 = vadd.f32 %v7164_v61, %v7084_v26  ;;  %7565 = vmatprep.mubr.f32.mxu1 %v2860_v0  ;;  %v2880_v49 = vand.u32 4294901760, %v2879_v63  ;;  %v14161_v11 = vand.u32 4294901760, %v10460_v57  ;;  %v10540_v26 = vand.u32 4294901760, %v10511_v6  ;;  %v14164_v12 = vld [vmem:[#allocation53_spill] sm:$0xff] }
 0x262   :  { %14160 = vst [vmem:[#allocation148_spill] sm:$0xff] %v10528_v2  ;;  %7651 = vmatprep.mubr.f32.mxu0 %v10443_v13  ;;  %v868_v19 = vpop.f32.mrf.mxu1  ;;  %v1281_v23 = vpop.f32.mrf.mxu0  ;;  %7683 = vmatprep.subr.mxu1 %v14162_v51  ;;  %v10544_v61 = vsub.f32 %v10472_v59, %v10503_v35  ;;  %v10548_v63 = vmul.f32 %v14164_v12, %v14164_v12  ;;  %v14169_v12 = vld [vmem:[#allocation41_spill] sm:$0xff] }
 0x263   :  { %v2889_v36 = vsub.f32 %v10460_v57, %v14161_v11  ;;  %7763 = vmatprep.subr.mxu0 %v8957_v1  ;;  %14163 = vst [vmem:[#allocation37_spill] sm:$0xff] %v10540_v26  ;;  %v10550_v0 = vadd.f32 %v1257_v56, %v868_v19  ;;  %7684 = vmatpush3.msra.mxu1 %v14162_v51  ;;  %v14167_v11 = vand.u32 4294901760, %v10483_v37  ;;  %v10564_v56 = vand.u32 4294901760, %v10528_v2 }
 0x264   :  { %14165 = vst [vmem:[#allocation149_spill] sm:$0xff] %v10548_v63  ;;  %7764 = vmatpush3.msra.mxu0 %v8957_v1  ;;  %v10560_v59 = vsub.f32 %v10487_v54, %v10519_v15  ;;  %v7087_v25 = vpop.f32.mrf.mxu1  ;;  %v7173_v57 = vpop.f32.mrf.mxu0  ;;  %7566 = vmatmul.mubr.f32.gmra.mxu1 %v2870_v17  ;;  %v14170_v54 = vand.u32 4294901760, %v10507_v42 }
 0x265   :  { %14166 = vst [vmem:[#allocation150_spill] sm:$0xff] %v10550_v0  ;;  %v2899_v9 = vsub.f32 %v10483_v37, %v14167_v11  ;;  %7652 = vmatmul.mubr.f32.gmra.mxu0 %v10468_v5  ;;  %14168 = vst [vmem:[#allocation151_spill] sm:$0xff] %v10564_v56  ;;  %v10566_v19 = vadd.f32 %v7167_v52, %v7087_v25  ;;  %7568 = vmatprep.mubr.f32.mxu1 %v2880_v49  ;;  %v2890_v51 = vand.u32 4294901760, %v2889_v36 }
 0x266   :  { %7654 = vmatprep.mubr.f32.mxu0 %v10479_v62  ;;  %v888_v11 = vpop.f32.mrf.mxu1  ;;  %v1293_v13 = vpop.f32.mrf.mxu0  ;;  %7685 = vmatprep.subr.mxu1 %v14169_v12  ;;  %v2909_v17 = vsub.f32 %v10507_v42, %v14170_v54  ;;  %v10576_v0 = vand.u32 4294901760, %v10548_v63  ;;  %v10580_v25 = vsub.f32 %v10511_v6, %v10540_v26  ;;  %v14172_v49 = vand.u32 4294901760, %v10523_v22  ;;  %v14174_v6 = vld [vmem:[#allocation45_spill] sm:$0xff] }
 0x267   :  { %7765 = vmatprep.subr.mxu0 %v13887_v29  ;;  %v10582_v36 = vadd.f32 %v1269_v21, %v888_v11  ;;  %7686 = vmatpush3.msra.mxu1 %v14169_v12  ;;  %v2900_v52 = vand.u32 4294901760, %v2899_v9  ;;  %v10593_v21 = vsub.f32 %v10528_v2, %v10564_v56 }
 0x268   :  { %14171 = vst [vmem:[#allocation41_spill] sm:$0xff] %v10576_v0  ;;  %7766 = vmatpush3.msra.mxu0 %v13887_v29  ;;  %v2919_v54 = vsub.f32 %v10523_v22, %v14172_v49  ;;  %v7090_v62 = vpop.f32.mrf.mxu1  ;;  %v7176_v42 = vpop.f32.mrf.mxu0  ;;  %7569 = vmatmul.mubr.f32.gmra.mxu1 %v2890_v51  ;;  %v2910_v49 = vand.u32 4294901760, %v2909_v17  ;;  %v14175_v51 = vand.u32 4294901760, %v10544_v61  ;;  %v14176_v17 = vand.u32 4294901760, %v10560_v59 }
 0x269   :  { %7655 = vmatmul.mubr.f32.gmra.mxu0 %v10503_v35  ;;  %v10595_v11 = vadd.f32 %v7170_v24, %v7090_v62  ;;  %7571 = vmatprep.mubr.f32.mxu1 %v2900_v52  ;;  %v10606_v24 = vsub.f32 %v10548_v63, %v10576_v0 }
 0x26a   :  { %7657 = vmatprep.mubr.f32.mxu0 %v10519_v15  ;;  %v908_v9 = vpop.f32.mrf.mxu1  ;;  %v1305_v12 = vpop.f32.mrf.mxu0  ;;  %7687 = vmatprep.subr.mxu1 %v14174_v6  ;;  %v2929_v5 = vsub.f32 %v10544_v61, %v14175_v51  ;;  %v2920_v52 = vand.u32 4294901760, %v2919_v54  ;;  %v2939_v2 = vsub.f32 %v10560_v59, %v14176_v17  ;;  %v13768_v51 = vand.u32 4294901760, %v10593_v21  ;;  %v14177_v54 = vld [vmem:[#allocation50_spill] sm:$0xff] }
 0x26b   :  { %14173 = vst [vmem:[#allocation152_spill] sm:$0xff] %v10595_v11  ;;  %7767 = vmatprep.subr.mxu0 %v13893_v28  ;;  %v10608_v62 = vadd.f32 %v1281_v23, %v908_v9  ;;  %7688 = vmatpush3.msra.mxu1 %v14174_v6  ;;  %v14178_v17 = vand.u32 4294901760, %v10580_v25  ;;  %v13767_v63 = vand.u32 4294901760, %v10606_v24 }
 0x26c   :  { %7768 = vmatpush3.msra.mxu0 %v13893_v28  ;;  %v7093_v15 = vpop.f32.mrf.mxu1  ;;  %v7179_v11 = vpop.f32.mrf.mxu0  ;;  %7572 = vmatmul.mubr.f32.gmra.mxu1 %v2910_v49  ;;  %v2930_v9 = vand.u32 4294901760, %v2929_v5  ;;  %v2959_v5 = vsub.f32 %v10593_v21, %v13768_v51 }
 0x26d   :  { %7658 = vmatmul.mubr.f32.gmra.mxu0 %v10540_v26  ;;  %v10617_v35 = vadd.f32 %v7173_v57, %v7093_v15  ;;  %7574 = vmatprep.mubr.f32.mxu1 %v2920_v52  ;;  %v2949_v49 = vsub.f32 %v10580_v25, %v14178_v17  ;;  %v2940_v15 = vand.u32 4294901760, %v2939_v2 }
 0x26e   :  { %7660 = vmatprep.mubr.f32.mxu0 %v10564_v56  ;;  %v928_v23 = vpop.f32.mrf.mxu1  ;;  %v1317_v6 = vpop.f32.mrf.mxu0  ;;  %7769 = vmatprep.subr.mxu0 %v13899_v16 }
 0x26f   :  { %7689 = vmatprep.subr.mxu1 %v14177_v54  ;;  %v10626_v26 = vadd.f32 %v1293_v13, %v928_v23  ;;  %7770 = vmatpush3.msra.mxu0 %v13899_v16  ;;  %v14179_v13 = vand.u32 4294901760, %v10023_v58 }
 0x270   :  { %7690 = vmatpush3.msra.mxu1 %v14177_v54  ;;  %v7096_v57 = vpop.f32.mrf.mxu1  ;;  %v7182_v52 = vpop.f32.mrf.mxu0  ;;  %7771 = vmatprep.subr.mxu0 %v13905_v10  ;;  %v2950_v54 = vand.u32 4294901760, %v2949_v49  ;;  %v14180_v49 = vand.u32 4294901760, %v10044_v3 }
 0x271   :  { %7575 = vmatmul.mubr.f32.gmra.mxu1 %v2930_v9  ;;  %7661 = vmatmul.mubr.f32.gmra.mxu0 %v10576_v0  ;;  %v10634_v56 = vadd.f32 %v7176_v42, %v7096_v57  ;;  %v2969_v9 = vsub.f32 %v10606_v24, %v13767_v63  ;;  %v2960_v57 = vand.u32 4294901760, %v2959_v5 }
 0x272   :  { %7577 = vmatprep.mubr.f32.mxu1 %v2940_v15  ;;  %7772 = vmatpush3.msra.mxu0 %v13905_v10  ;;  %v948_v2 = vpop.f32.mrf.mxu1  ;;  %v1329_v23 = vpop.f32.mrf.mxu0 }
 0x273   :  { %7775 = vmatprep.mubr.f32.mxu0 %v14179_v13  ;;  %v10643_v17 = vadd.f32 %v1305_v12, %v948_v2  ;;  %7773 = vmatprep.subr.mxu0 %v13911_v18  ;;  %v14181_v12 = vand.u32 4294901760, %v10058_v48  ;;  %v2970_v51 = vand.u32 4294901760, %v2969_v9 }
 0x274   :  { %7691 = vmatprep.subr.mxu1 %v13916_v55  ;;  %7774 = vmatpush3.msra.mxu0 %v13911_v18  ;;  %v7099_v42 = vpop.f32.mrf.mxu1  ;;  %v10648_v15 = vpop.f32.mrf.mxu0 }
 0x275   :  { %7578 = vmatmul.mubr.f32.gmra.mxu1 %v2950_v54  ;;  %v10650_v13 = vadd.f32 %v7179_v11, %v7099_v42  ;;  %7776 = vmatmul.mubr.f32.vlgmr.msra.gmra.mxu0 %v14180_v49  ;;  %v14182_v54 = vand.u32 4294901760, %v10079_v32 }
 0x276   :  { %7692 = vmatpush3.msra.mxu1 %v13916_v55  ;;  %7580 = vmatprep.mubr.f32.mxu1 %v2960_v57  ;;  %v968_v2 = vpop.f32.mrf.mxu1  ;;  %v10657_v63 = vpop.f32.mrf.mxu0 }
 0x277   :  { %7778 = vmatprep.mubr.f32.mxu0 %v14181_v12  ;;  %v10659_v0 = vadd.f32 %v1317_v6, %v968_v2  ;;  %7693 = vmatprep.subr.mxu1 %v13919_v31  ;;  %v14183_v6 = vand.u32 4294901760, %v10093_v43 }
 0x278   :  { %7903 = vmatprep.subr.mxu0 %v8757_v39  ;;  %v7102_v11 = vpop.f32.mrf.mxu1  ;;  %v10663_v5 = vpop.f32.mrf.mxu0  ;;  %7694 = vmatpush3.msra.mxu1 %v13919_v31 }
 0x279   :  { %7581 = vmatmul.mubr.f32.gmra.mxu1 %v2970_v51  ;;  %7904 = vmatpush3.msra.mxu0 %v8757_v39  ;;  %v10666_v55 = vadd.f32 %v7182_v52, %v7102_v11  ;;  %v14185_v51 = vand.u32 4294901760, %v10125_v50 }
 0x27a   :  { %7779 = vmatmul.mubr.f32.gmra.mxu0 %v14182_v54  ;;  %7695 = vmatprep.mubr.f32.mxu1 %v10023_v58  ;;  %v988_v9 = vpop.f32.mrf.mxu1  ;;  %v10674_v42 = vpop.f32.mrf.mxu0  ;;  %v14184_v58 = vand.u32 4294901760, %v10102_v4 }
 0x27b   :  { %7781 = vmatprep.mubr.f32.mxu0 %v14183_v6  ;;  %v10676_v57 = vadd.f32 %v1329_v23, %v988_v9  ;;  %7823 = vmatprep.subr.mxu1 %v13922_v33  ;;  %v14195_v6 = vld [vmem:[#allocation17_spill] sm:$0xff]  ;;  %v14199_v9 = vld [vmem:[#allocation107_spill] sm:$0xff] }
 0x27c   :  { %7905 = vmatprep.subr.mxu0 %v8759_v40  ;;  %v10680_v39 = vpop.f32.mrf.mxu1  ;;  %v10682_v31 = vpop.f32.mrf.mxu0 }
 0x27d   :  { %7696 = vmatmul.mubr.f32.vlgmr.msra.gmra.mxu1 %v10044_v3  ;;  %7906 = vmatpush3.msra.mxu0 %v8759_v40 }
 0x27e   :  { %7782 = vmatmul.mubr.f32.gmra.mxu0 %v14184_v58  ;;  %7824 = vmatpush3.msra.mxu1 %v13922_v33  ;;  %v10692_v52 = vpop.f32.mrf.mxu1  ;;  %v10694_v23 = vpop.f32.mrf.mxu0  ;;  %v14187_v33 = vand.u32 4294901760, %v10138_v20  ;;  %v14200_v58 = vand.u32 4294901760, %v14199_v9 }
 0x27f   :  { %7698 = vmatprep.mubr.f32.mxu1 %v10058_v48  ;;  %7784 = vmatprep.mubr.f32.mxu0 %v14185_v51  ;;  %v14188_v48 = vand.u32 4294901760, %v10159_v7 }
 0x280   :  { %7825 = vmatprep.subr.mxu1 %v13925_v38  ;;  %7907 = vmatprep.subr.mxu0 %v8761_v41  ;;  %v10698_v3 = vpop.f32.mrf.mxu1  ;;  %v10700_v40 = vpop.f32.mrf.mxu0 }
 0x281   :  { %14186 = vst [vmem:[#allocation45_spill] sm:$0xff] %v10700_v40  ;;  %7699 = vmatmul.mubr.f32.gmra.mxu1 %v10079_v32  ;;  %7908 = vmatpush3.msra.mxu0 %v8761_v41  ;;  %v14232_v40 = vld [vmem:[#allocation34_spill] sm:$0xff] }
 0x282   :  { %7785 = vmatmul.mubr.f32.gmra.mxu0 %v14187_v33  ;;  %7826 = vmatpush3.msra.mxu1 %v13925_v38  ;;  %v10710_v49 = vpop.f32.mrf.mxu1  ;;  %v10712_v12 = vpop.f32.mrf.mxu0  ;;  %v14191_v38 = vand.u32 4294901760, %v10182_v14 }
 0x283   :  { %7701 = vmatprep.mubr.f32.mxu1 %v10093_v43  ;;  %7787 = vmatprep.mubr.f32.mxu0 %v14188_v48  ;;  %14189 = vst [vmem:[#allocation50_spill] sm:$0xff] %v10712_v12  ;;  %v14192_v43 = vld [vmem:[#allocation95_spill] sm:$0xff]  ;;  %v14231_v12 = vld [vmem:[#allocation141_spill] sm:$0xff] }
 0x284   :  { %7827 = vmatprep.subr.mxu1 %v13928_v30  ;;  %7909 = vmatprep.subr.mxu0 %v8772_v45  ;;  %v10716_v32 = vpop.f32.mrf.mxu1  ;;  %v10718_v41 = vpop.f32.mrf.mxu0  ;;  %v14193_v2 = vand.u32 4294901760, %v14192_v43  ;;  %v14202_v48 = vld [vmem:[#allocation19_spill] sm:$0xff] }
 0x285   :  { %14190 = vst [vmem:[#allocation153_spill] sm:$0xff] %v10718_v41  ;;  %7702 = vmatmul.mubr.f32.gmra.mxu1 %v10102_v4  ;;  %7910 = vmatpush3.msra.mxu0 %v8772_v45 }
 0x286   :  { %7788 = vmatmul.mubr.f32.gmra.mxu0 %v14191_v38  ;;  %7828 = vmatpush3.msra.mxu1 %v13928_v30  ;;  %v10728_v11 = vpop.f32.mrf.mxu1  ;;  %v10730_v54 = vpop.f32.mrf.mxu0  ;;  %v14197_v30 = vld [vmem:[#allocation103_spill] sm:$0xff] }
 0x287   :  { %7704 = vmatprep.mubr.f32.mxu1 %v10125_v50  ;;  %7790 = vmatprep.mubr.f32.mxu0 %v14193_v2  ;;  %14194 = vst [vmem:[#allocation95_spill] sm:$0xff] %v10730_v54  ;;  %v14198_v50 = vand.u32 4294901760, %v14197_v30  ;;  %v14207_v2 = vld [vmem:[#allocation115_spill] sm:$0xff] }
 0x288   :  { %7829 = vmatprep.subr.mxu1 %v14195_v6  ;;  %7911 = vmatprep.subr.mxu0 %v8774_v46  ;;  %v10734_v4 = vpop.f32.mrf.mxu1  ;;  %v10736_v45 = vpop.f32.mrf.mxu0  ;;  %v14224_v54 = vld [vmem:[#allocation27_spill] sm:$0xff] }
 0x289   :  { %14196 = vst [vmem:[#allocation17_spill] sm:$0xff] %v10736_v45  ;;  %7705 = vmatmul.mubr.f32.gmra.mxu1 %v10138_v20  ;;  %7912 = vmatpush3.msra.mxu0 %v8774_v46 }
 0x28a   :  { %7791 = vmatmul.mubr.f32.gmra.mxu0 %v14198_v50  ;;  %7830 = vmatpush3.msra.mxu1 %v14195_v6  ;;  %v10746_v51 = vpop.f32.mrf.mxu1  ;;  %v10748_v33 = vpop.f32.mrf.mxu0  ;;  %v14208_v6 = vand.u32 4294901760, %v14207_v2 }
 0x28b   :  { %7707 = vmatprep.mubr.f32.mxu1 %v10159_v7  ;;  %7793 = vmatprep.mubr.f32.mxu0 %v14200_v58  ;;  %14201 = vst [vmem:[#allocation103_spill] sm:$0xff] %v10748_v33  ;;  %v14205_v7 = vld [vmem:[#allocation59_spill] sm:$0xff]  ;;  %v14211_v33 = vld [vmem:[#allocation20_spill] sm:$0xff] }
 0x28c   :  { %7831 = vmatprep.subr.mxu1 %v14202_v48  ;;  %7913 = vmatprep.subr.mxu0 %v8776_v47  ;;  %v10752_v20 = vpop.f32.mrf.mxu1  ;;  %v10754_v46 = vpop.f32.mrf.mxu0  ;;  %v14206_v38 = vand.u32 4294901760, %v14205_v7 }
 0x28d   :  { %14203 = vst [vmem:[#allocation107_spill] sm:$0xff] %v10752_v20  ;;  %14204 = vst [vmem:[#allocation19_spill] sm:$0xff] %v10754_v46  ;;  %7708 = vmatmul.mubr.f32.gmra.mxu1 %v10182_v14  ;;  %7914 = vmatpush3.msra.mxu0 %v8776_v47  ;;  %v14217_v46 = vld [vmem:[#allocation25_spill] sm:$0xff] }
 0x28e   :  { %7794 = vmatmul.mubr.f32.gmra.mxu0 %v14206_v38  ;;  %7832 = vmatpush3.msra.mxu1 %v14202_v48  ;;  %v10764_v50 = vpop.f32.mrf.mxu1  ;;  %v10766_v58 = vpop.f32.mrf.mxu0  ;;  %v14213_v48 = vld [vmem:[#allocation11_spill] sm:$0xff]  ;;  %v14215_v38 = vand.u32 4294901760, %v10327_v8 }
 0x28f   :  { %7710 = vmatprep.mubr.f32.mxu1 %v14192_v43  ;;  %7796 = vmatprep.mubr.f32.mxu0 %v14208_v6  ;;  %14209 = vst [vmem:[#allocation59_spill] sm:$0xff] %v10764_v50  ;;  %14210 = vst [vmem:[#allocation115_spill] sm:$0xff] %v10766_v58  ;;  %v14214_v43 = vand.u32 4294901760, %v14213_v48 }
 0x290   :  { %7833 = vmatprep.subr.mxu1 %v14211_v33  ;;  %7915 = vmatprep.subr.mxu0 %v8793_v53  ;;  %v10770_v14 = vpop.f32.mrf.mxu1  ;;  %v7318_v47 = vpop.f32.mrf.mxu0 }
 0x291   :  { %14212 = vst [vmem:[#allocation20_spill] sm:$0xff] %v10770_v14  ;;  %7711 = vmatmul.mubr.f32.gmra.mxu1 %v14197_v30  ;;  %7916 = vmatpush3.msra.mxu0 %v8793_v53 }
 0x292   :  { %7797 = vmatmul.mubr.f32.gmra.mxu0 %v14214_v43  ;;  %7834 = vmatpush3.msra.mxu1 %v14211_v33  ;;  %v10780_v6 = vpop.f32.mrf.mxu1  ;;  %v1857_v58 = vpop.f32.mrf.mxu0  ;;  %v14219_v33 = vld [vmem:[#allocation118_spill] sm:$0xff] }
 0x293   :  { %7713 = vmatprep.mubr.f32.mxu1 %v14199_v9  ;;  %7799 = vmatprep.mubr.f32.mxu0 %v14215_v38  ;;  %14216 = vst [vmem:[#allocation11_spill] sm:$0xff] %v10780_v6  ;;  %v14220_v43 = vand.u32 4294901760, %v14219_v33  ;;  %v14221_v9 = vld [vmem:[#allocation122_spill] sm:$0xff] }
 0x294   :  { %7835 = vmatprep.subr.mxu1 %v14217_v46  ;;  %7917 = vmatprep.subr.mxu0 %v8815_v60  ;;  %v10784_v30 = vpop.f32.mrf.mxu1  ;;  %v7321_v53 = vpop.f32.mrf.mxu0  ;;  %v14222_v38 = vand.u32 4294901760, %v14221_v9 }
 0x295   :  { %14218 = vst [vmem:[#allocation25_spill] sm:$0xff] %v10784_v30  ;;  %7714 = vmatmul.mubr.f32.gmra.mxu1 %v14205_v7  ;;  %7918 = vmatpush3.msra.mxu0 %v8815_v60  ;;  %v14225_v30 = vld [vmem:[#allocation32_spill] sm:$0xff]  ;;  %v14226_v60 = vld [vmem:[#allocation138_spill] sm:$0xff] }
 0x296   :  { %7800 = vmatmul.mubr.f32.gmra.mxu0 %v14220_v43  ;;  %7836 = vmatpush3.msra.mxu1 %v14217_v46  ;;  %v10794_v45 = vpop.f32.mrf.mxu1  ;;  %v1873_v6 = vpop.f32.mrf.mxu0  ;;  %v14227_v43 = vld [vmem:[#allocation124_spill] sm:$0xff] }
 0x297   :  { %7716 = vmatprep.mubr.f32.mxu1 %v14207_v2  ;;  %7802 = vmatprep.mubr.f32.mxu0 %v14222_v38  ;;  %14223 = vst [vmem:[#allocation118_spill] sm:$0xff] %v10794_v45  ;;  %v14228_v2 = vand.u32 4294901760, %v14227_v43  ;;  %v14229_v38 = vld [vmem:[#allocation18_spill] sm:$0xff] }
 0x298   :  { %7837 = vmatprep.subr.mxu1 %v14224_v54  ;;  %7919 = vmatprep.subr.mxu0 %v14225_v30  ;;  %v7238_v7 = vpop.f32.mrf.mxu1  ;;  %v7324_v14 = vpop.f32.mrf.mxu0  ;;  %v14230_v45 = vand.u32 4294901760, %v14229_v38 }
 0x299   :  { %7717 = vmatmul.mubr.f32.gmra.mxu1 %v14213_v48  ;;  %7920 = vmatpush3.msra.mxu0 %v14225_v30  ;;  %v1545_v46 = vadd.f32 %v7238_v7, %v14226_v60 }
 0x29a   :  { %7803 = vmatmul.mubr.f32.gmra.mxu0 %v14228_v2  ;;  %7838 = vmatpush3.msra.mxu1 %v14224_v54  ;;  %v1537_v41 = vpop.f32.mrf.mxu1  ;;  %v1889_v50 = vpop.f32.mrf.mxu0  ;;  %v14234_v54 = vld [vmem:[#allocation133_spill] sm:$0xff]  ;;  %v14238_v2 = vld [vmem:[#allocation146_spill] sm:$0xff] }
 0x29b   :  { %7719 = vmatprep.mubr.f32.mxu1 %v10327_v8  ;;  %7805 = vmatprep.mubr.f32.mxu0 %v14230_v45  ;;  %v1538_v20 = vadd.f32 %v1537_v41, %v14231_v12  ;;  %v10810_v48 = vadd.f32 %v7318_v47, %v1545_v46  ;;  %v14235_v45 = vand.u32 4294901760, %v14234_v54  ;;  %v14236_v41 = vld [vmem:[#allocation134_spill] sm:$0xff] }
 0x29c   :  { %7839 = vmatprep.subr.mxu1 %v14232_v40  ;;  %7921 = vmatprep.subr.mxu0 %v8943_v44  ;;  %v7241_v30 = vpop.f32.mrf.mxu1  ;;  %v7327_v7 = vpop.f32.mrf.mxu0  ;;  %v14237_v47 = vand.u32 4294901760, %v14236_v41 }
 0x29d   :  { %14233 = vst [vmem:[#allocation122_spill] sm:$0xff] %v10810_v48  ;;  %7720 = vmatmul.mubr.f32.gmra.mxu1 %v14219_v33  ;;  %7922 = vmatpush3.msra.mxu0 %v8943_v44  ;;  %v1559_v8 = vadd.f32 %v7241_v30, %v10490_v27  ;;  %v10818_v12 = vadd.f32 %v1857_v58, %v1538_v20  ;;  %v14239_v48 = vld [vmem:[#allocation36_spill] sm:$0xff]  ;;  %v14240_v20 = vld [vmem:[#allocation139_spill] sm:$0xff] }
 0x29e   :  { %7806 = vmatmul.mubr.f32.gmra.mxu0 %v14235_v45  ;;  %7840 = vmatpush3.msra.mxu1 %v14232_v40  ;;  %v1551_v60 = vpop.f32.mrf.mxu1  ;;  %v1905_v46 = vpop.f32.mrf.mxu0  ;;  %v14241_v58 = vand.u32 4294901760, %v14240_v20 }
 0x29f   :  { %7722 = vmatprep.mubr.f32.mxu1 %v14221_v9  ;;  %7808 = vmatprep.mubr.f32.mxu0 %v14237_v47  ;;  %v1552_v33 = vadd.f32 %v1551_v60, %v14238_v2  ;;  %v10826_v44 = vadd.f32 %v7321_v53, %v1559_v8  ;;  %v14242_v53 = vand.u32 4294901760, %v10483_v37  ;;  %v14243_v47 = vld [vmem:[#allocation150_spill] sm:$0xff]  ;;  %v14244_v60 = vld [vmem:[#allocation40_spill] sm:$0xff] }
 0x2a0   :  { %7841 = vmatprep.subr.mxu1 %v14239_v48  ;;  %7923 = vmatprep.subr.mxu0 %v8957_v1  ;;  %v7244_v27 = vpop.f32.mrf.mxu1  ;;  %v7330_v30 = vpop.f32.mrf.mxu0 }
 0x2a1   :  { %7723 = vmatmul.mubr.f32.gmra.mxu1 %v14227_v43  ;;  %7924 = vmatpush3.msra.mxu0 %v8957_v1  ;;  %v1573_v40 = vadd.f32 %v7244_v27, %v10530_v34  ;;  %v10834_v9 = vadd.f32 %v1873_v6, %v1552_v33 }
 0x2a2   :  { %7809 = vmatmul.mubr.f32.gmra.mxu0 %v14241_v58  ;;  %7842 = vmatpush3.msra.mxu1 %v14239_v48  ;;  %v1565_v8 = vpop.f32.mrf.mxu1  ;;  %v1921_v45 = vpop.f32.mrf.mxu0  ;;  %v14248_v58 = vld [vmem:[#allocation44_spill] sm:$0xff] }
 0x2a3   :  { %7725 = vmatprep.mubr.f32.mxu1 %v14229_v38  ;;  %7811 = vmatprep.mubr.f32.mxu0 %v14242_v53  ;;  %v1566_v43 = vadd.f32 %v1565_v8, %v14243_v47  ;;  %v10842_v1 = vadd.f32 %v7324_v14, %v1573_v40  ;;  %v14245_v38 = vld [vmem:[#allocation144_spill] sm:$0xff]  ;;  %v14247_v14 = vand.u32 4294901760, %v10523_v22  ;;  %v14250_v8 = vand.u32 4294901760, %v10544_v61 }
 0x2a4   :  { %7843 = vmatprep.subr.mxu1 %v14244_v60  ;;  %7925 = vmatprep.subr.mxu0 %v13887_v29  ;;  %v7247_v34 = vpop.f32.mrf.mxu1  ;;  %v7333_v2 = vpop.f32.mrf.mxu0  ;;  %v14246_v48 = vand.u32 4294901760, %v14245_v38 }
 0x2a5   :  { %7726 = vmatmul.mubr.f32.gmra.mxu1 %v14234_v54  ;;  %7926 = vmatpush3.msra.mxu0 %v13887_v29  ;;  %v1587_v6 = vadd.f32 %v7247_v34, %v10566_v19  ;;  %v10850_v33 = vadd.f32 %v1889_v50, %v1566_v43  ;;  %v14249_v50 = vld [vmem:[#allocation152_spill] sm:$0xff] }
 0x2a6   :  { %7812 = vmatmul.mubr.f32.gmra.mxu0 %v14246_v48  ;;  %7844 = vmatpush3.msra.mxu1 %v14244_v60  ;;  %v1579_v27 = vpop.f32.mrf.mxu1  ;;  %v1937_v40 = vpop.f32.mrf.mxu0  ;;  %v14252_v60 = vld [vmem:[#allocation48_spill] sm:$0xff] }
 0x2a7   :  { %7728 = vmatprep.mubr.f32.mxu1 %v14236_v41  ;;  %7814 = vmatprep.mubr.f32.mxu0 %v14247_v14  ;;  %v1580_v54 = vadd.f32 %v1579_v27, %v10582_v36  ;;  %v10858_v29 = vadd.f32 %v7327_v7, %v1587_v6  ;;  %v14251_v7 = vand.u32 4294901760, %v10560_v59  ;;  %v14255_v27 = vld [vmem:[#allocation54_spill] sm:$0xff] }
 0x2a8   :  { %7845 = vmatprep.subr.mxu1 %v14248_v58  ;;  %7927 = vmatprep.subr.mxu0 %v13893_v28  ;;  %v7250_v19 = vpop.f32.mrf.mxu1  ;;  %v7336_v53 = vpop.f32.mrf.mxu0 }
 0x2a9   :  { %7729 = vmatmul.mubr.f32.gmra.mxu1 %v14240_v20  ;;  %7928 = vmatpush3.msra.mxu0 %v13893_v28  ;;  %v1601_v41 = vadd.f32 %v7250_v19, %v14249_v50  ;;  %v10866_v36 = vadd.f32 %v1905_v46, %v1580_v54  ;;  %v14253_v46 = vand.u32 4294901760, %v10580_v25 }
 0x2aa   :  { %7815 = vmatmul.mubr.f32.gmra.mxu0 %v14250_v8  ;;  %7846 = vmatpush3.msra.mxu1 %v14248_v58  ;;  %v1593_v47 = vpop.f32.mrf.mxu1  ;;  %v1953_v43 = vpop.f32.mrf.mxu0  ;;  %v14257_v58 = vld [vmem:[#allocation14_spill] sm:$0xff] }
 0x2ab   :  { %7731 = vmatprep.mubr.f32.mxu1 %v10483_v37  ;;  %7817 = vmatprep.mubr.f32.mxu0 %v14251_v7  ;;  %v1594_v20 = vadd.f32 %v1593_v47, %v10608_v62  ;;  %v10874_v28 = vadd.f32 %v7330_v30, %v1601_v41  ;;  %v14254_v30 = vand.u32 4294901760, %v10593_v21  ;;  %v14261_v47 = vld [vmem:[#allocation31_spill] sm:$0xff] }
 0x2ac   :  { %7847 = vmatprep.subr.mxu1 %v14252_v60  ;;  %7929 = vmatprep.subr.mxu0 %v13899_v16  ;;  %v7253_v34 = vpop.f32.mrf.mxu1  ;;  %v7339_v6 = vpop.f32.mrf.mxu0 }
 0x2ad   :  { %7732 = vmatmul.mubr.f32.gmra.mxu1 %v14245_v38  ;;  %7930 = vmatpush3.msra.mxu0 %v13899_v16  ;;  %v1615_v37 = vadd.f32 %v7253_v34, %v10617_v35  ;;  %v10882_v62 = vadd.f32 %v1921_v45, %v1594_v20  ;;  %v14256_v45 = vand.u32 4294901760, %v10606_v24 }
 0x2ae   :  { %7818 = vmatmul.mubr.f32.gmra.mxu0 %v14253_v46  ;;  %7848 = vmatpush3.msra.mxu1 %v14252_v60  ;;  %v1607_v48 = vpop.f32.mrf.mxu1  ;;  %v1969_v14 = vpop.f32.mrf.mxu0  ;;  %v14265_v46 = vld [vmem:[#allocation24_spill] sm:$0xff] }
 0x2af   :  { %7734 = vmatprep.mubr.f32.mxu1 %v10523_v22  ;;  %7820 = vmatprep.mubr.f32.mxu0 %v14254_v30  ;;  %v1608_v38 = vadd.f32 %v1607_v48, %v10626_v26  ;;  %v10890_v16 = vadd.f32 %v7333_v2, %v1615_v37  ;;  %v14268_v48 = vld [vmem:[#allocation102_spill] sm:$0xff] }
 0x2b0   :  { %7849 = vmatprep.subr.mxu1 %v14255_v27  ;;  %7931 = vmatprep.subr.mxu0 %v13905_v10  ;;  %v7256_v35 = vpop.f32.mrf.mxu1  ;;  %v7342_v54 = vpop.f32.mrf.mxu0 }
 0x2b1   :  { %7735 = vmatmul.mubr.f32.gmra.mxu1 %v10544_v61  ;;  %7932 = vmatpush3.msra.mxu0 %v13905_v10  ;;  %v1629_v22 = vadd.f32 %v7256_v35, %v10634_v56  ;;  %v10898_v26 = vadd.f32 %v1937_v40, %v1608_v38  ;;  %v14258_v10 = vld [vmem:[#allocation56_spill] sm:$0xff] }
 0x2b2   :  { %7821 = vmatmul.mubr.f32.gmra.mxu0 %v14256_v45  ;;  %7850 = vmatpush3.msra.mxu1 %v14255_v27  ;;  %v1621_v2 = vpop.f32.mrf.mxu1  ;;  %v1985_v19 = vpop.f32.mrf.mxu0  ;;  %v14259_v40 = vld [vmem:[#allocation16_spill] sm:$0xff]  ;;  %v14270_v27 = vld [vmem:[#allocation105_spill] sm:$0xff] }
 0x2b3   :  { %7737 = vmatprep.mubr.f32.mxu1 %v10560_v59  ;;  %7935 = vmatprep.mubr.f32.mxu0 %v14257_v58  ;;  %v1622_v50 = vadd.f32 %v1621_v2, %v10643_v17  ;;  %v10905_v61 = vadd.f32 %v7336_v53, %v1629_v22  ;;  %v14260_v17 = vld [vmem:[#allocation22_spill] sm:$0xff]  ;;  %v1454_v35 = vadd.f32 %v10710_v49, %v14270_v27  ;;  %v14284_v27 = vld [vmem:[#allocation107_spill] sm:$0xff] }
 0x2b4   :  { %7933 = vmatprep.subr.mxu0 %v13911_v18  ;;  %7851 = vmatprep.subr.mxu1 %v14258_v10  ;;  %v7259_v56 = vpop.f32.mrf.mxu1  ;;  %v7457_v41 = vpop.f32.mrf.mxu0 }
 0x2b5   :  { %7934 = vmatpush3.msra.mxu0 %v13911_v18  ;;  %7738 = vmatmul.mubr.f32.gmra.mxu1 %v10580_v25  ;;  %v1643_v59 = vadd.f32 %v7259_v56, %v10650_v13  ;;  %v10912_v8 = vadd.f32 %v1953_v43, %v1622_v50  ;;  %v1447_v18 = vadd.f32 %v10680_v39, %v14261_v47  ;;  %v14262_v25 = vld [vmem:[#allocation58_spill] sm:$0xff] }
 0x2b6   :  { %7852 = vmatpush3.msra.mxu1 %v14258_v10  ;;  %7936 = vmatmul.mubr.f32.vlgmr.msra.gmra.mxu0 %v14259_v40  ;;  %v1635_v53 = vpop.f32.mrf.mxu1  ;;  %v2385_v7 = vpop.f32.mrf.mxu0  ;;  %v14264_v43 = vld [vmem:[#allocation98_spill] sm:$0xff] }
 0x2b7   :  { %7740 = vmatprep.mubr.f32.mxu1 %v10593_v21  ;;  %7938 = vmatprep.mubr.f32.mxu0 %v14260_v17  ;;  %v1636_v20 = vadd.f32 %v1635_v53, %v10659_v0  ;;  %v10920_v13 = vadd.f32 %v7339_v6, %v1643_v59  ;;  %v1440_v21 = vadd.f32 %v10692_v52, %v14264_v43  ;;  %v14267_v0 = vld [vmem:[#allocation75_spill] sm:$0xff]  ;;  %v14274_v50 = vld [vmem:[#allocation110_spill] sm:$0xff]  ;;  %v14279_v43 = vld [vmem:[#allocation116_spill] sm:$0xff] }
 0x2b8   :  { %7853 = vmatprep.subr.mxu1 %v14262_v25  ;;  %v7262_v60 = vpop.f32.mrf.mxu1  ;;  %v7460_v34 = vpop.f32.mrf.mxu0  ;;  %v1754_v52 = vadd.f32 %v10648_v15, %v1447_v18  ;;  %v1475_v49 = vadd.f32 %v10716_v32, %v14274_v50  ;;  %v14276_v32 = vld [vmem:[#allocation82_spill] sm:$0xff] }
 0x2b9   :  { %14263 = vst [vmem:[#allocation27_spill] sm:$0xff] %v10920_v13  ;;  %7741 = vmatmul.mubr.f32.gmra.mxu1 %v10606_v24  ;;  %v1657_v37 = vadd.f32 %v7262_v60, %v10666_v55  ;;  %v10928_v39 = vadd.f32 %v1969_v14, %v1636_v20  ;;  %v1461_v24 = vadd.f32 %v10698_v3, %v14268_v48  ;;  %v14278_v20 = vld [vmem:[#allocation86_spill] sm:$0xff] }
 0x2ba   :  { %7854 = vmatpush3.msra.mxu1 %v14262_v25  ;;  %7939 = vmatmul.mubr.f32.gmra.mxu0 %v14265_v46  ;;  %v1649_v6 = vpop.f32.mrf.mxu1  ;;  %v2397_v30 = vpop.f32.mrf.mxu0  ;;  %v1746_v3 = vadd.f32 %v10657_v63, %v1440_v21  ;;  %v1762_v63 = vadd.f32 %v10674_v42, %v1454_v35  ;;  %v1482_v21 = vadd.f32 %v10746_v51, %v14279_v43  ;;  %v14281_v48 = vld [vmem:[#allocation30_spill] sm:$0xff]  ;;  %v14282_v51 = vld [vmem:[#allocation45_spill] sm:$0xff]  ;;  %v14293_v43 = vld [vmem:[#allocation47_spill] sm:$0xff] }
 0x2bb   :  { %14266 = vst [vmem:[#allocation32_spill] sm:$0xff] %v10928_v39  ;;  %7855 = vmatprep.mubr.f32.mxu1 %v14257_v58  ;;  %7941 = vmatprep.mubr.f32.mxu0 %v14267_v0  ;;  %v1650_v38 = vadd.f32 %v1649_v6, %v10676_v57  ;;  %v10936_v55 = vadd.f32 %v7342_v54, %v1657_v37  ;;  %v14271_v58 = vld [vmem:[#allocation26_spill] sm:$0xff]  ;;  %v14273_v57 = vld [vmem:[#allocation79_spill] sm:$0xff] }
 0x2bc   :  { %v7377_v14 = vpop.f32.mrf.mxu1  ;;  %v7463_v22 = vpop.f32.mrf.mxu0  ;;  %v1770_v59 = vadd.f32 %v10663_v5, %v1461_v24  ;;  %v14280_v6 = vld [vmem:[#allocation87_spill] sm:$0xff]  ;;  %v14324_v39 = vld [vmem:[#allocation142_spill] sm:$0xff] }
 0x2bd   :  { %14269 = vst [vmem:[#allocation138_spill] sm:$0xff] %v10936_v55  ;;  %7856 = vmatmul.mubr.f32.vlgmr.msra.gmra.mxu1 %v14259_v40  ;;  %v2119_v45 = vadd.f32 %v7377_v14, %v1754_v52  ;;  %v10944_v2 = vadd.f32 %v1985_v19, %v1650_v38  ;;  %v14275_v19 = vld [vmem:[#allocation114_spill] sm:$0xff]  ;;  %v14283_v52 = vld [vmem:[#allocation119_spill] sm:$0xff] }
 0x2be   :  { %7942 = vmatmul.mubr.f32.gmra.mxu0 %v14271_v58  ;;  %7858 = vmatprep.mubr.f32.mxu1 %v14260_v17  ;;  %v2112_v15 = vpop.f32.mrf.mxu1  ;;  %v2409_v54 = vpop.f32.mrf.mxu0  ;;  %v1468_v17 = vadd.f32 %v10728_v11, %v14275_v19  ;;  %v1503_v35 = vadd.f32 %v14284_v27, %v14283_v52  ;;  %v14316_v55 = vld [vmem:[#allocation127_spill] sm:$0xff] }
 0x2bf   :  { %14272 = vst [vmem:[#allocation124_spill] sm:$0xff] %v10944_v2  ;;  %7944 = vmatprep.mubr.f32.mxu0 %v14273_v57  ;;  %v10949_v10 = vadd.f32 %v7457_v41, %v2119_v45  ;;  %v2113_v56 = vadd.f32 %v2112_v15, %v1746_v3  ;;  %v14277_v41 = vld [vmem:[#allocation9_spill] sm:$0xff]  ;;  %v14285_v3 = vld [vmem:[#allocation50_spill] sm:$0xff]  ;;  %v14287_v15 = vld [vmem:[#allocation59_spill] sm:$0xff] }
 0x2c0   :  { %v7380_v40 = vpop.f32.mrf.mxu1  ;;  %v7466_v53 = vpop.f32.mrf.mxu0  ;;  %v1489_v5 = vadd.f32 %v10734_v4, %v14277_v41  ;;  %v14291_v41 = vld [vmem:[#allocation125_spill] sm:$0xff] }
 0x2c1   :  { %7859 = vmatmul.mubr.f32.gmra.mxu1 %v14265_v46  ;;  %8163 = vrcp.f32 %v10949_v10  ;;  %v10957_v47 = vadd.f32 %v2385_v7, %v2113_v56  ;;  %v2131_v18 = vadd.f32 %v7380_v40, %v1770_v59  ;;  %v1786_v7 = vadd.f32 %v10682_v31, %v1475_v49  ;;  %v14288_v59 = vld [vmem:[#allocation94_spill] sm:$0xff] }
 0x2c2   :  { %7945 = vmatmul.mubr.f32.gmra.mxu0 %v14276_v32  ;;  %7861 = vmatprep.mubr.f32.mxu1 %v14267_v0  ;;  %v2124_v25 = vpop.f32.mrf.mxu1  ;;  %v2421_v60 = vpop.f32.mrf.mxu0  ;;  %v1802_v38 = vadd.f32 %v14282_v51, %v1489_v5  ;;  %v14292_v5 = vld [vmem:[#allocation20_spill] sm:$0xff]  ;;  %v14297_v51 = vld [vmem:[#allocation51_spill] sm:$0xff] }
 0x2c3   :  { %7947 = vmatprep.mubr.f32.mxu0 %v14278_v20  ;;  %8165 = vrcp.f32 %v10957_v47  ;;  %v10965_v42 = vadd.f32 %v7460_v34, %v2131_v18  ;;  %v2125_v11 = vadd.f32 %v2124_v25, %v1762_v63  ;;  %v1778_v34 = vadd.f32 %v10694_v23, %v1468_v17  ;;  %v14290_v18 = vld [vmem:[#allocation153_spill] sm:$0xff] }
 0x2c4   :  { %v7383_v37 = vpop.f32.mrf.mxu1  ;;  %v7469_v46 = vpop.f32.mrf.mxu0  ;;  %v1794_v23 = vadd.f32 %v14285_v3, %v1482_v21  ;;  %v14300_v3 = vld [vmem:[#allocation17_spill] sm:$0xff] }
 0x2c5   :  { %7862 = vmatmul.mubr.f32.gmra.mxu1 %v14271_v58  ;;  %8167 = vrcp.f32 %v10965_v42  ;;  %v10972_v4 = vadd.f32 %v2397_v30, %v2125_v11  ;;  %v2143_v0 = vadd.f32 %v7383_v37, %v1786_v7 }
 0x2c6   :  { %7948 = vmatmul.mubr.f32.gmra.mxu0 %v14280_v6  ;;  %7864 = vmatprep.mubr.f32.mxu1 %v14273_v57  ;;  %v2136_v31 = vpop.f32.mrf.mxu1  ;;  %v2433_v24 = vpop.f32.mrf.mxu0  ;;  %v14286_v57 = vld [vmem:[#allocation123_spill] sm:$0xff] }
 0x2c7   :  { %7950 = vmatprep.mubr.f32.mxu0 %v14281_v48  ;;  %8169 = vrcp.f32 %v10972_v4  ;;  %v10982_v30 = vadd.f32 %v7463_v22, %v2143_v0  ;;  %v2137_v14 = vadd.f32 %v2136_v31, %v1778_v34  ;;  %v1496_v50 = vadd.f32 %v14287_v15, %v14286_v57  ;;  %v14289_v22 = vld [vmem:[#allocation99_spill] sm:$0xff]  ;;  %v14295_v0 = vld [vmem:[#allocation129_spill] sm:$0xff] }
 0x2c8   :  { %v7386_v45 = vpop.f32.mrf.mxu1  ;;  %v7472_v58 = vpop.f32.mrf.mxu0  ;;  %v14296_v34 = vld [vmem:[#allocation11_spill] sm:$0xff] }
 0x2c9   :  { %7865 = vmatmul.mubr.f32.gmra.mxu1 %v14276_v32  ;;  %8171 = vrcp.f32 %v10982_v30  ;;  %v10989_v49 = vadd.f32 %v2409_v54, %v2137_v14  ;;  %v2155_v56 = vadd.f32 %v7386_v45, %v1802_v38  ;;  %v1818_v32 = vadd.f32 %v14290_v18, %v1503_v35  ;;  %v14299_v14 = vld [vmem:[#allocation25_spill] sm:$0xff]  ;;  %v14302_v18 = vld [vmem:[#allocation135_spill] sm:$0xff] }
 0x2ca   :  { %7951 = vmatmul.mubr.f32.gmra.mxu0 %v14288_v59  ;;  %7867 = vmatprep.mubr.f32.mxu1 %v14278_v20  ;;  %v2148_v40 = vpop.f32.mrf.mxu1  ;;  %v2445_v63 = vpop.f32.mrf.mxu0  ;;  %v1517_v54 = vadd.f32 %v14292_v5, %v14291_v41  ;;  %v1510_v31 = vadd.f32 %v14296_v34, %v14295_v0 }
 0x2cb   :  { %7953 = vmatprep.mubr.f32.mxu0 %v14289_v22  ;;  %8173 = vrcp.f32 %v10989_v49  ;;  %v10995_v19 = vadd.f32 %v7466_v53, %v2155_v56  ;;  %v2149_v17 = vadd.f32 %v2148_v40, %v1794_v23  ;;  %v14294_v53 = vld [vmem:[#allocation95_spill] sm:$0xff] }
 0x2cc   :  { %v7389_v25 = vpop.f32.mrf.mxu1  ;;  %v11000_v11 = vpop.f32.mrf.mxu0  ;;  %v1810_v21 = vadd.f32 %v14294_v53, %v1496_v50  ;;  %v1834_v23 = vadd.f32 %v14300_v3, %v1517_v54  ;;  %v14304_v54 = vld [vmem:[#allocation60_spill] sm:$0xff] }
 0x2cd   :  { %7868 = vmatmul.mubr.f32.gmra.mxu1 %v14280_v6  ;;  %8175 = vrcp.f32 %v10995_v19  ;;  %v11004_v20 = vadd.f32 %v2421_v60, %v2149_v17  ;;  %v2167_v7 = vadd.f32 %v7389_v25, %v1818_v32  ;;  %v14303_v32 = vld [vmem:[#allocation118_spill] sm:$0xff]  ;;  %v14305_v25 = vld [vmem:[#allocation103_spill] sm:$0xff] }
 0x2ce   :  { %7954 = vmatmul.mubr.f32.gmra.mxu0 %v14293_v43  ;;  %7870 = vmatprep.mubr.f32.mxu1 %v14281_v48  ;;  %v8164_v37 = vpop.eup %8163  ;;  %v2160_v38 = vpop.f32.mrf.mxu1  ;;  %v14298_v48 = vld [vmem:[#allocation131_spill] sm:$0xff]  ;;  %v1524_v41 = vadd.f32 %v14303_v32, %v14302_v18 }
 0x2cf   :  { %7956 = vmatprep.mubr.f32.mxu0 %v14297_v51  ;;  %v11012_v52 = vpop.f32.mrf.mxu0  ;;  %v4582_v6 = vmul.f32 %v8164_v37, %v10949_v10  ;;  %8177 = vrcp.f32 %v11004_v20  ;;  %v11016_v60 = vadd.f32 %v7469_v46, %v2167_v7  ;;  %v2161_v27 = vadd.f32 %v2160_v38, %v1810_v21  ;;  %v14301_v46 = vld [vmem:[#allocation111_spill] sm:$0xff] }
 0x2d0   :  { %v8166_v35 = vpop.eup %8165  ;;  %v1531_v45 = vadd.f32 %v14299_v14, %v14298_v48  ;;  %v7392_v57 = vpop.f32.mrf.mxu1  ;;  %v14309_v18 = vld [vmem:[#allocation115_spill] sm:$0xff] }
 0x2d1   :  { %v11021_v15 = vpop.f32.mrf.mxu0  ;;  %7871 = vmatmul.mubr.f32.gmra.mxu1 %v14288_v59  ;;  %v4614_v50 = vsub.f32 2.0, %v4582_v6  ;;  %v4581_v56 = vmul.f32 %v8166_v35, %v10957_v47  ;;  %8179 = vrcp.f32 %v11016_v60  ;;  %v11026_v40 = vadd.f32 %v2433_v24, %v2161_v27  ;;  %v14306_v6 = vld [vmem:[#allocation19_spill] sm:$0xff] }
 0x2d2   :  { %7957 = vmatmul.mubr.f32.gmra.mxu0 %v14301_v46  ;;  %7873 = vmatprep.mubr.f32.mxu1 %v14289_v22  ;;  %v8168_v17 = vpop.eup %8167  ;;  %v2179_v5 = vadd.f32 %v7392_v57, %v1834_v23  ;;  %v1826_v59 = vadd.f32 %v14305_v25, %v1510_v31  ;;  %v2172_v7 = vpop.f32.mrf.mxu1  ;;  %v1850_v27 = vadd.f32 %v14306_v6, %v1531_v45  ;;  %v14307_v57 = vld [vmem:[#allocation61_spill] sm:$0xff] }
 0x2d3   :  { %7959 = vmatprep.mubr.f32.mxu0 %v14304_v54  ;;  %v11034_v53 = vpop.f32.mrf.mxu0  ;;  %v4646_v21 = vmul.f32 %v8164_v37, %v4614_v50  ;;  %v4613_v0 = vsub.f32 2.0, %v4581_v56  ;;  %v4584_v24 = vmul.f32 %v8168_v17, %v10965_v42  ;;  %8181 = vrcp.f32 %v11026_v40  ;;  %v14308_v56 = vld [vmem:[#allocation10_spill] sm:$0xff] }
 0x2d4   :  { %v8170_v34 = vpop.eup %8169  ;;  %v11038_v22 = vadd.f32 %v7472_v58, %v2179_v5  ;;  %v2173_v38 = vadd.f32 %v2172_v7, %v1826_v59  ;;  %v7395_v48 = vpop.f32.mrf.mxu1 }
 0x2d5   :  { %v11041_v14 = vpop.f32.mrf.mxu0  ;;  %7874 = vmatmul.mubr.f32.gmra.mxu1 %v14293_v43  ;;  %v4678_v31 = vmul.f32 %v4646_v21, %v10949_v10  ;;  %v4645_v3 = vmul.f32 %v8166_v35, %v4613_v0  ;;  %v4616_v37 = vsub.f32 2.0, %v4584_v24  ;;  %v4583_v23 = vmul.f32 %v8170_v34, %v10972_v4 }
 0x2d6   :  { %7960 = vmatmul.mubr.f32.gmra.mxu0 %v14307_v57  ;;  %7876 = vmatprep.mubr.f32.mxu1 %v14297_v51  ;;  %v8172_v58 = vpop.eup %8171  ;;  %8183 = vrcp.f32 %v11038_v22  ;;  %v11049_v50 = vadd.f32 %v2445_v63, %v2173_v38  ;;  %v2191_v45 = vadd.f32 %v7395_v48, %v1850_v27  ;;  %v1842_v43 = vadd.f32 %v14309_v18, %v1524_v41  ;;  %v2184_v32 = vpop.f32.mrf.mxu1  ;;  %v14310_v27 = vld [vmem:[#allocation117_spill] sm:$0xff] }
 0x2d7   :  { %7962 = vmatprep.mubr.f32.mxu0 %v14308_v56  ;;  %v11053_v10 = vpop.f32.mrf.mxu0  ;;  %v4710_v35 = vsub.f32 2.0, %v4678_v31  ;;  %v4677_v5 = vmul.f32 %v4645_v3, %v10957_v47  ;;  %v4648_v25 = vmul.f32 %v8168_v17, %v4616_v37  ;;  %v4615_v59 = vsub.f32 2.0, %v4583_v23  ;;  %v14311_v23 = vld [vmem:[#allocation13_spill] sm:$0xff] }
 0x2d8   :  { %v8174_v7 = vpop.eup %8173  ;;  %v4586_v51 = vmul.f32 %v8172_v58, %v10982_v30  ;;  %8185 = vrcp.f32 %v11049_v50  ;;  %v11059_v63 = vadd.f32 %v11000_v11, %v2191_v45  ;;  %v2185_v0 = vadd.f32 %v2184_v32, %v1842_v43  ;;  %v7398_v24 = vpop.f32.mrf.mxu1 }
 0x2d9   :  { %v11061_v38 = vpop.f32.mrf.mxu0  ;;  %7877 = vmatmul.mubr.f32.gmra.mxu1 %v14301_v46  ;;  %v4742_v41 = vmul.f32 %v4710_v35, %v4646_v21  ;;  %v4709_v6 = vsub.f32 2.0, %v4677_v5  ;;  %v4680_v47 = vmul.f32 %v4648_v25, %v10965_v42  ;;  %v4647_v17 = vmul.f32 %v8170_v34, %v4615_v59  ;;  %v14312_v42 = vld [vmem:[#allocation65_spill] sm:$0xff] }
 0x2da   :  { %7963 = vmatmul.mubr.f32.gmra.mxu0 %v14310_v27  ;;  %7879 = vmatprep.mubr.f32.mxu1 %v14304_v54  ;;  %v8176_v48 = vpop.eup %8175  ;;  %v4618_v31 = vsub.f32 2.0, %v4586_v51  ;;  %v4585_v11 = vmul.f32 %v8174_v7, %v10989_v49  ;;  %8187 = vrcp.f32 %v11059_v63  ;;  %v11070_v37 = vadd.f32 %v11012_v52, %v2185_v0  ;;  %v11073_v46 = vpop.f32.mrf.mxu1  ;;  %v14313_v51 = vld [vmem:[#allocation63_spill] sm:$0xff] }
 0x2db   :  { %7965 = vmatprep.mubr.f32.mxu0 %v14311_v23  ;;  %v11075_v21 = vpop.f32.mrf.mxu0  ;;  %v4774_v34 = vmul.f32 %v14312_v42, %v4742_v41  ;;  %v4741_v45 = vmul.f32 %v4709_v6, %v4645_v3  ;;  %v4712_v18 = vsub.f32 2.0, %v4680_v47  ;;  %v4679_v54 = vmul.f32 %v4647_v17, %v10972_v4  ;;  %v14314_v6 = vld [vmem:[#allocation126_spill] sm:$0xff] }
 0x2dc   :  { %v8178_v43 = vpop.eup %8177  ;;  %v4650_v32 = vmul.f32 %v8172_v58, %v4618_v31  ;;  %v4617_v35 = vsub.f32 2.0, %v4585_v11  ;;  %v4588_v5 = vmul.f32 %v8176_v48, %v10995_v19  ;;  %8189 = vrcp.f32 %v11070_v37  ;;  %v11081_v52 = vpop.f32.mrf.mxu1  ;;  %v14315_v42 = vld [vmem:[#allocation122_spill] sm:$0xff] }
 0x2dd   :  { %v11083_v59 = vpop.f32.mrf.mxu0  ;;  %7880 = vmatmul.mubr.f32.gmra.mxu1 %v14307_v57  ;;  %5062 = vst [vmem:[#allocation4 + $0x8] sm:$0xff] %v4774_v34  ;;  %v4773_v0 = vmul.f32 %v14313_v51, %v4741_v45  ;;  %v4744_v3 = vmul.f32 %v4712_v18, %v4648_v25  ;;  %v4711_v41 = vsub.f32 2.0, %v4679_v54  ;;  %v4587_v4 = vmul.f32 %v8178_v43, %v11004_v20  ;;  %v14317_v25 = vld [vmem:[#allocation66_spill] sm:$0xff] }
 0x2de   :  { %7966 = vmatmul.mubr.f32.gmra.mxu0 %v14314_v6  ;;  %7882 = vmatprep.mubr.f32.mxu1 %v14308_v56  ;;  %v8180_v58 = vpop.eup %8179  ;;  %v4682_v47 = vmul.f32 %v4650_v32, %v10982_v30  ;;  %v4649_v31 = vmul.f32 %v8174_v7, %v4617_v35  ;;  %v4620_v11 = vsub.f32 2.0, %v4588_v5  ;;  %v2203_v2 = vadd.f32 %v7398_v24, %v14315_v42  ;;  %v11093_v57 = vpop.f32.mrf.mxu1  ;;  %v5140_v30 = vld [vmem:[%s13364_s4 + $0x78] sm:$0xff] }
 0x2df   :  { %7968 = vmatprep.mubr.f32.mxu0 %v14316_v55  ;;  %v11095_v34 = vpop.f32.mrf.mxu0  ;;  %5061 = vst [vmem:[#allocation4] sm:$0xff] %v4773_v0  ;;  %v4776_v45 = vmul.f32 %v14317_v25, %v4744_v3  ;;  %v4743_v18 = vmul.f32 %v4711_v41, %v4647_v17  ;;  %v4619_v54 = vsub.f32 2.0, %v4587_v4  ;;  %v4590_v56 = vmul.f32 %v8180_v58, %v11016_v60  ;;  %v14318_v17 = vld [vmem:[#allocation64_spill] sm:$0xff] }
 0x2e0   :  { %v8182_v7 = vpop.eup %8181  ;;  %v4714_v35 = vsub.f32 2.0, %v4682_v47  ;;  %v4681_v24 = vmul.f32 %v4649_v31, %v10989_v49  ;;  %v4652_v5 = vmul.f32 %v8176_v48, %v4620_v11  ;;  %v11104_v51 = vadd.f32 %v11021_v15, %v2203_v2  ;;  %v11106_v42 = vpop.f32.mrf.mxu1  ;;  %7983 = vmatprep.subr.mxu0 %v5140_v30  ;;  %v14319_v25 = vld [vmem:[#allocation132_spill] sm:$0xff]  ;;  %8063 = vmatprep.subr.mxu1 %v5140_v30 }
 0x2e1   :  { %v11108_v0 = vpop.f32.mrf.mxu0  ;;  %7883 = vmatmul.mubr.f32.gmra.mxu1 %v14310_v27  ;;  %5064 = vst [vmem:[#allocation4 + $0x18] sm:$0xff] %v4776_v45  ;;  %v4775_v3 = vmul.f32 %v14318_v17, %v4743_v18  ;;  %v4651_v41 = vmul.f32 %v8178_v43, %v4619_v54  ;;  %v4622_v4 = vsub.f32 2.0, %v4590_v56  ;;  %v4589_v47 = vmul.f32 %v8182_v7, %v11026_v40  ;;  %v14320_v48 = vld [vmem:[#allocation136_spill] sm:$0xff] }
 0x2e2   :  { %7969 = vmatmul.mubr.f32.gmra.mxu0 %v14319_v25  ;;  %7885 = vmatprep.mubr.f32.mxu1 %v14311_v23  ;;  %v4746_v2 = vmul.f32 %v4714_v35, %v4650_v32  ;;  %v4713_v49 = vsub.f32 2.0, %v4681_v24  ;;  %v4684_v15 = vmul.f32 %v4652_v5, %v10995_v19  ;;  %8191 = vrcp.f32 %v11104_v51  ;;  %v11118_v27 = vpop.f32.mrf.mxu1  ;;  %v11128_v19 = vld [vmem:[%s13364_s4 + $0x70] sm:$0xff]  ;;  %v14321_v32 = vld [vmem:[#allocation68_spill] sm:$0xff] }
 0x2e3   :  { %7971 = vmatprep.mubr.f32.mxu0 %v14320_v48  ;;  %v11120_v11 = vpop.f32.mrf.mxu0  ;;  %7984 = vmatpush3.msra.mxu0 %v5140_v30  ;;  %v8184_v43 = vpop.eup %8183  ;;  %5063 = vst [vmem:[#allocation4 + $0x10] sm:$0xff] %v4775_v3  ;;  %v4683_v45 = vmul.f32 %v4651_v41, %v11004_v20  ;;  %v4654_v18 = vmul.f32 %v8180_v58, %v4622_v4  ;;  %v4621_v54 = vsub.f32 2.0, %v4589_v47 }
 0x2e4   :  { %v2197_v23 = vadd.f32 %v11073_v46, %v10818_v12  ;;  %v4778_v56 = vmul.f32 %v14321_v32, %v4746_v2  ;;  %v4745_v35 = vmul.f32 %v4713_v49, %v4649_v31  ;;  %v4716_v24 = vsub.f32 2.0, %v4684_v15  ;;  %v11132_v3 = vpop.f32.mrf.mxu1  ;;  %7985 = vmatprep.subr.mxu0 %v11128_v19  ;;  %v14322_v31 = vld [vmem:[#allocation33_spill] sm:$0xff]  ;;  %v14323_v2 = vld [vmem:[#allocation67_spill] sm:$0xff]  ;;  %8079 = vmatpush3.msra.mxu1 %v5140_v30 }
 0x2e5   :  { %v4592_v17 = vmul.f32 %v8184_v43, %v11038_v22  ;;  %v11134_v20 = vpop.f32.mrf.mxu0  ;;  %7886 = vmatmul.mubr.f32.gmra.mxu1 %v14314_v6  ;;  %v8186_v12 = vpop.eup %8185  ;;  %v4715_v46 = vsub.f32 2.0, %v4683_v45  ;;  %v4686_v58 = vmul.f32 %v4654_v18, %v11016_v60  ;;  %v4653_v4 = vmul.f32 %v8182_v7, %v4621_v54  ;;  %7986 = vmatpush3.msra.mxu0 %v11128_v19 }
 0x2e6   :  { %v11140_v47 = vadd.f32 %v11034_v53, %v2197_v23  ;;  %7972 = vmatmul.mubr.f32.gmra.mxu0 %v14322_v31  ;;  %7888 = vmatprep.mubr.f32.mxu1 %v14316_v55  ;;  %5066 = vst [vmem:[#allocation4 + $0x28] sm:$0xff] %v4778_v56  ;;  %v4777_v49 = vmul.f32 %v14323_v2, %v4745_v35  ;;  %v11147_v45 = vpop.f32.mrf.mxu1  ;;  %v14325_v23 = vld [vmem:[#allocation72_spill] sm:$0xff] }
 0x2e7   :  { %v4748_v15 = vmul.f32 %v4716_v24, %v4652_v5  ;;  %v4624_v32 = vsub.f32 2.0, %v4592_v17  ;;  %v4591_v6 = vmul.f32 %v8186_v12, %v11049_v50  ;;  %7974 = vmatprep.mubr.f32.mxu0 %v14324_v39  ;;  %v11149_v60 = vpop.f32.mrf.mxu0  ;;  %v8188_v53 = vpop.eup %8187  ;;  %v4747_v7 = vmul.f32 %v4715_v46, %v4651_v41  ;;  %v11157_v5 = vld [vmem:[%s13364_s4 + $0x68] sm:$0xff]  ;;  %8064 = vmatprep.subr.mxu1 %v11128_v19 }
 0x2e8   :  { %v4718_v54 = vsub.f32 2.0, %v4686_v58  ;;  %v4685_v55 = vmul.f32 %v4653_v4, %v11026_v40  ;;  %8193 = vrcp.f32 %v11140_v47  ;;  %5065 = vst [vmem:[#allocation4 + $0x20] sm:$0xff] %v4777_v49  ;;  %v4594_v17 = vmul.f32 %v8188_v53, %v11059_v63  ;;  %v11161_v2 = vpop.f32.mrf.mxu1  ;;  %7987 = vmatprep.subr.mxu0 %v11157_v5  ;;  %v14327_v46 = vld [vmem:[#allocation69_spill] sm:$0xff]  ;;  %8080 = vmatpush3.msra.mxu1 %v11128_v19 }
 0x2e9   :  { %v4780_v56 = vmul.f32 %v14325_v23, %v4748_v15  ;;  %v4656_v35 = vmul.f32 %v8184_v43, %v4624_v32  ;;  %v4623_v24 = vsub.f32 2.0, %v4591_v6  ;;  %v11163_v41 = vpop.f32.mrf.mxu0  ;;  %7889 = vmatmul.mubr.f32.gmra.mxu1 %v14319_v25  ;;  %v8190_v40 = vpop.eup %8189  ;;  %v4779_v58 = vmul.f32 %v14327_v46, %v4747_v7  ;;  %v14328_v43 = vld [vmem:[#allocation35_spill] sm:$0xff]  ;;  %7988 = vmatpush3.msra.mxu0 %v11157_v5  ;;  %v14335_v19 = vld [vmem:[#allocation41_spill] sm:$0xff] }
 0x2ea   :  { %14326 = vst [vmem:[#allocation18_spill] sm:$0xff] %v11163_v41  ;;  %v4750_v13 = vmul.f32 %v4718_v54, %v4654_v18  ;;  %v4717_v30 = vsub.f32 2.0, %v4685_v55  ;;  %v2215_v49 = vadd.f32 %v11081_v52, %v10826_v44  ;;  %7975 = vmatmul.mubr.f32.gmra.mxu0 %v14328_v43  ;;  %7891 = vmatprep.mubr.f32.mxu1 %v14320_v48  ;;  %v4626_v6 = vsub.f32 2.0, %v4594_v17  ;;  %v14329_v23 = vld [vmem:[#allocation147_spill] sm:$0xff]  ;;  %v11175_v41 = vpop.f32.mrf.mxu1  ;;  %v14330_v44 = vld [vmem:[#allocation76_spill] sm:$0xff] }
 0x2eb   :  { %5068 = vst [vmem:[#allocation4 + $0x38] sm:$0xff] %v4780_v56  ;;  %v4688_v15 = vmul.f32 %v4656_v35, %v11038_v22  ;;  %v4655_v32 = vmul.f32 %v8186_v12, %v4623_v24  ;;  %v4593_v25 = vmul.f32 %v8190_v40, %v11070_v37  ;;  %7977 = vmatprep.mubr.f32.mxu0 %v14329_v23  ;;  %v11177_v18 = vpop.f32.mrf.mxu0  ;;  %5067 = vst [vmem:[#allocation4 + $0x30] sm:$0xff] %v4779_v58  ;;  %v11189_v12 = vld [vmem:[%s13364_s4 + $0x60] sm:$0xff] }
 0x2ec   :  { %v4782_v52 = vmul.f32 %v14330_v44, %v4750_v13  ;;  %v4749_v7 = vmul.f32 %v4717_v30, %v4653_v4  ;;  %v11182_v48 = vadd.f32 %v11041_v14, %v2215_v49  ;;  %v2209_v22 = vadd.f32 %v11093_v57, %v10834_v9  ;;  %v11193_v13 = vpop.f32.mrf.mxu1  ;;  %7989 = vmatprep.subr.mxu0 %v11189_v12  ;;  %v14331_v9 = vld [vmem:[#allocation73_spill] sm:$0xff]  ;;  %v14333_v30 = vld [vmem:[#allocation151_spill] sm:$0xff] }
 0x2ed   :  { %v4720_v54 = vsub.f32 2.0, %v4688_v15  ;;  %v4687_v55 = vmul.f32 %v4655_v32, %v11049_v50  ;;  %v4658_v56 = vmul.f32 %v8188_v53, %v4626_v6  ;;  %v4625_v24 = vsub.f32 2.0, %v4593_v25  ;;  %v11195_v4 = vpop.f32.mrf.mxu0  ;;  %7892 = vmatmul.mubr.f32.gmra.mxu1 %v14322_v31  ;;  %v14332_v53 = vld [vmem:[#allocation37_spill] sm:$0xff]  ;;  %7990 = vmatpush3.msra.mxu0 %v11189_v12 }
 0x2ee   :  { %5070 = vst [vmem:[#allocation4 + $0x48] sm:$0xff] %v4782_v52  ;;  %v4781_v14 = vmul.f32 %v14331_v9, %v4749_v7  ;;  %8195 = vrcp.f32 %v11182_v48  ;;  %v11202_v57 = vadd.f32 %v11053_v10, %v2209_v22  ;;  %v2227_v50 = vadd.f32 %v11106_v42, %v10842_v1  ;;  %7978 = vmatmul.mubr.f32.gmra.mxu0 %v14332_v53  ;;  %v2256_v49 = vpop.f32.mrf.mxu1  ;;  %v11224_v42 = vld [vmem:[%s13364_s4 + $0x58] sm:$0xff] }
 0x2ef   :  { %7894 = vmatprep.mubr.f32.mxu1 %v14324_v39  ;;  %v4752_v17 = vmul.f32 %v4720_v54, %v4656_v35  ;;  %v4719_v46 = vsub.f32 2.0, %v4687_v55  ;;  %v4690_v31 = vmul.f32 %v4658_v56, %v11059_v63  ;;  %v4657_v58 = vmul.f32 %v8190_v40, %v4625_v24  ;;  %7980 = vmatprep.mubr.f32.mxu0 %v14333_v30  ;;  %v11210_v15 = vpop.f32.mrf.mxu0  ;;  %v8192_v10 = vpop.eup %8191  ;;  %v14334_v35 = vld [vmem:[#allocation80_spill] sm:$0xff] }
 0x2f0   :  { %5069 = vst [vmem:[#allocation4 + $0x40] sm:$0xff] %v4781_v14  ;;  %8197 = vrcp.f32 %v11202_v57  ;;  %v11215_v1 = vadd.f32 %v11061_v38, %v2227_v50  ;;  %v2221_v39 = vadd.f32 %v11118_v27, %v10850_v33  ;;  %v2239_v63 = vadd.f32 %v11132_v3, %v10858_v29  ;;  %v7416_v44 = vpop.f32.mrf.mxu1  ;;  %7991 = vmatprep.subr.mxu0 %v11224_v42  ;;  %v14337_v55 = vld [vmem:[#allocation84_spill] sm:$0xff] }
 0x2f1   :  { %v4784_v40 = vmul.f32 %v14334_v35, %v4752_v17  ;;  %v4751_v6 = vmul.f32 %v4719_v46, %v4655_v32  ;;  %v4722_v25 = vsub.f32 2.0, %v4690_v31  ;;  %v4689_v38 = vmul.f32 %v4657_v58, %v11070_v37  ;;  %v11229_v52 = vpop.f32.mrf.mxu0  ;;  %7895 = vmatmul.mubr.f32.gmra.mxu1 %v14328_v43  ;;  %v14336_v37 = vld [vmem:[#allocation77_spill] sm:$0xff]  ;;  %7992 = vmatpush3.msra.mxu0 %v11224_v42 }
 0x2f2   :  { %v4596_v33 = vmul.f32 %v8192_v10, %v11104_v51  ;;  %8199 = vrcp.f32 %v11215_v1  ;;  %v11236_v29 = vadd.f32 %v11075_v21, %v2221_v39  ;;  %v11239_v27 = vadd.f32 %v11083_v59, %v2239_v63  ;;  %7981 = vmatmul.mubr.f32.gmra.mxu0 %v14335_v19  ;;  %7897 = vmatprep.mubr.f32.mxu1 %v14329_v23  ;;  %v2268_v22 = vpop.f32.mrf.mxu1  ;;  %v14340_v63 = vld [vmem:[#allocation27_spill] sm:$0xff] }
 0x2f3   :  { %5072 = vst [vmem:[#allocation4 + $0x58] sm:$0xff] %v4784_v40  ;;  %v4783_v3 = vmul.f32 %v14336_v37, %v4751_v6  ;;  %v4754_v43 = vmul.f32 %v4722_v25, %v4658_v56  ;;  %v4721_v32 = vsub.f32 2.0, %v4689_v38  ;;  %v2233_v7 = vadd.f32 %v11147_v45, %v10866_v36  ;;  %v11246_v54 = vpop.f32.mrf.mxu0  ;;  %8065 = vmatprep.subr.mxu1 %v11157_v5  ;;  %v11258_v36 = vld [vmem:[%s13364_s4 + $0x50] sm:$0xff] }
 0x2f4   :  { %v4628_v21 = vsub.f32 2.0, %v4596_v33  ;;  %8201 = vrcp.f32 %v11236_v29  ;;  %v2251_v59 = vadd.f32 %v11161_v2, %v10874_v28  ;;  %v2245_v23 = vadd.f32 %v11175_v41, %v10882_v62  ;;  %8081 = vmatpush3.msra.mxu1 %v11157_v5  ;;  %v7419_v28 = vpop.f32.mrf.mxu1  ;;  %7993 = vmatprep.subr.mxu0 %v11258_v36  ;;  %v14342_v6 = vld [vmem:[#allocation138_spill] sm:$0xff] }
 0x2f5   :  { %v8194_v45 = vpop.eup %8193  ;;  %5071 = vst [vmem:[#allocation4 + $0x50] sm:$0xff] %v4783_v3  ;;  %v4786_v56 = vmul.f32 %v14337_v55, %v4754_v43  ;;  %v4753_v24 = vmul.f32 %v4721_v32, %v4657_v58  ;;  %8203 = vrcp.f32 %v11239_v27  ;;  %v11264_v9 = vadd.f32 %v11095_v34, %v2233_v7  ;;  %v11266_v2 = vpop.f32.mrf.mxu0  ;;  %7898 = vmatmul.mubr.f32.gmra.mxu1 %v14332_v53  ;;  %v14338_v34 = vld [vmem:[#allocation81_spill] sm:$0xff]  ;;  %v14343_v7 = vld [vmem:[#allocation88_spill] sm:$0xff] }
 0x2f6   :  { %v4660_v62 = vmul.f32 %v8192_v10, %v4628_v21  ;;  %v4595_v5 = vmul.f32 %v8194_v45, %v11140_v47  ;;  %v11272_v41 = vadd.f32 %v11108_v0, %v2251_v59  ;;  %v11275_v14 = vadd.f32 %v11120_v11, %v2245_v23  ;;  %7900 = vmatprep.mubr.f32.mxu1 %v14333_v30  ;;  %v2280_v46 = vpop.f32.mrf.mxu1 }
 0x2f7   :  { %5074 = vst [vmem:[#allocation4 + $0x68] sm:$0xff] %v4786_v56  ;;  %v4785_v50 = vmul.f32 %v14338_v34, %v4753_v24  ;;  %8205 = vrcp.f32 %v11264_v9  ;;  %v2263_v53 = vadd.f32 %v11193_v13, %v10890_v16  ;;  %v2257_v17 = vadd.f32 %v2256_v49, %v10898_v26  ;;  %v11283_v31 = vpop.f32.mrf.mxu0  ;;  %7994 = vmatpush3.msra.mxu0 %v11258_v36  ;;  %v5134_v16 = vld [vmem:[%s13364_s4 + $0x48] sm:$0xff] }
 0x2f8   :  { %8066 = vmatprep.subr.mxu1 %v11189_v12  ;;  %v4692_v0 = vmul.f32 %v4660_v62, %v11104_v51  ;;  %v4627_v11 = vsub.f32 2.0, %v4595_v5  ;;  %8207 = vrcp.f32 %v11272_v41  ;;  %v2275_v58 = vadd.f32 %v7416_v44, %v10905_v61  ;;  %v7422_v30 = vpop.f32.mrf.mxu1  ;;  %7995 = vmatprep.subr.mxu0 %v5134_v16 }
 0x2f9   :  { %8082 = vmatpush3.msra.mxu1 %v11189_v12  ;;  %5073 = vst [vmem:[#allocation4 + $0x60] sm:$0xff] %v4785_v50  ;;  %8209 = vrcp.f32 %v11275_v14  ;;  %v11296_v26 = vadd.f32 %v11134_v20, %v2263_v53  ;;  %v11299_v13 = vadd.f32 %v11149_v60, %v2257_v17  ;;  %v2269_v51 = vadd.f32 %v2268_v22, %v10912_v8  ;;  %v11302_v49 = vpop.f32.mrf.mxu0  ;;  %v14339_v12 = vld [vmem:[#allocation18_spill] sm:$0xff]  ;;  %v14341_v60 = vld [vmem:[#allocation32_spill] sm:$0xff] }
 0x2fa   :  { %7901 = vmatmul.mubr.f32.gmra.mxu1 %v14335_v19  ;;  %v4724_v61 = vsub.f32 2.0, %v4692_v0  ;;  %v4659_v10 = vmul.f32 %v8194_v45, %v4627_v11  ;;  %v11306_v39 = vadd.f32 %v14339_v12, %v2275_v58  ;;  %v2287_v35 = vadd.f32 %v7419_v28, %v14340_v63  ;;  %7996 = vmatpush3.msra.mxu0 %v5134_v16  ;;  %v2292_v38 = vpop.f32.mrf.mxu1 }
 0x2fb   :  { %8067 = vmatprep.subr.mxu1 %v11224_v42  ;;  %v8196_v20 = vpop.eup %8195  ;;  %8211 = vrcp.f32 %v11296_v26  ;;  %v11312_v8 = vadd.f32 %v11177_v18, %v2269_v51  ;;  %v2281_v40 = vadd.f32 %v2280_v46, %v14341_v60  ;;  %v2299_v25 = vadd.f32 %v7422_v30, %v14342_v6  ;;  %v11316_v44 = vpop.f32.mrf.mxu0  ;;  %v5133_v18 = vld [vmem:[%s13364_s4 + $0x40] sm:$0xff]  ;;  %v14345_v46 = vld [vmem:[#allocation85_spill] sm:$0xff] }
 0x2fc   :  { %8083 = vmatpush3.msra.mxu1 %v11224_v42  ;;  %v4756_v33 = vmul.f32 %v4724_v61, %v4660_v62  ;;  %v4691_v19 = vmul.f32 %v4659_v10, %v11140_v47  ;;  %v4598_v37 = vmul.f32 %v8196_v20, %v11182_v48  ;;  %8213 = vrcp.f32 %v11299_v13  ;;  %v7537_v47 = vpop.f32.mrf.mxu1  ;;  %7997 = vmatprep.subr.mxu0 %v5133_v18 }
 0x2fd   :  { %8068 = vmatprep.subr.mxu1 %v11258_v36  ;;  %v8198_v3 = vpop.eup %8197  ;;  %8215 = vrcp.f32 %v11306_v39  ;;  %v11328_v43 = vadd.f32 %v11195_v4, %v2287_v35  ;;  %v11331_v42 = vadd.f32 %v11210_v15, %v2281_v40  ;;  %v11333_v32 = vpop.f32.mrf.mxu0  ;;  %7998 = vmatpush3.msra.mxu0 %v5133_v18  ;;  %v11340_v4 = vadd.f32 %v11229_v52, %v2299_v25  ;;  %v14344_v15 = vld [vmem:[#allocation124_spill] sm:$0xff] }
 0x2fe   :  { %8084 = vmatpush3.msra.mxu1 %v11258_v36  ;;  %v4788_v22 = vmul.f32 %v14343_v7, %v4756_v33  ;;  %v4723_v21 = vsub.f32 2.0, %v4691_v19  ;;  %v4630_v59 = vsub.f32 2.0, %v4598_v37  ;;  %v4597_v23 = vmul.f32 %v8198_v3, %v11202_v57  ;;  %v11346_v36 = vpop.f32.mrf.mxu1 }
 0x2ff   :  { %8069 = vmatprep.subr.mxu1 %v5134_v16  ;;  %v8200_v45 = vpop.eup %8199  ;;  %8217 = vrcp.f32 %v11312_v8  ;;  %v2293_v55 = vadd.f32 %v2292_v38, %v14344_v15  ;;  %v11344_v56 = vadd.f32 %v11266_v2, %v7537_v47  ;;  %v11348_v24 = vpop.f32.mrf.mxu0 }
 0x300   :  { %8085 = vmatpush3.msra.mxu1 %v5134_v16  ;;  %5076 = vst [vmem:[#allocation4 + $0x78] sm:$0xff] %v4788_v22  ;;  %v4755_v28 = vmul.f32 %v4723_v21, %v4659_v10  ;;  %v4662_v62 = vmul.f32 %v8196_v20, %v4630_v59  ;;  %v4629_v5 = vsub.f32 2.0, %v4597_v23  ;;  %v4600_v34 = vmul.f32 %v8200_v45, %v11215_v1  ;;  %v7540_v2 = vpop.f32.mrf.mxu1  ;;  %v14346_v23 = vld [vmem:[#allocation92_spill] sm:$0xff] }
 0x301   :  { %8070 = vmatprep.subr.mxu1 %v5133_v18  ;;  %v8202_v50 = vpop.eup %8201  ;;  %8219 = vrcp.f32 %v11328_v43  ;;  %v11353_v52 = vadd.f32 %v11246_v54, %v2293_v55  ;;  %v11355_v53 = vpop.f32.mrf.mxu0  ;;  %v11363_v54 = vadd.f32 %v11302_v49, %v7540_v2 }
 0x302   :  { %8086 = vmatpush3.msra.mxu1 %v5133_v18  ;;  %v8204_v17 = vpop.eup %8203  ;;  %v4787_v0 = vmul.f32 %v14345_v46, %v4755_v28  ;;  %v4694_v11 = vmul.f32 %v4662_v62, %v11182_v48  ;;  %v4661_v58 = vmul.f32 %v8198_v3, %v4629_v5  ;;  %v4632_v16 = vsub.f32 2.0, %v4600_v34  ;;  %v11365_v61 = vpop.f32.mrf.mxu1 }
 0x303   :  { %v4599_v51 = vmul.f32 %v8202_v50, %v11236_v29  ;;  %v4602_v30 = vmul.f32 %v8204_v17, %v11239_v27  ;;  %8221 = vrcp.f32 %v11331_v42  ;;  %v11367_v10 = vpop.f32.mrf.mxu0 }
 0x304   :  { %v8206_v12 = vpop.eup %8205  ;;  %5075 = vst [vmem:[#allocation4 + $0x70] sm:$0xff] %v4787_v0  ;;  %v4726_v63 = vsub.f32 2.0, %v4694_v11  ;;  %v4693_v48 = vmul.f32 %v4661_v58, %v11202_v57  ;;  %v4664_v35 = vmul.f32 %v8200_v45, %v4632_v16  ;;  %8223 = vrcp.f32 %v11340_v4  ;;  %v11373_v49 = vpop.f32.mrf.mxu1  ;;  %v14347_v0 = vld [vmem:[#allocation89_spill] sm:$0xff] }
 0x305   :  { %v8208_v20 = vpop.eup %8207  ;;  %v4631_v60 = vsub.f32 2.0, %v4599_v51  ;;  %v4634_v40 = vsub.f32 2.0, %v4602_v30  ;;  %v4601_v6 = vmul.f32 %v8206_v12, %v11264_v9  ;;  %8225 = vrcp.f32 %v11353_v52  ;;  %v11375_v25 = vpop.f32.mrf.mxu0 }
 0x306   :  { %v8210_v38 = vpop.eup %8209  ;;  %v4758_v33 = vmul.f32 %v4726_v63, %v4662_v62  ;;  %v4725_v19 = vsub.f32 2.0, %v4693_v48  ;;  %v4696_v37 = vmul.f32 %v4664_v35, %v11215_v1  ;;  %v4604_v57 = vmul.f32 %v8208_v20, %v11272_v41  ;;  %v11380_v22 = vpop.f32.mrf.mxu1 }
 0x307   :  { %v4663_v18 = vmul.f32 %v8202_v50, %v4631_v60  ;;  %v4666_v3 = vmul.f32 %v8204_v17, %v4634_v40  ;;  %v4633_v47 = vsub.f32 2.0, %v4601_v6  ;;  %v4603_v7 = vmul.f32 %v8210_v38, %v11275_v14  ;;  %v11382_v21 = vpop.f32.mrf.mxu0  ;;  %v14348_v40 = vld [vmem:[#allocation96_spill] sm:$0xff] }
 0x308   :  { %v8212_v59 = vpop.eup %8211  ;;  %v4790_v45 = vmul.f32 %v14346_v23, %v4758_v33  ;;  %v4757_v15 = vmul.f32 %v4725_v19, %v4661_v58  ;;  %v4728_v55 = vsub.f32 2.0, %v4696_v37  ;;  %v4636_v28 = vsub.f32 2.0, %v4604_v57  ;;  %v11387_v2 = vpop.f32.mrf.mxu1 }
 0x309   :  { %v8214_v62 = vpop.eup %8213  ;;  %v4695_v1 = vmul.f32 %v4663_v18, %v11236_v29  ;;  %v4698_v5 = vmul.f32 %v4666_v3, %v11239_v27  ;;  %v4665_v34 = vmul.f32 %v8206_v12, %v4633_v47  ;;  %v4635_v50 = vsub.f32 2.0, %v4603_v7  ;;  %v11389_v17 = vpop.f32.mrf.mxu0 }
 0x30a   :  { %v8216_v46 = vpop.eup %8215  ;;  %5078 = vst [vmem:[#allocation4 + $0x88] sm:$0xff] %v4790_v45  ;;  %v4789_v11 = vmul.f32 %v14347_v0, %v4757_v15  ;;  %v4760_v16 = vmul.f32 %v4728_v55, %v4664_v35  ;;  %v4668_v51 = vmul.f32 %v8208_v20, %v4636_v28  ;;  %v4606_v58 = vmul.f32 %v8212_v59, %v11296_v26  ;;  %v11394_v27 = vpop.f32.mrf.mxu1 }
 0x30b   :  { %v4727_v30 = vsub.f32 2.0, %v4695_v1  ;;  %v4730_v63 = vsub.f32 2.0, %v4698_v5  ;;  %v4697_v29 = vmul.f32 %v4665_v34, %v11264_v9  ;;  %v4667_v48 = vmul.f32 %v8210_v38, %v4635_v50  ;;  %v11396_v12 = vpop.f32.mrf.mxu0  ;;  %v14350_v1 = vld [vmem:[#allocation100_spill] sm:$0xff] }
 0x30c   :  { %v8218_v60 = vpop.eup %8217  ;;  %5077 = vst [vmem:[#allocation4 + $0x80] sm:$0xff] %v4789_v11  ;;  %v4792_v6 = vmul.f32 %v14348_v40, %v4760_v16  ;;  %v4700_v33 = vmul.f32 %v4668_v51, %v11272_v41  ;;  %v4638_v19 = vsub.f32 2.0, %v4606_v58  ;;  %v4605_v35 = vmul.f32 %v8214_v62, %v11299_v13  ;;  %v11402_v9 = vpop.f32.mrf.mxu1  ;;  %v14349_v41 = vld [vmem:[#allocation93_spill] sm:$0xff] }
 0x30d   :  { %v4759_v20 = vmul.f32 %v4727_v30, %v4663_v18  ;;  %v4762_v37 = vmul.f32 %v4730_v63, %v4666_v3  ;;  %v4729_v57 = vsub.f32 2.0, %v4697_v29  ;;  %v4699_v47 = vmul.f32 %v4667_v48, %v11275_v14  ;;  %v11404_v38 = vpop.f32.mrf.mxu0  ;;  %v14351_v63 = vld [vmem:[#allocation97_spill] sm:$0xff] }
 0x30e   :  { %v8220_v7 = vpop.eup %8219  ;;  %5080 = vst [vmem:[#allocation4 + $0x98] sm:$0xff] %v4792_v6  ;;  %v4732_v23 = vsub.f32 2.0, %v4700_v33  ;;  %v4670_v45 = vmul.f32 %v8212_v59, %v4638_v19  ;;  %v4637_v15 = vsub.f32 2.0, %v4605_v35  ;;  %v4608_v55 = vmul.f32 %v8216_v46, %v11306_v39  ;;  %v11409_v50 = vpop.f32.mrf.mxu1 }
 0x30f   :  { %v4791_v28 = vmul.f32 %v14349_v41, %v4759_v20  ;;  %v4794_v5 = vmul.f32 %v14350_v1, %v4762_v37  ;;  %v4761_v18 = vmul.f32 %v4729_v57, %v4665_v34  ;;  %v4731_v3 = vsub.f32 2.0, %v4699_v47  ;;  %v11411_v14 = vpop.f32.mrf.mxu0  ;;  %v14353_v57 = vld [vmem:[#allocation101_spill] sm:$0xff] }
 0x310   :  { %v8222_v0 = vpop.eup %8221  ;;  %v4764_v11 = vmul.f32 %v4732_v23, %v4668_v51  ;;  %v4702_v16 = vmul.f32 %v4670_v45, %v11296_v26  ;;  %v4669_v58 = vmul.f32 %v8214_v62, %v4637_v15  ;;  %v4640_v30 = vsub.f32 2.0, %v4608_v55  ;;  %v11417_v33 = vpop.f32.mrf.mxu1  ;;  %v14352_v51 = vld [vmem:[#allocation62_spill] sm:$0xff] }
 0x311   :  { %v8224_v59 = vpop.eup %8223  ;;  %5079 = vst [vmem:[#allocation4 + $0x90] sm:$0xff] %v4791_v28  ;;  %5082 = vst [vmem:[#allocation4 + $0xa8] sm:$0xff] %v4794_v5  ;;  %v4793_v29 = vmul.f32 %v14351_v63, %v4761_v18  ;;  %v4763_v40 = vmul.f32 %v4731_v3, %v4667_v48  ;;  %v4607_v6 = vmul.f32 %v8218_v60, %v11312_v8  ;;  %v11419_v19 = vpop.f32.mrf.mxu0  ;;  %v14354_v63 = vld [vmem:[#allocation42_spill] sm:$0xff] }
 0x312   :  { %v4610_v34 = vmul.f32 %v8220_v7, %v11328_v43  ;;  %v8226_v35 = vpop.eup %8225  ;;  %v4796_v20 = vmul.f32 %v14352_v51, %v4764_v11  ;;  %v4734_v26 = vsub.f32 2.0, %v4702_v16  ;;  %v4701_v62 = vmul.f32 %v4669_v58, %v11299_v13  ;;  %v2762_v55 = vpop.f32.mrf.mxu1 }
 0x313   :  { %v4672_v37 = vmul.f32 %v8216_v46, %v4640_v30  ;;  %5081 = vst [vmem:[#allocation4 + $0xa0] sm:$0xff] %v4793_v29  ;;  %v4795_v47 = vmul.f32 %v14353_v57, %v4763_v40  ;;  %v4639_v23 = vsub.f32 2.0, %v4607_v6  ;;  %v4609_v15 = vmul.f32 %v8222_v0, %v11331_v42  ;;  %v11425_v41 = vpop.f32.mrf.mxu0 }
 0x314   :  { %v4642_v48 = vsub.f32 2.0, %v4610_v34  ;;  %5084 = vst [vmem:[#allocation4 + $0xb8] sm:$0xff] %v4796_v20  ;;  %v4766_v28 = vmul.f32 %v4734_v26, %v4670_v45  ;;  %v4733_v1 = vsub.f32 2.0, %v4701_v62  ;;  %v4612_v18 = vmul.f32 %v8224_v59, %v11340_v4  ;;  %v7555_v16 = vpop.f32.mrf.mxu1 }
 0x315   :  { %v4704_v5 = vmul.f32 %v4672_v37, %v11306_v39  ;;  %5083 = vst [vmem:[#allocation4 + $0xb0] sm:$0xff] %v4795_v47  ;;  %v4671_v13 = vmul.f32 %v8218_v60, %v4639_v23  ;;  %v4641_v3 = vsub.f32 2.0, %v4609_v15  ;;  %v4611_v11 = vmul.f32 %v8226_v35, %v11353_v52  ;;  %v7641_v30 = vpop.f32.mrf.mxu0  ;;  %v14355_v60 = vld [vmem:[#allocation38_spill] sm:$0xff] }
 0x316   :  { %v4674_v46 = vmul.f32 %v8220_v7, %v4642_v48  ;;  %v4798_v29 = vmul.f32 %v14354_v63, %v4766_v28  ;;  %v4765_v40 = vmul.f32 %v4733_v1, %v4669_v58  ;;  %v4644_v34 = vsub.f32 2.0, %v4612_v18  ;;  %v2782_v26 = vpop.f32.mrf.mxu1 }
 0x317   :  { %v4736_v6 = vsub.f32 2.0, %v4704_v5  ;;  %v4703_v45 = vmul.f32 %v4671_v13, %v11312_v8  ;;  %v4673_v39 = vmul.f32 %v8222_v0, %v4641_v3  ;;  %v4643_v20 = vsub.f32 2.0, %v4611_v11  ;;  %v3219_v62 = vpop.f32.mrf.mxu0  ;;  %v14356_v8 = vld [vmem:[#allocation46_spill] sm:$0xff] }
 0x318   :  { %v4706_v51 = vmul.f32 %v4674_v46, %v11328_v43  ;;  %5086 = vst [vmem:[#allocation4 + $0xc8] sm:$0xff] %v4798_v29  ;;  %v4797_v7 = vmul.f32 %v14355_v60, %v4765_v40  ;;  %v4676_v47 = vmul.f32 %v8224_v59, %v4644_v34  ;;  %v7558_v28 = vpop.f32.mrf.mxu1  ;;  %v11439_v0 = vadd.f32 %v11333_v32, %v11373_v49  ;;  %v14357_v29 = vld [vmem:[#allocation106_spill] sm:$0xff]  ;;  %v14358_v49 = vld [vmem:[#allocation49_spill] sm:$0xff] }
 0x319   :  { %v4768_v57 = vmul.f32 %v4736_v6, %v4672_v37  ;;  %v4735_v23 = vsub.f32 2.0, %v4703_v45  ;;  %v4705_v15 = vmul.f32 %v4673_v39, %v11331_v42  ;;  %v4675_v58 = vmul.f32 %v8226_v35, %v4643_v20  ;;  %v7644_v1 = vpop.f32.mrf.mxu0 }
 0x31a   :  { %v4738_v48 = vsub.f32 2.0, %v4706_v51  ;;  %5085 = vst [vmem:[#allocation4 + $0xc0] sm:$0xff] %v4797_v7  ;;  %v4708_v43 = vmul.f32 %v4676_v47, %v11340_v4  ;;  %v2802_v11 = vpop.f32.mrf.mxu1  ;;  %v11444_v35 = vadd.f32 %v11355_v53, %v11387_v2  ;;  %v11448_v4 = vadd.f32 %v11375_v25, %v11402_v9  ;;  %v5132_v25 = vld [vmem:[%s13364_s4 + $0x38] sm:$0xff]  ;;  %v5131_v2 = vld [vmem:[%s13364_s4 + $0x30] sm:$0xff]  ;;  %v14359_v9 = vld [vmem:[#allocation109_spill] sm:$0xff] }
 0x31b   :  { %v4800_v5 = vmul.f32 %v14356_v8, %v4768_v57  ;;  %v4767_v18 = vmul.f32 %v4735_v23, %v4671_v13  ;;  %v4737_v37 = vsub.f32 2.0, %v4705_v15  ;;  %v4707_v59 = vmul.f32 %v4675_v58, %v11353_v52  ;;  %v3231_v63 = vpop.f32.mrf.mxu0  ;;  %7999 = vmatprep.subr.mxu0 %v5132_v25  ;;  %8071 = vmatprep.subr.mxu1 %v5132_v25 }
 0x31c   :  { %v4770_v3 = vmul.f32 %v4738_v48, %v4674_v46  ;;  %v4740_v42 = vsub.f32 2.0, %v4708_v43  ;;  %v7561_v6 = vpop.f32.mrf.mxu1  ;;  %v11454_v45 = vadd.f32 %v11389_v17, %v11417_v33  ;;  %v11457_v53 = vadd.f32 %v11396_v12, %v2762_v55  ;;  %v14360_v55 = vld [vmem:[#allocation53_spill] sm:$0xff]  ;;  %8000 = vmatpush3.msra.mxu0 %v5132_v25  ;;  %8087 = vmatpush3.msra.mxu1 %v5132_v25 }
 0x31d   :  { %5088 = vst [vmem:[#allocation4 + $0xd8] sm:$0xff] %v4800_v5  ;;  %v4799_v32 = vmul.f32 %v14357_v29, %v4767_v18  ;;  %v4769_v46 = vmul.f32 %v4737_v37, %v4673_v39  ;;  %v4739_v40 = vsub.f32 2.0, %v4707_v59  ;;  %v7647_v52 = vpop.f32.mrf.mxu0  ;;  %v11467_v20 = vadd.f32 %v11404_v38, %v7555_v16  ;;  %v14361_v38 = vld [vmem:[#allocation112_spill] sm:$0xff]  ;;  %8001 = vmatprep.subr.mxu0 %v5131_v2  ;;  %v5128_v59 = vld [vmem:[%s13364_s4 + $0x18] sm:$0xff] }
 0x31e   :  { %v4802_v13 = vmul.f32 %v14358_v49, %v4770_v3  ;;  %v4772_v34 = vmul.f32 %v4740_v42, %v4676_v47  ;;  %v11470_v17 = vadd.f32 %v11411_v14, %v2782_v26  ;;  %v2822_v12 = vpop.f32.mrf.mxu1  ;;  %v11474_v7 = vadd.f32 %v11419_v19, %v7558_v28  ;;  %8002 = vmatpush3.msra.mxu0 %v5131_v2  ;;  %v5129_v37 = vld [vmem:[%s13364_s4 + $0x20] sm:$0xff] }
 0x31f   :  { %5087 = vst [vmem:[#allocation4 + $0xd0] sm:$0xff] %v4799_v32  ;;  %v4801_v51 = vmul.f32 %v14359_v9, %v4769_v46  ;;  %v4771_v39 = vmul.f32 %v4739_v40, %v4675_v58  ;;  %v3243_v33 = vpop.f32.mrf.mxu0  ;;  %v11477_v57 = vadd.f32 %v11425_v41, %v2802_v11  ;;  %v11479_v47 = vadd.f32 %v7641_v30, %v7561_v6  ;;  %v5130_v30 = vld [vmem:[%s13364_s4 + $0x28] sm:$0xff]  ;;  %v5127_v40 = vld [vmem:[%s13364_s4 + $0x10] sm:$0xff] }
 0x320   :  { %5090 = vst [vmem:[#allocation4 + $0xe8] sm:$0xff] %v4802_v13  ;;  %v4804_v60 = vmul.f32 %v14360_v55, %v4772_v34  ;;  %v11482_v23 = vadd.f32 %v3219_v62, %v2822_v12  ;;  %v7564_v14 = vpop.f32.mrf.mxu1  ;;  %8072 = vmatprep.subr.mxu1 %v5131_v2  ;;  %8003 = vmatprep.subr.mxu0 %v5130_v30 }
 0x321   :  { %5089 = vst [vmem:[#allocation4 + $0xe0] sm:$0xff] %v4801_v51  ;;  %v4803_v16 = vmul.f32 %v14361_v38, %v4771_v39  ;;  %v7650_v26 = vpop.f32.mrf.mxu0  ;;  %v11484_v48 = vadd.f32 %v7644_v1, %v7564_v14  ;;  %8088 = vmatpush3.msra.mxu1 %v5131_v2  ;;  %8004 = vmatpush3.msra.mxu0 %v5130_v30  ;;  %v5126_v51 = vld [vmem:[%s13364_s4 + $0x8] sm:$0xff] }
 0x322   :  { %5092 = vst [vmem:[#allocation4 + $0xf8] sm:$0xff] %v4804_v60  ;;  %v2842_v19 = vpop.f32.mrf.mxu1  ;;  %8073 = vmatprep.subr.mxu1 %v5130_v30  ;;  %8005 = vmatprep.subr.mxu0 %v5129_v37 }
 0x323   :  { %5091 = vst [vmem:[#allocation4 + $0xf0] sm:$0xff] %v4803_v16  ;;  %v3255_v41 = vpop.f32.mrf.mxu0  ;;  %v11489_v15 = vadd.f32 %v3231_v63, %v2842_v19  ;;  %8089 = vmatpush3.msra.mxu1 %v5130_v30  ;;  %8006 = vmatpush3.msra.mxu0 %v5129_v37 }
 0x324   :  { %v7567_v62 = vpop.f32.mrf.mxu1  ;;  %8074 = vmatprep.subr.mxu1 %v5129_v37  ;;  %8007 = vmatprep.subr.mxu0 %v5128_v59 }
 0x325   :  { %v7653_v58 = vpop.f32.mrf.mxu0  ;;  %v11491_v28 = vadd.f32 %v7647_v52, %v7567_v62  ;;  %8090 = vmatpush3.msra.mxu1 %v5129_v37  ;;  %8008 = vmatpush3.msra.mxu0 %v5128_v59 }
 0x326   :  { %v2862_v1 = vpop.f32.mrf.mxu1  ;;  %8075 = vmatprep.subr.mxu1 %v5128_v59  ;;  %8009 = vmatprep.subr.mxu0 %v5127_v40 }
 0x327   :  { %v3267_v8 = vpop.f32.mrf.mxu0  ;;  %v11493_v5 = vadd.f32 %v3243_v33, %v2862_v1  ;;  %8091 = vmatpush3.msra.mxu1 %v5128_v59  ;;  %8010 = vmatpush3.msra.mxu0 %v5127_v40 }
 0x328   :  { %v7570_v43 = vpop.f32.mrf.mxu1  ;;  %8076 = vmatprep.subr.mxu1 %v5127_v40  ;;  %8011 = vmatprep.subr.mxu0 %v5126_v51 }
 0x329   :  { %v7656_v18 = vpop.f32.mrf.mxu0  ;;  %v11495_v3 = vadd.f32 %v7650_v26, %v7570_v43  ;;  %8092 = vmatpush3.msra.mxu1 %v5127_v40  ;;  %8012 = vmatpush3.msra.mxu0 %v5126_v51  ;;  %v5125_v26 = vld [vmem:[%s13364_s4] sm:$0xff] }
 0x32a   :  { %v2882_v11 = vpop.f32.mrf.mxu1  ;;  %8077 = vmatprep.subr.mxu1 %v5126_v51  ;;  %8013 = vmatprep.subr.mxu0 %v5125_v26 }
 0x32b   :  { %v3279_v63 = vpop.f32.mrf.mxu0  ;;  %v11503_v42 = vadd.f32 %v3255_v41, %v2882_v11  ;;  %8093 = vmatpush3.msra.mxu1 %v5126_v51  ;;  %8014 = vmatpush3.msra.mxu0 %v5125_v26 }
 0x32c   :  { %v7573_v29 = vpop.f32.mrf.mxu1  ;;  %8078 = vmatprep.subr.mxu1 %v5125_v26 }
 0x32d   :  { %v7659_v32 = vpop.f32.mrf.mxu0  ;;  %v11505_v49 = vadd.f32 %v7653_v58, %v7573_v29  ;;  %8094 = vmatpush3.msra.mxu1 %v5125_v26 }
 0x32e   :  { %v2902_v13 = vpop.f32.mrf.mxu1 }
 0x32f   :  { %v3291_v46 = vpop.f32.mrf.mxu0  ;;  %v11510_v6 = vadd.f32 %v3267_v8, %v2902_v13  ;;  %v3124_v8 = vadd.f32 %v11283_v31, %v11346_v36  ;;  %v3148_v36 = vadd.f32 %v11348_v24, %v11380_v22 }
 0x331   :  { %v7576_v52 = vpop.f32.mrf.mxu1  ;;  %v7662_v34 = vpop.f32.mrf.mxu0 }
 0x332   :  { %v11512_v25 = vadd.f32 %v7656_v18, %v7576_v52 }
 0x333   :  { %v2922_v2 = vpop.f32.mrf.mxu1  ;;  %v3303_v9 = vpop.f32.mrf.mxu0 }
 0x334   :  { %v11517_v39 = vadd.f32 %v3279_v63, %v2922_v2  ;;  %v3136_v63 = vadd.f32 %v11316_v44, %v11365_v61 }
 0x335   :  { %v7579_v12 = vpop.f32.mrf.mxu1  ;;  %v11521_v55 = vpop.f32.mrf.mxu0 }
 0x336   :  { %v11519_v33 = vadd.f32 %v7659_v32, %v7579_v12 }
 0x337   :  { %v2942_v60 = vpop.f32.mrf.mxu1  ;;  %v3719_v16 = vpop.f32.mrf.mxu0 }
 0x338   :  { %v11523_v38 = vadd.f32 %v3291_v46, %v2942_v60 }
 0x339   :  { %v7582_v14 = vpop.f32.mrf.mxu1 }
 0x33a   :  { %v11528_v19 = vadd.f32 %v7662_v34, %v7582_v14  ;;  %v7780_v41 = vpop.f32.mrf.mxu0 }
 0x33b   :  { %v2962_v30 = vpop.f32.mrf.mxu1 }
 0x33c   :  { %v11530_v62 = vadd.f32 %v3303_v9, %v2962_v30  ;;  %v3735_v58 = vpop.f32.mrf.mxu0  ;;  %v3172_v30 = vadd.f32 %v11382_v21, %v11409_v50 }
 0x33d   :  { %v11532_v1 = vpop.f32.mrf.mxu1 }
 0x33e   :  { %v7783_v43 = vpop.f32.mrf.mxu0 }
 0x33f   :  { %v3413_v18 = vpop.f32.mrf.mxu1 }
 0x340   :  { %v3414_v37 = vadd.f32 %v3413_v18, %v3124_v8  ;;  %v3751_v59 = vpop.f32.mrf.mxu0 }
 0x341   :  { %v7700_v11 = vpop.f32.mrf.mxu1 }
 0x342   :  { %v3435_v29 = vadd.f32 %v7700_v11, %v11363_v54  ;;  %v11539_v32 = vpop.f32.mrf.mxu0  ;;  %v11541_v13 = vadd.f32 %v3719_v16, %v3414_v37  ;;  %v3160_v16 = vadd.f32 %v11367_v10, %v11394_v27 }
 0x343   :  { %v3427_v46 = vpop.f32.mrf.mxu1 }
 0x344   :  { %v3428_v40 = vadd.f32 %v3427_v46, %v3136_v63  ;;  %v3767_v52 = vpop.f32.mrf.mxu0  ;;  %v11543_v34 = vadd.f32 %v7780_v41, %v3435_v29 }
 0x345   :  { %v7703_v31 = vpop.f32.mrf.mxu1 }
 0x346   :  { %v3449_v2 = vadd.f32 %v7703_v31, %v11439_v0  ;;  %v7789_v9 = vpop.f32.mrf.mxu0  ;;  %v11548_v51 = vadd.f32 %v3735_v58, %v3428_v40 }
 0x347   :  { %v3441_v44 = vpop.f32.mrf.mxu1 }
 0x348   :  { %v3442_v54 = vadd.f32 %v3441_v44, %v3148_v36  ;;  %v3783_v61 = vpop.f32.mrf.mxu0  ;;  %v11550_v12 = vadd.f32 %v7783_v43, %v3449_v2 }
 0x349   :  { %v11552_v60 = vpop.f32.mrf.mxu1 }
 0x34a   :  { %v7792_v14 = vpop.f32.mrf.mxu0  ;;  %v11556_v26 = vadd.f32 %v3751_v59, %v3442_v54 }
 0x34b   :  { %v3455_v41 = vpop.f32.mrf.mxu1 }
 0x34c   :  { %v3456_v24 = vadd.f32 %v3455_v41, %v3160_v16  ;;  %v3799_v22 = vpop.f32.mrf.mxu0 }
 0x34d   :  { %v7709_v0 = vpop.f32.mrf.mxu1 }
 0x34e   :  { %v3477_v58 = vadd.f32 %v7709_v0, %v11448_v4  ;;  %v7795_v8 = vpop.f32.mrf.mxu0  ;;  %v11561_v43 = vadd.f32 %v3767_v52, %v3456_v24 }
 0x34f   :  { %v3469_v18 = vpop.f32.mrf.mxu1 }
 0x350   :  { %v3470_v37 = vadd.f32 %v3469_v18, %v3172_v30  ;;  %v3815_v11 = vpop.f32.mrf.mxu0  ;;  %v11563_v63 = vadd.f32 %v7789_v9, %v3477_v58 }
 0x351   :  { %v7712_v10 = vpop.f32.mrf.mxu1 }
 0x352   :  { %v3491_v27 = vadd.f32 %v7712_v10, %v11454_v45  ;;  %v7798_v59 = vpop.f32.mrf.mxu0  ;;  %v11566_v29 = vadd.f32 %v3783_v61, %v3470_v37 }
 0x353   :  { %v3483_v46 = vpop.f32.mrf.mxu1 }
 0x354   :  { %v3484_v40 = vadd.f32 %v3483_v46, %v11457_v53  ;;  %v3831_v21 = vpop.f32.mrf.mxu0  ;;  %v11569_v50 = vadd.f32 %v7792_v14, %v3491_v27 }
 0x355   :  { %v7715_v4 = vpop.f32.mrf.mxu1 }
 0x356   :  { %v3505_v52 = vadd.f32 %v7715_v4, %v11467_v20  ;;  %v7801_v31 = vpop.f32.mrf.mxu0  ;;  %v11572_v36 = vadd.f32 %v3799_v22, %v3484_v40 }
 0x357   :  { %v3497_v2 = vpop.f32.mrf.mxu1 }
 0x358   :  { %v3498_v9 = vadd.f32 %v3497_v2, %v11470_v17  ;;  %v3847_v44 = vpop.f32.mrf.mxu0  ;;  %v11575_v45 = vadd.f32 %v7795_v8, %v3505_v52 }
 0x359   :  { %v7718_v54 = vpop.f32.mrf.mxu1 }
 0x35a   :  { %v3519_v61 = vadd.f32 %v7718_v54, %v11474_v7  ;;  %v7804_v16 = vpop.f32.mrf.mxu0  ;;  %v11578_v53 = vadd.f32 %v3815_v11, %v3498_v9  ;;  %v8483_v9 = vld [vmem:[%s13360_s0] sm:$0xff] }
 0x35b   :  { %v3511_v14 = vpop.f32.mrf.mxu1 }
 0x35c   :  { %v3512_v41 = vadd.f32 %v3511_v14, %v11477_v57  ;;  %v3863_v24 = vpop.f32.mrf.mxu0  ;;  %v11581_v20 = vadd.f32 %v7798_v59, %v3519_v61 }
 0x35d   :  { %v7721_v22 = vpop.f32.mrf.mxu1 }
 0x35e   :  { %v3533_v0 = vadd.f32 %v7721_v22, %v11479_v47  ;;  %v7807_v30 = vpop.f32.mrf.mxu0  ;;  %v11584_v17 = vadd.f32 %v3831_v21, %v3512_v41  ;;  %v8484_v22 = vld [vmem:[%s13360_s0 + $0x8] sm:$0xff] }
 0x35f   :  { %v3525_v58 = vpop.f32.mrf.mxu1 }
 0x360   :  { %v3526_v8 = vadd.f32 %v3525_v58, %v11482_v23  ;;  %v3879_v18 = vpop.f32.mrf.mxu0  ;;  %v11587_v7 = vadd.f32 %v7801_v31, %v3533_v0  ;;  %v5374_v0 = vmul.f32 %v8484_v22, %v8484_v22 }
 0x361   :  { %v7724_v37 = vpop.f32.mrf.mxu1 }
 0x362   :  { %v3547_v11 = vadd.f32 %v7724_v37, %v11484_v48  ;;  %v7810_v10 = vpop.f32.mrf.mxu0  ;;  %v11590_v57 = vadd.f32 %v3847_v44, %v3526_v8 }
 0x363   :  { %v3539_v27 = vpop.f32.mrf.mxu1 }
 0x364   :  { %v3540_v59 = vadd.f32 %v3539_v27, %v11489_v15  ;;  %v3895_v46 = vpop.f32.mrf.mxu0  ;;  %v11593_v47 = vadd.f32 %v7804_v16, %v3547_v11  ;;  %v5373_v15 = vmul.f32 %v8483_v9, %v8483_v9  ;;  %v5408_v27 = vsel %vm13779_vm0, %v5374_v0, 0.0 }
 0x365   :  { %v7727_v40 = vpop.f32.mrf.mxu1  ;;  %5409 = vadd.xlane.f32.xlu1 %v5408_v27 }
 0x366   :  { %v3561_v21 = vadd.f32 %v7727_v40, %v11491_v28  ;;  %v7813_v4 = vpop.f32.mrf.mxu0  ;;  %v11596_v23 = vadd.f32 %v3863_v24, %v3540_v59  ;;  %v8487_v40 = vld [vmem:[%s13360_s0 + $0x20] sm:$0xff] }
 0x367   :  { %v3553_v52 = vpop.f32.mrf.mxu1 }
 0x368   :  { %v3554_v31 = vadd.f32 %v3553_v52, %v11493_v5  ;;  %v3911_v2 = vpop.f32.mrf.mxu0  ;;  %v11599_v48 = vadd.f32 %v7807_v30, %v3561_v21  ;;  %v5405_v30 = vsel %vm13779_vm0, %v5373_v15, 0.0  ;;  %v5377_v21 = vmul.f32 %v8487_v40, %v8487_v40  ;;  %v8488_v15 = vld [vmem:[%s13360_s0 + $0x28] sm:$0xff] }
 0x369   :  { %v7730_v44 = vpop.f32.mrf.mxu1  ;;  %5406 = vadd.xlane.f32.xlu0 %v5405_v30  ;;  %v3421_v40 = vadd.f32 %v11532_v1, %v11344_v56  ;;  %v8493_v1 = vld [vmem:[%s13360_s0 + $0x50] sm:$0xff] }
 0x36a   :  { %v3575_v54 = vadd.f32 %v7730_v44, %v11495_v3  ;;  %v7816_v61 = vpop.f32.mrf.mxu0  ;;  %v11605_v16 = vadd.f32 %v3879_v18, %v3554_v31  ;;  %v8485_v3 = vld [vmem:[%s13360_s0 + $0x18] sm:$0xff]  ;;  %v5378_v44 = vmul.f32 %v8488_v15, %v8488_v15 }
 0x36b   :  { %v3567_v28 = vpop.f32.mrf.mxu1  ;;  %v5376_v58 = vmul.f32 %v8485_v3, %v8485_v3 }
 0x36c   :  { %v3568_v14 = vadd.f32 %v3567_v28, %v11503_v42  ;;  %v3927_v41 = vpop.f32.mrf.mxu0  ;;  %v11608_v24 = vadd.f32 %v7810_v10, %v3575_v54  ;;  %v8486_v42 = vld [vmem:[%s13360_s0 + $0x10] sm:$0xff] }
 0x36d   :  { %v7733_v5 = vpop.f32.mrf.mxu1  ;;  %v5375_v8 = vmul.f32 %v8486_v42, %v8486_v42 }
 0x36e   :  { %v3589_v18 = vadd.f32 %v7733_v5, %v11505_v49  ;;  %v7819_v37 = vpop.f32.mrf.mxu0  ;;  %v11621_v11 = vadd.f32 %v3895_v46, %v3568_v14  ;;  %v5414_v46 = vsel %vm13779_vm0, %v5376_v58, 0.0 }
 0x36f   :  { %v3581_v10 = vpop.f32.mrf.mxu1  ;;  %v5411_v59 = vsel %vm13779_vm0, %v5375_v8, 0.0  ;;  %5415 = vadd.xlane.f32.xlu1 %v5414_v46  ;;  %v8492_v46 = vld [vmem:[%s13360_s0 + $0x48] sm:$0xff] }
 0x370   :  { %v3582_v52 = vadd.f32 %v3581_v10, %v11510_v6  ;;  %v3943_v31 = vpop.f32.mrf.mxu0  ;;  %v11629_v9 = vadd.f32 %v7813_v4, %v3589_v18  ;;  %5412 = vadd.xlane.f32.xlu0 %v5411_v59  ;;  %v5417_v6 = vsel %vm13779_vm0, %v5377_v21, 0.0  ;;  %v8489_v4 = vld [vmem:[%s13360_s0 + $0x30] sm:$0xff]  ;;  %v5382_v15 = vmul.f32 %v8492_v46, %v8492_v46 }
 0x371   :  { %v7736_v49 = vpop.f32.mrf.mxu1  ;;  %v5379_v22 = vmul.f32 %v8489_v4, %v8489_v4 }
 0x372   :  { %v3603_v54 = vadd.f32 %v7736_v49, %v11512_v25  ;;  %v7822_v28 = vpop.f32.mrf.mxu0  ;;  %v11636_v14 = vadd.f32 %v3911_v2, %v3582_v52  ;;  %v5420_v25 = vsel %vm13779_vm0, %v5378_v44, 0.0  ;;  %v8490_v2 = vld [vmem:[%s13360_s0 + $0x38] sm:$0xff] }
 0x373   :  { %v3595_v5 = vpop.f32.mrf.mxu1  ;;  %v5380_v42 = vmul.f32 %v8490_v2, %v8490_v2  ;;  %5421 = vadd.xlane.f32.xlu1 %v5420_v25 }
 0x374   :  { %v3596_v0 = vadd.f32 %v3595_v5, %v11517_v39  ;;  %v3959_v30 = vpop.f32.mrf.mxu0  ;;  %v11643_v3 = vadd.f32 %v7816_v61, %v3603_v54  ;;  %5418 = vadd.xlane.f32.xlu0 %v5417_v6  ;;  %v5423_v39 = vsel %vm13779_vm0, %v5379_v22, 0.0  ;;  %v8491_v61 = vld [vmem:[%s13360_s0 + $0x40] sm:$0xff]  ;;  %v3728_v22 = vadd.f32 %v11521_v55, %v3421_v40 }
 0x375   :  { %v7739_v58 = vpop.f32.mrf.mxu1  ;;  %v5381_v59 = vmul.f32 %v8491_v61, %v8491_v61  ;;  %v8495_v55 = vld [vmem:[%s13360_s0 + $0x60] sm:$0xff] }
 0x376   :  { %v3617_v8 = vadd.f32 %v7739_v58, %v11519_v33  ;;  %v7937_v18 = vpop.f32.mrf.mxu0  ;;  %v11650_v10 = vadd.f32 %v3927_v41, %v3596_v0  ;;  %v5426_v41 = vsel %vm13779_vm0, %v5380_v42, 0.0  ;;  %v8494_v58 = vld [vmem:[%s13360_s0 + $0x58] sm:$0xff] }
 0x377   :  { %v3609_v27 = vpop.f32.mrf.mxu1  ;;  %5427 = vadd.xlane.f32.xlu1 %v5426_v41  ;;  %v5384_v25 = vmul.f32 %v8494_v58, %v8494_v58  ;;  %v8499_v58 = vld [vmem:[%s13360_s0 + $0x80] sm:$0xff] }
 0x378   :  { %v3610_v21 = vadd.f32 %v3609_v27, %v11523_v38  ;;  %v4359_v52 = vpop.f32.mrf.mxu0  ;;  %v11659_v49 = vadd.f32 %v7819_v37, %v3617_v8  ;;  %5424 = vadd.xlane.f32.xlu0 %v5423_v39  ;;  %v5429_v38 = vsel %vm13779_vm0, %v5381_v59, 0.0  ;;  %v5383_v37 = vmul.f32 %v8493_v1, %v8493_v1 }
 0x379   :  { %v7742_v33 = vpop.f32.mrf.mxu1 }
 0x37a   :  { %v3631_v44 = vadd.f32 %v7742_v33, %v11528_v19  ;;  %v7940_v54 = vpop.f32.mrf.mxu0  ;;  %v11666_v5 = vadd.f32 %v3943_v31, %v3610_v21  ;;  %v5432_v31 = vsel %vm13779_vm0, %v5382_v15, 0.0  ;;  %v5435_v27 = vsel %vm13779_vm0, %v5383_v37, 0.0 }
 0x37b   :  { %v3623_v56 = vpop.f32.mrf.mxu1  ;;  %5433 = vadd.xlane.f32.xlu1 %v5432_v31  ;;  %v5438_v21 = vsel %vm13779_vm0, %v5384_v25, 0.0  ;;  %v5389_v25 = vmul.f32 %v8499_v58, %v8499_v58 }
 0x37c   :  { %v3624_v6 = vadd.f32 %v3623_v56, %v11530_v62  ;;  %v4371_v4 = vpop.f32.mrf.mxu0  ;;  %v11674_v0 = vadd.f32 %v7822_v28, %v3631_v44  ;;  %5430 = vadd.xlane.f32.xlu0 %v5429_v38  ;;  %v5385_v28 = vmul.f32 %v8495_v55, %v8495_v55  ;;  %v8497_v44 = vld [vmem:[%s13360_s0 + $0x70] sm:$0xff]  ;;  %v3463_v38 = vadd.f32 %v11552_v60, %v11444_v35 }
 0x37d   :  { %v7857_v19 = vpop.f32.mrf.mxu1  ;;  %v5387_v56 = vmul.f32 %v8497_v44, %v8497_v44 }
 0x37e   :  { %v4093_v2 = vadd.f32 %v7857_v19, %v3728_v22  ;;  %v7943_v42 = vpop.f32.mrf.mxu0  ;;  %v11680_v8 = vadd.f32 %v3959_v30, %v3624_v6  ;;  %v8496_v30 = vld [vmem:[%s13360_s0 + $0x68] sm:$0xff]  ;;  %v8498_v22 = vld [vmem:[%s13360_s0 + $0x78] sm:$0xff] }
 0x37f   :  { %v4086_v62 = vpop.f32.mrf.mxu1  ;;  %v5386_v33 = vmul.f32 %v8496_v30, %v8496_v30  ;;  %5439 = vadd.xlane.f32.xlu1 %v5438_v21  ;;  %v5388_v19 = vmul.f32 %v8498_v22, %v8498_v22  ;;  %v5453_v30 = vsel %vm13779_vm0, %v5389_v25, 0.0 }
 0x380   :  { %v11686_v39 = vadd.f32 %v7937_v18, %v4093_v2  ;;  %v4087_v61 = vadd.f32 %v4086_v62, %v11541_v13  ;;  %v4383_v59 = vpop.f32.mrf.mxu0  ;;  %5436 = vadd.xlane.f32.xlu0 %v5435_v27  ;;  %v5441_v13 = vsel %vm13779_vm0, %v5385_v28, 0.0  ;;  %v3776_v27 = vadd.f32 %v11539_v32, %v3463_v38  ;;  %v8500_v28 = vld [vmem:[%s13360_s0 + $0x88] sm:$0xff]  ;;  %v8501_v32 = vld [vmem:[%s13360_s0 + $0x90] sm:$0xff] }
 0x381   :  { %v7860_v40 = vpop.f32.mrf.mxu1  ;;  %v5444_v6 = vsel %vm13779_vm0, %v5386_v33, 0.0  ;;  %v5450_v55 = vsel %vm13779_vm0, %v5388_v19, 0.0  ;;  %v5391_v33 = vmul.f32 %v8501_v32, %v8501_v32  ;;  %v8503_v19 = vld [vmem:[%s13360_s0 + $0xa0] sm:$0xff] }
 0x382   :  { %8227 = vrcp.f32 %v11686_v39  ;;  %v11694_v41 = vadd.f32 %v4359_v52, %v4087_v61  ;;  %v4105_v46 = vadd.f32 %v7860_v40, %v11543_v34  ;;  %v7946_v18 = vpop.f32.mrf.mxu0  ;;  %v5390_v61 = vmul.f32 %v8500_v28, %v8500_v28 }
 0x383   :  { %v4098_v15 = vpop.f32.mrf.mxu1  ;;  %5445 = vadd.xlane.f32.xlu1 %v5444_v6  ;;  %v5459_v22 = vsel %vm13779_vm0, %v5391_v33, 0.0 }
 0x384   :  { %8229 = vrcp.f32 %v11694_v41  ;;  %v11704_v1 = vadd.f32 %v7940_v54, %v4105_v46  ;;  %v4099_v52 = vadd.f32 %v4098_v15, %v11548_v51  ;;  %v4395_v34 = vpop.f32.mrf.mxu0  ;;  %5442 = vadd.xlane.f32.xlu0 %v5441_v13  ;;  %v5447_v51 = vsel %vm13779_vm0, %v5387_v56, 0.0  ;;  %v8502_v56 = vld [vmem:[%s13360_s0 + $0x98] sm:$0xff] }
 0x385   :  { %v7863_v37 = vpop.f32.mrf.mxu1  ;;  %v5456_v44 = vsel %vm13779_vm0, %v5390_v61, 0.0  ;;  %v5392_v38 = vmul.f32 %v8502_v56, %v8502_v56 }
 0x386   :  { %8231 = vrcp.f32 %v11704_v1  ;;  %v11712_v31 = vadd.f32 %v4371_v4, %v4099_v52  ;;  %v4117_v35 = vadd.f32 %v7863_v37, %v11550_v12  ;;  %v7949_v60 = vpop.f32.mrf.mxu0 }
 0x387   :  { %v4110_v54 = vpop.f32.mrf.mxu1  ;;  %5451 = vadd.xlane.f32.xlu1 %v5450_v55  ;;  %v8505_v55 = vld [vmem:[%s13360_s0 + $0xb8] sm:$0xff] }
 0x388   :  { %8233 = vrcp.f32 %v11712_v31  ;;  %v11720_v2 = vadd.f32 %v7943_v42, %v4117_v35  ;;  %v4111_v62 = vadd.f32 %v4110_v54, %v11556_v26  ;;  %v4407_v4 = vpop.f32.mrf.mxu0  ;;  %5448 = vadd.xlane.f32.xlu0 %v5447_v51  ;;  %v5393_v35 = vmul.f32 %v8503_v19, %v8503_v19 }
 0x389   :  { %v7866_v12 = vpop.f32.mrf.mxu1 }
 0x38a   :  { %8235 = vrcp.f32 %v11720_v2  ;;  %v11729_v40 = vadd.f32 %v4383_v59, %v4111_v62  ;;  %v4129_v42 = vadd.f32 %v7866_v12, %v3776_v27  ;;  %v7952_v21 = vpop.f32.mrf.mxu0  ;;  %v5462_v62 = vsel %vm13779_vm0, %v5392_v38, 0.0  ;;  %v8504_v27 = vld [vmem:[%s13360_s0 + $0xa8] sm:$0xff] }
 0x38b   :  { %v4122_v26 = vpop.f32.mrf.mxu1  ;;  %5457 = vadd.xlane.f32.xlu1 %v5456_v44  ;;  %v5394_v12 = vmul.f32 %v8504_v27, %v8504_v27  ;;  %v5465_v33 = vsel %vm13779_vm0, %v5393_v35, 0.0 }
 0x38c   :  { %8237 = vrcp.f32 %v11729_v40  ;;  %v11736_v46 = vadd.f32 %v7946_v18, %v4129_v42  ;;  %v4123_v15 = vadd.f32 %v4122_v26, %v11561_v43  ;;  %v4419_v13 = vpop.f32.mrf.mxu0  ;;  %5454 = vadd.xlane.f32.xlu0 %v5453_v30 }
 0x38d   :  { %v7869_v59 = vpop.f32.mrf.mxu1  ;;  %v5468_v19 = vsel %vm13779_vm0, %v5394_v12, 0.0 }
 0x38e   :  { %8239 = vrcp.f32 %v11736_v46  ;;  %v11744_v52 = vadd.f32 %v4395_v34, %v4123_v15  ;;  %v4141_v37 = vadd.f32 %v7869_v59, %v11563_v63  ;;  %v11747_v18 = vpop.f32.mrf.mxu0  ;;  %v8506_v15 = vld [vmem:[%s13360_s0 + $0xb0] sm:$0xff] }
 0x38f   :  { %v8228_v43 = vpop.eup %8227  ;;  %v4134_v6 = vpop.f32.mrf.mxu1  ;;  %v5395_v59 = vmul.f32 %v8506_v15, %v8506_v15  ;;  %5463 = vadd.xlane.f32.xlu1 %v5462_v62 }
 0x390   :  { %v4838_v54 = vmul.f32 %v8228_v43, %v11686_v39  ;;  %8241 = vrcp.f32 %v11744_v52  ;;  %v11755_v34 = vadd.f32 %v7949_v60, %v4141_v37  ;;  %v4135_v63 = vadd.f32 %v4134_v6, %v11566_v29  ;;  %v11758_v51 = vpop.f32.mrf.mxu0  ;;  %5460 = vadd.xlane.f32.xlu0 %v5459_v22 }
 0x391   :  { %v8230_v58 = vpop.eup %8229  ;;  %v7872_v25 = vpop.f32.mrf.mxu1  ;;  %v5396_v60 = vmul.f32 %v8505_v55, %v8505_v55  ;;  %v5471_v55 = vsel %vm13779_vm0, %v5395_v59, 0.0 }
 0x392   :  { %v4870_v28 = vsub.f32 2.0, %v4838_v54  ;;  %v4837_v29 = vmul.f32 %v8230_v58, %v11694_v41  ;;  %8243 = vrcp.f32 %v11755_v34  ;;  %v11769_v61 = vadd.f32 %v4407_v4, %v4135_v63  ;;  %v11771_v42 = vpop.f32.mrf.mxu0 }
 0x393   :  { %v8232_v26 = vpop.eup %8231  ;;  %v4153_v30 = vadd.f32 %v7872_v25, %v11569_v50  ;;  %v4146_v32 = vpop.f32.mrf.mxu1  ;;  %v5474_v35 = vsel %vm13779_vm0, %v5396_v60, 0.0  ;;  %5469 = vadd.xlane.f32.xlu1 %v5468_v19 }
 0x394   :  { %v4902_v44 = vmul.f32 %v8228_v43, %v4870_v28  ;;  %v4869_v56 = vsub.f32 2.0, %v4837_v29  ;;  %v4840_v38 = vmul.f32 %v8232_v26, %v11704_v1  ;;  %8245 = vrcp.f32 %v11769_v61  ;;  %v11780_v4 = vpop.f32.mrf.mxu0  ;;  %5466 = vadd.xlane.f32.xlu0 %v5465_v33 }
 0x395   :  { %v8234_v37 = vpop.eup %8233  ;;  %v11782_v6 = vadd.f32 %v7952_v21, %v4153_v30  ;;  %v4147_v50 = vadd.f32 %v4146_v32, %v11572_v36  ;;  %v7875_v22 = vpop.f32.mrf.mxu1 }
 0x396   :  { %v4934_v43 = vmul.f32 %v4902_v44, %v11686_v39  ;;  %v11788_v54 = vmul.f32 %v8230_v58, %v4869_v56  ;;  %v4872_v63 = vsub.f32 2.0, %v4840_v38  ;;  %v4839_v25 = vmul.f32 %v8234_v37, %v11712_v31  ;;  %v11791_v27 = vpop.f32.mrf.mxu0 }
 0x397   :  { %v8236_v62 = vpop.eup %8235  ;;  %8247 = vrcp.f32 %v11782_v6  ;;  %v11794_v21 = vadd.f32 %v4419_v13, %v4147_v50  ;;  %v4165_v36 = vadd.f32 %v7875_v22, %v11575_v45  ;;  %v4158_v12 = vpop.f32.mrf.mxu1  ;;  %v14362_v22 = vld [vmem:[#allocation57_spill] sm:$0xff]  ;;  %5475 = vadd.xlane.f32.xlu1 %v5474_v35 }
 0x398   :  { %v4966_v60 = vsub.f32 2.0, %v4934_v43  ;;  %v11800_v39 = vmul.f32 %v11788_v54, %v11694_v41  ;;  %v11802_v58 = vmul.f32 %v8232_v26, %v4872_v63  ;;  %v4871_v28 = vsub.f32 2.0, %v4839_v25  ;;  %v11804_v29 = vpop.f32.mrf.mxu0  ;;  %5472 = vadd.xlane.f32.xlu0 %v5471_v55 }
 0x399   :  { %v8238_v30 = vpop.eup %8237  ;;  %v4842_v13 = vmul.f32 %v8236_v62, %v11720_v2  ;;  %8249 = vrcp.f32 %v11794_v21  ;;  %v11809_v45 = vadd.f32 %v11747_v18, %v4165_v36  ;;  %v4159_v32 = vadd.f32 %v4158_v12, %v11578_v53  ;;  %v7878_v33 = vpop.f32.mrf.mxu1 }
 0x39a   :  { %v4998_v15 = vmul.f32 %v4966_v60, %v4902_v44  ;;  %v4965_v41 = vsub.f32 2.0, %v11800_v39  ;;  %v11815_v26 = vmul.f32 %v11802_v58, %v11704_v1  ;;  %v11817_v59 = vmul.f32 %v8234_v37, %v4871_v28  ;;  %v11819_v56 = vpop.f32.mrf.mxu0 }
 0x39b   :  { %v8240_v38 = vpop.eup %8239  ;;  %v4874_v50 = vsub.f32 2.0, %v4842_v13  ;;  %v4841_v18 = vmul.f32 %v8238_v30, %v11729_v40  ;;  %8251 = vrcp.f32 %v11809_v45  ;;  %v11824_v53 = vadd.f32 %v11758_v51, %v4159_v32  ;;  %v4170_v44 = vpop.f32.mrf.mxu1 }
 0x39c   :  { %v11827_v19 = vmul.f32 %v4998_v15, %v14362_v22  ;;  %v11832_v37 = vmul.f32 %v11817_v59, %v11712_v31  ;;  %v4844_v43 = vmul.f32 %v8240_v38, %v11736_v46  ;;  %v11835_v63 = vpop.f32.mrf.mxu0  ;;  %v4177_v12 = vadd.f32 %v7878_v33, %v11581_v20 }
 0x39d   :  { %v8242_v25 = vpop.eup %8241  ;;  %v11837_v36 = vmul.f32 %v8236_v62, %v4874_v50  ;;  %v4873_v51 = vsub.f32 2.0, %v4841_v18  ;;  %8253 = vrcp.f32 %v11824_v53  ;;  %v7881_v55 = vpop.f32.mrf.mxu1  ;;  %v4171_v28 = vadd.f32 %v4170_v44, %v11584_v17 }
 0x39e   :  { %5094 = vst [vmem:[#allocation2 + $0x8] sm:$0xff] %v11827_v19  ;;  %v4967_v60 = vsub.f32 2.0, %v11832_v37  ;;  %v4876_v31 = vsub.f32 2.0, %v4844_v43  ;;  %v4843_v39 = vmul.f32 %v8242_v25, %v11744_v52  ;;  %v11845_v13 = vpop.f32.mrf.mxu0  ;;  %v11854_v20 = vadd.f32 %v11771_v42, %v4177_v12 }
 0x39f   :  { %v8244_v35 = vpop.eup %8243  ;;  %v11849_v62 = vmul.f32 %v11837_v36, %v11720_v2  ;;  %v11851_v32 = vmul.f32 %v8238_v30, %v4873_v51  ;;  %v4189_v33 = vadd.f32 %v7881_v55, %v11587_v7  ;;  %v4182_v15 = vpop.f32.mrf.mxu1  ;;  %v11859_v17 = vadd.f32 %v11780_v4, %v4171_v28 }
 0x3a0   :  { %v4908_v50 = vmul.f32 %v8240_v38, %v4876_v31  ;;  %v4875_v18 = vsub.f32 2.0, %v4843_v39  ;;  %v4846_v22 = vmul.f32 %v8244_v35, %v11755_v34  ;;  %v11861_v44 = vpop.f32.mrf.mxu0  ;;  %8255 = vrcp.f32 %v11854_v20 }
 0x3a1   :  { %v8246_v43 = vpop.eup %8245  ;;  %v11866_v30 = vmul.f32 %v11851_v32, %v11729_v40  ;;  %v11870_v7 = vadd.f32 %v11791_v27, %v4189_v33  ;;  %v7884_v42 = vpop.f32.mrf.mxu1  ;;  %8257 = vrcp.f32 %v11859_v17  ;;  %v4183_v40 = vadd.f32 %v4182_v15, %v11590_v57  ;;  %v14363_v57 = vld [vmem:[#allocation52_spill] sm:$0xff] }
 0x3a2   :  { %v4940_v38 = vmul.f32 %v4908_v50, %v11736_v46  ;;  %v11873_v51 = vmul.f32 %v8242_v25, %v4875_v18  ;;  %v4878_v4 = vsub.f32 2.0, %v4846_v22  ;;  %v4845_v12 = vmul.f32 %v8246_v43, %v11769_v61  ;;  %v11876_v55 = vpop.f32.mrf.mxu0 }
 0x3a3   :  { %v4997_v39 = vmul.f32 %v4965_v41, %v11788_v54  ;;  %v4194_v27 = vpop.f32.mrf.mxu1  ;;  %8259 = vrcp.f32 %v11870_v7  ;;  %v11891_v2 = vadd.f32 %v11804_v29, %v4183_v40  ;;  %v4201_v29 = vadd.f32 %v7884_v42, %v11593_v47 }
 0x3a4   :  { %v8248_v28 = vpop.eup %8247  ;;  %v4972_v33 = vsub.f32 2.0, %v4940_v38  ;;  %v11884_v46 = vmul.f32 %v11873_v51, %v11744_v52  ;;  %v11886_v25 = vmul.f32 %v8244_v35, %v4878_v4  ;;  %v4877_v18 = vsub.f32 2.0, %v4845_v12  ;;  %v11901_v4 = vpop.f32.mrf.mxu0 }
 0x3a5   :  { %v4848_v22 = vmul.f32 %v8248_v28, %v11782_v6  ;;  %v5029_v15 = vmul.f32 %v4997_v39, %v14363_v57  ;;  %v7887_v54 = vpop.f32.mrf.mxu1  ;;  %8261 = vrcp.f32 %v11891_v2  ;;  %v14364_v39 = vld [vmem:[#allocation78_spill] sm:$0xff]  ;;  %v11920_v42 = vadd.f32 %v11819_v56, %v4201_v29 }
 0x3a6   :  { %v8250_v41 = vpop.eup %8249  ;;  %v5004_v31 = vmul.f32 %v4972_v33, %v4908_v50  ;;  %v4971_v38 = vsub.f32 2.0, %v11884_v46  ;;  %v11897_v52 = vmul.f32 %v11886_v25, %v11755_v34  ;;  %v11899_v35 = vmul.f32 %v8246_v43, %v4877_v18 }
 0x3a7   :  { %v4880_v12 = vsub.f32 2.0, %v4848_v22  ;;  %v4847_v1 = vmul.f32 %v8250_v41, %v11794_v21  ;;  %5093 = vst [vmem:[#allocation2] sm:$0xff] %v5029_v15  ;;  %8015 = vmatprep.mubr.f32.mxu0 %v5029_v15  ;;  %v4206_v50 = vpop.f32.mrf.mxu1  ;;  %v4195_v18 = vadd.f32 %v4194_v27, %v11596_v23  ;;  %v4999_v23 = vmul.f32 %v4967_v60, %v11817_v59 }
 0x3a8   :  { %v8252_v40 = vpop.eup %8251  ;;  %v11907_v33 = vmul.f32 %v5004_v31, %v14364_v39  ;;  %v4974_v34 = vsub.f32 2.0, %v11897_v52  ;;  %v11912_v43 = vmul.f32 %v11899_v35, %v11769_v61  ;;  %8016 = vmatmul.mubr.f32.vlgmr.msra.gmra.mxu0 %v11827_v19  ;;  %v4213_v19 = vadd.f32 %v7887_v54, %v11599_v48 }
 0x3a9   :  { %v11916_v22 = vmul.f32 %v8248_v28, %v4880_v12  ;;  %v4879_v57 = vsub.f32 2.0, %v4847_v1  ;;  %v4850_v47 = vmul.f32 %v8252_v40, %v11809_v45  ;;  %v7890_v31 = vpop.f32.mrf.mxu1  ;;  %v11925_v61 = vadd.f32 %v11835_v63, %v4195_v18  ;;  %v11931_v1 = vpop.f32.mrf.mxu0  ;;  %v14365_v63 = vld [vmem:[#allocation15_spill] sm:$0xff] }
 0x3aa   :  { %v8254_v15 = vpop.eup %8253  ;;  %5100 = vst [vmem:[#allocation2 + $0x38] sm:$0xff] %v11907_v33  ;;  %v4973_v39 = vsub.f32 2.0, %v11912_v43  ;;  %8263 = vrcp.f32 %v11920_v42  ;;  %v5031_v18 = vmul.f32 %v4999_v23, %v14365_v63  ;;  %v11943_v59 = vadd.f32 %v11845_v13, %v4213_v19  ;;  %v14367_v13 = vld [vmem:[#allocation21_spill] sm:$0xff] }
 0x3ab   :  { %v11935_v56 = vmul.f32 %v11916_v22, %v11782_v6  ;;  %v11937_v27 = vmul.f32 %v8250_v41, %v4879_v57  ;;  %v4882_v28 = vsub.f32 2.0, %v4850_v47  ;;  %v4849_v12 = vmul.f32 %v8254_v15, %v11824_v53  ;;  %v4218_v29 = vpop.f32.mrf.mxu1 }
 0x3ac   :  { %v14366_v48 = vsub.f32 2.0, %v11815_v26  ;;  %8265 = vrcp.f32 %v11925_v61  ;;  %5095 = vst [vmem:[#allocation2 + $0x10] sm:$0xff] %v5031_v18  ;;  %8018 = vmatprep.mubr.f32.mxu0 %v5031_v18  ;;  %v4207_v26 = vadd.f32 %v4206_v50, %v11605_v16  ;;  %v14368_v19 = vsub.f32 2.0, %v11866_v30 }
 0x3ad   :  { %v11951_v60 = vmul.f32 %v11937_v27, %v11794_v21  ;;  %v11953_v54 = vmul.f32 %v8252_v40, %v4882_v28  ;;  %v4881_v41 = vsub.f32 2.0, %v4849_v12  ;;  %v7893_v57 = vpop.f32.mrf.mxu1  ;;  %v8256_v47 = vpop.eup %8255  ;;  %8267 = vrcp.f32 %v11943_v59 }
 0x3ae   :  { %v5000_v37 = vmul.f32 %v14366_v48, %v11802_v58  ;;  %v4503_v58 = vpop.f32.mrf.mxu0  ;;  %v5001_v63 = vmul.f32 %v14368_v19, %v11851_v32  ;;  %v4852_v12 = vmul.f32 %v8256_v47, %v11854_v20  ;;  %v8258_v48 = vpop.eup %8257  ;;  %v11971_v16 = vadd.f32 %v11861_v44, %v4207_v26  ;;  %v14369_v32 = vld [vmem:[#allocation70_spill] sm:$0xff] }
 0x3af   :  { %v4975_v21 = vsub.f32 2.0, %v11951_v60  ;;  %v11964_v40 = vmul.f32 %v11953_v54, %v11809_v45  ;;  %v11966_v28 = vmul.f32 %v8254_v15, %v4881_v41  ;;  %v4230_v18 = vpop.f32.mrf.mxu1  ;;  %v4225_v50 = vadd.f32 %v7890_v31, %v11608_v24 }
 0x3b0   :  { %v5032_v23 = vmul.f32 %v5000_v37, %v14367_v13  ;;  %v5033_v30 = vmul.f32 %v5001_v63, %v14369_v32  ;;  %v4884_v37 = vsub.f32 2.0, %v4852_v12  ;;  %v4851_v41 = vmul.f32 %v8258_v48, %v11859_v17  ;;  %v8260_v19 = vpop.eup %8259 }
 0x3b1   :  { %v11978_v15 = vmul.f32 %v11966_v28, %v11824_v53  ;;  %v7896_v13 = vpop.f32.mrf.mxu1  ;;  %8269 = vrcp.f32 %v11971_v16  ;;  %v11983_v44 = vadd.f32 %v11876_v55, %v4225_v50  ;;  %v14370_v24 = vsub.f32 2.0, %v11849_v62  ;;  %v14371_v55 = vld [vmem:[#allocation71_spill] sm:$0xff] }
 0x3b2   :  { %5096 = vst [vmem:[#allocation2 + $0x18] sm:$0xff] %v5032_v23  ;;  %8019 = vmatmul.mubr.f32.gmra.mxu0 %v5032_v23  ;;  %5097 = vst [vmem:[#allocation2 + $0x20] sm:$0xff] %v5033_v30  ;;  %v7976_v23 = vpop.f32.mrf.mxu0  ;;  %v4219_v53 = vadd.f32 %v4218_v29, %v11621_v11  ;;  %v11990_v63 = vmul.f32 %v8256_v47, %v4884_v37  ;;  %v4883_v12 = vsub.f32 2.0, %v4851_v41  ;;  %v8262_v6 = vpop.eup %8261 }
 0x3b3   :  { %8021 = vmatprep.mubr.f32.mxu0 %v5033_v30  ;;  %v5002_v31 = vmul.f32 %v14370_v24, %v11837_v36  ;;  %v4977_v26 = vsub.f32 2.0, %v11978_v15  ;;  %v4854_v32 = vmul.f32 %v8260_v19, %v11870_v7  ;;  %v4242_v45 = vpop.f32.mrf.mxu1  ;;  %8271 = vrcp.f32 %v11983_v44  ;;  %v14378_v15 = vld [vmem:[#allocation91_spill] sm:$0xff] }
 0x3b4   :  { %v11996_v50 = vadd.f32 %v11901_v4, %v4219_v53  ;;  %v5003_v11 = vmul.f32 %v4971_v38, %v11873_v51  ;;  %v12003_v36 = vmul.f32 %v11990_v63, %v11854_v20  ;;  %v12005_v62 = vmul.f32 %v8258_v48, %v4883_v12  ;;  %v4515_v37 = vpop.f32.mrf.mxu0  ;;  %v14372_v4 = vld [vmem:[#allocation74_spill] sm:$0xff] }
 0x3b5   :  { %v5034_v30 = vmul.f32 %v5002_v31, %v14371_v55  ;;  %v4886_v29 = vsub.f32 2.0, %v4854_v32  ;;  %v4853_v47 = vmul.f32 %v8262_v6, %v11891_v2  ;;  %v4237_v24 = vadd.f32 %v7893_v57, %v11629_v9  ;;  %v7899_v46 = vpop.f32.mrf.mxu1 }
 0x3b6   :  { %8273 = vrcp.f32 %v11996_v50  ;;  %v5035_v41 = vmul.f32 %v5003_v11, %v14372_v4  ;;  %v4231_v51 = vadd.f32 %v4230_v18, %v11636_v14  ;;  %v4980_v20 = vsub.f32 2.0, %v12003_v36 }
 0x3b7   :  { %5098 = vst [vmem:[#allocation2 + $0x28] sm:$0xff] %v5034_v30  ;;  %8022 = vmatmul.mubr.f32.gmra.mxu0 %v5034_v30  ;;  %v12015_v38 = vmul.f32 %v12005_v62, %v11859_v17  ;;  %v12017_v48 = vmul.f32 %v8260_v19, %v4886_v29  ;;  %v4885_v31 = vsub.f32 2.0, %v4853_v47  ;;  %v12020_v53 = vadd.f32 %v11931_v1, %v4237_v24  ;;  %v8264_v57 = vpop.eup %8263 }
 0x3b8   :  { %5099 = vst [vmem:[#allocation2 + $0x30] sm:$0xff] %v5035_v41  ;;  %8024 = vmatprep.mubr.f32.mxu1 %v5035_v41  ;;  %v12022_v12 = vadd.f32 %v4503_v58, %v4231_v51  ;;  %v5005_v9 = vmul.f32 %v4973_v39, %v11899_v35  ;;  %v4249_v14 = vadd.f32 %v7896_v13, %v11643_v3  ;;  %v7979_v3 = vpop.f32.mrf.mxu0  ;;  %v14373_v35 = vld [vmem:[#allocation28_spill] sm:$0xff]  ;;  %v4254_v13 = vpop.f32.mrf.mxu1  ;;  %v14375_v29 = vsub.f32 2.0, %v11935_v56 }
 0x3b9   :  { %v4979_v17 = vsub.f32 2.0, %v12015_v38  ;;  %v12031_v18 = vmul.f32 %v12017_v48, %v11870_v7  ;;  %v12033_v19 = vmul.f32 %v8262_v6, %v4885_v31  ;;  %8025 = vmatmul.mubr.f32.vlgmr.msra.gmra.mxu1 %v11907_v33  ;;  %v5006_v1 = vmul.f32 %v4974_v34, %v11886_v25  ;;  %v8266_v7 = vpop.eup %8265  ;;  %v14374_v25 = vld [vmem:[#allocation83_spill] sm:$0xff] }
 0x3ba   :  { %v4856_v43 = vmul.f32 %v8264_v57, %v11920_v42  ;;  %8275 = vrcp.f32 %v12020_v53  ;;  %v5037_v39 = vmul.f32 %v5005_v9, %v14373_v35  ;;  %v12042_v58 = vadd.f32 %v7976_v23, %v4249_v14  ;;  %v8268_v55 = vpop.eup %8267  ;;  %v7902_v51 = vpop.f32.mrf.mxu1  ;;  %v14376_v9 = vld [vmem:[#allocation29_spill] sm:$0xff] }
 0x3bb   :  { %v4982_v6 = vsub.f32 2.0, %v12031_v18  ;;  %v12047_v33 = vmul.f32 %v12033_v19, %v11891_v2  ;;  %8277 = vrcp.f32 %v12022_v12  ;;  %v5038_v52 = vmul.f32 %v5006_v1, %v14374_v25 }
 0x3bc   :  { %v4888_v34 = vsub.f32 2.0, %v4856_v43  ;;  %v4855_v32 = vmul.f32 %v8266_v7, %v11925_v61  ;;  %5101 = vst [vmem:[#allocation2 + $0x40] sm:$0xff] %v5037_v39  ;;  %8027 = vmatprep.mubr.f32.mxu1 %v5037_v39  ;;  %8279 = vrcp.f32 %v12042_v58  ;;  %v4243_v23 = vadd.f32 %v4242_v45, %v11650_v10  ;;  %v4527_v45 = vpop.f32.mrf.mxu0 }
 0x3bd   :  { %v4981_v30 = vsub.f32 2.0, %v12047_v33  ;;  %5102 = vst [vmem:[#allocation2 + $0x48] sm:$0xff] %v5038_v52  ;;  %8028 = vmatmul.mubr.f32.gmra.mxu1 %v5038_v52  ;;  %v5007_v2 = vmul.f32 %v4975_v21, %v11937_v27  ;;  %v4261_v11 = vadd.f32 %v7899_v46, %v11659_v49  ;;  %v5008_v47 = vmul.f32 %v14375_v29, %v11916_v22  ;;  %v14377_v27 = vld [vmem:[#allocation90_spill] sm:$0xff] }
 0x3be   :  { %v12062_v4 = vmul.f32 %v8264_v57, %v4888_v34  ;;  %v4887_v41 = vsub.f32 2.0, %v4855_v32  ;;  %v4858_v10 = vmul.f32 %v8268_v55, %v11943_v59  ;;  %v12065_v24 = vadd.f32 %v4515_v37, %v4243_v23  ;;  %v8270_v31 = vpop.eup %8269 }
 0x3bf   :  { %v5039_v14 = vmul.f32 %v5007_v2, %v14376_v9  ;;  %v12068_v60 = vadd.f32 %v7979_v3, %v4261_v11  ;;  %v5040_v49 = vmul.f32 %v5008_v47, %v14377_v27  ;;  %v4255_v21 = vadd.f32 %v4254_v13, %v11666_v5  ;;  %v7982_v13 = vpop.f32.mrf.mxu0 }
 0x3c0   :  { %v12074_v22 = vmul.f32 %v12062_v4, %v11920_v42  ;;  %v12076_v56 = vmul.f32 %v8266_v7, %v4887_v41  ;;  %v4890_v46 = vsub.f32 2.0, %v4858_v10  ;;  %v4857_v37 = vmul.f32 %v8270_v31, %v11971_v16  ;;  %v8272_v57 = vpop.eup %8271  ;;  %v4266_v7 = vpop.f32.mrf.mxu1 }
 0x3c1   :  { %8281 = vrcp.f32 %v12065_v24  ;;  %5103 = vst [vmem:[#allocation2 + $0x50] sm:$0xff] %v5039_v14  ;;  %8030 = vmatprep.mubr.f32.mxu1 %v5039_v14  ;;  %5104 = vst [vmem:[#allocation2 + $0x58] sm:$0xff] %v5040_v49  ;;  %v12080_v1 = vadd.f32 %v4527_v45, %v4255_v21  ;;  %v5009_v5 = vmul.f32 %v4977_v26, %v11966_v28  ;;  %v4539_v41 = vpop.f32.mrf.mxu0 }
 0x3c2   :  { %v4273_v42 = vadd.f32 %v7902_v51, %v11674_v0  ;;  %v4984_v43 = vsub.f32 2.0, %v12074_v22  ;;  %v4951_v3 = vmul.f32 %v12076_v56, %v11925_v61  ;;  %v12089_v35 = vmul.f32 %v8268_v55, %v4890_v46  ;;  %8031 = vmatmul.mubr.f32.gmra.mxu1 %v5040_v49  ;;  %v14380_v51 = vld [vmem:[#allocation39_spill] sm:$0xff] }
 0x3c3   :  { %v4889_v39 = vsub.f32 2.0, %v4857_v37  ;;  %v8274_v25 = vpop.eup %8273  ;;  %v4860_v52 = vmul.f32 %v8272_v57, %v11983_v44  ;;  %8283 = vrcp.f32 %v12068_v60  ;;  %v5041_v28 = vmul.f32 %v5009_v5, %v14378_v15  ;;  %v14382_v5 = vld [vmem:[#allocation104_spill] sm:$0xff]  ;;  %v14384_v15 = vld [vmem:[#allocation55_spill] sm:$0xff] }
 0x3c4   :  { %v12094_v26 = vadd.f32 %v7982_v13, %v4273_v42  ;;  %v4983_v0 = vsub.f32 2.0, %v4951_v3  ;;  %v12098_v34 = vmul.f32 %v12089_v35, %v11943_v59  ;;  %v4859_v32 = vmul.f32 %v8274_v25, %v11996_v50 }
 0x3c5   :  { %v4921_v61 = vmul.f32 %v8270_v31, %v4889_v39  ;;  %v4892_v23 = vsub.f32 2.0, %v4860_v52  ;;  %8285 = vrcp.f32 %v12080_v1  ;;  %5105 = vst [vmem:[#allocation2 + $0x60] sm:$0xff] %v5041_v28  ;;  %8033 = vmatprep.mubr.f32.mxu1 %v5041_v28  ;;  %v14379_v55 = vsub.f32 2.0, %v11964_v40 }
 0x3c6   :  { %v4267_v11 = vadd.f32 %v4266_v7, %v11680_v8  ;;  %v4986_v29 = vsub.f32 2.0, %v12098_v34  ;;  %v4891_v59 = vsub.f32 2.0, %v4859_v32  ;;  %8287 = vrcp.f32 %v12094_v26 }
 0x3c7   :  { %v5010_v2 = vmul.f32 %v14379_v55, %v11953_v54  ;;  %v4953_v47 = vmul.f32 %v4921_v61, %v11971_v16  ;;  %v8276_v10 = vpop.eup %8275  ;;  %v12109_v45 = vmul.f32 %v8272_v57, %v4892_v23  ;;  %v5011_v54 = vmul.f32 %v4979_v17, %v12005_v62  ;;  %v14381_v62 = vld [vmem:[#allocation43_spill] sm:$0xff] }
 0x3c8   :  { %v12112_v9 = vadd.f32 %v4539_v41, %v4267_v11  ;;  %v8278_v8 = vpop.eup %8277  ;;  %v4923_v14 = vmul.f32 %v8274_v25, %v4891_v59  ;;  %v4862_v16 = vmul.f32 %v8276_v10, %v12020_v53  ;;  %v5012_v27 = vmul.f32 %v4980_v20, %v11990_v63  ;;  %v14383_v25 = vld [vmem:[#allocation108_spill] sm:$0xff] }
 0x3c9   :  { %v5042_v31 = vmul.f32 %v5010_v2, %v14380_v51  ;;  %v4985_v40 = vsub.f32 2.0, %v4953_v47  ;;  %v8280_v49 = vpop.eup %8279  ;;  %v4956_v21 = vmul.f32 %v12109_v45, %v11983_v44  ;;  %v4861_v46 = vmul.f32 %v8278_v8, %v12022_v12  ;;  %v14388_v59 = vld [vmem:[#allocation120_spill] sm:$0xff] }
 0x3ca   :  { %8289 = vrcp.f32 %v12112_v9  ;;  %v5043_v38 = vmul.f32 %v5011_v54, %v14381_v62  ;;  %v4955_v17 = vmul.f32 %v4923_v14, %v11996_v50  ;;  %v4894_v37 = vsub.f32 2.0, %v4862_v16 }
 0x3cb   :  { %5106 = vst [vmem:[#allocation2 + $0x68] sm:$0xff] %v5042_v31  ;;  %8034 = vmatmul.mubr.f32.gmra.mxu1 %v5042_v31  ;;  %v4864_v57 = vmul.f32 %v8280_v49, %v12042_v58  ;;  %v5044_v36 = vmul.f32 %v5012_v27, %v14382_v5  ;;  %v4988_v63 = vsub.f32 2.0, %v4956_v21  ;;  %v4893_v20 = vsub.f32 2.0, %v4861_v46  ;;  %v14391_v46 = vld [vmem:[#allocation23_spill] sm:$0xff] }
 0x3cc   :  { %5107 = vst [vmem:[#allocation2 + $0x70] sm:$0xff] %v5043_v38  ;;  %8036 = vmatprep.mubr.f32.mxu1 %v5043_v38  ;;  %v5013_v44 = vmul.f32 %v4981_v30, %v12033_v19  ;;  %v5014_v42 = vmul.f32 %v4982_v6, %v12017_v48  ;;  %v4987_v3 = vsub.f32 2.0, %v4955_v17  ;;  %v4926_v39 = vmul.f32 %v8276_v10, %v4894_v37  ;;  %v14385_v6 = vld [vmem:[#allocation113_spill] sm:$0xff] }
 0x3cd   :  { %v4896_v50 = vsub.f32 2.0, %v4864_v57  ;;  %5108 = vst [vmem:[#allocation2 + $0x78] sm:$0xff] %v5044_v36  ;;  %v5015_v13 = vmul.f32 %v4983_v0, %v12076_v56  ;;  %v4925_v7 = vmul.f32 %v8278_v8, %v4893_v20  ;;  %v5016_v19 = vmul.f32 %v4984_v43, %v12062_v4  ;;  %v14386_v0 = vld [vmem:[#allocation8_spill] sm:$0xff]  ;;  %v14392_v57 = vld [vmem:[#allocation130_spill] sm:$0xff] }
 0x3ce   :  { %v5045_v52 = vmul.f32 %v5013_v44, %v14383_v25  ;;  %v5046_v28 = vmul.f32 %v5014_v42, %v14384_v15  ;;  %v8282_v33 = vpop.eup %8281  ;;  %v4958_v18 = vmul.f32 %v4926_v39, %v12020_v53  ;;  %v5017_v34 = vmul.f32 %v4985_v40, %v4921_v61  ;;  %v14387_v53 = vld [vmem:[#allocation12_spill] sm:$0xff] }
 0x3cf   :  { %8037 = vmatmul.mubr.f32.gmra.mxu1 %v5044_v36  ;;  %v4928_v48 = vmul.f32 %v8280_v49, %v4896_v50  ;;  %v5047_v30 = vmul.f32 %v5015_v13, %v14385_v6  ;;  %v4957_v32 = vmul.f32 %v4925_v7, %v12022_v12  ;;  %v4863_v56 = vmul.f32 %v8282_v33, %v12065_v24  ;;  %v14390_v49 = vld [vmem:[#allocation128_spill] sm:$0xff] }
 0x3d0   :  { %5109 = vst [vmem:[#allocation2 + $0x80] sm:$0xff] %v5045_v52  ;;  %8039 = vmatprep.mubr.f32.mxu1 %v5045_v52  ;;  %5110 = vst [vmem:[#allocation2 + $0x88] sm:$0xff] %v5046_v28  ;;  %v5048_v23 = vmul.f32 %v5016_v19, %v14386_v0  ;;  %v5018_v55 = vmul.f32 %v4986_v29, %v12089_v35  ;;  %v8284_v22 = vpop.eup %8283  ;;  %v4990_v4 = vsub.f32 2.0, %v4958_v18  ;;  %v14389_v35 = vld [vmem:[#allocation121_spill] sm:$0xff]  ;;  %v14393_v20 = vld [vmem:[#allocation140_spill] sm:$0xff] }
 0x3d1   :  { %v4960_v43 = vmul.f32 %v4928_v48, %v12042_v58  ;;  %5111 = vst [vmem:[#allocation2 + $0x90] sm:$0xff] %v5047_v30  ;;  %v5049_v2 = vmul.f32 %v5017_v34, %v14387_v53  ;;  %v5019_v11 = vmul.f32 %v4987_v3, %v4923_v14  ;;  %v4989_v61 = vsub.f32 2.0, %v4957_v32  ;;  %v14395_v34 = vld [vmem:[#allocation145_spill] sm:$0xff]  ;;  %v14396_v0 = vld [vmem:[#allocation143_spill] sm:$0xff] }
 0x3d2   :  { %v4895_v47 = vsub.f32 2.0, %v4863_v56  ;;  %v4866_v12 = vmul.f32 %v8284_v22, %v12068_v60  ;;  %5112 = vst [vmem:[#allocation2 + $0x98] sm:$0xff] %v5048_v23  ;;  %v5050_v41 = vmul.f32 %v5018_v55, %v14388_v59  ;;  %v8286_v10 = vpop.eup %8285  ;;  %v5020_v58 = vmul.f32 %v4988_v63, %v12109_v45 }
 0x3d3   :  { %8040 = vmatmul.mubr.f32.gmra.mxu1 %v5046_v28  ;;  %v4992_v51 = vsub.f32 2.0, %v4960_v43  ;;  %5113 = vst [vmem:[#allocation2 + $0xa0] sm:$0xff] %v5049_v2  ;;  %v5051_v29 = vmul.f32 %v5019_v11, %v14389_v35  ;;  %v5022_v31 = vmul.f32 %v4990_v4, %v4926_v39  ;;  %v8288_v54 = vpop.eup %8287  ;;  %v4865_v14 = vmul.f32 %v8286_v10, %v12080_v1  ;;  %v14398_v4 = vld [vmem:[#allocation148_spill] sm:$0xff] }
 0x3d4   :  { %8042 = vmatprep.mubr.f32.mxu1 %v5047_v30  ;;  %v4927_v8 = vmul.f32 %v8282_v33, %v4895_v47  ;;  %v4898_v40 = vsub.f32 2.0, %v4866_v12  ;;  %5114 = vst [vmem:[#allocation2 + $0xa8] sm:$0xff] %v5050_v41  ;;  %v5021_v16 = vmul.f32 %v4989_v61, %v4925_v7  ;;  %v4868_v27 = vmul.f32 %v8288_v54, %v12094_v26  ;;  %v14394_v33 = vld [vmem:[#allocation137_spill] sm:$0xff]  ;;  %v12173_v43 = vld [vmem:[%s13365_s5] ss:$0 sm:$0xff] }
 0x3d5   :  { %5115 = vst [vmem:[#allocation2 + $0xb0] sm:$0xff] %v5051_v29  ;;  %v5052_v21 = vmul.f32 %v5020_v58, %v14390_v49  ;;  %v5054_v62 = vmul.f32 %v5022_v31, %v14391_v46  ;;  %v5024_v38 = vmul.f32 %v4992_v51, %v4928_v48  ;;  %v4897_v45 = vsub.f32 2.0, %v4865_v14 }
 0x3d6   :  { %v4959_v17 = vmul.f32 %v4927_v8, %v12065_v24  ;;  %v4930_v37 = vmul.f32 %v8284_v22, %v4898_v40  ;;  %v5053_v5 = vmul.f32 %v5021_v16, %v14392_v57  ;;  %v4900_v63 = vsub.f32 2.0, %v4868_v27 }
 0x3d7   :  { %8043 = vmatmul.mubr.f32.gmra.mxu1 %v5048_v23  ;;  %v8290_v36 = vpop.eup %8289  ;;  %5116 = vst [vmem:[#allocation2 + $0xb8] sm:$0xff] %v5052_v21  ;;  %5118 = vst [vmem:[#allocation2 + $0xc8] sm:$0xff] %v5054_v62  ;;  %v5056_v44 = vmul.f32 %v5024_v38, %v14393_v20  ;;  %v4929_v39 = vmul.f32 %v8286_v10, %v4897_v45 }
 0x3d8   :  { %8045 = vmatprep.mubr.f32.mxu1 %v5049_v2  ;;  %v4991_v42 = vsub.f32 2.0, %v4959_v17  ;;  %v4962_v3 = vmul.f32 %v4930_v37, %v12068_v60  ;;  %v4867_v50 = vmul.f32 %v8290_v36, %v12112_v9  ;;  %5117 = vst [vmem:[#allocation2 + $0xc0] sm:$0xff] %v5053_v5  ;;  %v4932_v24 = vmul.f32 %v8288_v54, %v4900_v63 }
 0x3d9   :  { %5120 = vst [vmem:[#allocation2 + $0xd8] sm:$0xff] %v5056_v44  ;;  %v4961_v7 = vmul.f32 %v4929_v39, %v12080_v1 }
 0x3da   :  { %v4994_v13 = vsub.f32 2.0, %v4962_v3  ;;  %v4899_v25 = vsub.f32 2.0, %v4867_v50  ;;  %v5023_v52 = vmul.f32 %v4991_v42, %v4927_v8  ;;  %v4964_v15 = vmul.f32 %v4932_v24, %v12094_v26  ;;  %v14397_v26 = vld [vmem:[#allocation149_spill] sm:$0xff] }
 0x3db   :  { %8046 = vmatmul.mubr.f32.gmra.mxu1 %v5050_v41  ;;  %v4993_v28 = vsub.f32 2.0, %v4961_v7 }
 0x3dc   :  { %8048 = vmatprep.mubr.f32.mxu1 %v5051_v29  ;;  %v4931_v19 = vmul.f32 %v8290_v36, %v4899_v25  ;;  %v5055_v18 = vmul.f32 %v5023_v52, %v14394_v33  ;;  %v5026_v60 = vmul.f32 %v4994_v13, %v4930_v37  ;;  %v4996_v48 = vsub.f32 2.0, %v4964_v15 }
 0x3dd   :  { %v5025_v30 = vmul.f32 %v4993_v28, %v4929_v39 }
 0x3de   :  { %v4963_v6 = vmul.f32 %v4931_v19, %v12112_v9  ;;  %5119 = vst [vmem:[#allocation2 + $0xd0] sm:$0xff] %v5055_v18  ;;  %v5058_v32 = vmul.f32 %v5026_v60, %v14395_v34  ;;  %v5028_v1 = vmul.f32 %v4996_v48, %v4932_v24 }
 0x3df   :  { %8049 = vmatmul.mubr.f32.gmra.mxu1 %v5052_v21  ;;  %v5057_v23 = vmul.f32 %v5025_v30, %v14396_v0 }
 0x3e0   :  { %8051 = vmatprep.mubr.f32.mxu1 %v5053_v5  ;;  %v4995_v56 = vsub.f32 2.0, %v4963_v6  ;;  %5122 = vst [vmem:[#allocation2 + $0xe8] sm:$0xff] %v5058_v32  ;;  %v5060_v55 = vmul.f32 %v5028_v1, %v14397_v26 }
 0x3e1   :  { %5121 = vst [vmem:[#allocation2 + $0xe0] sm:$0xff] %v5057_v23 }
 0x3e2   :  { %v5027_v22 = vmul.f32 %v4995_v56, %v4931_v19  ;;  %5124 = vst [vmem:[#allocation2 + $0xf8] sm:$0xff] %v5060_v55 }
 0x3e3   :  { %8052 = vmatmul.mubr.f32.gmra.mxu1 %v5054_v62 }
 0x3e4   :  { %8054 = vmatprep.mubr.f32.mxu1 %v5055_v18  ;;  %v5059_v9 = vmul.f32 %v5027_v22, %v14398_v4 }
 0x3e6   :  { %5123 = vst [vmem:[#allocation2 + $0xf0] sm:$0xff] %v5059_v9 }
 0x3e7   :  { %8055 = vmatmul.mubr.f32.gmra.mxu1 %v5056_v44 }
 0x3e8   :  { %8057 = vmatprep.mubr.f32.mxu1 %v5057_v23 }
 0x3eb   :  { %8058 = vmatmul.mubr.f32.gmra.mxu1 %v5058_v32 }
 0x3ec   :  { %8060 = vmatprep.mubr.f32.mxu1 %v5059_v9 }
 0x3ef   :  { %8061 = vmatmul.mubr.f32.gmra.mxu1 %v5060_v55 }
 0x468   :  { %v8017_v53 = vpop.f32.mrf.mxu0 }
 0x469   :  { %v12176_v2 = vadd.f32 %v8017_v53, %v12173_v43 }
 0x46a   :  { %v5214_v11 = vpop.f32.mrf.mxu0 }
 0x46b   :  { %v12179_v61 = vadd.f32 %v12173_v43, %v5214_v11  ;;  %v5726_v47 = vmul.f32 %v12176_v2, %v12176_v2 }
 0x46d   :  { %v5760_v12 = vsel %vm13779_vm0, %v5726_v47, 0.0  ;;  %v5725_v59 = vmul.f32 %v12179_v61, %v12179_v61 }
 0x46e   :  { %5761 = vadd.xlane.f32.xlu1 %v5760_v12 }
 0x46f   :  { %v5757_v41 = vsel %vm13779_vm0, %v5725_v59, 0.0 }
 0x470   :  { %5758 = vadd.xlane.f32.xlu0 %v5757_v41 }
 0x472   :  { %v8020_v10 = vpop.f32.mrf.mxu0 }
 0x473   :  { %v12188_v51 = vadd.f32 %v8020_v10, %v12173_v43 }
 0x474   :  { %v5224_v35 = vpop.f32.mrf.mxu0 }
 0x475   :  { %v12191_v29 = vadd.f32 %v12173_v43, %v5224_v35  ;;  %v5728_v58 = vmul.f32 %v12188_v51, %v12188_v51 }
 0x477   :  { %v5766_v31 = vsel %vm13779_vm0, %v5728_v58, 0.0  ;;  %v5727_v54 = vmul.f32 %v12191_v29, %v12191_v29  ;;  %v8023_v8 = vpop.f32.mrf.mxu0 }
 0x478   :  { %5767 = vadd.xlane.f32.xlu1 %v5766_v31  ;;  %v12199_v40 = vadd.f32 %v8023_v8, %v12173_v43 }
 0x479   :  { %v5763_v14 = vsel %vm13779_vm0, %v5727_v54, 0.0  ;;  %v5234_v16 = vpop.f32.mrf.mxu0  ;;  %v8026_v49 = vpop.f32.mrf.mxu1 }
 0x47a   :  { %5764 = vadd.xlane.f32.xlu0 %v5763_v14  ;;  %v12203_v27 = vadd.f32 %v12173_v43, %v5234_v16  ;;  %v5730_v21 = vmul.f32 %v12199_v40, %v12199_v40  ;;  %v12208_v46 = vadd.f32 %v8026_v49, %v12173_v43 }
 0x47b   :  { %v5244_v62 = vpop.f32.mrf.mxu1 }
 0x47c   :  { %v5772_v38 = vsel %vm13779_vm0, %v5730_v21, 0.0  ;;  %v5729_v17 = vmul.f32 %v12203_v27, %v12203_v27  ;;  %v12214_v37 = vadd.f32 %v12173_v43, %v5244_v62  ;;  %v5732_v45 = vmul.f32 %v12208_v46, %v12208_v46 }
 0x47d   :  { %5773 = vadd.xlane.f32.xlu1 %v5772_v38  ;;  %v8029_v57 = vpop.f32.mrf.mxu1 }
 0x47e   :  { %v5769_v5 = vsel %vm13779_vm0, %v5729_v17, 0.0  ;;  %v12220_v36 = vadd.f32 %v8029_v57, %v12173_v43  ;;  %v5778_v63 = vsel %vm13779_vm0, %v5732_v45, 0.0  ;;  %v5731_v20 = vmul.f32 %v12214_v37, %v12214_v37 }
 0x47f   :  { %5770 = vadd.xlane.f32.xlu0 %v5769_v5  ;;  %v5254_v44 = vpop.f32.mrf.mxu1 }
 0x480   :  { %v12226_v42 = vadd.f32 %v12173_v43, %v5254_v44  ;;  %v5775_v3 = vsel %vm13779_vm0, %v5731_v20, 0.0  ;;  %v5734_v39 = vmul.f32 %v12220_v36, %v12220_v36 }
 0x481   :  { %5779 = vadd.xlane.f32.xlu1 %v5778_v63 }
 0x482   :  { %v8032_v50 = vpop.f32.mrf.mxu1  ;;  %v5784_v24 = vsel %vm13779_vm0, %v5734_v39, 0.0  ;;  %v5733_v13 = vmul.f32 %v12226_v42, %v12226_v42 }
 0x483   :  { %5776 = vadd.xlane.f32.xlu0 %v5775_v3  ;;  %v12235_v7 = vadd.f32 %v8032_v50, %v12173_v43 }
 0x484   :  { %v5264_v25 = vpop.f32.mrf.mxu1  ;;  %v5781_v52 = vsel %vm13779_vm0, %v5733_v13, 0.0 }
 0x485   :  { %5785 = vadd.xlane.f32.xlu1 %v5784_v24  ;;  %v12239_v15 = vadd.f32 %v12173_v43, %v5264_v25  ;;  %v5736_v28 = vmul.f32 %v12235_v7, %v12235_v7 }
 0x487   :  { %5782 = vadd.xlane.f32.xlu0 %v5781_v52  ;;  %v5790_v19 = vsel %vm13779_vm0, %v5736_v28, 0.0  ;;  %v5735_v33 = vmul.f32 %v12239_v15, %v12239_v15 }
 0x489   :  { %5791 = vadd.xlane.f32.xlu1 %v5790_v19  ;;  %v5787_v60 = vsel %vm13779_vm0, %v5735_v33, 0.0 }
 0x48b   :  { %v8035_v18 = vpop.f32.mrf.mxu1  ;;  %5788 = vadd.xlane.f32.xlu0 %v5787_v60 }
 0x48c   :  { %v12248_v48 = vadd.f32 %v8035_v18, %v12173_v43 }
 0x48d   :  { %v5274_v6 = vpop.f32.mrf.mxu1 }
 0x48e   :  { %v12251_v30 = vadd.f32 %v12173_v43, %v5274_v6  ;;  %v5738_v34 = vmul.f32 %v12248_v48, %v12248_v48 }
 0x48f   :  { %v8038_v32 = vpop.f32.mrf.mxu1 }
 0x490   :  { %v12256_v1 = vadd.f32 %v8038_v32, %v12173_v43  ;;  %v5796_v56 = vsel %vm13779_vm0, %v5738_v34, 0.0  ;;  %v5737_v0 = vmul.f32 %v12251_v30, %v12251_v30 }
 0x491   :  { %v5284_v23 = vpop.f32.mrf.mxu1  ;;  %5797 = vadd.xlane.f32.xlu1 %v5796_v56 }
 0x492   :  { %v12262_v26 = vadd.f32 %v12173_v43, %v5284_v23  ;;  %v5793_v55 = vsel %vm13779_vm0, %v5737_v0, 0.0  ;;  %v5740_v22 = vmul.f32 %v12256_v1, %v12256_v1 }
 0x493   :  { %v8041_v4 = vpop.f32.mrf.mxu1  ;;  %5794 = vadd.xlane.f32.xlu0 %v5793_v55 }
 0x494   :  { %14399 = vst [vmem:[#allocation141_spill] sm:$0xff] %v12262_v26  ;;  %v12268_v9 = vadd.f32 %v8041_v4, %v12173_v43  ;;  %v5802_v53 = vsel %vm13779_vm0, %v5740_v22, 0.0  ;;  %v5739_v11 = vmul.f32 %v12262_v26, %v12262_v26 }
 0x495   :  { %v5294_v47 = vpop.f32.mrf.mxu1  ;;  %5803 = vadd.xlane.f32.xlu1 %v5802_v53 }
 0x496   :  { %14400 = vst [vmem:[#allocation34_spill] sm:$0xff] %v12268_v9  ;;  %v12274_v12 = vadd.f32 %v12173_v43, %v5294_v47  ;;  %v5799_v59 = vsel %vm13779_vm0, %v5739_v11, 0.0  ;;  %v5742_v41 = vmul.f32 %v12268_v9, %v12268_v9 }
 0x497   :  { %v8044_v10 = vpop.f32.mrf.mxu1  ;;  %5800 = vadd.xlane.f32.xlu0 %v5799_v59 }
 0x498   :  { %14401 = vst [vmem:[#allocation133_spill] sm:$0xff] %v12274_v12  ;;  %v12280_v35 = vadd.f32 %v8044_v10, %v12173_v43  ;;  %v5808_v58 = vsel %vm13779_vm0, %v5742_v41, 0.0  ;;  %v5741_v31 = vmul.f32 %v12274_v12, %v12274_v12 }
 0x499   :  { %v5304_v54 = vpop.f32.mrf.mxu1  ;;  %5809 = vadd.xlane.f32.xlu1 %v5808_v58 }
 0x49a   :  { %14402 = vst [vmem:[#allocation134_spill] sm:$0xff] %v12280_v35  ;;  %v12286_v8 = vadd.f32 %v12173_v43, %v5304_v54  ;;  %v5805_v14 = vsel %vm13779_vm0, %v5741_v31, 0.0  ;;  %v5744_v16 = vmul.f32 %v12280_v35, %v12280_v35 }
 0x49b   :  { %v8047_v49 = vpop.f32.mrf.mxu1  ;;  %5806 = vadd.xlane.f32.xlu0 %v5805_v14 }
 0x49c   :  { %14403 = vst [vmem:[#allocation146_spill] sm:$0xff] %v12286_v8  ;;  %v12292_v21 = vadd.f32 %v8047_v49, %v12173_v43  ;;  %v5814_v62 = vsel %vm13779_vm0, %v5744_v16, 0.0  ;;  %v5743_v38 = vmul.f32 %v12286_v8, %v12286_v8 }
 0x49d   :  { %v5314_v17 = vpop.f32.mrf.mxu1  ;;  %5815 = vadd.xlane.f32.xlu1 %v5814_v62 }
 0x49e   :  { %14404 = vst [vmem:[#allocation36_spill] sm:$0xff] %v12292_v21  ;;  %v12298_v45 = vadd.f32 %v12173_v43, %v5314_v17  ;;  %v5811_v57 = vsel %vm13779_vm0, %v5743_v38, 0.0  ;;  %v5746_v5 = vmul.f32 %v12292_v21, %v12292_v21 }
 0x49f   :  { %v8050_v63 = vpop.f32.mrf.mxu1  ;;  %5812 = vadd.xlane.f32.xlu0 %v5811_v57 }
 0x4a0   :  { %14405 = vst [vmem:[#allocation139_spill] sm:$0xff] %v12298_v45  ;;  %v12304_v20 = vadd.f32 %v8050_v63, %v12173_v43  ;;  %v5820_v44 = vsel %vm13779_vm0, %v5746_v5, 0.0  ;;  %v5745_v3 = vmul.f32 %v12298_v45, %v12298_v45  ;;  %v8507_v5 = vld [vmem:[%s13360_s0 + $0xc8] sm:$0xff] }
 0x4a1   :  { %v5324_v39 = vpop.f32.mrf.mxu1  ;;  %5821 = vadd.xlane.f32.xlu1 %v5820_v44  ;;  %v5398_v63 = vmul.f32 %v8507_v5, %v8507_v5  ;;  %v12366_v44 = vpop.xlane.xlu1 %5409 }
 0x4a2   :  { %14406 = vst [vmem:[#allocation150_spill] sm:$0xff] %v12304_v20  ;;  %v12310_v50 = vadd.f32 %v12173_v43, %v5324_v39  ;;  %v5817_v24 = vsel %vm13779_vm0, %v5745_v3, 0.0  ;;  %v5748_v13 = vmul.f32 %v12304_v20, %v12304_v20  ;;  %8291 = vrsqrt.f32 %v12366_v44 }
 0x4a3   :  { %v8053_v25 = vpop.f32.mrf.mxu1  ;;  %5818 = vadd.xlane.f32.xlu0 %v5817_v24  ;;  %vm5510_vm1 = vcmp.eq.f32.partialorder %v12366_v44, inf  ;;  %vm5512_vm2 = vcmp.eq.f32.partialorder %v12366_v44, 0.0 }
 0x4a4   :  { %14407 = vst [vmem:[#allocation40_spill] sm:$0xff] %v12310_v50  ;;  %v12316_v52 = vadd.f32 %v8053_v25, %v12173_v43  ;;  %v5826_v28 = vsel %vm13779_vm0, %v5748_v13, 0.0  ;;  %v5747_v19 = vmul.f32 %v12310_v50, %v12310_v50  ;;  %v12374_v13 = vpop.xlane.xlu0 %5406 }
 0x4a5   :  { %v5334_v33 = vpop.f32.mrf.mxu1  ;;  %5827 = vadd.xlane.f32.xlu1 %v5826_v28  ;;  %v5480_v28 = vsel %vm13779_vm0, %v5398_v63, 0.0  ;;  %8293 = vrsqrt.f32 %v12374_v13  ;;  %vm5503_vm3 = vcmp.eq.f32.partialorder %v12374_v13, inf  ;;  %vm5505_vm4 = vcmp.eq.f32.partialorder %v12374_v13, 0.0 }
 0x4a6   :  { %14408 = vst [vmem:[#allocation144_spill] sm:$0xff] %v12316_v52  ;;  %v12322_v18 = vadd.f32 %v12173_v43, %v5334_v33  ;;  %v5823_v60 = vsel %vm13779_vm0, %v5747_v19, 0.0  ;;  %v5750_v6 = vmul.f32 %v12316_v52, %v12316_v52  ;;  %v8509_v19 = vld [vmem:[%s13360_s0 + $0xd8] sm:$0xff] }
 0x4a7   :  { %v8056_v34 = vpop.f32.mrf.mxu1  ;;  %5824 = vadd.xlane.f32.xlu0 %v5823_v60  ;;  %v5400_v33 = vmul.f32 %v8509_v19, %v8509_v19 }
 0x4a8   :  { %14409 = vst [vmem:[#allocation44_spill] sm:$0xff] %v12322_v18  ;;  %v12328_v32 = vadd.f32 %v8056_v34, %v12173_v43  ;;  %v5832_v56 = vsel %vm13779_vm0, %v5750_v6, 0.0  ;;  %v5749_v0 = vmul.f32 %v12322_v18, %v12322_v18  ;;  %v8510_v6 = vld [vmem:[%s13360_s0 + $0xd0] sm:$0xff] }
 0x4a9   :  { %v5344_v23 = vpop.f32.mrf.mxu1  ;;  %5833 = vadd.xlane.f32.xlu1 %v5832_v56  ;;  %v5399_v34 = vmul.f32 %v8510_v6, %v8510_v6  ;;  %v12385_v56 = vpop.xlane.xlu1 %5415 }
 0x4aa   :  { %14410 = vst [vmem:[#allocation152_spill] sm:$0xff] %v12328_v32  ;;  %v12334_v55 = vadd.f32 %v12173_v43, %v5344_v23  ;;  %v5829_v22 = vsel %vm13779_vm0, %v5749_v0, 0.0  ;;  %v5752_v4 = vmul.f32 %v12328_v32, %v12328_v32  ;;  %v5486_v0 = vsel %vm13779_vm0, %v5400_v33, 0.0  ;;  %v8511_v23 = vld [vmem:[%s13360_s0 + $0xe8] sm:$0xff] }
 0x4ab   :  { %v8059_v53 = vpop.f32.mrf.mxu1  ;;  %5830 = vadd.xlane.f32.xlu0 %v5829_v22  ;;  %v5402_v22 = vmul.f32 %v8511_v23, %v8511_v23  ;;  %8295 = vrsqrt.f32 %v12385_v56  ;;  %vm5524_vm5 = vcmp.eq.f32.partialorder %v12385_v56, inf  ;;  %vm5526_vm6 = vcmp.eq.f32.partialorder %v12385_v56, 0.0 }
 0x4ac   :  { %14411 = vst [vmem:[#allocation48_spill] sm:$0xff] %v12334_v55  ;;  %v12340_v11 = vadd.f32 %v8059_v53, %v12173_v43  ;;  %v5838_v47 = vsel %vm13779_vm0, %v5752_v4, 0.0  ;;  %v5751_v59 = vmul.f32 %v12334_v55, %v12334_v55  ;;  %v12391_v4 = vpop.xlane.xlu0 %5412  ;;  %v5483_v53 = vsel %vm13779_vm0, %v5399_v34, 0.0 }
 0x4ad   :  { %v5354_v41 = vpop.f32.mrf.mxu1  ;;  %5839 = vadd.xlane.f32.xlu1 %v5838_v47  ;;  %v8512_v47 = vld [vmem:[%s13360_s0 + $0xe0] sm:$0xff]  ;;  %8297 = vrsqrt.f32 %v12391_v4  ;;  %vm5517_vm7 = vcmp.eq.f32.partialorder %v12391_v4, inf  ;;  %vm5519_vm8 = vcmp.eq.f32.partialorder %v12391_v4, 0.0 }
 0x4ae   :  { %14412 = vst [vmem:[#allocation54_spill] sm:$0xff] %v12340_v11  ;;  %v12346_v10 = vadd.f32 %v12173_v43, %v5354_v41  ;;  %v5835_v58 = vsel %vm13779_vm0, %v5751_v59, 0.0  ;;  %v5754_v31 = vmul.f32 %v12340_v11, %v12340_v11  ;;  %v5401_v59 = vmul.f32 %v8512_v47, %v8512_v47 }
 0x4af   :  { %5836 = vadd.xlane.f32.xlu0 %v5835_v58  ;;  %v8062_v54 = vpop.f32.mrf.mxu1  ;;  %v5492_v41 = vsel %vm13779_vm0, %v5402_v22, 0.0  ;;  %v8513_v58 = vld [vmem:[%s13360_s0 + $0xf8] sm:$0xff]  ;;  %v5513_v22 = vand.u32 2147483648, %v12366_v44  ;;  %v5506_v47 = vand.u32 2147483648, %v12374_v13 }
 0x4b0   :  { %14413 = vst [vmem:[#allocation14_spill] sm:$0xff] %v12346_v10  ;;  %v12352_v14 = vadd.f32 %v8062_v54, %v12173_v43  ;;  %v5844_v16 = vsel %vm13779_vm0, %v5754_v31, 0.0  ;;  %v5753_v49 = vmul.f32 %v12346_v10, %v12346_v10  ;;  %v5404_v31 = vmul.f32 %v8513_v58, %v8513_v58  ;;  %v12401_v54 = vpop.xlane.xlu1 %5421 }
 0x4b1   :  { %5845 = vadd.xlane.f32.xlu1 %v5844_v16  ;;  %v5364_v62 = vpop.f32.mrf.mxu1  ;;  %v5489_v16 = vsel %vm13779_vm0, %v5401_v59, 0.0  ;;  %8299 = vrsqrt.f32 %v12401_v54  ;;  %v5527_v58 = vand.u32 2147483648, %v12385_v56  ;;  %vm5538_vm9 = vcmp.eq.f32.partialorder %v12401_v54, inf }
 0x4b2   :  { %14414 = vst [vmem:[#allocation56_spill] sm:$0xff] %v12352_v14  ;;  %v12358_v38 = vadd.f32 %v12173_v43, %v5364_v62  ;;  %v5841_v17 = vsel %vm13779_vm0, %v5753_v49, 0.0  ;;  %v5756_v57 = vmul.f32 %v12352_v14, %v12352_v14  ;;  %v8508_v43 = vld [vmem:[%s13360_s0 + $0xc0] sm:$0xff]  ;;  %v8514_v49 = vld [vmem:[%s13360_s0 + $0xf0] sm:$0xff]  ;;  %vm5540_vm10 = vcmp.eq.f32.partialorder %v12401_v54, 0.0  ;;  %s8559_s0 = smov [#allocation2]  }
 0x4b3   :  { %5842 = vadd.xlane.f32.xlu0 %v5841_v17  ;;  %v5397_v24 = vmul.f32 %v8508_v43, %v8508_v43  ;;  %v5403_v62 = vmul.f32 %v8514_v49, %v8514_v49  ;;  %v12407_v17 = vpop.xlane.xlu0 %5418  ;;  %s6242_s12 = sshll.u32 %s8559_s0, 4  ;;  %s6243_s12 = int_to_ptr.vmem [resolvable:$true] %s6242_s12 }
 0x4b4   :  { %14415 = vst [vmem:[#allocation16_spill] sm:$0xff] %v12358_v38  ;;  %v5850_v3 = vsel %vm13779_vm0, %v5756_v57, 0.0  ;;  %v5755_v39 = vmul.f32 %v12358_v38, %v12358_v38  ;;  %v5498_v57 = vsel %vm13779_vm0, %v5404_v31, 0.0  ;;  %v12411_v63 = vpop.xlane.xlu1 %5427  ;;  %8301 = vrsqrt.f32 %v12407_v17  ;;  %s8515_s13 = scalar_lea.vmem %s6243_s12, 4096  ;;  %p8520_p1 = scmp.lt.s32.totalorder %s6243_s12, %s6243_s12 }
 0x4b5   :  { %5851 = vadd.xlane.f32.xlu1 %v5850_v3  ;;  %v5477_v60 = vsel %vm13779_vm0, %v5397_v24, 0.0  ;;  %v5495_v5 = vsel %vm13779_vm0, %v5403_v62, 0.0  ;;  %8303 = vrsqrt.f32 %v12411_v63  ;;  %v5520_v62 = vand.u32 2147483648, %v12391_v4  ;;  %p8516_p0 = scmp.ne.s32.totalorder %s6243_s12, %s8515_s13  ;;  %p8521_p2 = scmp.lt.s32.totalorder %s8515_s13, %s8515_s13 }
 0x4b6   :  { %v5847_v25 = vsel %vm13779_vm0, %v5755_v39, 0.0  ;;  %vm5531_vm11 = vcmp.eq.f32.partialorder %v12407_v17, inf  ;;  %vm5533_vm12 = vcmp.eq.f32.partialorder %v12407_v17, 0.0  ;;  %vm5552_vm13 = vcmp.eq.f32.partialorder %v12411_v63, inf }
 0x4b7   :  { %5848 = vadd.xlane.f32.xlu0 %v5847_v25  ;;  %v12413_v3 = vpop.xlane.xlu0 %5424  ;;  %vm5554_vm14 = vcmp.eq.f32.partialorder %v12411_v63, 0.0  ;;  %p8522_p3 = por %p8521_p2, %p8520_p1 }
 0x4b8   :  { %v12415_v39 = vpop.xlane.xlu1 %5433  ;;  %8305 = vrsqrt.f32 %v12413_v3  ;;  %vm5545_vm15 = vcmp.eq.f32.partialorder %v12413_v3, inf }
 0x4b9   :  { %5481 = vadd.xlane.f32.xlu1 %v5480_v28  ;;  %8307 = vrsqrt.f32 %v12415_v39  ;;  %p8523_p4 = pnand %p8522_p3, %p8516_p0 }
 0x4bb   :  { %5478 = vadd.xlane.f32.xlu0 %v5477_v60  ;;  %v12417_v43 = vpop.xlane.xlu0 %5430 }
 0x4bc   :  { %v12419_v24 = vpop.xlane.xlu1 %5439  ;;  %8309 = vrsqrt.f32 %v12417_v43  ;;  %vm5559_vm0 = vcmp.eq.f32.partialorder %v12417_v43, inf }
 0x4bd   :  { %5487 = vadd.xlane.f32.xlu1 %v5486_v0  ;;  %v8292_v0 = vpop.eup %8291  ;;  %8311 = vrsqrt.f32 %v12419_v24 }
 0x4be   :  { %v8294_v23 = vpop.eup %8293 }
 0x4bf   :  { %5484 = vadd.xlane.f32.xlu0 %v5483_v53  ;;  %v12421_v25 = vpop.xlane.xlu0 %5436  ;;  %v8296_v59 = vpop.eup %8295  ;;  %v5502_v49 = vmul.f32 %v8294_v23, %v12374_v13  ;;  %v5534_v23 = vand.u32 2147483648, %v12407_v17 }
 0x4c0   :  { %v12423_v28 = vpop.xlane.xlu1 %5445  ;;  %8313 = vrsqrt.f32 %v12421_v25  ;;  %v5523_v14 = vmul.f32 %v8296_v59, %v12385_v56 }
 0x4c1   :  { %5493 = vadd.xlane.f32.xlu1 %v5492_v41  ;;  %v5509_v41 = vmul.f32 %v8292_v0, %v12366_v44  ;;  %8315 = vrsqrt.f32 %v12423_v28  ;;  %v5504_v55 = vsel %vm5503_vm3, %v12374_v13, %v5502_v49  ;;  %vm5566_vm3 = vcmp.eq.f32.partialorder %v12415_v39, inf }
 0x4c2   :  { %v12504_v32 = vsel %vm5505_vm4, %v5506_v47, %v5504_v55  ;;  %vm5580_vm4 = vcmp.eq.f32.partialorder %v12419_v24, inf }
 0x4c3   :  { %5490 = vadd.xlane.f32.xlu0 %v5489_v16  ;;  %v12425_v19 = vpop.xlane.xlu0 %5442  ;;  %v8298_v16 = vpop.eup %8297  ;;  %v5511_v38 = vsel %vm5510_vm1, %v12366_v44, %v5509_v41  ;;  %vm5547_vm1 = vcmp.eq.f32.partialorder %v12413_v3, 0.0 }
 0x4c4   :  { %v12429_v33 = vpop.xlane.xlu1 %5451  ;;  %8317 = vrsqrt.f32 %v12425_v19  ;;  %v5516_v10 = vmul.f32 %v8298_v16, %v12391_v4  ;;  %v12496_v49 = vsel %vm5512_vm2, %v5513_v22, %v5511_v38  ;;  %v5525_v16 = vsel %vm5524_vm5, %v12385_v56, %v5523_v14 }
 0x4c5   :  { %5499 = vadd.xlane.f32.xlu1 %v5498_v57  ;;  %v8300_v57 = vpop.eup %8299  ;;  %8319 = vrsqrt.f32 %v12429_v33  ;;  %vm5568_vm2 = vcmp.eq.f32.partialorder %v12415_v39, 0.0  ;;  %vm5561_vm5 = vcmp.eq.f32.partialorder %v12417_v43, 0.0  ;;  %v12531_v22 = vsel %vm5526_vm6, %v5527_v58, %v5525_v16 }
 0x4c6   :  { %v8302_v0 = vpop.eup %8301  ;;  %v5537_v41 = vmul.f32 %v8300_v57, %v12401_v54  ;;  %v5518_v38 = vsel %vm5517_vm7, %v12391_v4, %v5516_v10  ;;  %vm5582_vm7 = vcmp.eq.f32.partialorder %v12419_v24, 0.0  ;;  %vm5594_vm6 = vcmp.eq.f32.partialorder %v12423_v28, inf }
 0x4c7   :  { %5496 = vadd.xlane.f32.xlu0 %v5495_v5  ;;  %v12433_v60 = vpop.xlane.xlu0 %5448  ;;  %v5541_v5 = vand.u32 2147483648, %v12401_v54  ;;  %v5530_v59 = vmul.f32 %v8302_v0, %v12407_v17  ;;  %v8304_v52 = vpop.eup %8303 }
 0x4c8   :  { %v12437_v6 = vpop.xlane.xlu1 %5457  ;;  %8321 = vrsqrt.f32 %v12433_v60  ;;  %v8306_v0 = vpop.eup %8305  ;;  %v5539_v55 = vsel %vm5538_vm9, %v12401_v54, %v5537_v41  ;;  %v5551_v14 = vmul.f32 %v8304_v52, %v12411_v63  ;;  %v12535_v41 = vsel %vm5519_vm8, %v5520_v62, %v5518_v38 }
 0x4c9   :  { %8323 = vrsqrt.f32 %v12437_v6  ;;  %v8308_v44 = vpop.eup %8307  ;;  %v5532_v10 = vsel %vm5531_vm11, %v12407_v17, %v5530_v59  ;;  %v5544_v57 = vmul.f32 %v8306_v0, %v12413_v3  ;;  %vm5573_vm9 = vcmp.eq.f32.partialorder %v12421_v25, inf }
 0x4ca   :  { %v8310_v47 = vpop.eup %8309  ;;  %v5565_v50 = vmul.f32 %v8308_v44, %v12415_v39  ;;  %vm5575_vm11 = vcmp.eq.f32.partialorder %v12421_v25, 0.0  ;;  %v12548_v62 = vsel %vm5540_vm10, %v5541_v5, %v5539_v55  ;;  %v12552_v16 = vsel %vm5533_vm12, %v5534_v23, %v5532_v10 }
 0x4cb   :  { %v12440_v34 = vpop.xlane.xlu0 %5454  ;;  %v8312_v59 = vpop.eup %8311  ;;  %v5553_v38 = vsel %vm5552_vm13, %v12411_v63, %v5551_v14  ;;  %v5558_v44 = vmul.f32 %v8310_v47, %v12417_v43  ;;  %vm5587_vm8 = vcmp.eq.f32.partialorder %v12425_v19, inf  ;;  %v5546_v17 = vsel %vm5545_vm15, %v12413_v3, %v5544_v57 }
 0x4cc   :  { %v12449_v53 = vpop.xlane.xlu1 %5463  ;;  %8325 = vrsqrt.f32 %v12440_v34  ;;  %v5579_v23 = vmul.f32 %v8312_v59, %v12419_v24  ;;  %v5567_v14 = vsel %vm5566_vm3, %v12415_v39, %v5565_v50  ;;  %vm5596_vm10 = vcmp.eq.f32.partialorder %v12423_v28, 0.0 }
 0x4cd   :  { %8327 = vrsqrt.f32 %v12449_v53  ;;  %v8314_v4 = vpop.eup %8313  ;;  %vm5589_vm12 = vcmp.eq.f32.partialorder %v12425_v19, 0.0  ;;  %vm5608_vm13 = vcmp.eq.f32.partialorder %v12429_v33, inf  ;;  %v14416_v55 = vand.u32 2147483648, %v12411_v63 }
 0x4ce   :  { %v8316_v5 = vpop.eup %8315  ;;  %v5572_v47 = vmul.f32 %v8314_v4, %v12421_v25  ;;  %vm5610_vm15 = vcmp.eq.f32.partialorder %v12429_v33, 0.0 }
 0x4cf   :  { %v12459_v31 = vpop.xlane.xlu0 %5460  ;;  %v12584_v0 = vsel %vm5554_vm14, %v14416_v55, %v5553_v38 }
 0x4d0   :  { %v12479_v11 = vpop.xlane.xlu1 %5469  ;;  %8329 = vrsqrt.f32 %v12459_v31 }
 0x4d1   :  { %8331 = vrsqrt.f32 %v12479_v11  ;;  %v8318_v10 = vpop.eup %8317 }
 0x4d2   :  { %v8320_v59 = vpop.eup %8319 }
 0x4d3   :  { %v12492_v18 = vpop.xlane.xlu0 %5466 }
 0x4d4   :  { %v12527_v13 = vpop.xlane.xlu1 %5475 }
 0x4d7   :  { %v12544_v58 = vpop.xlane.xlu0 %5472 }
 0x4f7   :  { %v12562_v54 = vpop.xlane.xlu1 %5761 }
 0x4f8   :  { %8333 = vrsqrt.f32 %v12562_v54 }
 0x4f9   :  { %8335 = vrsqrt.f32 %v12492_v18  ;;  %v12578_v57 = vpop.xlane.xlu0 %5758 }
 0x4fa   :  { %8337 = vrsqrt.f32 %v12578_v57 }
 0x4fb   :  { %8526 = shalt.err (!%p8523_p4)
}
 0x4fc   :  { %s8560_s14 = smov 128   ;;  %s8561_s15 = smov 8   ;;  %v8322_v63 = vpop.eup %8321  ;;  %v14417_v4 = vand.u32 2147483648, %v12413_v3  ;;  %v5560_v55 = vsel %vm5559_vm0, %v12417_v43, %v5558_v44  ;;  %vm5601_vm14 = vcmp.eq.f32.partialorder %v12433_v60, inf  ;;  %vm5603_vm3 = vcmp.eq.f32.partialorder %v12433_v60, 0.0 }
 0x4fd   :  { %6248 = dma.vmem_to_hbm [thread:$0]  %s6243_s12, 4096, %s13366_s6, [#allocation3], %s8560_s14, %s8560_s14, %s8561_s15   ;;  %v14418_v50 = vand.u32 2147483648, %v12415_v39  ;;  %v5581_v3 = vsel %vm5580_vm4, %v12419_v24, %v5579_v23  ;;  %vm5622_vm0 = vcmp.eq.f32.partialorder %v12437_v6, inf  ;;  %v8324_v44 = vpop.eup %8323  ;;  %v5593_v52 = vmul.f32 %v8316_v5, %v12423_v28 }
 0x4fe   :  { %v12599_v38 = vsel %vm5547_vm1, %v14417_v4, %v5546_v17  ;;  %s8562_s3 = smov [#allocation4]   ;;  %v5604_v17 = vand.u32 2147483648, %v12433_v60  ;;  %v5574_v4 = vsel %vm5573_vm9, %v12421_v25, %v5572_v47  ;;  %v5586_v39 = vmul.f32 %v8318_v10, %v12425_v19 }
 0x4ff   :  { %s6254_s18 = sshll.u32 %s8562_s3, 4  ;;  %v12610_v56 = vsel %vm5568_vm2, %v14418_v50, %v5567_v14  ;;  %v5607_v14 = vmul.f32 %v8320_v59, %v12429_v33  ;;  %s6255_s18 = int_to_ptr.vmem [resolvable:$true] %s6254_s18 }
 0x500   :  { %s8535_s6 = scalar_lea.vmem %s6255_s18, 4096  ;;  %p8540_p6 = scmp.lt.s32.totalorder %s6255_s18, %s6255_s18 }
 0x501   :  { %p8536_p5 = scmp.ne.s32.totalorder %s6255_s18, %s8535_s6  ;;  %p8541_p7 = scmp.lt.s32.totalorder %s8535_s6, %s8535_s6 }
 0x503   :  { %p8542_p8 = por %p8541_p7, %p8540_p6 }
 0x505   :  { %p8543_p9 = pnand %p8542_p8, %p8536_p5 }
 0x507   :  { %8546 = shalt.err (!%p8543_p9)
}
 0x508   :  { %6260 = dma.vmem_to_hbm [thread:$0]  %s6255_s18, 4096, %s13367_s7, [#allocation5], %s8560_s14, %s8560_s14, %s8561_s15   ;;  %v8326_v23 = vpop.eup %8325  ;;  %v14419_v5 = vand.u32 2147483648, %v12417_v43  ;;  %v5600_v47 = vmul.f32 %v8322_v63, %v12433_v60  ;;  %vm5615_vm1 = vcmp.eq.f32.partialorder %v12440_v34, inf  ;;  %v14420_v20 = vand.u32 2147483648, %v12419_v24  ;;  %v12647_v43 = vpop.xlane.xlu1 %5767 }
 0x509   :  { %v8328_v50 = vpop.eup %8327  ;;  %vm5636_vm2 = vcmp.eq.f32.partialorder %v12449_v53, inf  ;;  %8339 = vrsqrt.f32 %v12527_v13  ;;  %vm5629_vm4 = vcmp.eq.f32.partialorder %v12459_v31, inf  ;;  %v5588_v24 = vsel %vm5587_vm8, %v12425_v19, %v5586_v39 }
 0x50a   :  { %v12633_v10 = vsel %vm5561_vm5, %v14419_v5, %v5560_v55  ;;  %v12642_v45 = vsel %vm5582_vm7, %v14420_v20, %v5581_v3  ;;  %v8330_v63 = vpop.eup %8329  ;;  %v14421_v55 = vand.u32 2147483648, %v12421_v25  ;;  %8341 = vrsqrt.f32 %v12647_v43 }
 0x50b   :  { %v5595_v20 = vsel %vm5594_vm6, %v12423_v28, %v5593_v52  ;;  %v5609_v25 = vsel %vm5608_vm13, %v12429_v33, %v5607_v14  ;;  %v5621_v3 = vmul.f32 %v8324_v44, %v12437_v6  ;;  %vm5624_vm5 = vcmp.eq.f32.partialorder %v12437_v6, 0.0 }
 0x50c   :  { %v12653_v5 = vsel %vm5575_vm11, %v14421_v55, %v5574_v4  ;;  %v12669_v4 = vpop.xlane.xlu0 %5764  ;;  %v5602_v55 = vsel %vm5601_vm14, %v12433_v60, %v5600_v47  ;;  %v5614_v52 = vmul.f32 %v8326_v23, %v12440_v34  ;;  %vm5617_vm7 = vcmp.eq.f32.partialorder %v12440_v34, 0.0  ;;  %v8332_v47 = vpop.eup %8331 }
 0x50d   :  { %v5635_v39 = vmul.f32 %v8328_v50, %v12449_v53  ;;  %vm5638_vm9 = vcmp.eq.f32.partialorder %v12449_v53, 0.0  ;;  %vm5631_vm11 = vcmp.eq.f32.partialorder %v12459_v31, 0.0  ;;  %8343 = vrsqrt.f32 %v12669_v4  ;;  %v8334_v8 = vpop.eup %8333 }
 0x50e   :  { %v5628_v44 = vmul.f32 %v8330_v63, %v12459_v31  ;;  %v5632_v14 = vand.u32 2147483648, %v12459_v31  ;;  %vm5650_vm6 = vcmp.eq.f32.partialorder %v12479_v11, inf  ;;  %vm5652_vm8 = vcmp.eq.f32.partialorder %v12479_v11, 0.0 }
 0x50f   :  { %v14422_v23 = vand.u32 2147483648, %v12423_v28  ;;  %v14423_v59 = vand.u32 2147483648, %v12425_v19  ;;  %v5653_v63 = vand.u32 2147483648, %v12479_v11  ;;  %vm5643_vm13 = vcmp.eq.f32.partialorder %v12492_v18, inf }
 0x510   :  { %v14424_v35 = vand.u32 2147483648, %v12429_v33  ;;  %v12706_v28 = vsel %vm5603_vm3, %v5604_v17, %v5602_v55  ;;  %v5623_v19 = vsel %vm5622_vm0, %v12437_v6, %v5621_v3  ;;  %v5861_v33 = vmul.f32 %v8334_v8, %v12562_v54  ;;  %v12728_v55 = vpop.xlane.xlu0 %5770 }
 0x511   :  { %v12688_v50 = vsel %vm5596_vm10, %v14422_v23, %v5595_v20  ;;  %v12694_v21 = vsel %vm5589_vm12, %v14423_v59, %v5588_v24  ;;  %14425 = vst [vmem:[#allocation22_spill] sm:$0xff] %v12706_v28  ;;  %v12712_v20 = vpop.xlane.xlu1 %5773  ;;  %v8336_v24 = vpop.eup %8335  ;;  %v5616_v23 = vsel %vm5615_vm1, %v12440_v34, %v5614_v52  ;;  %v5630_v17 = vsel %vm5629_vm4, %v12459_v31, %v5628_v44 }
 0x512   :  { %v12702_v12 = vsel %vm5610_vm15, %v14424_v35, %v5609_v25  ;;  %v5637_v35 = vsel %vm5636_vm2, %v12449_v53, %v5635_v39  ;;  %8345 = vrsqrt.f32 %v12712_v20  ;;  %v8338_v60 = vpop.eup %8337  ;;  %v5649_v25 = vmul.f32 %v8332_v47, %v12479_v11 }
 0x513   :  { %vm5862_vm10 = vcmp.eq.f32.partialorder %v12562_v54, inf  ;;  %v5865_v3 = vand.u32 2147483648, %v12562_v54  ;;  %vm5864_vm12 = vcmp.eq.f32.partialorder %v12562_v54, 0.0  ;;  %v5854_v8 = vmul.f32 %v8338_v60, %v12578_v57 }
 0x514   :  { %v5863_v52 = vsel %vm5862_vm10, %v12562_v54, %v5861_v33  ;;  %8347 = vrsqrt.f32 %v12728_v55  ;;  %v5642_v39 = vmul.f32 %v8336_v24, %v12492_v18  ;;  %vm5855_vm15 = vcmp.eq.f32.partialorder %v12578_v57, inf  ;;  %v12747_v60 = vpop.xlane.xlu0 %5776 }
 0x515   :  { %v5866_v59 = vsel %vm5864_vm12, %v5865_v3, %v5863_v52  ;;  %v5858_v44 = vand.u32 2147483648, %v12578_v57  ;;  %v12737_v47 = vpop.xlane.xlu1 %5779  ;;  %v5856_v26 = vsel %vm5855_vm15, %v12578_v57, %v5854_v8  ;;  %vm5857_vm14 = vcmp.eq.f32.partialorder %v12578_v57, 0.0 }
 0x516   :  { %v6078_v9 = vadd.f32 1e-07, %v5866_v59  ;;  %8349 = vrsqrt.f32 %v12737_v47  ;;  %v5651_v54 = vsel %vm5650_vm6, %v12479_v11, %v5649_v25  ;;  %v8340_v3 = vpop.eup %8339  ;;  %v14426_v59 = vand.u32 2147483648, %v12437_v6 }
 0x517   :  { %8351 = vrsqrt.f32 %v12544_v58  ;;  %v5859_v33 = vsel %vm5857_vm14, %v5858_v44, %v5856_v26  ;;  %v8342_v28 = vpop.eup %8341  ;;  %v14427_v25 = vand.u32 2147483648, %v12440_v34  ;;  %v14428_v26 = vand.u32 2147483648, %v12449_v53 }
 0x518   :  { %v12753_v52 = vsel %vm5624_vm5, %v14426_v59, %v5623_v19  ;;  %8353 = vrcp.f32 %v6078_v9  ;;  %v6077_v8 = vadd.f32 1e-07, %v5859_v33  ;;  %v12770_v6 = vsel %vm5631_vm11, %v5632_v14, %v5630_v17  ;;  %v12791_v11 = vpop.xlane.xlu0 %5782 }
 0x519   :  { %v12760_v24 = vsel %vm5617_vm7, %v14427_v25, %v5616_v23  ;;  %v12766_v44 = vsel %vm5638_vm9, %v14428_v26, %v5637_v35  ;;  %8355 = vrsqrt.f32 %v12747_v60  ;;  %v12773_v9 = vpop.xlane.xlu1 %5785  ;;  %v12777_v19 = vsel %vm5652_vm8, %v5653_v63, %v5651_v54 }
 0x51a   :  { %v12782_v34 = vsel %vm5643_vm13, %v12492_v18, %v5642_v39  ;;  %8357 = vrcp.f32 %v6077_v8  ;;  %v5875_v53 = vmul.f32 %v8342_v28, %v12647_v43  ;;  %v8344_v23 = vpop.eup %8343  ;;  %v12786_v31 = vmul.f32 %v8340_v3, %v12527_v13 }
 0x51b   :  { %vm5876_vm3 = vcmp.eq.f32.partialorder %v12647_v43, inf  ;;  %v5879_v14 = vand.u32 2147483648, %v12647_v43  ;;  %8359 = vrsqrt.f32 %v12773_v9  ;;  %vm5878_vm0 = vcmp.eq.f32.partialorder %v12647_v43, 0.0 }
 0x51c   :  { %v5877_v63 = vsel %vm5876_vm3, %v12647_v43, %v5875_v53  ;;  %v5868_v35 = vmul.f32 %v8344_v23, %v12669_v4  ;;  %8361 = vrsqrt.f32 %v12791_v11  ;;  %vm5869_vm1 = vcmp.eq.f32.partialorder %v12669_v4, inf  ;;  %v12808_v8 = vpop.xlane.xlu0 %5788 }
 0x51d   :  { %v5880_v28 = vsel %vm5878_vm0, %v5879_v14, %v5877_v63  ;;  %vm5871_vm2 = vcmp.eq.f32.partialorder %v12669_v4, 0.0  ;;  %v5872_v17 = vand.u32 2147483648, %v12669_v4  ;;  %v12800_v39 = vpop.xlane.xlu1 %5791  ;;  %vm5890_vm4 = vcmp.eq.f32.partialorder %v12712_v20, inf }
 0x51e   :  { %v6080_v54 = vadd.f32 1e-07, %v5880_v28  ;;  %v5870_v33 = vsel %vm5869_vm1, %v12669_v4, %v5868_v35  ;;  %8363 = vrsqrt.f32 %v12800_v39  ;;  %vm5892_vm5 = vcmp.eq.f32.partialorder %v12712_v20, 0.0 }
 0x51f   :  { %v8346_v43 = vpop.eup %8345  ;;  %v5873_v3 = vsel %vm5871_vm2, %v5872_v17, %v5870_v33  ;;  %v5893_v59 = vand.u32 2147483648, %v12712_v20  ;;  %vm5883_vm7 = vcmp.eq.f32.partialorder %v12728_v55, inf  ;;  %vm5885_vm9 = vcmp.eq.f32.partialorder %v12728_v55, 0.0 }
 0x520   :  { %8365 = vrcp.f32 %v6080_v54  ;;  %v6079_v25 = vadd.f32 1e-07, %v5873_v3  ;;  %v5889_v26 = vmul.f32 %v8346_v43, %v12712_v20  ;;  %v5886_v53 = vand.u32 2147483648, %v12728_v55 }
 0x521   :  { %v8348_v4 = vpop.eup %8347  ;;  %vm5904_vm11 = vcmp.eq.f32.partialorder %v12737_v47, inf  ;;  %vm5906_vm6 = vcmp.eq.f32.partialorder %v12737_v47, 0.0  ;;  %8367 = vrsqrt.f32 %v12808_v8  ;;  %v5907_v63 = vand.u32 2147483648, %v12737_v47 }
 0x522   :  { %8369 = vrcp.f32 %v6079_v25  ;;  %v5891_v23 = vsel %vm5890_vm4, %v12712_v20, %v5889_v26  ;;  %v5882_v14 = vmul.f32 %v8348_v4, %v12728_v55  ;;  %vm5897_vm8 = vcmp.eq.f32.partialorder %v12747_v60, inf  ;;  %v12833_v25 = vpop.xlane.xlu1 %5797 }
 0x523   :  { %v8350_v35 = vpop.eup %8349  ;;  %v5894_v28 = vsel %vm5892_vm5, %v5893_v59, %v5891_v23  ;;  %vm5899_vm13 = vcmp.eq.f32.partialorder %v12747_v60, 0.0  ;;  %v5900_v17 = vand.u32 2147483648, %v12747_v60  ;;  %vm5918_vm10 = vcmp.eq.f32.partialorder %v12773_v9, inf }
 0x524   :  { %v12826_v54 = vpop.eup %8351  ;;  %v6082_v33 = vadd.f32 1e-07, %v5894_v28  ;;  %v5884_v43 = vsel %vm5883_vm7, %v12728_v55, %v5882_v14  ;;  %v5903_v3 = vmul.f32 %v8350_v35, %v12737_v47  ;;  %vm5920_vm12 = vcmp.eq.f32.partialorder %v12773_v9, 0.0  ;;  %v12845_v28 = vpop.xlane.xlu0 %5794 }
 0x525   :  { %v8354_v20 = vpop.eup %8353  ;;  %v5887_v59 = vsel %vm5885_vm9, %v5886_v53, %v5884_v43  ;;  %v5921_v26 = vand.u32 2147483648, %v12773_v9  ;;  %8371 = vrsqrt.f32 %v12833_v25  ;;  %vm5664_vm15 = vcmp.eq.f32.partialorder %v12527_v13, inf }
 0x526   :  { %v8356_v4 = vpop.eup %8355  ;;  %v6142_v23 = vmul.f32 %v8354_v20, %v12496_v49  ;;  %8373 = vrcp.f32 %v6082_v33  ;;  %v6081_v14 = vadd.f32 1e-07, %v5887_v59  ;;  %v5905_v35 = vsel %vm5904_vm11, %v12737_v47, %v5903_v3  ;;  %v12854_v3 = vpop.xlane.xlu1 %5803 }
 0x527   :  { %v8358_v55 = vpop.eup %8357  ;;  %v5908_v53 = vsel %vm5906_vm6, %v5907_v63, %v5905_v35  ;;  %v5896_v43 = vmul.f32 %v8356_v4, %v12747_v60  ;;  %vm5911_vm14 = vcmp.eq.f32.partialorder %v12791_v11, inf  ;;  %8375 = vrsqrt.f32 %v12845_v28 }
 0x528   :  { %v8360_v57 = vpop.eup %8359  ;;  %v6174_v49 = vmul.f32 %v6142_v23, %v12176_v2  ;;  %v6141_v33 = vmul.f32 %v8358_v55, %v12504_v32  ;;  %8377 = vrcp.f32 %v6081_v14  ;;  %v6084_v20 = vadd.f32 1e-07, %v5908_v53  ;;  %v12870_v14 = vpop.xlane.xlu0 %5800 }
 0x529   :  { %v8362_v59 = vpop.eup %8361  ;;  %v5898_v47 = vsel %vm5897_vm8, %v12747_v60, %v5896_v43  ;;  %v5917_v63 = vmul.f32 %v8360_v57, %v12773_v9  ;;  %vm5913_vm3 = vcmp.eq.f32.partialorder %v12791_v11, 0.0  ;;  %v5914_v4 = vand.u32 2147483648, %v12791_v11 }
 0x52a   :  { %vm14429_vm0 = vcmask 261120   ;;  %v6173_v2 = vmul.f32 %v6141_v33, %v12179_v61  ;;  %8379 = vrcp.f32 %v6084_v20  ;;  %v5901_v32 = vsel %vm5899_vm13, %v5900_v17, %v5898_v47  ;;  %v12888_v53 = vpop.xlane.xlu1 %5809 }
 0x52b   :  { %6206 = vst.msk [vmem:[%s13368_s8 + $0x8] sm:$0xff] %vm14429_vm0, %v6174_v49  ;;  %v5910_v23 = vmul.f32 %v8362_v59, %v12791_v11  ;;  %v8364_v57 = vpop.eup %8363  ;;  %v6083_v35 = vadd.f32 1e-07, %v5901_v32  ;;  %v5919_v55 = vsel %vm5918_vm10, %v12773_v9, %v5917_v63  ;;  %vm5932_vm1 = vcmp.eq.f32.partialorder %v12800_v39, inf  ;;  %vm14430_vm2 = vmmov %vm14429_vm0 }
 0x52c   :  { %8381 = vrsqrt.f32 %v12854_v3  ;;  %6205 = vst.msk [vmem:[%s13368_s8] sm:$0xff] %vm14430_vm2, %v6173_v2  ;;  %v5922_v61 = vsel %vm5920_vm12, %v5921_v26, %v5919_v55  ;;  %v5931_v17 = vmul.f32 %v8364_v57, %v12800_v39  ;;  %vm5934_vm4 = vcmp.eq.f32.partialorder %v12800_v39, 0.0  ;;  %v12898_v63 = vpop.xlane.xlu0 %5806  ;;  %vm14431_vm9 = vmmov %vm14429_vm0 }
 0x52d   :  { %v5912_v60 = vsel %vm5911_vm14, %v12791_v11, %v5910_v23  ;;  %v8366_v43 = vpop.eup %8365  ;;  %8383 = vrcp.f32 %v6083_v35  ;;  %v6086_v49 = vadd.f32 1e-07, %v5922_v61  ;;  %v5935_v20 = vand.u32 2147483648, %v12800_v39  ;;  %vm14432_vm8 = vmmov %vm14429_vm0 }
 0x52e   :  { %v5915_v33 = vsel %vm5913_vm3, %v5914_v4, %v5912_v60  ;;  %v8368_v9 = vpop.eup %8367  ;;  %v6144_v26 = vmul.f32 %v8366_v43, %v12531_v22  ;;  %v5933_v47 = vsel %vm5932_vm1, %v12800_v39, %v5931_v17  ;;  %vm5925_vm5 = vcmp.eq.f32.partialorder %v12808_v8, inf  ;;  %v12904_v35 = vpop.xlane.xlu1 %5815  ;;  %vm14434_vm3 = vmmov %vm14429_vm0 }
 0x52f   :  { %v6085_v59 = vadd.f32 1e-07, %v5915_v33  ;;  %v8370_v2 = vpop.eup %8369  ;;  %8385 = vrcp.f32 %v6086_v49  ;;  %v5936_v32 = vsel %vm5934_vm4, %v5935_v20, %v5933_v47  ;;  %v5924_v11 = vmul.f32 %v8368_v9, %v12808_v8 }
 0x530   :  { %v5928_v4 = vand.u32 2147483648, %v12808_v8  ;;  %v6176_v23 = vmul.f32 %v6144_v26, %v12188_v51  ;;  %v6143_v22 = vmul.f32 %v8370_v2, %v12535_v41  ;;  %v6088_v57 = vadd.f32 1e-07, %v5936_v32 }
 0x531   :  { %8387 = vrcp.f32 %v6085_v59  ;;  %v12910_v39 = vsel %vm5664_vm15, %v12527_v13, %v12786_v31  ;;  %v5926_v55 = vsel %vm5925_vm5, %v12808_v8, %v5924_v11  ;;  %vm5927_vm7 = vcmp.eq.f32.partialorder %v12808_v8, 0.0  ;;  %v12921_v31 = vpop.xlane.xlu0 %5812  ;;  %vm14433_vm15 = vmmov %vm14429_vm0 }
 0x532   :  { %8389 = vrsqrt.f32 %v12870_v14  ;;  %v8372_v61 = vpop.eup %8371  ;;  %6208 = vst.msk [vmem:[%s13368_s8 + $0x18] sm:$0xff] %vm14431_vm9, %v6176_v23  ;;  %v6175_v51 = vmul.f32 %v6143_v22, %v12191_v29  ;;  %v5929_v41 = vsel %vm5927_vm7, %v5928_v4, %v5926_v55  ;;  %vm5946_vm11 = vcmp.eq.f32.partialorder %v12833_v25, inf  ;;  %v12934_v33 = vpop.xlane.xlu1 %5821 }
 0x533   :  { %8391 = vrcp.f32 %v6088_v57  ;;  %v8374_v60 = vpop.eup %8373  ;;  %v6087_v17 = vadd.f32 1e-07, %v5929_v41  ;;  %v5945_v8 = vmul.f32 %v8372_v61, %v12833_v25  ;;  %vm5948_vm6 = vcmp.eq.f32.partialorder %v12833_v25, 0.0 }
 0x534   :  { %8393 = vrsqrt.f32 %v12888_v53  ;;  %v8376_v43 = vpop.eup %8375  ;;  %6207 = vst.msk [vmem:[%s13368_s8 + $0x10] sm:$0xff] %vm14432_vm8, %v6175_v51  ;;  %v6146_v29 = vmul.f32 %v8374_v60, %v12548_v62  ;;  %v5949_v49 = vand.u32 2147483648, %v12833_v25  ;;  %vm5939_vm13 = vcmp.eq.f32.partialorder %v12845_v28, inf  ;;  %vm14436_vm8 = vmmov %vm14430_vm2 }
 0x535   :  { %8395 = vrsqrt.f32 %v12898_v63  ;;  %v8378_v20 = vpop.eup %8377  ;;  %v5947_v9 = vsel %vm5946_vm11, %v12833_v25, %v5945_v8  ;;  %v5938_v26 = vmul.f32 %v8376_v43, %v12845_v28  ;;  %vm5941_vm10 = vcmp.eq.f32.partialorder %v12845_v28, 0.0  ;;  %v12946_v32 = vpop.xlane.xlu0 %5818  ;;  %vm14435_vm11 = vmmov %vm14430_vm2 }
 0x536   :  { %8397 = vrcp.f32 %v6087_v17  ;;  %v6178_v62 = vmul.f32 %v6146_v29, %v12199_v40  ;;  %v6145_v59 = vmul.f32 %v8378_v20, %v12552_v16  ;;  %v5950_v47 = vsel %vm5948_vm6, %v5949_v49, %v5947_v9  ;;  %v12958_v57 = vpop.xlane.xlu1 %5827 }
 0x537   :  { %v5942_v2 = vand.u32 2147483648, %v12845_v28  ;;  %v8380_v11 = vpop.eup %8379  ;;  %v6090_v4 = vadd.f32 1e-07, %v5950_v47  ;;  %v5940_v23 = vsel %vm5939_vm13, %v12845_v28, %v5938_v26  ;;  %vm5960_vm12 = vcmp.eq.f32.partialorder %v12854_v3, inf }
 0x538   :  { %8399 = vrsqrt.f32 %v12904_v35  ;;  %6210 = vst.msk [vmem:[%s13368_s8 + $0x28] sm:$0xff] %vm14433_vm15, %v6178_v62  ;;  %v6177_v40 = vmul.f32 %v6145_v59, %v12203_v27  ;;  %v6148_v16 = vmul.f32 %v8380_v11, %v12584_v0  ;;  %vm5962_vm14 = vcmp.eq.f32.partialorder %v12854_v3, 0.0  ;;  %vm14438_vm15 = vmmov %vm14430_vm2 }
 0x539   :  { %v8382_v22 = vpop.eup %8381  ;;  %v5943_v25 = vsel %vm5941_vm10, %v5942_v2, %v5940_v23  ;;  %8401 = vrcp.f32 %v6090_v4  ;;  %v5963_v61 = vand.u32 2147483648, %v12854_v3  ;;  %vm5953_vm0 = vcmp.eq.f32.partialorder %v12870_v14, inf  ;;  %v12970_v0 = vpop.xlane.xlu0 %5824  ;;  %vm14437_vm10 = vmmov %vm14430_vm2 }
 0x53a   :  { %v6089_v28 = vadd.f32 1e-07, %v5943_v25  ;;  %v5959_v55 = vmul.f32 %v8382_v22, %v12854_v3  ;;  %v8384_v51 = vpop.eup %8383  ;;  %6209 = vst.msk [vmem:[%s13368_s8 + $0x20] sm:$0xff] %vm14434_vm3, %v6177_v40  ;;  %v6180_v27 = vmul.f32 %v6148_v16, %v12208_v46  ;;  %vm5955_vm1 = vcmp.eq.f32.partialorder %v12870_v14, 0.0 }
 0x53b   :  { %8403 = vrsqrt.f32 %v12921_v31  ;;  %v6147_v41 = vmul.f32 %v8384_v51, %v12599_v38  ;;  %v5956_v17 = vand.u32 2147483648, %v12870_v14  ;;  %vm5974_vm4 = vcmp.eq.f32.partialorder %v12888_v53, inf }
 0x53c   :  { %8405 = vrcp.f32 %v6089_v28  ;;  %v5961_v60 = vsel %vm5960_vm12, %v12854_v3, %v5959_v55  ;;  %v8386_v8 = vpop.eup %8385  ;;  %6212 = vst.msk [vmem:[%s13368_s8 + $0x38] sm:$0xff] %vm14430_vm2, %v6180_v27  ;;  %vm5976_vm5 = vcmp.eq.f32.partialorder %v12888_v53, 0.0  ;;  %v5977_v20 = vand.u32 2147483648, %v12888_v53  ;;  %v12993_v3 = vpop.xlane.xlu1 %5833 }
 0x53d   :  { %v5964_v46 = vsel %vm5962_vm14, %v5963_v61, %v5961_v60  ;;  %8407 = vrsqrt.f32 %v12934_v33  ;;  %v6179_v43 = vmul.f32 %v6147_v41, %v12214_v37  ;;  %v6150_v29 = vmul.f32 %v8386_v8, %v12610_v56  ;;  %v13006_v11 = vpop.xlane.xlu0 %5830 }
 0x53e   :  { %v8388_v38 = vpop.eup %8387  ;;  %v6092_v49 = vadd.f32 1e-07, %v5964_v46  ;;  %vm5967_vm7 = vcmp.eq.f32.partialorder %v12898_v63, inf  ;;  %vm5969_vm9 = vcmp.eq.f32.partialorder %v12898_v63, 0.0  ;;  %8409 = vrsqrt.f32 %v12946_v32 }
 0x53f   :  { %v8390_v9 = vpop.eup %8389  ;;  %v6149_v26 = vmul.f32 %v8388_v38, %v12633_v10  ;;  %6211 = vst.msk [vmem:[%s13368_s8 + $0x30] sm:$0xff] %vm14435_vm11, %v6179_v43  ;;  %v6182_v37 = vmul.f32 %v6150_v29, %v12220_v36  ;;  %v5970_v10 = vand.u32 2147483648, %v12898_v63  ;;  %vm5988_vm6 = vcmp.eq.f32.partialorder %v12904_v35, inf }
 0x540   :  { %v8392_v62 = vpop.eup %8391  ;;  %8411 = vrcp.f32 %v6092_v49  ;;  %v5952_v56 = vmul.f32 %v8390_v9, %v12870_v14  ;;  %vm5990_vm13 = vcmp.eq.f32.partialorder %v12904_v35, 0.0  ;;  %vm5981_vm12 = vcmp.eq.f32.partialorder %v12921_v31, inf  ;;  %v13043_v51 = vpop.xlane.xlu1 %5839 }
 0x541   :  { %v8394_v59 = vpop.eup %8393  ;;  %v6181_v47 = vmul.f32 %v6149_v26, %v12226_v42  ;;  %v6152_v2 = vmul.f32 %v8392_v62, %v12642_v45  ;;  %8413 = vrsqrt.f32 %v12958_v57  ;;  %6214 = vst.msk [vmem:[%s13368_s8 + $0x48] sm:$0xff] %vm14436_vm8, %v6182_v37  ;;  %v5991_v45 = vand.u32 2147483648, %v12904_v35  ;;  %v13052_v46 = vpop.xlane.xlu0 %5836 }
 0x542   :  { %v8396_v4 = vpop.eup %8395  ;;  %v5954_v36 = vsel %vm5953_vm0, %v12870_v14, %v5952_v56  ;;  %v5973_v42 = vmul.f32 %v8394_v59, %v12888_v53  ;;  %8415 = vrsqrt.f32 %v12970_v0  ;;  %vm5983_vm14 = vcmp.eq.f32.partialorder %v12921_v31, 0.0 }
 0x543   :  { %v8398_v23 = vpop.eup %8397  ;;  %6213 = vst.msk [vmem:[%s13368_s8 + $0x40] sm:$0xff] %vm14437_vm10, %v6181_v47  ;;  %v6184_v22 = vmul.f32 %v6152_v2, %v12235_v7  ;;  %v5957_v40 = vsel %vm5955_vm1, %v5956_v17, %v5954_v36  ;;  %v5966_v16 = vmul.f32 %v8396_v4, %v12898_v63  ;;  %v5984_v14 = vand.u32 2147483648, %v12921_v31  ;;  %vm14439_vm1 = vmmov %vm14430_vm2 }
 0x544   :  { %v6151_v25 = vmul.f32 %v8398_v23, %v12653_v5  ;;  %v6091_v28 = vadd.f32 1e-07, %v5957_v40  ;;  %v5975_v55 = vsel %vm5974_vm4, %v12888_v53, %v5973_v42  ;;  %vm5645_vm3 = vcmp.eq.f32.partialorder %v12492_v18, 0.0  ;;  %vm14441_vm11 = vmmov %vm14439_vm1 }
 0x545   :  { %v8400_v61 = vpop.eup %8399  ;;  %6216 = vst.msk [vmem:[%s13368_s8 + $0x58] sm:$0xff] %vm14438_vm15, %v6184_v22  ;;  %v5978_v7 = vsel %vm5976_vm5, %v5977_v20, %v5975_v55  ;;  %v5968_v5 = vsel %vm5967_vm7, %v12898_v63, %v5966_v16  ;;  %vm6002_vm0 = vcmp.eq.f32.partialorder %v12934_v33, inf  ;;  %vm6004_vm2 = vcmp.eq.f32.partialorder %v12934_v33, 0.0  ;;  %v13092_v42 = vpop.xlane.xlu0 %5842 }
 0x546   :  { %v6183_v27 = vmul.f32 %v6151_v25, %v12239_v15  ;;  %8417 = vrcp.f32 %v6091_v28  ;;  %v6094_v41 = vadd.f32 1e-07, %v5978_v7  ;;  %v5971_v60 = vsel %vm5969_vm9, %v5970_v10, %v5968_v5  ;;  %v8402_v17 = vpop.eup %8401  ;;  %v13077_v10 = vpop.xlane.xlu1 %5845  ;;  %vm14440_vm9 = vmmov %vm14439_vm1 }
 0x547   :  { %v6093_v53 = vadd.f32 1e-07, %v5971_v60  ;;  %v5987_v8 = vmul.f32 %v8400_v61, %v12904_v35  ;;  %8419 = vrsqrt.f32 %v12993_v3  ;;  %v6154_v15 = vmul.f32 %v8402_v17, %v12688_v50 }
 0x548   :  { %v8404_v38 = vpop.eup %8403  ;;  %6215 = vst.msk [vmem:[%s13368_s8 + $0x50] sm:$0xff] %vm14439_vm1, %v6183_v27  ;;  %8421 = vrcp.f32 %v6094_v41  ;;  %v6005_v63 = vand.u32 2147483648, %v12934_v33  ;;  %vm5666_vm4 = vcmp.eq.f32.partialorder %v12527_v13, 0.0  ;;  %vm5995_vm5 = vcmp.eq.f32.partialorder %v12946_v32, inf }
 0x549   :  { %v8406_v43 = vpop.eup %8405  ;;  %8423 = vrcp.f32 %v6093_v53  ;;  %v5989_v29 = vsel %vm5988_vm6, %v12904_v35, %v5987_v8  ;;  %v5980_v49 = vmul.f32 %v8404_v38, %v12921_v31  ;;  %v6186_v50 = vmul.f32 %v6154_v15, %v12248_v48  ;;  %v14445_v53 = vld [vmem:[#allocation22_spill] sm:$0xff] }
 0x54a   :  { %v8408_v20 = vpop.eup %8407  ;;  %v6153_v9 = vmul.f32 %v8406_v43, %v12694_v21  ;;  %v5992_v26 = vsel %vm5990_vm13, %v5991_v45, %v5989_v29  ;;  %8425 = vrsqrt.f32 %v13006_v11  ;;  %vm5997_vm7 = vcmp.eq.f32.partialorder %v12946_v32, 0.0  ;;  %v13115_v7 = vpop.xlane.xlu1 %5851 }
 0x54b   :  { %v6096_v62 = vadd.f32 1e-07, %v5992_v26  ;;  %v5982_v37 = vsel %vm5981_vm12, %v12921_v31, %v5980_v49  ;;  %v6001_v56 = vmul.f32 %v8408_v20, %v12934_v33  ;;  %v8410_v59 = vpop.eup %8409  ;;  %6218 = vst.msk [vmem:[%s13368_s8 + $0x68] sm:$0xff] %vm14440_vm9, %v6186_v50  ;;  %v5998_v35 = vand.u32 2147483648, %v12946_v32  ;;  %vm14443_vm12 = vmmov %vm14439_vm1  ;;  %v14446_v49 = vld [vmem:[#allocation141_spill] sm:$0xff] }
 0x54c   :  { %v6185_v48 = vmul.f32 %v6153_v9, %v12251_v30  ;;  %v5985_v21 = vsel %vm5983_vm14, %v5984_v14, %v5982_v37  ;;  %8427 = vrsqrt.f32 %v13043_v51  ;;  %v5994_v36 = vmul.f32 %v8410_v59, %v12946_v32 }
 0x54d   :  { %v8412_v47 = vpop.eup %8411  ;;  %8429 = vrcp.f32 %v6096_v62  ;;  %v6095_v2 = vadd.f32 1e-07, %v5985_v21  ;;  %v6003_v4 = vsel %vm6002_vm0, %v12934_v33, %v6001_v56  ;;  %vm6016_vm6 = vcmp.eq.f32.partialorder %v12958_v57, inf  ;;  %vm14447_vm0 = vmmov %vm14439_vm1  ;;  %v14449_v56 = vld [vmem:[#allocation133_spill] sm:$0xff] }
 0x54e   :  { %v8414_v45 = vpop.eup %8413  ;;  %6217 = vst.msk [vmem:[%s13368_s8 + $0x60] sm:$0xff] %vm14441_vm11, %v6185_v48  ;;  %v6156_v30 = vmul.f32 %v8412_v47, %v12702_v12  ;;  %v6006_v31 = vsel %vm6004_vm2, %v6005_v63, %v6003_v4  ;;  %vm6018_vm8 = vcmp.eq.f32.partialorder %v12958_v57, 0.0  ;;  %vm5657_vm13 = vcmp.eq.f32.partialorder %v12544_v58, inf  ;;  %v13156_v26 = vpop.xlane.xlu1 %5481 }
 0x54f   :  { %8431 = vrcp.f32 %v6095_v2  ;;  %v6098_v23 = vadd.f32 1e-07, %v6006_v31  ;;  %v5996_v22 = vsel %vm5995_vm5, %v12946_v32, %v5994_v36  ;;  %v6015_v40 = vmul.f32 %v8414_v45, %v12958_v57  ;;  %v8416_v16 = vpop.eup %8415 }
 0x550   :  { %v6188_v12 = vmul.f32 %v6156_v30, %v12256_v1  ;;  %v5999_v33 = vsel %vm5997_vm7, %v5998_v35, %v5996_v22  ;;  %v6019_v25 = vand.u32 2147483648, %v12958_v57  ;;  %8433 = vrsqrt.f32 %v13052_v46  ;;  %vm14451_vm7 = vmmov %vm14447_vm0 }
 0x551   :  { %8435 = vrcp.f32 %v6098_v23  ;;  %v6097_v28 = vadd.f32 1e-07, %v5999_v33  ;;  %v6017_v55 = vsel %vm6016_vm6, %v12958_v57, %v6015_v40  ;;  %v6008_v61 = vmul.f32 %v8416_v16, %v12970_v0 }
 0x552   :  { %v14442_v5 = vand.u32 2147483648, %v12492_v18  ;;  %vm5659_vm10 = vcmp.eq.f32.partialorder %v12544_v58, 0.0  ;;  %6220 = vst.msk [vmem:[%s13368_s8 + $0x78] sm:$0xff] %vm14443_vm12, %v6188_v12  ;;  %v6020_v32 = vsel %vm6018_vm8, %v6019_v25, %v6017_v55  ;;  %vm6009_vm15 = vcmp.eq.f32.partialorder %v12970_v0, inf  ;;  %vm14456_vm12 = vmmov %vm14447_vm0 }
 0x553   :  { %v6012_v14 = vand.u32 2147483648, %v12970_v0  ;;  %v8418_v27 = vpop.eup %8417  ;;  %8437 = vrcp.f32 %v6097_v28  ;;  %v6100_v41 = vadd.f32 1e-07, %v6020_v32  ;;  %v6010_v18 = vsel %vm6009_vm15, %v12970_v0, %v6008_v61  ;;  %v13197_v28 = vpop.xlane.xlu1 %5487 }
 0x554   :  { %v13122_v1 = vsel %vm5645_vm3, %v14442_v5, %v12782_v34  ;;  %vm6011_vm14 = vcmp.eq.f32.partialorder %v12970_v0, 0.0  ;;  %v13135_v34 = vpop.xlane.xlu0 %5848  ;;  %v8420_v60 = vpop.eup %8419  ;;  %v14444_v17 = vand.u32 2147483648, %v12527_v13  ;;  %v6155_v8 = vmul.f32 %v8418_v27, %v14445_v53 }
 0x555   :  { %v6013_v38 = vsel %vm6011_vm14, %v6012_v14, %v6010_v18  ;;  %8439 = vrsqrt.f32 %v13077_v10  ;;  %v8422_v15 = vpop.eup %8421  ;;  %v5656_v63 = vmul.f32 %v12826_v54, %v12544_v58  ;;  %v6029_v43 = vmul.f32 %v8420_v60, %v12993_v3  ;;  %vm14458_vm14 = vmmov %vm14447_vm0 }
 0x556   :  { %v13142_v57 = vsel %vm5666_vm4, %v14444_v17, %v12910_v39  ;;  %8441 = vrcp.f32 %v6100_v41  ;;  %v6099_v0 = vadd.f32 1e-07, %v6013_v38  ;;  %v8424_v29 = vpop.eup %8423  ;;  %v6187_v20 = vmul.f32 %v6155_v8, %v14446_v49  ;;  %vm14450_vm4 = vmmov %vm14447_vm0 }
 0x557   :  { %v6158_v13 = vmul.f32 %v8422_v15, %v12753_v52  ;;  %vm6030_vm3 = vcmp.eq.f32.partialorder %v12993_v3, inf  ;;  %8443 = vrsqrt.f32 %v13092_v42  ;;  %v8426_v39 = vpop.eup %8425  ;;  %v6157_v50 = vmul.f32 %v8424_v29, %v12760_v24  ;;  %v14448_v52 = vld [vmem:[#allocation34_spill] sm:$0xff]  ;;  %v13233_v49 = vpop.xlane.xlu1 %5493 }
 0x558   :  { %8445 = vrcp.f32 %v6099_v0  ;;  %v6031_v9 = vsel %vm6030_vm3, %v12993_v3, %v6029_v43  ;;  %v6033_v54 = vand.u32 2147483648, %v12993_v3  ;;  %6219 = vst.msk [vmem:[%s13368_s8 + $0x70] sm:$0xff] %vm14447_vm0, %v6187_v20  ;;  %vm6032_vm1 = vcmp.eq.f32.partialorder %v12993_v3, 0.0  ;;  %v13169_v35 = vpop.xlane.xlu0 %5478 }
 0x559   :  { %v6190_v62 = vmul.f32 %v6158_v13, %v14448_v52  ;;  %v6022_v37 = vmul.f32 %v8426_v39, %v13006_v11  ;;  %vm6023_vm2 = vcmp.eq.f32.partialorder %v13006_v11, inf  ;;  %v8428_v24 = vpop.eup %8427  ;;  %v6189_v59 = vmul.f32 %v6157_v50, %v14449_v56 }
 0x55a   :  { %v6034_v48 = vsel %vm6032_vm1, %v6033_v54, %v6031_v9  ;;  %v6026_v21 = vand.u32 2147483648, %v13006_v11  ;;  %8447 = vrsqrt.f32 %v13115_v7  ;;  %v8430_v47 = vpop.eup %8429  ;;  %v5658_v2 = vsel %vm5657_vm13, %v12544_v58, %v5656_v63  ;;  %vm14454_vm13 = vmmov %vm14447_vm0 }
 0x55b   :  { %6222 = vst.msk [vmem:[%s13368_s8 + $0x88] sm:$0xff] %vm14450_vm4, %v6190_v62  ;;  %v6024_v3 = vsel %vm6023_vm2, %v13006_v11, %v6022_v37  ;;  %vm6025_vm5 = vcmp.eq.f32.partialorder %v13006_v11, 0.0  ;;  %v6043_v4 = vmul.f32 %v8428_v24, %v13043_v51  ;;  %v6160_v36 = vmul.f32 %v8430_v47, %v12766_v44  ;;  %v14453_v44 = vld [vmem:[#allocation134_spill] sm:$0xff]  ;;  %vm14461_vm2 = vmmov %vm14447_vm0 }
 0x55c   :  { %6221 = vst.msk [vmem:[%s13368_s8 + $0x80] sm:$0xff] %vm14451_vm7, %v6189_v59  ;;  %v6027_v45 = vsel %vm6025_vm5, %v6026_v21, %v6024_v3  ;;  %vm6044_vm9 = vcmp.eq.f32.partialorder %v13043_v51, inf  ;;  %v6047_v30 = vand.u32 2147483648, %v13043_v51  ;;  %v8432_v31 = vpop.eup %8431  ;;  %v6102_v23 = vadd.f32 1e-07, %v6034_v48  ;;  %v13210_v14 = vpop.xlane.xlu0 %5484  ;;  %v14462_v59 = vld [vmem:[#allocation40_spill] sm:$0xff]  ;;  %vm14463_vm5 = vmmov %vm14447_vm0 }
 0x55d   :  { %v6045_v22 = vsel %vm6044_vm9, %v13043_v51, %v6043_v4  ;;  %vm6046_vm11 = vcmp.eq.f32.partialorder %v13043_v51, 0.0  ;;  %8449 = vrsqrt.f32 %v13135_v34  ;;  %v8434_v11 = vpop.eup %8433  ;;  %v14452_v40 = vand.u32 2147483648, %v12544_v58  ;;  %v14455_v58 = vld [vmem:[#allocation146_spill] sm:$0xff]  ;;  %v13268_v4 = vpop.xlane.xlu1 %5499 }
 0x55e   :  { %v6192_v12 = vmul.f32 %v6160_v36, %v14453_v44  ;;  %v6159_v33 = vmul.f32 %v8432_v31, %v12770_v6  ;;  %v6048_v25 = vsel %vm6046_vm11, %v6047_v30, %v6045_v22  ;;  %v8436_v55 = vpop.eup %8435  ;;  %v6101_v61 = vadd.f32 1e-07, %v6027_v45 }
 0x55f   :  { %v5661_v16 = vsel %vm5659_vm10, %v14452_v40, %v5658_v2  ;;  %v6036_v5 = vmul.f32 %v8434_v11, %v13052_v46  ;;  %vm6037_vm6 = vcmp.eq.f32.partialorder %v13052_v46, inf  ;;  %vm6039_vm8 = vcmp.eq.f32.partialorder %v13052_v46, 0.0 }
 0x560   :  { %6224 = vst.msk [vmem:[%s13368_s8 + $0x98] sm:$0xff] %vm14454_vm13, %v6192_v12  ;;  %v6191_v51 = vmul.f32 %v6159_v33, %v14455_v58  ;;  %v6162_v6 = vmul.f32 %v8436_v55, %v12777_v19  ;;  %v6040_v32 = vand.u32 2147483648, %v13052_v46  ;;  %8451 = vrsqrt.f32 %v13156_v26  ;;  %v8438_v27 = vpop.eup %8437  ;;  %v14457_v19 = vld [vmem:[#allocation36_spill] sm:$0xff]  ;;  %v13248_v62 = vpop.xlane.xlu0 %5490 }
 0x561   :  { %8453 = vrcp.f32 %v6102_v23  ;;  %v6104_v41 = vadd.f32 1e-07, %v6048_v25  ;;  %v6038_v18 = vsel %vm6037_vm6, %v13052_v46, %v6036_v5  ;;  %vm6058_vm10 = vcmp.eq.f32.partialorder %v13077_v10, inf }
 0x562   :  { %v8440_v60 = vpop.eup %8439  ;;  %6223 = vst.msk [vmem:[%s13368_s8 + $0x90] sm:$0xff] %vm14456_vm12, %v6191_v51  ;;  %v6194_v17 = vmul.f32 %v6162_v6, %v14457_v19  ;;  %v6161_v53 = vmul.f32 %v8438_v27, %v13122_v1  ;;  %v6041_v8 = vsel %vm6039_vm8, %v6040_v32, %v6038_v18  ;;  %8455 = vrsqrt.f32 %v13169_v35  ;;  %v14459_v1 = vld [vmem:[#allocation139_spill] sm:$0xff] }
 0x563   :  { %v8442_v38 = vpop.eup %8441  ;;  %8457 = vrcp.f32 %v6101_v61  ;;  %v6057_v15 = vmul.f32 %v8440_v60, %v13077_v10  ;;  %vm6060_vm15 = vcmp.eq.f32.partialorder %v13077_v10, 0.0  ;;  %v6061_v63 = vand.u32 2147483648, %v13077_v10  ;;  %v14464_v60 = vld [vmem:[#allocation144_spill] sm:$0xff] }
 0x564   :  { %v8444_v0 = vpop.eup %8443  ;;  %6226 = vst.msk [vmem:[%s13368_s8 + $0xa8] sm:$0xff] %vm14458_vm14, %v6194_v17  ;;  %v6193_v43 = vmul.f32 %v6161_v53, %v14459_v1  ;;  %v6164_v46 = vmul.f32 %v8442_v38, %v13142_v57  ;;  %v6103_v29 = vadd.f32 1e-07, %v6041_v8  ;;  %8459 = vrsqrt.f32 %v13197_v28  ;;  %v14460_v57 = vld [vmem:[#allocation150_spill] sm:$0xff]  ;;  %v13274_v23 = vpop.xlane.xlu0 %5496  ;;  %vm14465_vm14 = vmmov %vm14447_vm0 }
 0x565   :  { %v8446_v20 = vpop.eup %8445  ;;  %v6059_v13 = vsel %vm6058_vm10, %v13077_v10, %v6057_v15  ;;  %v6050_v39 = vmul.f32 %v8444_v0, %v13092_v42  ;;  %vm6051_vm3 = vcmp.eq.f32.partialorder %v13092_v42, inf  ;;  %v6054_v50 = vand.u32 2147483648, %v13092_v42 }
 0x566   :  { %6225 = vst.msk [vmem:[%s13368_s8 + $0xa0] sm:$0xff] %vm14447_vm0, %v6193_v43  ;;  %v6196_v9 = vmul.f32 %v6164_v46, %v14460_v57  ;;  %v6163_v54 = vmul.f32 %v8446_v20, %v5661_v16  ;;  %8461 = vrcp.f32 %v6104_v41  ;;  %v6062_v52 = vsel %vm6060_vm15, %v6061_v63, %v6059_v13  ;;  %v14466_v63 = vld [vmem:[#allocation44_spill] sm:$0xff] }
 0x567   :  { %v8448_v37 = vpop.eup %8447  ;;  %v6106_v24 = vadd.f32 1e-07, %v6062_v52  ;;  %v6052_v56 = vsel %vm6051_vm3, %v13092_v42, %v6050_v39  ;;  %vm6053_vm1 = vcmp.eq.f32.partialorder %v13092_v42, 0.0  ;;  %8463 = vrsqrt.f32 %v13210_v14  ;;  %v14468_v20 = vld [vmem:[#allocation152_spill] sm:$0xff] }
 0x568   :  { %6228 = vst.msk [vmem:[%s13368_s8 + $0xb8] sm:$0xff] %vm14461_vm2, %v6196_v9  ;;  %v6195_v48 = vmul.f32 %v6163_v54, %v14462_v59  ;;  %8465 = vrcp.f32 %v6103_v29  ;;  %v6055_v10 = vsel %vm6053_vm1, %v6054_v50, %v6052_v56  ;;  %v6071_v21 = vmul.f32 %v8448_v37, %v13115_v7  ;;  %vm14467_vm1 = vmmov %vm14461_vm2  ;;  %v14470_v59 = vld [vmem:[#allocation48_spill] sm:$0xff] }
 0x569   :  { %8467 = vrcp.f32 %v6106_v24  ;;  %v6105_v47 = vadd.f32 1e-07, %v6055_v10  ;;  %vm6072_vm4 = vcmp.eq.f32.partialorder %v13115_v7, inf  ;;  %v6075_v2 = vand.u32 2147483648, %v13115_v7 }
 0x56a   :  { %v8450_v42 = vpop.eup %8449  ;;  %6227 = vst.msk [vmem:[%s13368_s8 + $0xb0] sm:$0xff] %vm14463_vm5, %v6195_v48  ;;  %v6073_v3 = vsel %vm6072_vm4, %v13115_v7, %v6071_v21  ;;  %vm6074_vm7 = vcmp.eq.f32.partialorder %v13115_v7, 0.0  ;;  %8469 = vrsqrt.f32 %v13233_v49  ;;  %vm6065_vm9 = vcmp.eq.f32.partialorder %v13135_v34, inf }
 0x56b   :  { %8471 = vrcp.f32 %v6105_v47  ;;  %v6076_v36 = vsel %vm6074_vm7, %v6075_v2, %v6073_v3  ;;  %v6064_v45 = vmul.f32 %v8450_v42, %v13135_v34  ;;  %v6068_v31 = vand.u32 2147483648, %v13135_v34  ;;  %vm14469_vm7 = vmmov %vm14467_vm1 }
 0x56c   :  { %v6108_v30 = vadd.f32 1e-07, %v6076_v36  ;;  %8473 = vrsqrt.f32 %v13248_v62  ;;  %vm6067_vm11 = vcmp.eq.f32.partialorder %v13135_v34, 0.0  ;;  %vm5678_vm6 = vcmp.eq.f32.partialorder %v13156_v26, inf }
 0x56d   :  { %v8452_v22 = vpop.eup %8451  ;;  %v6066_v7 = vsel %vm6065_vm9, %v13135_v34, %v6064_v45  ;;  %8475 = vrsqrt.f32 %v13268_v4  ;;  %v5681_v33 = vand.u32 2147483648, %v13156_v26  ;;  %vm5680_vm8 = vcmp.eq.f32.partialorder %v13156_v26, 0.0 }
 0x56e   :  { %v8454_v11 = vpop.eup %8453  ;;  %8477 = vrcp.f32 %v6108_v30  ;;  %v6069_v40 = vsel %vm6067_vm11, %v6068_v31, %v6066_v7  ;;  %v5677_v16 = vmul.f32 %v8452_v22, %v13156_v26  ;;  %vm5671_vm13 = vcmp.eq.f32.partialorder %v13169_v35, inf  ;;  %v14472_v31 = vld [vmem:[#allocation54_spill] sm:$0xff] }
 0x56f   :  { %v8456_v44 = vpop.eup %8455  ;;  %v6107_v12 = vadd.f32 1e-07, %v6069_v40  ;;  %8479 = vrsqrt.f32 %v13274_v23  ;;  %v5674_v58 = vand.u32 2147483648, %v13169_v35  ;;  %vm5673_vm10 = vcmp.eq.f32.partialorder %v13169_v35, 0.0 }
 0x570   :  { %v8458_v25 = vpop.eup %8457  ;;  %v5679_v55 = vsel %vm5678_vm6, %v13156_v26, %v5677_v16  ;;  %v5670_v34 = vmul.f32 %v8456_v44, %v13169_v35  ;;  %vm5692_vm12 = vcmp.eq.f32.partialorder %v13197_v28, inf  ;;  %v5695_v26 = vand.u32 2147483648, %v13197_v28 }
 0x571   :  { %v8460_v61 = vpop.eup %8459  ;;  %8481 = vrcp.f32 %v6107_v12  ;;  %v5682_v5 = vsel %vm5680_vm8, %v5681_v33, %v5679_v55  ;;  %vm5694_vm15 = vcmp.eq.f32.partialorder %v13197_v28, 0.0  ;;  %vm5685_vm3 = vcmp.eq.f32.partialorder %v13210_v14, inf  ;;  %vm14471_vm8 = vmmov %vm14467_vm1  ;;  %v14475_v33 = vld [vmem:[#allocation56_spill] sm:$0xff] }
 0x572   :  { %v6166_v51 = vmul.f32 %v8454_v11, %v5682_v5  ;;  %v5672_v6 = vsel %vm5671_vm13, %v13169_v35, %v5670_v34  ;;  %v5691_v32 = vmul.f32 %v8460_v61, %v13197_v28  ;;  %v5688_v43 = vand.u32 2147483648, %v13210_v14 }
 0x573   :  { %v8462_v27 = vpop.eup %8461  ;;  %v5675_v41 = vsel %vm5673_vm10, %v5674_v58, %v5672_v6  ;;  %vm5687_vm0 = vcmp.eq.f32.partialorder %v13210_v14, 0.0  ;;  %vm5706_vm2 = vcmp.eq.f32.partialorder %v13233_v49, inf  ;;  %vm5708_vm4 = vcmp.eq.f32.partialorder %v13233_v49, 0.0 }
 0x574   :  { %v8464_v18 = vpop.eup %8463  ;;  %v6198_v19 = vmul.f32 %v6166_v51, %v14464_v60  ;;  %v6165_v17 = vmul.f32 %v8458_v25, %v5675_v41  ;;  %v5693_v53 = vsel %vm5692_vm12, %v13197_v28, %v5691_v32  ;;  %v5709_v54 = vand.u32 2147483648, %v13233_v49  ;;  %vm14473_vm12 = vmmov %vm14467_vm1 }
 0x575   :  { %v8466_v8 = vpop.eup %8465  ;;  %v5696_v38 = vsel %vm5694_vm15, %v5695_v26, %v5693_v53  ;;  %v5684_v35 = vmul.f32 %v8464_v18, %v13210_v14  ;;  %vm5699_vm5 = vcmp.eq.f32.partialorder %v13248_v62, inf  ;;  %vm5701_vm9 = vcmp.eq.f32.partialorder %v13248_v62, 0.0  ;;  %vm14476_vm15 = vmmov %vm14467_vm1 }
 0x576   :  { %v8468_v15 = vpop.eup %8467  ;;  %6230 = vst.msk [vmem:[%s13368_s8 + $0xc8] sm:$0xff] %vm14465_vm14, %v6198_v19  ;;  %v6197_v0 = vmul.f32 %v6165_v17, %v14466_v63  ;;  %v6168_v1 = vmul.f32 %v8462_v27, %v5696_v38  ;;  %v5702_v24 = vand.u32 2147483648, %v13248_v62  ;;  %vm5720_vm11 = vcmp.eq.f32.partialorder %v13268_v4, inf  ;;  %vm14477_vm14 = vmmov %vm14467_vm1 }
 0x577   :  { %v8470_v46 = vpop.eup %8469  ;;  %v5686_v28 = vsel %vm5685_vm3, %v13210_v14, %v5684_v35  ;;  %vm5722_vm6 = vcmp.eq.f32.partialorder %v13268_v4, 0.0  ;;  %vm5713_vm13 = vcmp.eq.f32.partialorder %v13274_v23, inf  ;;  %v5716_v11 = vand.u32 2147483648, %v13274_v23  ;;  %vm14479_vm3 = vmmov %vm14467_vm1 }
 0x578   :  { %v8472_v29 = vpop.eup %8471  ;;  %6229 = vst.msk [vmem:[%s13368_s8 + $0xc0] sm:$0xff] %vm14467_vm1, %v6197_v0  ;;  %v6200_v13 = vmul.f32 %v6168_v1, %v14468_v20  ;;  %v5689_v39 = vsel %vm5687_vm0, %v5688_v43, %v5686_v28  ;;  %v5705_v50 = vmul.f32 %v8470_v46, %v13233_v49  ;;  %vm5715_vm10 = vcmp.eq.f32.partialorder %v13274_v23, 0.0 }
 0x579   :  { %v8474_v57 = vpop.eup %8473  ;;  %v6167_v9 = vmul.f32 %v8466_v8, %v5689_v39 }
 0x57a   :  { %v8476_v14 = vpop.eup %8475  ;;  %6232 = vst.msk [vmem:[%s13368_s8 + $0xd8] sm:$0xff] %vm14469_vm7, %v6200_v13  ;;  %v5707_v52 = vsel %vm5706_vm2, %v13233_v49, %v5705_v50  ;;  %v5698_v37 = vmul.f32 %v8474_v57, %v13248_v62  ;;  %v5723_v49 = vand.u32 2147483648, %v13268_v4 }
 0x57b   :  { %v8478_v56 = vpop.eup %8477  ;;  %v6199_v48 = vmul.f32 %v6167_v9, %v14470_v59  ;;  %v5710_v10 = vsel %vm5708_vm4, %v5709_v54, %v5707_v52  ;;  %v5719_v21 = vmul.f32 %v8476_v14, %v13268_v4 }
 0x57c   :  { %v8480_v47 = vpop.eup %8479  ;;  %v6170_v2 = vmul.f32 %v8468_v15, %v5710_v10  ;;  %v5700_v42 = vsel %vm5699_vm5, %v13248_v62, %v5698_v37 }
 0x57d   :  { %6231 = vst.msk [vmem:[%s13368_s8 + $0xd0] sm:$0xff] %vm14471_vm8, %v6199_v48  ;;  %v5703_v3 = vsel %vm5701_vm9, %v5702_v24, %v5700_v42  ;;  %v5721_v36 = vsel %vm5720_vm11, %v13268_v4, %v5719_v21  ;;  %v5712_v45 = vmul.f32 %v8480_v47, %v13274_v23  ;;  %v14474_v4 = vld [vmem:[#allocation14_spill] sm:$0xff] }
 0x57e   :  { %v8482_v30 = vpop.eup %8481  ;;  %v6202_v22 = vmul.f32 %v6170_v2, %v14472_v31  ;;  %v6169_v62 = vmul.f32 %v8472_v29, %v5703_v3  ;;  %v5724_v7 = vsel %vm5722_vm6, %v5723_v49, %v5721_v36 }
 0x57f   :  { %v6172_v40 = vmul.f32 %v8478_v56, %v5724_v7  ;;  %v5714_v16 = vsel %vm5713_vm13, %v13274_v23, %v5712_v45  ;;  %v14478_v23 = vld [vmem:[#allocation16_spill] sm:$0xff] }
 0x580   :  { %6234 = vst.msk [vmem:[%s13368_s8 + $0xe8] sm:$0xff] %vm14473_vm12, %v6202_v22  ;;  %v6201_v44 = vmul.f32 %v6169_v62, %v14474_v4  ;;  %v5717_v12 = vsel %vm5715_vm10, %v5716_v11, %v5714_v16 }
 0x581   :  { %v6204_v25 = vmul.f32 %v6172_v40, %v14475_v33  ;;  %v6171_v55 = vmul.f32 %v8482_v30, %v5717_v12 }
 0x582   :  { %6233 = vst.msk [vmem:[%s13368_s8 + $0xe0] sm:$0xff] %vm14476_vm15, %v6201_v44 }
 0x583   :  { %6236 = vst.msk [vmem:[%s13368_s8 + $0xf8] sm:$0xff] %vm14477_vm14, %v6204_v25  ;;  %v6203_v34 = vmul.f32 %v6171_v55, %v14478_v23 }
 0x585   :  { %6235 = vst.msk [vmem:[%s13368_s8 + $0xf0] sm:$0xff] %vm14479_vm3, %v6203_v34 }
 0x586   :  { %8555 = dma.done.wait [#allocation3], 4096  }
 0x587   :  { %8556 = vsyncadd [#allocation3], 4294963200 }
 0x588   :  { %8557 = dma.done.wait [#allocation5], 4096  }
 0x589   :  { %8558 = vsyncadd [#allocation5], 4294963200 }
 0x58a   :  { %6271 = vsyncpa [#allocation3], 1 }
 0x58b   :  { %6272 = vsyncpa [#allocation5], 1 }

</bundles_post_ra>
